<compile_context>
chip_gen: v7x
topology: tpu7x:2x2x1
jax: 0.10.0
libtpu: 0.0.40
codegen_flags: <defaults>
</compile_context>

<pallas_src>
import functools

import jax
import jax.numpy as jnp
from jax.experimental import pallas as pl
from jax.experimental.pallas import tpu as pltpu  # noqa: F401  (not needed at these sizes)


def _round_up(x, m):
    return (x + m - 1) // m * m


# --------------------------------------------------------------------------
# FC kernel: y = z @ W^T + b   (single step, whole operands in VMEM)
# --------------------------------------------------------------------------
def _fc_kernel(z_ref, w_ref, b_ref, o_ref):
    o_ref[...] = (
        jnp.dot(z_ref[...], w_ref[...], preferred_element_type=jnp.float32)
        + b_ref[...]
    )


def fc(z, w_t, b_row):
    n = z.shape[0]
    out_f = w_t.shape[1]
    return pl.pallas_call(
        _fc_kernel,
        out_shape=jax.ShapeDtypeStruct((n, out_f), jnp.float32),
    )(z, w_t, b_row)


# --------------------------------------------------------------------------
# Stride-2 deconv (k=4, s=2, p=1, bias=False) + folded eval-BN + LeakyReLU(0.1)
# Sub-pixel decomposition: 4 output phases, 2x2 taps each, accumulated in-register.
# --------------------------------------------------------------------------
def _deconv_s2_kernel(x_ref, w_ref, scale_ref, bias_ref, o_ref, *,
                      wp, m_out, cout, slope):
    # x_ref:     (Cin, Wcols)   channels on sublanes, flat padded spatial on lanes
    # w_ref:     (16*Cout, Cin) (phase, tap) sub-kernels, each transposed to (Cout, Cin)
    # scale/bias:(Cout, 1)      folded eval-mode BatchNorm affine
    # o_ref:     (4*Cout, m_out) the 4 sub-pixel phase outputs stacked on sublanes
    scale = scale_ref[...]
    bias = bias_ref[...]

    # 9 distinct shifted views of the single VMEM-resident input, reused by the
    # 16 (phase, tap) pairs.  All slice starts are static.
    shifted = {}
    for dy in range(3):
        for dx in range(3):
            shifted[(dy, dx)] = x_ref[:, pl.ds(dy * wp + dx, m_out)]

    for p in range(4):                      # phase = (py, px) output-pixel parity
        py, px = p // 2, p % 2
        acc = None
        for a in range(2):                  # 2x2 taps of this phase
            for b in range(2):
                t = 4 * p + 2 * a + b
                w_tap = w_ref[pl.ds(t * cout, cout), :]            # (Cout, Cin)
                contrib = jnp.dot(w_tap, shifted[(a + py, b + px)],
                                  preferred_element_type=jnp.float32)
                acc = contrib if acc is None else acc + contrib
        y = acc * scale + bias
        y = jnp.where(y > 0, y, slope * y)                          # LeakyReLU(0.1)
        o_ref[pl.ds(p * cout, cout), :] = y.astype(o_ref.dtype)


def deconv_s2(x_cnhw, w_taps, scale, bias, *, slope=0.1):
    """x_cnhw: (Cin, N, H, W) -> (Cout, N, 2H, 2W)."""
    cin, n, h, w = x_cnhw.shape
    cout = w_taps.shape[0] // 16
    hp, wp = h + 2, w + 2
    m = n * hp * wp
    m_out = _round_up(m, 128)                      # lane-dense output width
    wcols = _round_up(m_out + 2 * wp + 2, 128)     # room for the largest tap shift

    xp = jnp.pad(x_cnhw, ((0, 0), (0, 0), (1, 1), (1, 1)))
    xf = jnp.pad(xp.reshape(cin, m), ((0, 0), (0, wcols - m)))

    out = pl.pallas_call(
        functools.partial(_deconv_s2_kernel, wp=wp, m_out=m_out, cout=cout,
                          slope=slope),
        out_shape=jax.ShapeDtypeStruct((4 * cout, m_out), jnp.float32),
    )(xf, w_taps, scale, bias)

    # depth-to-space: out[(py,px,c), (n,i,j)] -> y[c, n, 2i+py, 2j+px]  (layout glue)
    out = out.reshape(2, 2, cout, m_out)[:, :, :, :m]
    out = out.reshape(2, 2, cout, n, hp, wp)[:, :, :, :, :h, :w]
    return out.transpose(2, 3, 4, 0, 5, 1).reshape(cout, n, 2 * h, 2 * w)


# --------------------------------------------------------------------------
# Final layer: ConvTranspose2d(k=3, s=1, p=1, bias=False) + tanh
# (= 3x3 conv of the 1-padded input with the spatially flipped kernel)
# --------------------------------------------------------------------------
def _conv_s1_tanh_kernel(x_ref, w_ref, o_ref, *, wp, m_out, cpad):
    acc = None
    for ky in range(3):
        for kx in range(3):
            t = 3 * ky + kx
            w_tap = w_ref[pl.ds(t * cpad, cpad), :]        # (Cpad, Cin)
            xs = x_ref[:, pl.ds(ky * wp + kx, m_out)]      # (Cin, m_out)
            contrib = jnp.dot(w_tap, xs, preferred_element_type=jnp.float32)
            acc = contrib if acc is None else acc + contrib
    o_ref[...] = jnp.tanh(acc).astype(o_ref.dtype)


def conv_s1_tanh(x_cnhw, w_taps, cout):
    """x_cnhw: (Cin, N, H, W) -> (N, cout, H, W) in NCHW."""
    cin, n, h, w = x_cnhw.shape
    cpad = w_taps.shape[0] // 9                    # Cout padded to 8 sublanes
    hp, wp = h + 2, w + 2
    m = n * hp * wp
    m_out = _round_up(m, 128)
    wcols = _round_up(m_out + 2 * wp + 2, 128)

    xp = jnp.pad(x_cnhw, ((0, 0), (0, 0), (1, 1), (1, 1)))
    xf = jnp.pad(xp.reshape(cin, m), ((0, 0), (0, wcols - m)))

    out = pl.pallas_call(
        functools.partial(_conv_s1_tanh_kernel, wp=wp, m_out=m_out, cpad=cpad),
        out_shape=jax.ShapeDtypeStruct((cpad, m_out), jnp.float32),
    )(xf, w_taps)

    out = out[:cout, :m].reshape(cout, n, hp, wp)[:, :, :h, :w]
    return out.transpose(1, 0, 2, 3)               # NCHW


# --------------------------------------------------------------------------
# Parameters: raw (torch-layout) init + one-time kernel-ready preparation
# --------------------------------------------------------------------------
def init_params(key, z_size, conv_dim):
    ks = jax.random.split(key, 16)
    p = {}
    fc_out = conv_dim * 32 * 4 * 4
    p["fc_w"] = 0.05 * jax.random.normal(ks[0], (fc_out, z_size), jnp.float32)
    p["fc_b"] = 0.01 * jax.random.normal(ks[1], (fc_out,), jnp.float32)

    chans = [conv_dim * 32, conv_dim * 16, conv_dim * 8, conv_dim * 4, 3]
    kernels = [4, 4, 4, 3]
    for i in range(4):
        cin, cout, k = chans[i], chans[i + 1], kernels[i]
        p[f"w{i + 1}"] = 0.05 * jax.random.normal(
            ks[2 + 3 * i], (cin, cout, k, k), jnp.float32)
        if i < 3:  # deconv4 has no batch norm
            p[f"gamma{i + 1}"] = 1.0 + 0.1 * jax.random.normal(
                ks[3 + 3 * i], (cout,), jnp.float32)
            p[f"beta{i + 1}"] = 0.1 * jax.random.normal(
                ks[4 + 3 * i], (cout,), jnp.float32)
    return p


def prepare_params(params, eps=1e-5):
    """One-time weight preprocessing (hoisted out of the forward path)."""
    prep = {}
    prep["fc_wt"] = params["fc_w"].T                      # (z, fc_out)
    prep["fc_b"] = params["fc_b"].reshape(1, -1)

    # stride-2 layers: per (phase, tap) sub-kernels, transposed to (Cout, Cin).
    # Phase (py,px), tap (a,b) multiplies xpad[:, i+a+py, j+b+px] by
    # w[:, :, 3-(2a+py), 3-(2b+px)]  (sub-pixel decomposition of the deconv).
    for i in (1, 2, 3):
        w = params[f"w{i}"]                               # (Cin, Cout, 4, 4)
        cout = w.shape[1]
        taps = []
        for py in range(2):
            for px in range(2):
                for a in range(2):
                    for b in range(2):
                        ky, kx = 3 - (2 * a + py), 3 - (2 * b + px)
                        taps.append(w[:, :, ky, kx].T)    # (Cout, Cin)
        prep[f"w{i}"] = jnp.concatenate(taps, axis=0)     # (16*Cout, Cin)
        # eval-mode BatchNorm (running_mean=0, running_var=1) folded:
        prep[f"scale{i}"] = (params[f"gamma{i}"] / jnp.sqrt(1.0 + eps)).reshape(cout, 1)
        prep[f"bias{i}"] = params[f"beta{i}"].reshape(cout, 1)

    # final k=3, s=1, p=1 layer: flipped taps, Cout padded to 8 sublanes.
    w4 = params["w4"]                                     # (Cin, 3, 3, 3)
    cout = w4.shape[1]
    cpad = 8
    taps = []
    for ky in range(3):
        for kx in range(3):
            t = w4[:, :, 2 - ky, 2 - kx].T                # (3, Cin)
            taps.append(jnp.pad(t, ((0, cpad - cout), (0, 0))))
    prep["w4"] = jnp.concatenate(taps, axis=0)            # (9*8, Cin)
    return prep


# --------------------------------------------------------------------------
# Forward pass
# --------------------------------------------------------------------------
def generator_forward(prep, z):
    n = z.shape[0]
    h = fc(z, prep["fc_wt"], prep["fc_b"])                # (N, conv_dim*32*16)
    c0 = h.shape[1] // 16
    # torch: view(N, conv_dim*32, 4, 4); we carry activations channels-first.
    x = h.reshape(n, c0, 4, 4).transpose(1, 0, 2, 3)      # (C, N, 4, 4)

    for i in (1, 2, 3):
        x = deconv_s2(x, prep[f"w{i}"], prep[f"scale{i}"], prep[f"bias{i}"],
                      slope=0.1)
        # TODO(synk): nn.Dropout(0.4) is identity in eval mode; omitted.

    return conv_s1_tanh(x, prep["w4"], cout=3)            # (N, 3, 32, 32) NCHW


if __name__ == "__main__":
    z_size = 32
    conv_dim = 4
    batch = 2

    key = jax.random.PRNGKey(0)
    kz, kp = jax.random.split(key)
    z = jax.random.normal(kz, (batch, z_size), jnp.float32)

    raw_params = init_params(kp, z_size, conv_dim)
    prep = prepare_params(raw_params)       # hoisted, runs once

    fwd = jax.jit(generator_forward)
    out = jax.block_until_ready(fwd(prep, z))

    assert out.shape == (batch, 3, 32, 32), out.shape
    assert bool(jnp.all(jnp.isfinite(out)))
    assert bool(jnp.all(jnp.abs(out) <= 1.0))  # tanh output range
    print("KERNEL_OK")
</pallas_src>

<mosaic_0001>
module attributes {stable_mosaic.version = 11 : i64} {
  func.func @_fc_kernel(%arg0: memref<2x32xf32, #tpu.memory_space<vmem>>, %arg1: memref<32x2048xf32, #tpu.memory_space<vmem>>, %arg2: memref<1x2048xf32, #tpu.memory_space<vmem>>, %arg3: memref<2x2048xf32, #tpu.memory_space<vmem>>) attributes {dimension_semantics = [], scalar_prefetch = 0 : i64, scratch_operands = 0 : i64, tpu.core_type = #tpu.core_type<tc>} {
    %c0 = arith.constant 0 : index
    %c0_0 = arith.constant 0 : index
    %0 = vector.load %arg0[%c0, %c0_0] : memref<2x32xf32, #tpu.memory_space<vmem>>, vector<2x32xf32>
    %c0_1 = arith.constant 0 : index
    %c0_2 = arith.constant 0 : index
    %1 = vector.load %arg1[%c0_1, %c0_2] : memref<32x2048xf32, #tpu.memory_space<vmem>>, vector<32x2048xf32>
    %cst = arith.constant dense<0.000000e+00> : vector<2x2048xf32>
    %2 = tpu.matmul %0, %1, %cst {dimension_numbers = #tpu.dot_dimension_numbers<[1], [0], [0], [1], [0, 0, 1, 1], [], []>} : vector<2x32xf32>, vector<32x2048xf32>, vector<2x2048xf32> -> vector<2x2048xf32>
    %c0_3 = arith.constant 0 : index
    %c0_4 = arith.constant 0 : index
    %3 = vector.load %arg2[%c0_3, %c0_4] : memref<1x2048xf32, #tpu.memory_space<vmem>>, vector<1x2048xf32>
    %4 = vector.broadcast %3 : vector<1x2048xf32> to vector<2x2048xf32>
    %5 = arith.addf %2, %4 : vector<2x2048xf32>
    %c0_5 = arith.constant 0 : index
    %c0_6 = arith.constant 0 : index
    %6 = vector.load %arg3[%c0_5, %c0_6] : memref<2x2048xf32, #tpu.memory_space<vmem>>, vector<2x2048xf32>
    tpu.vector_store %arg3[%c0_5, %c0_6], %5 {strides = array<i32>} : memref<2x2048xf32, #tpu.memory_space<vmem>>, vector<2x2048xf32>,
    return
  }
}

module attributes {stable_mosaic.version = 11 : i64} {
  func.func @_deconv_s2_kernel(%arg0: memref<128x256xf32, #tpu.memory_space<vmem>>, %arg1: memref<1024x128xf32, #tpu.memory_space<vmem>>, %arg2: memref<64x1xf32, #tpu.memory_space<vmem>>, %arg3: memref<64x1xf32, #tpu.memory_space<vmem>>, %arg4: memref<256x128xf32, #tpu.memory_space<vmem>>) attributes {dimension_semantics = [], scalar_prefetch = 0 : i64, scratch_operands = 0 : i64, tpu.core_type = #tpu.core_type<tc>} {
    %c0 = arith.constant 0 : index
    %c0_0 = arith.constant 0 : index
    %0 = vector.load %arg2[%c0, %c0_0] : memref<64x1xf32, #tpu.memory_space<vmem>>, vector<64x1xf32>
    %c0_1 = arith.constant 0 : index
    %c0_2 = arith.constant 0 : index
    %1 = vector.load %arg3[%c0_1, %c0_2] : memref<64x1xf32, #tpu.memory_space<vmem>>, vector<64x1xf32>
    %c0_3 = arith.constant 0 : index
    %c0_4 = arith.constant 0 : index
    %2 = vector.load %arg0[%c0_3, %c0_4] : memref<128x256xf32, #tpu.memory_space<vmem>>, vector<128x128xf32>
    %c0_5 = arith.constant 0 : index
    %c1 = arith.constant 1 : index
    %3 = vector.load %arg0[%c0_5, %c1] : memref<128x256xf32, #tpu.memory_space<vmem>>, vector<128x128xf32>
    %c0_6 = arith.constant 0 : index
    %c2 = arith.constant 2 : index
    %4 = vector.load %arg0[%c0_6, %c2] : memref<128x256xf32, #tpu.memory_space<vmem>>, vector<128x128xf32>
    %c0_7 = arith.constant 0 : index
    %c6 = arith.constant 6 : index
    %5 = vector.load %arg0[%c0_7, %c6] : memref<128x256xf32, #tpu.memory_space<vmem>>, vector<128x128xf32>
    %c0_8 = arith.constant 0 : index
    %c7 = arith.constant 7 : index
    %6 = vector.load %arg0[%c0_8, %c7] : memref<128x256xf32, #tpu.memory_space<vmem>>, vector<128x128xf32>
    %c0_9 = arith.constant 0 : index
    %c8 = arith.constant 8 : index
    %7 = vector.load %arg0[%c0_9, %c8] : memref<128x256xf32, #tpu.memory_space<vmem>>, vector<128x128xf32>
    %c0_10 = arith.constant 0 : index
    %c12 = arith.constant 12 : index
    %8 = vector.load %arg0[%c0_10, %c12] : memref<128x256xf32, #tpu.memory_space<vmem>>, vector<128x128xf32>
    %c0_11 = arith.constant 0 : index
    %c13 = arith.constant 13 : index
    %9 = vector.load %arg0[%c0_11, %c13] : memref<128x256xf32, #tpu.memory_space<vmem>>, vector<128x128xf32>
    %c0_12 = arith.constant 0 : index
    %c14 = arith.constant 14 : index
    %10 = vector.load %arg0[%c0_12, %c14] : memref<128x256xf32, #tpu.memory_space<vmem>>, vector<128x128xf32>
    %c0_13 = arith.constant 0 : index
    %c0_14 = arith.constant 0 : index
    %11 = vector.load %arg1[%c0_13, %c0_14] : memref<1024x128xf32, #tpu.memory_space<vmem>>, vector<64x128xf32>
    %cst = arith.constant dense<0.000000e+00> : vector<64x128xf32>
    %12 = tpu.matmul %11, %2, %cst {dimension_numbers = #tpu.dot_dimension_numbers<[1], [0], [0], [1], [0, 0, 1, 1], [], []>} : vector<64x128xf32>, vector<128x128xf32>, vector<64x128xf32> -> vector<64x128xf32>
    %c64 = arith.constant 64 : index
    %c0_15 = arith.constant 0 : index
    %13 = vector.load %arg1[%c64, %c0_15] : memref<1024x128xf32, #tpu.memory_space<vmem>>, vector<64x128xf32>
    %cst_16 = arith.constant dense<0.000000e+00> : vector<64x128xf32>
    %14 = tpu.matmul %13, %3, %cst_16 {dimension_numbers = #tpu.dot_dimension_numbers<[1], [0], [0], [1], [0, 0, 1, 1], [], []>} : vector<64x128xf32>, vector<128x128xf32>, vector<64x128xf32> -> vector<64x128xf32>
    %15 = arith.addf %12, %14 : vector<64x128xf32>
    %c128 = arith.constant 128 : index
    %c0_17 = arith.constant 0 : index
    %16 = vector.load %arg1[%c128, %c0_17] : memref<1024x128xf32, #tpu.memory_space<vmem>>, vector<64x128xf32>
    %cst_18 = arith.constant dense<0.000000e+00> : vector<64x128xf32>
    %17 = tpu.matmul %16, %5, %cst_18 {dimension_numbers = #tpu.dot_dimension_numbers<[1], [0], [0], [1], [0, 0, 1, 1], [], []>} : vector<64x128xf32>, vector<128x128xf32>, vector<64x128xf32> -> vector<64x128xf32>
    %18 = arith.addf %15, %17 : vector<64x128xf32>
    %c192 = arith.constant 192 : index
    %c0_19 = arith.constant 0 : index
    %19 = vector.load %arg1[%c192, %c0_19] : memref<1024x128xf32, #tpu.memory_space<vmem>>, vector<64x128xf32>
    %cst_20 = arith.constant dense<0.000000e+00> : vector<64x128xf32>
    %20 = tpu.matmul %19, %6, %cst_20 {dimension_numbers = #tpu.dot_dimension_numbers<[1], [0], [0], [1], [0, 0, 1, 1], [], []>} : vector<64x128xf32>, vector<128x128xf32>, vector<64x128xf32> -> vector<64x128xf32>
    %21 = arith.addf %18, %20 : vector<64x128xf32>
    %22 = vector.broadcast %0 : vector<64x1xf32> to vector<64x128xf32>
    %23 = arith.mulf %21, %22 : vector<64x128xf32>
    %24 = vector.broadcast %1 : vector<64x1xf32> to vector<64x128xf32>
    %25 = arith.addf %23, %24 : vector<64x128xf32>
    %cst_21 = arith.constant 0.000000e+00 : f32
    %26 = vector.broadcast %cst_21 : f32 to vector<64x128xf32>
    %27 = arith.cmpf ogt, %25, %26 : vector<64x128xf32>
    %cst_22 = arith.constant 1.000000e-01 : f32
    %28 = vector.broadcast %cst_22 : f32 to vector<64x128xf32>
    %29 = arith.mulf %28, %25 : vector<64x128xf32>
    %30 = arith.select %27, %25, %29 : vector<64x128xi1>, vector<64x128xf32>
    %c0_23 = arith.constant 0 : index
    %c0_24 = arith.constant 0 : index
    %31 = vector.load %arg4[%c0_23, %c0_24] : memref<256x128xf32, #tpu.memory_space<vmem>>, vector<64x128xf32>
    tpu.vector_store %arg4[%c0_23, %c0_24], %30 {strides = array<i32>} : memref<256x128xf32, #tpu.memory_space<vmem>>, vector<64x128xf32>,
    %c256 = arith.constant 256 : index
    %c0_25 = arith.constant 0 : index
    %32 = vector.load %arg1[%c256, %c0_25] : memref<1024x128xf32, #tpu.memory_space<vmem>>, vector<64x128xf32>
    %cst_26 = arith.constant dense<0.000000e+00> : vector<64x128xf32>
    %33 = tpu.matmul %32, %3, %cst_26 {dimension_numbers = #tpu.dot_dimension_numbers<[1], [0], [0], [1], [0, 0, 1, 1], [], []>} : vector<64x128xf32>, vector<128x128xf32>, vector<64x128xf32> -> vector<64x128xf32>
    %c320 = arith.constant 320 : index
    %c0_27 = arith.constant 0 : index
    %34 = vector.load %arg1[%c320, %c0_27] : memref<1024x128xf32, #tpu.memory_space<vmem>>, vector<64x128xf32>
    %cst_28 = arith.constant dense<0.000000e+00> : vector<64x128xf32>
    %35 = tpu.matmul %34, %4, %cst_28 {dimension_numbers = #tpu.dot_dimension_numbers<[1], [0], [0], [1], [0, 0, 1, 1], [], []>} : vector<64x128xf32>, vector<128x128xf32>, vector<64x128xf32> -> vector<64x128xf32>
    %36 = arith.addf %33, %35 : vector<64x128xf32>
    %c384 = arith.constant 384 : index
    %c0_29 = arith.constant 0 : index
    %37 = vector.load %arg1[%c384, %c0_29] : memref<1024x128xf32, #tpu.memory_space<vmem>>, vector<64x128xf32>
    %cst_30 = arith.constant dense<0.000000e+00> : vector<64x128xf32>
    %38 = tpu.matmul %37, %6, %cst_30 {dimension_numbers = #tpu.dot_dimension_numbers<[1], [0], [0], [1], [0, 0, 1, 1], [], []>} : vector<64x128xf32>, vector<128x128xf32>, vector<64x128xf32> -> vector<64x128xf32>
    %39 = arith.addf %36, %38 : vector<64x128xf32>
    %c448 = arith.constant 448 : index
    %c0_31 = arith.constant 0 : index
    %40 = vector.load %arg1[%c448, %c0_31] : memref<1024x128xf32, #tpu.memory_space<vmem>>, vector<64x128xf32>
    %cst_32 = arith.constant dense<0.000000e+00> : vector<64x128xf32>
    %41 = tpu.matmul %40, %7, %cst_32 {dimension_numbers = #tpu.dot_dimension_numbers<[1], [0], [0], [1], [0, 0, 1, 1], [], []>} : vector<64x128xf32>, vector<128x128xf32>, vector<64x128xf32> -> vector<64x128xf32>
    %42 = arith.addf %39, %41 : vector<64x128xf32>
    %43 = vector.broadcast %0 : vector<64x1xf32> to vector<64x128xf32>
    %44 = arith.mulf %42, %43 : vector<64x128xf32>
    %45 = vector.broadcast %1 : vector<64x1xf32> to vector<64x128xf32>
    %46 = arith.addf %44, %45 : vector<64x128xf32>
    %cst_33 = arith.constant 0.000000e+00 : f32
    %47 = vector.broadcast %cst_33 : f32 to vector<64x128xf32>
    %48 = arith.cmpf ogt, %46, %47 : vector<64x128xf32>
    %cst_34 = arith.constant 1.000000e-01 : f32
    %49 = vector.broadcast %cst_34 : f32 to vector<64x128xf32>
    %50 = arith.mulf %49, %46 : vector<64x128xf32>
    %51 = arith.select %48, %46, %50 : vector<64x128xi1>, vector<64x128xf32>
    %c64_35 = arith.constant 64 : index
    %c0_36 = arith.constant 0 : index
    %52 = vector.load %arg4[%c64_35, %c0_36] : memref<256x128xf32, #tpu.memory_space<vmem>>, vector<64x128xf32>
    tpu.vector_store %arg4[%c64_35, %c0_36], %51 {strides = array<i32>} : memref<256x128xf32, #tpu.memory_space<vmem>>, vector<64x128xf32>,
    %c512 = arith.constant 512 : index
    %c0_37 = arith.constant 0 : index
    %53 = vector.load %arg1[%c512, %c0_37] : memref<1024x128xf32, #tpu.memory_space<vmem>>, vector<64x128xf32>
    %cst_38 = arith.constant dense<0.000000e+00> : vector<64x128xf32>
    %54 = tpu.matmul %53, %5, %cst_38 {dimension_numbers = #tpu.dot_dimension_numbers<[1], [0], [0], [1], [0, 0, 1, 1], [], []>} : vector<64x128xf32>, vector<128x128xf32>, vector<64x128xf32> -> vector<64x128xf32>
    %c576 = arith.constant 576 : index
    %c0_39 = arith.constant 0 : index
    %55 = vector.load %arg1[%c576, %c0_39] : memref<1024x128xf32, #tpu.memory_space<vmem>>, vector<64x128xf32>
    %cst_40 = arith.constant dense<0.000000e+00> : vector<64x128xf32>
    %56 = tpu.matmul %55, %6, %cst_40 {dimension_numbers = #tpu.dot_dimension_numbers<[1], [0], [0], [1], [0, 0, 1, 1], [], []>} : vector<64x128xf32>, vector<128x128xf32>, vector<64x128xf32> -> vector<64x128xf32>
    %57 = arith.addf %54, %56 : vector<64x128xf32>
    %c640 = arith.constant 640 : index
    %c0_41 = arith.constant 0 : index
    %58 = vector.load %arg1[%c640, %c0_41] : memref<1024x128xf32, #tpu.memory_space<vmem>>, vector<64x128xf32>
    %cst_42 = arith.constant dense<0.000000e+00> : vector<64x128xf32>
    %59 = tpu.matmul %58, %8, %cst_42 {dimension_numbers = #tpu.dot_dimension_numbers<[1], [0], [0], [1], [0, 0, 1, 1], [], []>} : vector<64x128xf32>, vector<128x128xf32>, vector<64x128xf32> -> vector<64x128xf32>
    %60 = arith.addf %57, %59 : vector<64x128xf32>
    %c704 = arith.constant 704 : index
    %c0_43 = arith.constant 0 : index
    %61 = vector.load %arg1[%c704, %c0_43] : memref<1024x128xf32, #tpu.memory_space<vmem>>, vector<64x128xf32>
    %cst_44 = arith.constant dense<0.000000e+00> : vector<64x128xf32>
    %62 = tpu.matmul %61, %9, %cst_44 {dimension_numbers = #tpu.dot_dimension_numbers<[1], [0], [0], [1], [0, 0, 1, 1], [], []>} : vector<64x128xf32>, vector<128x128xf32>, vector<64x128xf32> -> vector<64x128xf32>
    %63 = arith.addf %60, %62 : vector<64x128xf32>
    %64 = vector.broadcast %0 : vector<64x1xf32> to vector<64x128xf32>
    %65 = arith.mulf %63, %64 : vector<64x128xf32>
    %66 = vector.broadcast %1 : vector<64x1xf32> to vector<64x128xf32>
    %67 = arith.addf %65, %66 : vector<64x128xf32>
    %cst_45 = arith.constant 0.000000e+00 : f32
    %68 = vector.broadcast %cst_45 : f32 to vector<64x128xf32>
    %69 = arith.cmpf ogt, %67, %68 : vector<64x128xf32>
    %cst_46 = arith.constant 1.000000e-01 : f32
    %70 = vector.broadcast %cst_46 : f32 to vector<64x128xf32>
    %71 = arith.mulf %70, %67 : vector<64x128xf32>
    %72 = arith.select %69, %67, %71 : vector<64x128xi1>, vector<64x128xf32>
    %c128_47 = arith.constant 128 : index
    %c0_48 = arith.constant 0 : index
    %73 = vector.load %arg4[%c128_47, %c0_48] : memref<256x128xf32, #tpu.memory_space<vmem>>, vector<64x128xf32>
    tpu.vector_store %arg4[%c128_47, %c0_48], %72 {strides = array<i32>} : memref<256x128xf32, #tpu.memory_space<vmem>>, vector<64x128xf32>,
    %c768 = arith.constant 768 : index
    %c0_49 = arith.constant 0 : index
    %74 = vector.load %arg1[%c768, %c0_49] : memref<1024x128xf32, #tpu.memory_space<vmem>>, vector<64x128xf32>
    %cst_50 = arith.constant dense<0.000000e+00> : vector<64x128xf32>
    %75 = tpu.matmul %74, %6, %cst_50 {dimension_numbers = #tpu.dot_dimension_numbers<[1], [0], [0], [1], [0, 0, 1, 1], [], []>} : vector<64x128xf32>, vector<128x128xf32>, vector<64x128xf32> -> vector<64x128xf32>
    %c832 = arith.constant 832 : index
    %c0_51 = arith.constant 0 : index
    %76 = vector.load %arg1[%c832, %c0_51] : memref<1024x128xf32, #tpu.memory_space<vmem>>, vector<64x128xf32>
    %cst_52 = arith.constant dense<0.000000e+00> : vector<64x128xf32>
    %77 = tpu.matmul %76, %7, %cst_52 {dimension_numbers = #tpu.dot_dimension_numbers<[1], [0], [0], [1], [0, 0, 1, 1], [], []>} : vector<64x128xf32>, vector<128x128xf32>, vector<64x128xf32> -> vector<64x128xf32>
    %78 = arith.addf %75, %77 : vector<64x128xf32>
    %c896 = arith.constant 896 : index
    %c0_53 = arith.constant 0 : index
    %79 = vector.load %arg1[%c896, %c0_53] : memref<1024x128xf32, #tpu.memory_space<vmem>>, vector<64x128xf32>
    %cst_54 = arith.constant dense<0.000000e+00> : vector<64x128xf32>
    %80 = tpu.matmul %79, %9, %cst_54 {dimension_numbers = #tpu.dot_dimension_numbers<[1], [0], [0], [1], [0, 0, 1, 1], [], []>} : vector<64x128xf32>, vector<128x128xf32>, vector<64x128xf32> -> vector<64x128xf32>
    %81 = arith.addf %78, %80 : vector<64x128xf32>
    %c960 = arith.constant 960 : index
    %c0_55 = arith.constant 0 : index
    %82 = vector.load %arg1[%c960, %c0_55] : memref<1024x128xf32, #tpu.memory_space<vmem>>, vector<64x128xf32>
    %cst_56 = arith.constant dense<0.000000e+00> : vector<64x128xf32>
    %83 = tpu.matmul %82, %10, %cst_56 {dimension_numbers = #tpu.dot_dimension_numbers<[1], [0], [0], [1], [0, 0, 1, 1], [], []>} : vector<64x128xf32>, vector<128x128xf32>, vector<64x128xf32> -> vector<64x128xf32>
    %84 = arith.addf %81, %83 : vector<64x128xf32>
    %85 = vector.broadcast %0 : vector<64x1xf32> to vector<64x128xf32>
    %86 = arith.mulf %84, %85 : vector<64x128xf32>
    %87 = vector.broadcast %1 : vector<64x1xf32> to vector<64x128xf32>
    %88 = arith.addf %86, %87 : vector<64x128xf32>
    %cst_57 = arith.constant 0.000000e+00 : f32
    %89 = vector.broadcast %cst_57 : f32 to vector<64x128xf32>
    %90 = arith.cmpf ogt, %88, %89 : vector<64x128xf32>
    %cst_58 = arith.constant 1.000000e-01 : f32
    %91 = vector.broadcast %cst_58 : f32 to vector<64x128xf32>
    %92 = arith.mulf %91, %88 : vector<64x128xf32>
    %93 = arith.select %90, %88, %92 : vector<64x128xi1>, vector<64x128xf32>
    %c192_59 = arith.constant 192 : index
    %c0_60 = arith.constant 0 : index
    %94 = vector.load %arg4[%c192_59, %c0_60] : memref<256x128xf32, #tpu.memory_space<vmem>>, vector<64x128xf32>
    tpu.vector_store %arg4[%c192_59, %c0_60], %93 {strides = array<i32>} : memref<256x128xf32, #tpu.memory_space<vmem>>, vector<64x128xf32>,
    return
  }
}

module attributes {stable_mosaic.version = 11 : i64} {
  func.func @_deconv_s2_kernel(%arg0: memref<64x384xf32, #tpu.memory_space<vmem>>, %arg1: memref<512x64xf32, #tpu.memory_space<vmem>>, %arg2: memref<32x1xf32, #tpu.memory_space<vmem>>, %arg3: memref<32x1xf32, #tpu.memory_space<vmem>>, %arg4: memref<128x256xf32, #tpu.memory_space<vmem>>) attributes {dimension_semantics = [], scalar_prefetch = 0 : i64, scratch_operands = 0 : i64, tpu.core_type = #tpu.core_type<tc>} {
    %c0 = arith.constant 0 : index
    %c0_0 = arith.constant 0 : index
    %0 = vector.load %arg2[%c0, %c0_0] : memref<32x1xf32, #tpu.memory_space<vmem>>, vector<32x1xf32>
    %c0_1 = arith.constant 0 : index
    %c0_2 = arith.constant 0 : index
    %1 = vector.load %arg3[%c0_1, %c0_2] : memref<32x1xf32, #tpu.memory_space<vmem>>, vector<32x1xf32>
    %c0_3 = arith.constant 0 : index
    %c0_4 = arith.constant 0 : index
    %2 = vector.load %arg0[%c0_3, %c0_4] : memref<64x384xf32, #tpu.memory_space<vmem>>, vector<64x256xf32>
    %c0_5 = arith.constant 0 : index
    %c1 = arith.constant 1 : index
    %3 = vector.load %arg0[%c0_5, %c1] : memref<64x384xf32, #tpu.memory_space<vmem>>, vector<64x256xf32>
    %c0_6 = arith.constant 0 : index
    %c2 = arith.constant 2 : index
    %4 = vector.load %arg0[%c0_6, %c2] : memref<64x384xf32, #tpu.memory_space<vmem>>, vector<64x256xf32>
    %c0_7 = arith.constant 0 : index
    %c10 = arith.constant 10 : index
    %5 = vector.load %arg0[%c0_7, %c10] : memref<64x384xf32, #tpu.memory_space<vmem>>, vector<64x256xf32>
    %c0_8 = arith.constant 0 : index
    %c11 = arith.constant 11 : index
    %6 = vector.load %arg0[%c0_8, %c11] : memref<64x384xf32, #tpu.memory_space<vmem>>, vector<64x256xf32>
    %c0_9 = arith.constant 0 : index
    %c12 = arith.constant 12 : index
    %7 = vector.load %arg0[%c0_9, %c12] : memref<64x384xf32, #tpu.memory_space<vmem>>, vector<64x256xf32>
    %c0_10 = arith.constant 0 : index
    %c20 = arith.constant 20 : index
    %8 = vector.load %arg0[%c0_10, %c20] : memref<64x384xf32, #tpu.memory_space<vmem>>, vector<64x256xf32>
    %c0_11 = arith.constant 0 : index
    %c21 = arith.constant 21 : index
    %9 = vector.load %arg0[%c0_11, %c21] : memref<64x384xf32, #tpu.memory_space<vmem>>, vector<64x256xf32>
    %c0_12 = arith.constant 0 : index
    %c22 = arith.constant 22 : index
    %10 = vector.load %arg0[%c0_12, %c22] : memref<64x384xf32, #tpu.memory_space<vmem>>, vector<64x256xf32>
    %c0_13 = arith.constant 0 : index
    %c0_14 = arith.constant 0 : index
    %11 = vector.load %arg1[%c0_13, %c0_14] : memref<512x64xf32, #tpu.memory_space<vmem>>, vector<32x64xf32>
    %cst = arith.constant dense<0.000000e+00> : vector<32x256xf32>
    %12 = tpu.matmul %11, %2, %cst {dimension_numbers = #tpu.dot_dimension_numbers<[1], [0], [0], [1], [0, 0, 1, 1], [], []>} : vector<32x64xf32>, vector<64x256xf32>, vector<32x256xf32> -> vector<32x256xf32>
    %c32 = arith.constant 32 : index
    %c0_15 = arith.constant 0 : index
    %13 = vector.load %arg1[%c32, %c0_15] : memref<512x64xf32, #tpu.memory_space<vmem>>, vector<32x64xf32>
    %cst_16 = arith.constant dense<0.000000e+00> : vector<32x256xf32>
    %14 = tpu.matmul %13, %3, %cst_16 {dimension_numbers = #tpu.dot_dimension_numbers<[1], [0], [0], [1], [0, 0, 1, 1], [], []>} : vector<32x64xf32>, vector<64x256xf32>, vector<32x256xf32> -> vector<32x256xf32>
    %15 = arith.addf %12, %14 : vector<32x256xf32>
    %c64 = arith.constant 64 : index
    %c0_17 = arith.constant 0 : index
    %16 = vector.load %arg1[%c64, %c0_17] : memref<512x64xf32, #tpu.memory_space<vmem>>, vector<32x64xf32>
    %cst_18 = arith.constant dense<0.000000e+00> : vector<32x256xf32>
    %17 = tpu.matmul %16, %5, %cst_18 {dimension_numbers = #tpu.dot_dimension_numbers<[1], [0], [0], [1], [0, 0, 1, 1], [], []>} : vector<32x64xf32>, vector<64x256xf32>, vector<32x256xf32> -> vector<32x256xf32>
    %18 = arith.addf %15, %17 : vector<32x256xf32>
    %c96 = arith.constant 96 : index
    %c0_19 = arith.constant 0 : index
    %19 = vector.load %arg1[%c96, %c0_19] : memref<512x64xf32, #tpu.memory_space<vmem>>, vector<32x64xf32>
    %cst_20 = arith.constant dense<0.000000e+00> : vector<32x256xf32>
    %20 = tpu.matmul %19, %6, %cst_20 {dimension_numbers = #tpu.dot_dimension_numbers<[1], [0], [0], [1], [0, 0, 1, 1], [], []>} : vector<32x64xf32>, vector<64x256xf32>, vector<32x256xf32> -> vector<32x256xf32>
    %21 = arith.addf %18, %20 : vector<32x256xf32>
    %22 = vector.broadcast %0 : vector<32x1xf32> to vector<32x256xf32>
    %23 = arith.mulf %21, %22 : vector<32x256xf32>
    %24 = vector.broadcast %1 : vector<32x1xf32> to vector<32x256xf32>
    %25 = arith.addf %23, %24 : vector<32x256xf32>
    %cst_21 = arith.constant 0.000000e+00 : f32
    %26 = vector.broadcast %cst_21 : f32 to vector<32x256xf32>
    %27 = arith.cmpf ogt, %25, %26 : vector<32x256xf32>
    %cst_22 = arith.constant 1.000000e-01 : f32
    %28 = vector.broadcast %cst_22 : f32 to vector<32x256xf32>
    %29 = arith.mulf %28, %25 : vector<32x256xf32>
    %30 = arith.select %27, %25, %29 : vector<32x256xi1>, vector<32x256xf32>
    %c0_23 = arith.constant 0 : index
    %c0_24 = arith.constant 0 : index
    %31 = vector.load %arg4[%c0_23, %c0_24] : memref<128x256xf32, #tpu.memory_space<vmem>>, vector<32x256xf32>
    tpu.vector_store %arg4[%c0_23, %c0_24], %30 {strides = array<i32>} : memref<128x256xf32, #tpu.memory_space<vmem>>, vector<32x256xf32>,
    %c128 = arith.constant 128 : index
    %c0_25 = arith.constant 0 : index
    %32 = vector.load %arg1[%c128, %c0_25] : memref<512x64xf32, #tpu.memory_space<vmem>>, vector<32x64xf32>
    %cst_26 = arith.constant dense<0.000000e+00> : vector<32x256xf32>
    %33 = tpu.matmul %32, %3, %cst_26 {dimension_numbers = #tpu.dot_dimension_numbers<[1], [0], [0], [1], [0, 0, 1, 1], [], []>} : vector<32x64xf32>, vector<64x256xf32>, vector<32x256xf32> -> vector<32x256xf32>
    %c160 = arith.constant 160 : index
    %c0_27 = arith.constant 0 : index
    %34 = vector.load %arg1[%c160, %c0_27] : memref<512x64xf32, #tpu.memory_space<vmem>>, vector<32x64xf32>
    %cst_28 = arith.constant dense<0.000000e+00> : vector<32x256xf32>
    %35 = tpu.matmul %34, %4, %cst_28 {dimension_numbers = #tpu.dot_dimension_numbers<[1], [0], [0], [1], [0, 0, 1, 1], [], []>} : vector<32x64xf32>, vector<64x256xf32>, vector<32x256xf32> -> vector<32x256xf32>
    %36 = arith.addf %33, %35 : vector<32x256xf32>
    %c192 = arith.constant 192 : index
    %c0_29 = arith.constant 0 : index
    %37 = vector.load %arg1[%c192, %c0_29] : memref<512x64xf32, #tpu.memory_space<vmem>>, vector<32x64xf32>
    %cst_30 = arith.constant dense<0.000000e+00> : vector<32x256xf32>
    %38 = tpu.matmul %37, %6, %cst_30 {dimension_numbers = #tpu.dot_dimension_numbers<[1], [0], [0], [1], [0, 0, 1, 1], [], []>} : vector<32x64xf32>, vector<64x256xf32>, vector<32x256xf32> -> vector<32x256xf32>
    %39 = arith.addf %36, %38 : vector<32x256xf32>
    %c224 = arith.constant 224 : index
    %c0_31 = arith.constant 0 : index
    %40 = vector.load %arg1[%c224, %c0_31] : memref<512x64xf32, #tpu.memory_space<vmem>>, vector<32x64xf32>
    %cst_32 = arith.constant dense<0.000000e+00> : vector<32x256xf32>
    %41 = tpu.matmul %40, %7, %cst_32 {dimension_numbers = #tpu.dot_dimension_numbers<[1], [0], [0], [1], [0, 0, 1, 1], [], []>} : vector<32x64xf32>, vector<64x256xf32>, vector<32x256xf32> -> vector<32x256xf32>
    %42 = arith.addf %39, %41 : vector<32x256xf32>
    %43 = vector.broadcast %0 : vector<32x1xf32> to vector<32x256xf32>
    %44 = arith.mulf %42, %43 : vector<32x256xf32>
    %45 = vector.broadcast %1 : vector<32x1xf32> to vector<32x256xf32>
    %46 = arith.addf %44, %45 : vector<32x256xf32>
    %cst_33 = arith.constant 0.000000e+00 : f32
    %47 = vector.broadcast %cst_33 : f32 to vector<32x256xf32>
    %48 = arith.cmpf ogt, %46, %47 : vector<32x256xf32>
    %cst_34 = arith.constant 1.000000e-01 : f32
    %49 = vector.broadcast %cst_34 : f32 to vector<32x256xf32>
    %50 = arith.mulf %49, %46 : vector<32x256xf32>
    %51 = arith.select %48, %46, %50 : vector<32x256xi1>, vector<32x256xf32>
    %c32_35 = arith.constant 32 : index
    %c0_36 = arith.constant 0 : index
    %52 = vector.load %arg4[%c32_35, %c0_36] : memref<128x256xf32, #tpu.memory_space<vmem>>, vector<32x256xf32>
    tpu.vector_store %arg4[%c32_35, %c0_36], %51 {strides = array<i32>} : memref<128x256xf32, #tpu.memory_space<vmem>>, vector<32x256xf32>,
    %c256 = arith.constant 256 : index
    %c0_37 = arith.constant 0 : index
    %53 = vector.load %arg1[%c256, %c0_37] : memref<512x64xf32, #tpu.memory_space<vmem>>, vector<32x64xf32>
    %cst_38 = arith.constant dense<0.000000e+00> : vector<32x256xf32>
    %54 = tpu.matmul %53, %5, %cst_38 {dimension_numbers = #tpu.dot_dimension_numbers<[1], [0], [0], [1], [0, 0, 1, 1], [], []>} : vector<32x64xf32>, vector<64x256xf32>, vector<32x256xf32> -> vector<32x256xf32>
    %c288 = arith.constant 288 : index
    %c0_39 = arith.constant 0 : index
    %55 = vector.load %arg1[%c288, %c0_39] : memref<512x64xf32, #tpu.memory_space<vmem>>, vector<32x64xf32>
    %cst_40 = arith.constant dense<0.000000e+00> : vector<32x256xf32>
    %56 = tpu.matmul %55, %6, %cst_40 {dimension_numbers = #tpu.dot_dimension_numbers<[1], [0], [0], [1], [0, 0, 1, 1], [], []>} : vector<32x64xf32>, vector<64x256xf32>, vector<32x256xf32> -> vector<32x256xf32>
    %57 = arith.addf %54, %56 : vector<32x256xf32>
    %c320 = arith.constant 320 : index
    %c0_41 = arith.constant 0 : index
    %58 = vector.load %arg1[%c320, %c0_41] : memref<512x64xf32, #tpu.memory_space<vmem>>, vector<32x64xf32>
    %cst_42 = arith.constant dense<0.000000e+00> : vector<32x256xf32>
    %59 = tpu.matmul %58, %8, %cst_42 {dimension_numbers = #tpu.dot_dimension_numbers<[1], [0], [0], [1], [0, 0, 1, 1], [], []>} : vector<32x64xf32>, vector<64x256xf32>, vector<32x256xf32> -> vector<32x256xf32>
    %60 = arith.addf %57, %59 : vector<32x256xf32>
    %c352 = arith.constant 352 : index
    %c0_43 = arith.constant 0 : index
    %61 = vector.load %arg1[%c352, %c0_43] : memref<512x64xf32, #tpu.memory_space<vmem>>, vector<32x64xf32>
    %cst_44 = arith.constant dense<0.000000e+00> : vector<32x256xf32>
    %62 = tpu.matmul %61, %9, %cst_44 {dimension_numbers = #tpu.dot_dimension_numbers<[1], [0], [0], [1], [0, 0, 1, 1], [], []>} : vector<32x64xf32>, vector<64x256xf32>, vector<32x256xf32> -> vector<32x256xf32>
    %63 = arith.addf %60, %62 : vector<32x256xf32>
    %64 = vector.broadcast %0 : vector<32x1xf32> to vector<32x256xf32>
    %65 = arith.mulf %63, %64 : vector<32x256xf32>
    %66 = vector.broadcast %1 : vector<32x1xf32> to vector<32x256xf32>
    %67 = arith.addf %65, %66 : vector<32x256xf32>
    %cst_45 = arith.constant 0.000000e+00 : f32
    %68 = vector.broadcast %cst_45 : f32 to vector<32x256xf32>
    %69 = arith.cmpf ogt, %67, %68 : vector<32x256xf32>
    %cst_46 = arith.constant 1.000000e-01 : f32
    %70 = vector.broadcast %cst_46 : f32 to vector<32x256xf32>
    %71 = arith.mulf %70, %67 : vector<32x256xf32>
    %72 = arith.select %69, %67, %71 : vector<32x256xi1>, vector<32x256xf32>
    %c64_47 = arith.constant 64 : index
    %c0_48 = arith.constant 0 : index
    %73 = vector.load %arg4[%c64_47, %c0_48] : memref<128x256xf32, #tpu.memory_space<vmem>>, vector<32x256xf32>
    tpu.vector_store %arg4[%c64_47, %c0_48], %72 {strides = array<i32>} : memref<128x256xf32, #tpu.memory_space<vmem>>, vector<32x256xf32>,
    %c384 = arith.constant 384 : index
    %c0_49 = arith.constant 0 : index
    %74 = vector.load %arg1[%c384, %c0_49] : memref<512x64xf32, #tpu.memory_space<vmem>>, vector<32x64xf32>
    %cst_50 = arith.constant dense<0.000000e+00> : vector<32x256xf32>
    %75 = tpu.matmul %74, %6, %cst_50 {dimension_numbers = #tpu.dot_dimension_numbers<[1], [0], [0], [1], [0, 0, 1, 1], [], []>} : vector<32x64xf32>, vector<64x256xf32>, vector<32x256xf32> -> vector<32x256xf32>
    %c416 = arith.constant 416 : index
    %c0_51 = arith.constant 0 : index
    %76 = vector.load %arg1[%c416, %c0_51] : memref<512x64xf32, #tpu.memory_space<vmem>>, vector<32x64xf32>
    %cst_52 = arith.constant dense<0.000000e+00> : vector<32x256xf32>
    %77 = tpu.matmul %76, %7, %cst_52 {dimension_numbers = #tpu.dot_dimension_numbers<[1], [0], [0], [1], [0, 0, 1, 1], [], []>} : vector<32x64xf32>, vector<64x256xf32>, vector<32x256xf32> -> vector<32x256xf32>
    %78 = arith.addf %75, %77 : vector<32x256xf32>
    %c448 = arith.constant 448 : index
    %c0_53 = arith.constant 0 : index
    %79 = vector.load %arg1[%c448, %c0_53] : memref<512x64xf32, #tpu.memory_space<vmem>>, vector<32x64xf32>
    %cst_54 = arith.constant dense<0.000000e+00> : vector<32x256xf32>
    %80 = tpu.matmul %79, %9, %cst_54 {dimension_numbers = #tpu.dot_dimension_numbers<[1], [0], [0], [1], [0, 0, 1, 1], [], []>} : vector<32x64xf32>, vector<64x256xf32>, vector<32x256xf32> -> vector<32x256xf32>
    %81 = arith.addf %78, %80 : vector<32x256xf32>
    %c480 = arith.constant 480 : index
    %c0_55 = arith.constant 0 : index
    %82 = vector.load %arg1[%c480, %c0_55] : memref<512x64xf32, #tpu.memory_space<vmem>>, vector<32x64xf32>
    %cst_56 = arith.constant dense<0.000000e+00> : vector<32x256xf32>
    %83 = tpu.matmul %82, %10, %cst_56 {dimension_numbers = #tpu.dot_dimension_numbers<[1], [0], [0], [1], [0, 0, 1, 1], [], []>} : vector<32x64xf32>, vector<64x256xf32>, vector<32x256xf32> -> vector<32x256xf32>
    %84 = arith.addf %81, %83 : vector<32x256xf32>
    %85 = vector.broadcast %0 : vector<32x1xf32> to vector<32x256xf32>
    %86 = arith.mulf %84, %85 : vector<32x256xf32>
    %87 = vector.broadcast %1 : vector<32x1xf32> to vector<32x256xf32>
    %88 = arith.addf %86, %87 : vector<32x256xf32>
    %cst_57 = arith.constant 0.000000e+00 : f32
    %89 = vector.broadcast %cst_57 : f32 to vector<32x256xf32>
    %90 = arith.cmpf ogt, %88, %89 : vector<32x256xf32>
    %cst_58 = arith.constant 1.000000e-01 : f32
    %91 = vector.broadcast %cst_58 : f32 to vector<32x256xf32>
    %92 = arith.mulf %91, %88 : vector<32x256xf32>
    %93 = arith.select %90, %88, %92 : vector<32x256xi1>, vector<32x256xf32>
    %c96_59 = arith.constant 96 : index
    %c0_60 = arith.constant 0 : index
    %94 = vector.load %arg4[%c96_59, %c0_60] : memref<128x256xf32, #tpu.memory_space<vmem>>, vector<32x256xf32>
    tpu.vector_store %arg4[%c96_59, %c0_60], %93 {strides = array<i32>} : memref<128x256xf32, #tpu.memory_space<vmem>>, vector<32x256xf32>,
    return
  }
}

module attributes {stable_mosaic.version = 11 : i64} {
  func.func @_deconv_s2_kernel(%arg0: memref<32x896xf32, #tpu.memory_space<vmem>>, %arg1: memref<256x32xf32, #tpu.memory_space<vmem>>, %arg2: memref<16x1xf32, #tpu.memory_space<vmem>>, %arg3: memref<16x1xf32, #tpu.memory_space<vmem>>, %arg4: memref<64x768xf32, #tpu.memory_space<vmem>>) attributes {dimension_semantics = [], scalar_prefetch = 0 : i64, scratch_operands = 0 : i64, tpu.core_type = #tpu.core_type<tc>} {
    %c0 = arith.constant 0 : index
    %c0_0 = arith.constant 0 : index
    %0 = vector.load %arg2[%c0, %c0_0] : memref<16x1xf32, #tpu.memory_space<vmem>>, vector<16x1xf32>
    %c0_1 = arith.constant 0 : index
    %c0_2 = arith.constant 0 : index
    %1 = vector.load %arg3[%c0_1, %c0_2] : memref<16x1xf32, #tpu.memory_space<vmem>>, vector<16x1xf32>
    %c0_3 = arith.constant 0 : index
    %c0_4 = arith.constant 0 : index
    %2 = vector.load %arg0[%c0_3, %c0_4] : memref<32x896xf32, #tpu.memory_space<vmem>>, vector<32x768xf32>
    %c0_5 = arith.constant 0 : index
    %c1 = arith.constant 1 : index
    %3 = vector.load %arg0[%c0_5, %c1] : memref<32x896xf32, #tpu.memory_space<vmem>>, vector<32x768xf32>
    %c0_6 = arith.constant 0 : index
    %c2 = arith.constant 2 : index
    %4 = vector.load %arg0[%c0_6, %c2] : memref<32x896xf32, #tpu.memory_space<vmem>>, vector<32x768xf32>
    %c0_7 = arith.constant 0 : index
    %c18 = arith.constant 18 : index
    %5 = vector.load %arg0[%c0_7, %c18] : memref<32x896xf32, #tpu.memory_space<vmem>>, vector<32x768xf32>
    %c0_8 = arith.constant 0 : index
    %c19 = arith.constant 19 : index
    %6 = vector.load %arg0[%c0_8, %c19] : memref<32x896xf32, #tpu.memory_space<vmem>>, vector<32x768xf32>
    %c0_9 = arith.constant 0 : index
    %c20 = arith.constant 20 : index
    %7 = vector.load %arg0[%c0_9, %c20] : memref<32x896xf32, #tpu.memory_space<vmem>>, vector<32x768xf32>
    %c0_10 = arith.constant 0 : index
    %c36 = arith.constant 36 : index
    %8 = vector.load %arg0[%c0_10, %c36] : memref<32x896xf32, #tpu.memory_space<vmem>>, vector<32x768xf32>
    %c0_11 = arith.constant 0 : index
    %c37 = arith.constant 37 : index
    %9 = vector.load %arg0[%c0_11, %c37] : memref<32x896xf32, #tpu.memory_space<vmem>>, vector<32x768xf32>
    %c0_12 = arith.constant 0 : index
    %c38 = arith.constant 38 : index
    %10 = vector.load %arg0[%c0_12, %c38] : memref<32x896xf32, #tpu.memory_space<vmem>>, vector<32x768xf32>
    %c0_13 = arith.constant 0 : index
    %c0_14 = arith.constant 0 : index
    %11 = vector.load %arg1[%c0_13, %c0_14] : memref<256x32xf32, #tpu.memory_space<vmem>>, vector<16x32xf32>
    %cst = arith.constant dense<0.000000e+00> : vector<16x768xf32>
    %12 = tpu.matmul %11, %2, %cst {dimension_numbers = #tpu.dot_dimension_numbers<[1], [0], [0], [1], [0, 0, 1, 1], [], []>} : vector<16x32xf32>, vector<32x768xf32>, vector<16x768xf32> -> vector<16x768xf32>
    %c16 = arith.constant 16 : index
    %c0_15 = arith.constant 0 : index
    %13 = vector.load %arg1[%c16, %c0_15] : memref<256x32xf32, #tpu.memory_space<vmem>>, vector<16x32xf32>
    %cst_16 = arith.constant dense<0.000000e+00> : vector<16x768xf32>
    %14 = tpu.matmul %13, %3, %cst_16 {dimension_numbers = #tpu.dot_dimension_numbers<[1], [0], [0], [1], [0, 0, 1, 1], [], []>} : vector<16x32xf32>, vector<32x768xf32>, vector<16x768xf32> -> vector<16x768xf32>
    %15 = arith.addf %12, %14 : vector<16x768xf32>
    %c32 = arith.constant 32 : index
    %c0_17 = arith.constant 0 : index
    %16 = vector.load %arg1[%c32, %c0_17] : memref<256x32xf32, #tpu.memory_space<vmem>>, vector<16x32xf32>
    %cst_18 = arith.constant dense<0.000000e+00> : vector<16x768xf32>
    %17 = tpu.matmul %16, %5, %cst_18 {dimension_numbers = #tpu.dot_dimension_numbers<[1], [0], [0], [1], [0, 0, 1, 1], [], []>} : vector<16x32xf32>, vector<32x768xf32>, vector<16x768xf32> -> vector<16x768xf32>
    %18 = arith.addf %15, %17 : vector<16x768xf32>
    %c48 = arith.constant 48 : index
    %c0_19 = arith.constant 0 : index
    %19 = vector.load %arg1[%c48, %c0_19] : memref<256x32xf32, #tpu.memory_space<vmem>>, vector<16x32xf32>
    %cst_20 = arith.constant dense<0.000000e+00> : vector<16x768xf32>
    %20 = tpu.matmul %19, %6, %cst_20 {dimension_numbers = #tpu.dot_dimension_numbers<[1], [0], [0], [1], [0, 0, 1, 1], [], []>} : vector<16x32xf32>, vector<32x768xf32>, vector<16x768xf32> -> vector<16x768xf32>
    %21 = arith.addf %18, %20 : vector<16x768xf32>
    %22 = vector.broadcast %0 : vector<16x1xf32> to vector<16x768xf32>
    %23 = arith.mulf %21, %22 : vector<16x768xf32>
    %24 = vector.broadcast %1 : vector<16x1xf32> to vector<16x768xf32>
    %25 = arith.addf %23, %24 : vector<16x768xf32>
    %cst_21 = arith.constant 0.000000e+00 : f32
    %26 = vector.broadcast %cst_21 : f32 to vector<16x768xf32>
    %27 = arith.cmpf ogt, %25, %26 : vector<16x768xf32>
    %cst_22 = arith.constant 1.000000e-01 : f32
    %28 = vector.broadcast %cst_22 : f32 to vector<16x768xf32>
    %29 = arith.mulf %28, %25 : vector<16x768xf32>
    %30 = arith.select %27, %25, %29 : vector<16x768xi1>, vector<16x768xf32>
    %c0_23 = arith.constant 0 : index
    %c0_24 = arith.constant 0 : index
    %31 = vector.load %arg4[%c0_23, %c0_24] : memref<64x768xf32, #tpu.memory_space<vmem>>, vector<16x768xf32>
    tpu.vector_store %arg4[%c0_23, %c0_24], %30 {strides = array<i32>} : memref<64x768xf32, #tpu.memory_space<vmem>>, vector<16x768xf32>,
    %c64 = arith.constant 64 : index
    %c0_25 = arith.constant 0 : index
    %32 = vector.load %arg1[%c64, %c0_25] : memref<256x32xf32, #tpu.memory_space<vmem>>, vector<16x32xf32>
    %cst_26 = arith.constant dense<0.000000e+00> : vector<16x768xf32>
    %33 = tpu.matmul %32, %3, %cst_26 {dimension_numbers = #tpu.dot_dimension_numbers<[1], [0], [0], [1], [0, 0, 1, 1], [], []>} : vector<16x32xf32>, vector<32x768xf32>, vector<16x768xf32> -> vector<16x768xf32>
    %c80 = arith.constant 80 : index
    %c0_27 = arith.constant 0 : index
    %34 = vector.load %arg1[%c80, %c0_27] : memref<256x32xf32, #tpu.memory_space<vmem>>, vector<16x32xf32>
    %cst_28 = arith.constant dense<0.000000e+00> : vector<16x768xf32>
    %35 = tpu.matmul %34, %4, %cst_28 {dimension_numbers = #tpu.dot_dimension_numbers<[1], [0], [0], [1], [0, 0, 1, 1], [], []>} : vector<16x32xf32>, vector<32x768xf32>, vector<16x768xf32> -> vector<16x768xf32>
    %36 = arith.addf %33, %35 : vector<16x768xf32>
    %c96 = arith.constant 96 : index
    %c0_29 = arith.constant 0 : index
    %37 = vector.load %arg1[%c96, %c0_29] : memref<256x32xf32, #tpu.memory_space<vmem>>, vector<16x32xf32>
    %cst_30 = arith.constant dense<0.000000e+00> : vector<16x768xf32>
    %38 = tpu.matmul %37, %6, %cst_30 {dimension_numbers = #tpu.dot_dimension_numbers<[1], [0], [0], [1], [0, 0, 1, 1], [], []>} : vector<16x32xf32>, vector<32x768xf32>, vector<16x768xf32> -> vector<16x768xf32>
    %39 = arith.addf %36, %38 : vector<16x768xf32>
    %c112 = arith.constant 112 : index
    %c0_31 = arith.constant 0 : index
    %40 = vector.load %arg1[%c112, %c0_31] : memref<256x32xf32, #tpu.memory_space<vmem>>, vector<16x32xf32>
    %cst_32 = arith.constant dense<0.000000e+00> : vector<16x768xf32>
    %41 = tpu.matmul %40, %7, %cst_32 {dimension_numbers = #tpu.dot_dimension_numbers<[1], [0], [0], [1], [0, 0, 1, 1], [], []>} : vector<16x32xf32>, vector<32x768xf32>, vector<16x768xf32> -> vector<16x768xf32>
    %42 = arith.addf %39, %41 : vector<16x768xf32>
    %43 = vector.broadcast %0 : vector<16x1xf32> to vector<16x768xf32>
    %44 = arith.mulf %42, %43 : vector<16x768xf32>
    %45 = vector.broadcast %1 : vector<16x1xf32> to vector<16x768xf32>
    %46 = arith.addf %44, %45 : vector<16x768xf32>
    %cst_33 = arith.constant 0.000000e+00 : f32
    %47 = vector.broadcast %cst_33 : f32 to vector<16x768xf32>
    %48 = arith.cmpf ogt, %46, %47 : vector<16x768xf32>
    %cst_34 = arith.constant 1.000000e-01 : f32
    %49 = vector.broadcast %cst_34 : f32 to vector<16x768xf32>
    %50 = arith.mulf %49, %46 : vector<16x768xf32>
    %51 = arith.select %48, %46, %50 : vector<16x768xi1>, vector<16x768xf32>
    %c16_35 = arith.constant 16 : index
    %c0_36 = arith.constant 0 : index
    %52 = vector.load %arg4[%c16_35, %c0_36] : memref<64x768xf32, #tpu.memory_space<vmem>>, vector<16x768xf32>
    tpu.vector_store %arg4[%c16_35, %c0_36], %51 {strides = array<i32>} : memref<64x768xf32, #tpu.memory_space<vmem>>, vector<16x768xf32>,
    %c128 = arith.constant 128 : index
    %c0_37 = arith.constant 0 : index
    %53 = vector.load %arg1[%c128, %c0_37] : memref<256x32xf32, #tpu.memory_space<vmem>>, vector<16x32xf32>
    %cst_38 = arith.constant dense<0.000000e+00> : vector<16x768xf32>
    %54 = tpu.matmul %53, %5, %cst_38 {dimension_numbers = #tpu.dot_dimension_numbers<[1], [0], [0], [1], [0, 0, 1, 1], [], []>} : vector<16x32xf32>, vector<32x768xf32>, vector<16x768xf32> -> vector<16x768xf32>
    %c144 = arith.constant 144 : index
    %c0_39 = arith.constant 0 : index
    %55 = vector.load %arg1[%c144, %c0_39] : memref<256x32xf32, #tpu.memory_space<vmem>>, vector<16x32xf32>
    %cst_40 = arith.constant dense<0.000000e+00> : vector<16x768xf32>
    %56 = tpu.matmul %55, %6, %cst_40 {dimension_numbers = #tpu.dot_dimension_numbers<[1], [0], [0], [1], [0, 0, 1, 1], [], []>} : vector<16x32xf32>, vector<32x768xf32>, vector<16x768xf32> -> vector<16x768xf32>
    %57 = arith.addf %54, %56 : vector<16x768xf32>
    %c160 = arith.constant 160 : index
    %c0_41 = arith.constant 0 : index
    %58 = vector.load %arg1[%c160, %c0_41] : memref<256x32xf32, #tpu.memory_space<vmem>>, vector<16x32xf32>
    %cst_42 = arith.constant dense<0.000000e+00> : vector<16x768xf32>
    %59 = tpu.matmul %58, %8, %cst_42 {dimension_numbers = #tpu.dot_dimension_numbers<[1], [0], [0], [1], [0, 0, 1, 1], [], []>} : vector<16x32xf32>, vector<32x768xf32>, vector<16x768xf32> -> vector<16x768xf32>
    %60 = arith.addf %57, %59 : vector<16x768xf32>
    %c176 = arith.constant 176 : index
    %c0_43 = arith.constant 0 : index
    %61 = vector.load %arg1[%c176, %c0_43] : memref<256x32xf32, #tpu.memory_space<vmem>>, vector<16x32xf32>
    %cst_44 = arith.constant dense<0.000000e+00> : vector<16x768xf32>
    %62 = tpu.matmul %61, %9, %cst_44 {dimension_numbers = #tpu.dot_dimension_numbers<[1], [0], [0], [1], [0, 0, 1, 1], [], []>} : vector<16x32xf32>, vector<32x768xf32>, vector<16x768xf32> -> vector<16x768xf32>
    %63 = arith.addf %60, %62 : vector<16x768xf32>
    %64 = vector.broadcast %0 : vector<16x1xf32> to vector<16x768xf32>
    %65 = arith.mulf %63, %64 : vector<16x768xf32>
    %66 = vector.broadcast %1 : vector<16x1xf32> to vector<16x768xf32>
    %67 = arith.addf %65, %66 : vector<16x768xf32>
    %cst_45 = arith.constant 0.000000e+00 : f32
    %68 = vector.broadcast %cst_45 : f32 to vector<16x768xf32>
    %69 = arith.cmpf ogt, %67, %68 : vector<16x768xf32>
    %cst_46 = arith.constant 1.000000e-01 : f32
    %70 = vector.broadcast %cst_46 : f32 to vector<16x768xf32>
    %71 = arith.mulf %70, %67 : vector<16x768xf32>
    %72 = arith.select %69, %67, %71 : vector<16x768xi1>, vector<16x768xf32>
    %c32_47 = arith.constant 32 : index
    %c0_48 = arith.constant 0 : index
    %73 = vector.load %arg4[%c32_47, %c0_48] : memref<64x768xf32, #tpu.memory_space<vmem>>, vector<16x768xf32>
    tpu.vector_store %arg4[%c32_47, %c0_48], %72 {strides = array<i32>} : memref<64x768xf32, #tpu.memory_space<vmem>>, vector<16x768xf32>,
    %c192 = arith.constant 192 : index
    %c0_49 = arith.constant 0 : index
    %74 = vector.load %arg1[%c192, %c0_49] : memref<256x32xf32, #tpu.memory_space<vmem>>, vector<16x32xf32>
    %cst_50 = arith.constant dense<0.000000e+00> : vector<16x768xf32>
    %75 = tpu.matmul %74, %6, %cst_50 {dimension_numbers = #tpu.dot_dimension_numbers<[1], [0], [0], [1], [0, 0, 1, 1], [], []>} : vector<16x32xf32>, vector<32x768xf32>, vector<16x768xf32> -> vector<16x768xf32>
    %c208 = arith.constant 208 : index
    %c0_51 = arith.constant 0 : index
    %76 = vector.load %arg1[%c208, %c0_51] : memref<256x32xf32, #tpu.memory_space<vmem>>, vector<16x32xf32>
    %cst_52 = arith.constant dense<0.000000e+00> : vector<16x768xf32>
    %77 = tpu.matmul %76, %7, %cst_52 {dimension_numbers = #tpu.dot_dimension_numbers<[1], [0], [0], [1], [0, 0, 1, 1], [], []>} : vector<16x32xf32>, vector<32x768xf32>, vector<16x768xf32> -> vector<16x768xf32>
    %78 = arith.addf %75, %77 : vector<16x768xf32>
    %c224 = arith.constant 224 : index
    %c0_53 = arith.constant 0 : index
    %79 = vector.load %arg1[%c224, %c0_53] : memref<256x32xf32, #tpu.memory_space<vmem>>, vector<16x32xf32>
    %cst_54 = arith.constant dense<0.000000e+00> : vector<16x768xf32>
    %80 = tpu.matmul %79, %9, %cst_54 {dimension_numbers = #tpu.dot_dimension_numbers<[1], [0], [0], [1], [0, 0, 1, 1], [], []>} : vector<16x32xf32>, vector<32x768xf32>, vector<16x768xf32> -> vector<16x768xf32>
    %81 = arith.addf %78, %80 : vector<16x768xf32>
    %c240 = arith.constant 240 : index
    %c0_55 = arith.constant 0 : index
    %82 = vector.load %arg1[%c240, %c0_55] : memref<256x32xf32, #tpu.memory_space<vmem>>, vector<16x32xf32>
    %cst_56 = arith.constant dense<0.000000e+00> : vector<16x768xf32>
    %83 = tpu.matmul %82, %10, %cst_56 {dimension_numbers = #tpu.dot_dimension_numbers<[1], [0], [0], [1], [0, 0, 1, 1], [], []>} : vector<16x32xf32>, vector<32x768xf32>, vector<16x768xf32> -> vector<16x768xf32>
    %84 = arith.addf %81, %83 : vector<16x768xf32>
    %85 = vector.broadcast %0 : vector<16x1xf32> to vector<16x768xf32>
    %86 = arith.mulf %84, %85 : vector<16x768xf32>
    %87 = vector.broadcast %1 : vector<16x1xf32> to vector<16x768xf32>
    %88 = arith.addf %86, %87 : vector<16x768xf32>
    %cst_57 = arith.constant 0.000000e+00 : f32
    %89 = vector.broadcast %cst_57 : f32 to vector<16x768xf32>
    %90 = arith.cmpf ogt, %88, %89 : vector<16x768xf32>
    %cst_58 = arith.constant 1.000000e-01 : f32
    %91 = vector.broadcast %cst_58 : f32 to vector<16x768xf32>
    %92 = arith.mulf %91, %88 : vector<16x768xf32>
    %93 = arith.select %90, %88, %92 : vector<16x768xi1>, vector<16x768xf32>
    %c48_59 = arith.constant 48 : index
    %c0_60 = arith.constant 0 : index
    %94 = vector.load %arg4[%c48_59, %c0_60] : memref<64x768xf32, #tpu.memory_space<vmem>>, vector<16x768xf32>
    tpu.vector_store %arg4[%c48_59, %c0_60], %93 {strides = array<i32>} : memref<64x768xf32, #tpu.memory_space<vmem>>, vector<16x768xf32>,
    return
  }
}

module attributes {stable_mosaic.version = 11 : i64} {
  func.func @_conv_s1_tanh_kernel(%arg0: memref<16x2560xf32, #tpu.memory_space<vmem>>, %arg1: memref<72x16xf32, #tpu.memory_space<vmem>>, %arg2: memref<8x2432xf32, #tpu.memory_space<vmem>>) attributes {dimension_semantics = [], scalar_prefetch = 0 : i64, scratch_operands = 0 : i64, tpu.core_type = #tpu.core_type<tc>} {
    %c0 = arith.constant 0 : index
    %c0_0 = arith.constant 0 : index
    %0 = vector.load %arg1[%c0, %c0_0] : memref<72x16xf32, #tpu.memory_space<vmem>>, vector<8x16xf32>
    %c0_1 = arith.constant 0 : index
    %c0_2 = arith.constant 0 : index
    %1 = vector.load %arg0[%c0_1, %c0_2] : memref<16x2560xf32, #tpu.memory_space<vmem>>, vector<16x2432xf32>
    %cst = arith.constant dense<0.000000e+00> : vector<8x2432xf32>
    %2 = tpu.matmul %0, %1, %cst {dimension_numbers = #tpu.dot_dimension_numbers<[1], [0], [0], [1], [0, 0, 1, 1], [], []>} : vector<8x16xf32>, vector<16x2432xf32>, vector<8x2432xf32> -> vector<8x2432xf32>
    %c8 = arith.constant 8 : index
    %c0_3 = arith.constant 0 : index
    %3 = vector.load %arg1[%c8, %c0_3] : memref<72x16xf32, #tpu.memory_space<vmem>>, vector<8x16xf32>
    %c0_4 = arith.constant 0 : index
    %c1 = arith.constant 1 : index
    %4 = vector.load %arg0[%c0_4, %c1] : memref<16x2560xf32, #tpu.memory_space<vmem>>, vector<16x2432xf32>
    %cst_5 = arith.constant dense<0.000000e+00> : vector<8x2432xf32>
    %5 = tpu.matmul %3, %4, %cst_5 {dimension_numbers = #tpu.dot_dimension_numbers<[1], [0], [0], [1], [0, 0, 1, 1], [], []>} : vector<8x16xf32>, vector<16x2432xf32>, vector<8x2432xf32> -> vector<8x2432xf32>
    %6 = arith.addf %2, %5 : vector<8x2432xf32>
    %c16 = arith.constant 16 : index
    %c0_6 = arith.constant 0 : index
    %7 = vector.load %arg1[%c16, %c0_6] : memref<72x16xf32, #tpu.memory_space<vmem>>, vector<8x16xf32>
    %c0_7 = arith.constant 0 : index
    %c2 = arith.constant 2 : index
    %8 = vector.load %arg0[%c0_7, %c2] : memref<16x2560xf32, #tpu.memory_space<vmem>>, vector<16x2432xf32>
    %cst_8 = arith.constant dense<0.000000e+00> : vector<8x2432xf32>
    %9 = tpu.matmul %7, %8, %cst_8 {dimension_numbers = #tpu.dot_dimension_numbers<[1], [0], [0], [1], [0, 0, 1, 1], [], []>} : vector<8x16xf32>, vector<16x2432xf32>, vector<8x2432xf32> -> vector<8x2432xf32>
    %10 = arith.addf %6, %9 : vector<8x2432xf32>
    %c24 = arith.constant 24 : index
    %c0_9 = arith.constant 0 : index
    %11 = vector.load %arg1[%c24, %c0_9] : memref<72x16xf32, #tpu.memory_space<vmem>>, vector<8x16xf32>
    %c0_10 = arith.constant 0 : index
    %c34 = arith.constant 34 : index
    %12 = vector.load %arg0[%c0_10, %c34] : memref<16x2560xf32, #tpu.memory_space<vmem>>, vector<16x2432xf32>
    %cst_11 = arith.constant dense<0.000000e+00> : vector<8x2432xf32>
    %13 = tpu.matmul %11, %12, %cst_11 {dimension_numbers = #tpu.dot_dimension_numbers<[1], [0], [0], [1], [0, 0, 1, 1], [], []>} : vector<8x16xf32>, vector<16x2432xf32>, vector<8x2432xf32> -> vector<8x2432xf32>
    %14 = arith.addf %10, %13 : vector<8x2432xf32>
    %c32 = arith.constant 32 : index
    %c0_12 = arith.constant 0 : index
    %15 = vector.load %arg1[%c32, %c0_12] : memref<72x16xf32, #tpu.memory_space<vmem>>, vector<8x16xf32>
    %c0_13 = arith.constant 0 : index
    %c35 = arith.constant 35 : index
    %16 = vector.load %arg0[%c0_13, %c35] : memref<16x2560xf32, #tpu.memory_space<vmem>>, vector<16x2432xf32>
    %cst_14 = arith.constant dense<0.000000e+00> : vector<8x2432xf32>
    %17 = tpu.matmul %15, %16, %cst_14 {dimension_numbers = #tpu.dot_dimension_numbers<[1], [0], [0], [1], [0, 0, 1, 1], [], []>} : vector<8x16xf32>, vector<16x2432xf32>, vector<8x2432xf32> -> vector<8x2432xf32>
    %18 = arith.addf %14, %17 : vector<8x2432xf32>
    %c40 = arith.constant 40 : index
    %c0_15 = arith.constant 0 : index
    %19 = vector.load %arg1[%c40, %c0_15] : memref<72x16xf32, #tpu.memory_space<vmem>>, vector<8x16xf32>
    %c0_16 = arith.constant 0 : index
    %c36 = arith.constant 36 : index
    %20 = vector.load %arg0[%c0_16, %c36] : memref<16x2560xf32, #tpu.memory_space<vmem>>, vector<16x2432xf32>
    %cst_17 = arith.constant dense<0.000000e+00> : vector<8x2432xf32>
    %21 = tpu.matmul %19, %20, %cst_17 {dimension_numbers = #tpu.dot_dimension_numbers<[1], [0], [0], [1], [0, 0, 1, 1], [], []>} : vector<8x16xf32>, vector<16x2432xf32>, vector<8x2432xf32> -> vector<8x2432xf32>
    %22 = arith.addf %18, %21 : vector<8x2432xf32>
    %c48 = arith.constant 48 : index
    %c0_18 = arith.constant 0 : index
    %23 = vector.load %arg1[%c48, %c0_18] : memref<72x16xf32, #tpu.memory_space<vmem>>, vector<8x16xf32>
    %c0_19 = arith.constant 0 : index
    %c68 = arith.constant 68 : index
    %24 = vector.load %arg0[%c0_19, %c68] : memref<16x2560xf32, #tpu.memory_space<vmem>>, vector<16x2432xf32>
    %cst_20 = arith.constant dense<0.000000e+00> : vector<8x2432xf32>
    %25 = tpu.matmul %23, %24, %cst_20 {dimension_numbers = #tpu.dot_dimension_numbers<[1], [0], [0], [1], [0, 0, 1, 1], [], []>} : vector<8x16xf32>, vector<16x2432xf32>, vector<8x2432xf32> -> vector<8x2432xf32>
    %26 = arith.addf %22, %25 : vector<8x2432xf32>
    %c56 = arith.constant 56 : index
    %c0_21 = arith.constant 0 : index
    %27 = vector.load %arg1[%c56, %c0_21] : memref<72x16xf32, #tpu.memory_space<vmem>>, vector<8x16xf32>
    %c0_22 = arith.constant 0 : index
    %c69 = arith.constant 69 : index
    %28 = vector.load %arg0[%c0_22, %c69] : memref<16x2560xf32, #tpu.memory_space<vmem>>, vector<16x2432xf32>
    %cst_23 = arith.constant dense<0.000000e+00> : vector<8x2432xf32>
    %29 = tpu.matmul %27, %28, %cst_23 {dimension_numbers = #tpu.dot_dimension_numbers<[1], [0], [0], [1], [0, 0, 1, 1], [], []>} : vector<8x16xf32>, vector<16x2432xf32>, vector<8x2432xf32> -> vector<8x2432xf32>
    %30 = arith.addf %26, %29 : vector<8x2432xf32>
    %c64 = arith.constant 64 : index
    %c0_24 = arith.constant 0 : index
    %31 = vector.load %arg1[%c64, %c0_24] : memref<72x16xf32, #tpu.memory_space<vmem>>, vector<8x16xf32>
    %c0_25 = arith.constant 0 : index
    %c70 = arith.constant 70 : index
    %32 = vector.load %arg0[%c0_25, %c70] : memref<16x2560xf32, #tpu.memory_space<vmem>>, vector<16x2432xf32>
    %cst_26 = arith.constant dense<0.000000e+00> : vector<8x2432xf32>
    %33 = tpu.matmul %31, %32, %cst_26 {dimension_numbers = #tpu.dot_dimension_numbers<[1], [0], [0], [1], [0, 0, 1, 1], [], []>} : vector<8x16xf32>, vector<16x2432xf32>, vector<8x2432xf32> -> vector<8x2432xf32>
    %34 = arith.addf %30, %33 : vector<8x2432xf32>
    %35 = math.tanh %34 : vector<8x2432xf32>
    %c0_27 = arith.constant 0 : index
    %c0_28 = arith.constant 0 : index
    %36 = vector.load %arg2[%c0_27, %c0_28] : memref<8x2432xf32, #tpu.memory_space<vmem>>, vector<8x2432xf32>
    tpu.vector_store %arg2[%c0_27, %c0_28], %35 {strides = array<i32>} : memref<8x2432xf32, #tpu.memory_space<vmem>>, vector<8x2432xf32>,
    return
  }
}

</mosaic_0001>

<bundles_post_ra>
// kernel: generator_forward.5
= control target key start
LH: loop header
LB: loop body
LE: loop exit
PB: predicated region body
PF: predicated region fallthrough
CT: control target
= control target key end

     0   :  { %8 = vsyncpa [#allocation3], 0  ;;  %s1141_s0 = inlined_call_operand.hbm [shape: f32[2,32], index: 0, kind: input, shape index: {}]   ;;  %s1142_s1 = inlined_call_operand.hbm [shape: f32[32,2048], index: 1, kind: input, shape index: {}]   ;;  %s1143_s2 = inlined_call_operand.hbm [shape: f32[1,2048], index: 2, kind: input, shape index: {}]   ;;  %s1144_s3 = inlined_call_operand.vmem [shape: f32[2,2048], index: 3, kind: output, shape index: {}]  }
   0x1   :  { %9 = vsyncpa [#allocation5], 0  ;;  %s1019_s12 = smov [#allocation4]   ;;  %s949_s16 = scalar_lea.hbm %s1142_s1, 8192 }
   0x2   :  { %s25_s13 = sshll.u32 %s1019_s12, 4  ;;  %p950_p0 = scmp.ne.s32.totalorder %s1142_s1, %s949_s16  ;;  %s26_s13 = int_to_ptr.vmem [resolvable:$true] %s25_s13 }
   0x3   :  { %p953_p1 = scmp.lt.u32.totalorder %s949_s16, %s1142_s1 }
   0x5   :  { %p955_p2 = pnand %p953_p1, %p950_p0 }
   0x7   :  { %958 = shalt.err (!%p955_p2)
}
   0x8   :  { %s959_s21 = scalar_lea.vmem %s26_s13, 8192  ;;  %p964_p4 = scmp.lt.s32.totalorder %s26_s13, %s26_s13 }
   0x9   :  { %p960_p3 = scmp.ne.s32.totalorder %s26_s13, %s959_s21  ;;  %p965_p5 = scmp.lt.s32.totalorder %s959_s21, %s959_s21 }
   0xb   :  { %p966_p6 = por %p965_p5, %p964_p4 }
   0xd   :  { %p967_p7 = pnand %p966_p6, %p960_p3 }
   0xf   :  { %970 = shalt.err (!%p967_p7)
}
  0x10   :  { %s1020_s22 = smov 2048   ;;  %s1021_s23 = smov 128  }
  0x11   :  { %31 = dma.hbm_to_vmem [thread:$0]  %s1142_s1, 8192, %s26_s13, [#allocation5], %s1020_s22, %s1020_s22, %s1021_s23  }
  0x12   :  { %s1022_s26 = smov [#allocation2]   ;;  %s1023_s28 = smov [#allocation6]  }
  0x13   :  { %s16_s27 = sshll.u32 %s1022_s26, 4  ;;  %s38_s29 = sshll.u32 %s1023_s28, 4  ;;  %s17_s27 = int_to_ptr.vmem [resolvable:$true] %s16_s27  ;;  %s39_s29 = int_to_ptr.vmem [resolvable:$true] %s38_s29 }
  0x14   :  { %s971_s5 = scalar_lea.hbm %s1141_s0, 32 }
  0x15   :  { %p972_p8 = scmp.ne.s32.totalorder %s1141_s0, %s971_s5  ;;  %p975_p9 = scmp.lt.u32.totalorder %s971_s5, %s1141_s0 }
  0x17   :  { %p977_p10 = pnand %p975_p9, %p972_p8 }
  0x19   :  { %980 = shalt.err (!%p977_p10)
}
  0x1a   :  { %s981_s1 = scalar_lea.vmem %s17_s27, 32  ;;  %p986_p12 = scmp.lt.s32.totalorder %s17_s27, %s17_s27 }
  0x1b   :  { %p982_p11 = scmp.ne.s32.totalorder %s17_s27, %s981_s1  ;;  %p987_p13 = scmp.lt.s32.totalorder %s981_s1, %s981_s1 }
  0x1d   :  { %p988_p0 = por %p987_p13, %p986_p12 }
  0x1f   :  { %p989_p1 = pnand %p988_p0, %p982_p11 }
  0x21   :  { %992 = shalt.err (!%p989_p1)
}
  0x22   :  { %19 = dma.hbm_to_vmem [thread:$0]  %s1141_s0, 32, %s17_s27, [#allocation3]  }
  0x23   :  { %s993_s14 = scalar_lea.hbm %s1143_s2, 256 }
  0x24   :  { %p994_p2 = scmp.ne.s32.totalorder %s1143_s2, %s993_s14  ;;  %p997_p3 = scmp.lt.u32.totalorder %s993_s14, %s1143_s2 }
  0x26   :  { %p999_p4 = pnand %p997_p3, %p994_p2 }
  0x28   :  { %1002 = shalt.err (!%p999_p4)
}
  0x29   :  { %s1003_s19 = scalar_lea.vmem %s39_s29, 256  ;;  %p1008_p6 = scmp.lt.s32.totalorder %s39_s29, %s39_s29 }
  0x2a   :  { %p1004_p5 = scmp.ne.s32.totalorder %s39_s29, %s1003_s19  ;;  %p1009_p7 = scmp.lt.s32.totalorder %s1003_s19, %s1003_s19 }
  0x2c   :  { %p1010_p8 = por %p1009_p7, %p1008_p6 }
  0x2e   :  { %p1011_p9 = pnand %p1010_p8, %p1004_p5 }
  0x30   :  { %1014 = shalt.err (!%p1011_p9)
}
  0x31   :  { %41 = dma.hbm_to_vmem [thread:$0]  %s1143_s2, 256, %s39_s29, [#allocation5]  }
  0x32   :  { %1015 = dma.done.wait [#allocation3], 32  }
  0x33   :  { %1016 = vsyncadd [#allocation3], 4294967264 }
  0x34   :  { %1017 = dma.done.wait [#allocation5], 8448  }
  0x35   :  { %1018 = vsyncadd [#allocation5], 4294958848  ;;  %v1024_v0 = vmov 0.0   ;;  %v53_v1 = vld [vmem:[#allocation4 + $0x8] sm:$0xff]  ;;  %v55_v3 = vld [vmem:[#allocation4 + $0x18] sm:$0xff]  ;;  %vm200_vm0 = vcmask 261120  }
  0x36   :  { %268 = vmatprep.mubr.f32.mxu0 %v1024_v0  ;;  %339 = vmatprep.mubr.f32.mxu1 %v1024_v0  ;;  %v69_v2 = vld [vmem:[#allocation4 + $0x88] sm:$0xff]  ;;  %v71_v5 = vld [vmem:[#allocation4 + $0x98] sm:$0xff]  ;;  %v52_v6 = vld [vmem:[#allocation4] sm:$0xff] }
  0x37   :  { %v878_v4 = vpack.c.bf16 %v69_v2, %v53_v1  ;;  %v68_v7 = vld [vmem:[#allocation4 + $0x80] sm:$0xff]  ;;  %v886_v8 = vpack.c.bf16 %v71_v5, %v55_v3  ;;  %v54_v10 = vld [vmem:[#allocation4 + $0x10] sm:$0xff]  ;;  %v85_v12 = vld [vmem:[#allocation4 + $0x108] sm:$0xff] }
  0x38   :  { %v880_v9 = vpack.c.bf16 %v68_v7, %v52_v6  ;;  %v70_v11 = vld [vmem:[#allocation4 + $0x90] sm:$0xff]  ;;  %v101_v14 = vld [vmem:[#allocation4 + $0x188] sm:$0xff]  ;;  %v87_v15 = vld [vmem:[#allocation4 + $0x118] sm:$0xff] }
  0x39   :  { %879 = vmatprep.subr.bf16.mxu0 %v878_v4  ;;  %v888_v13 = vpack.c.bf16 %v70_v11, %v54_v10  ;;  %v103_v16 = vld [vmem:[#allocation4 + $0x198] sm:$0xff]  ;;  %887 = vmatprep.subr.bf16.mxu1 %v886_v8  ;;  %v882_v17 = vpack.c.bf16 %v101_v14, %v85_v12  ;;  %v84_v19 = vld [vmem:[#allocation4 + $0x100] sm:$0xff]  ;;  %v86_v21 = vld [vmem:[#allocation4 + $0x110] sm:$0xff] }
  0x3a   :  { %881 = vmatpush1.bf16.msra.mxu0 %v880_v9  ;;  %v890_v18 = vpack.c.bf16 %v103_v16, %v87_v15  ;;  %v100_v20 = vld [vmem:[#allocation4 + $0x180] sm:$0xff]  ;;  %v102_v23 = vld [vmem:[#allocation4 + $0x190] sm:$0xff]  ;;  %v57_v24 = vld [vmem:[#allocation4 + $0x28] sm:$0xff] }
  0x3b   :  { %889 = vmatpush1.bf16.msra.mxu1 %v888_v13  ;;  %v884_v22 = vpack.c.bf16 %v100_v20, %v84_v19  ;;  %883 = vmatprep.subr.bf16.mxu0 %v882_v17  ;;  %v892_v25 = vpack.c.bf16 %v102_v23, %v86_v21  ;;  %v1084_v26 = vld [vmem:[#allocation2] sm:$0x3]  ;;  %v73_v27 = vld [vmem:[#allocation4 + $0xa8] sm:$0xff]  ;;  %v56_v32 = vld [vmem:[#allocation4 + $0x20] sm:$0xff] }
  0x3c   :  { %891 = vmatprep.subr.bf16.mxu1 %v890_v18  ;;  %v59_v28 = vld [vmem:[#allocation4 + $0x38] sm:$0xff]  ;;  %v894_v30 = vpack.c.bf16 %v73_v27, %v57_v24  ;;  %v72_v33 = vld [vmem:[#allocation4 + $0xa0] sm:$0xff]  ;;  %v58_v34 = vld [vmem:[#allocation4 + $0x30] sm:$0xff] }
  0x3d   :  { %v75_v29 = vld [vmem:[#allocation4 + $0xb8] sm:$0xff]  ;;  %v896_v35 = vpack.c.bf16 %v72_v33, %v56_v32  ;;  %v74_v36 = vld [vmem:[#allocation4 + $0xb0] sm:$0xff]  ;;  %v89_v37 = vld [vmem:[#allocation4 + $0x128] sm:$0xff] }
  0x3e   :  { %v902_v31 = vpack.c.bf16 %v75_v29, %v59_v28  ;;  %885 = vmatpush1.bf16.msra.mxu0 %v884_v22  ;;  %v105_v38 = vld [vmem:[#allocation4 + $0x1a8] sm:$0xff]  ;;  %v904_v39 = vpack.c.bf16 %v74_v36, %v58_v34  ;;  %v91_v41 = vld [vmem:[#allocation4 + $0x138] sm:$0xff]  ;;  %v88_v43 = vld [vmem:[#allocation4 + $0x120] sm:$0xff]  ;;  %v120_v36 = vlaneseq }
  0x3f   :  { %893 = vmatpush1.bf16.msra.mxu1 %v892_v25  ;;  %895 = vmatprep.subr.bf16.mxu0 %v894_v30  ;;  %v898_v40 = vpack.c.bf16 %v105_v38, %v89_v37  ;;  %v107_v42 = vld [vmem:[#allocation4 + $0x1b8] sm:$0xff]  ;;  %v104_v45 = vld [vmem:[#allocation4 + $0x1a0] sm:$0xff]  ;;  %v90_v46 = vld [vmem:[#allocation4 + $0x130] sm:$0xff] }
  0x40   :  { %903 = vmatprep.subr.bf16.mxu1 %v902_v31  ;;  %v906_v44 = vpack.c.bf16 %v107_v42, %v91_v41  ;;  %v106_v47 = vld [vmem:[#allocation4 + $0x1b0] sm:$0xff]  ;;  %v61_v48 = vld [vmem:[#allocation4 + $0x48] sm:$0xff]  ;;  %v63_v50 = vld [vmem:[#allocation4 + $0x58] sm:$0xff]  ;;  %v900_v51 = vpack.c.bf16 %v104_v45, %v88_v43  ;;  %v1108_v37 = vshrl.u32 %v120_v36, 7 }
  0x41   :  { %870 = vmatmul.mubr.msk.f32.vlgmr.msra.gmra.mrb[0].mxu0 %vm200_vm0, %v1084_v26  ;;  %v77_v49 = vld [vmem:[#allocation4 + $0xc8] sm:$0xff]  ;;  %v79_v52 = vld [vmem:[#allocation4 + $0xd8] sm:$0xff]  ;;  %v908_v53 = vpack.c.bf16 %v106_v47, %v90_v46  ;;  %v60_v55 = vld [vmem:[#allocation4 + $0x40] sm:$0xff] }
  0x42   :  { %871 = vmatmul.mubr.msk.f32.vlgmr.msra.gmra.mrb[0].mxu1 %vm200_vm0, %v1084_v26  ;;  %897 = vmatpush1.bf16.msra.mxu0 %v896_v35  ;;  %v910_v54 = vpack.c.bf16 %v77_v49, %v61_v48  ;;  %v76_v56 = vld [vmem:[#allocation4 + $0xc0] sm:$0xff]  ;;  %v62_v57 = vld [vmem:[#allocation4 + $0x50] sm:$0xff]  ;;  %v918_v58 = vpack.c.bf16 %v79_v52, %v63_v50  ;;  %v93_v60 = vld [vmem:[#allocation4 + $0x148] sm:$0xff]  ;;  %v122_v38 = vsub.s32 0, %v1108_v37  ;;  %v130_v42 = vsub.s32 2, %v1108_v37 }
  0x43   :  { %905 = vmatpush1.bf16.msra.mxu1 %v904_v39  ;;  %899 = vmatprep.subr.bf16.mxu0 %v898_v40  ;;  %v78_v59 = vld [vmem:[#allocation4 + $0xd0] sm:$0xff]  ;;  %v109_v61 = vld [vmem:[#allocation4 + $0x1c8] sm:$0xff]  ;;  %v95_v62 = vld [vmem:[#allocation4 + $0x158] sm:$0xff]  ;;  %v912_v1 = vpack.c.bf16 %v76_v56, %v60_v55  ;;  %v1025_v39 = vmov 1983009808   ;;  %v134_v43 = vsub.s32 3, %v1108_v37 }
  0x44   :  { %907 = vmatprep.subr.bf16.mxu1 %v906_v44  ;;  %410 = vmatprep.mubr.f32.mxu0 %v1024_v0  ;;  %v111_v63 = vld [vmem:[#allocation4 + $0x1d8] sm:$0xff]  ;;  %v920_v2 = vpack.c.bf16 %v78_v59, %v62_v57  ;;  %v914_v3 = vpack.c.bf16 %v109_v61, %v93_v60  ;;  %v92_v4 = vld [vmem:[#allocation4 + $0x140] sm:$0xff]  ;;  %v94_v6 = vld [vmem:[#allocation4 + $0x150] sm:$0xff]  ;;  %v791_v40 = vunpack.c.l.s4 %v1025_v39  ;;  %v146_v57 = vsub.s32 6, %v1108_v37 }
  0x45   :  { %481 = vmatprep.mubr.f32.mxu1 %v1024_v0  ;;  %v108_v5 = vld [vmem:[#allocation4 + $0x1c0] sm:$0xff]  ;;  %v922_v7 = vpack.c.bf16 %v111_v63, %v95_v62  ;;  %v110_v8 = vld [vmem:[#allocation4 + $0x1d0] sm:$0xff]  ;;  %v65_v9 = vld [vmem:[#allocation4 + $0x68] sm:$0xff]  ;;  %v150_v60 = vsub.s32 7, %v1108_v37 }
  0x46   :  { %901 = vmatpush1.bf16.msra.mxu0 %v900_v51  ;;  %v81_v10 = vld [vmem:[#allocation4 + $0xe8] sm:$0xff]  ;;  %v67_v11 = vld [vmem:[#allocation4 + $0x78] sm:$0xff]  ;;  %v916_v13 = vpack.c.bf16 %v108_v5, %v92_v4  ;;  %v924_v14 = vpack.c.bf16 %v110_v8, %v94_v6  ;;  %v64_v16 = vld [vmem:[#allocation4 + $0x60] sm:$0xff]  ;;  %v792_v45 = vunpack.c.0.s8 %v791_v40 }
  0x47   :  { %909 = vmatpush1.bf16.msra.mxu1 %v908_v53  ;;  %911 = vmatprep.subr.bf16.mxu0 %v910_v54  ;;  %v83_v12 = vld [vmem:[#allocation4 + $0xf8] sm:$0xff]  ;;  %v926_v15 = vpack.c.bf16 %v81_v10, %v65_v9  ;;  %v80_v17 = vld [vmem:[#allocation4 + $0xe0] sm:$0xff]  ;;  %v66_v18 = vld [vmem:[#allocation4 + $0x70] sm:$0xff]  ;;  %v138_v53 = vsub.s32 4, %v1108_v37 }
  0x48   :  { %919 = vmatprep.subr.bf16.mxu1 %v918_v58  ;;  %v934_v19 = vpack.c.bf16 %v83_v12, %v67_v11  ;;  %v82_v20 = vld [vmem:[#allocation4 + $0xf0] sm:$0xff]  ;;  %v97_v21 = vld [vmem:[#allocation4 + $0x168] sm:$0xff]  ;;  %v99_v23 = vld [vmem:[#allocation4 + $0x178] sm:$0xff]  ;;  %v928_v25 = vpack.c.bf16 %v80_v17, %v64_v16  ;;  %v1115_v52 = vsub.s32 %v792_v45, %v1108_v37  ;;  %v142_v58 = vsub.s32 5, %v1108_v37 }
  0x49   :  { %872 = vmatmul.mubr.msk.f32.vlgmr.msra.gmra.mrb[2].mxu0 %vm200_vm0, %v1084_v26  ;;  %v113_v22 = vld [vmem:[#allocation4 + $0x1e8] sm:$0xff]  ;;  %v115_v24 = vld [vmem:[#allocation4 + $0x1f8] sm:$0xff]  ;;  %v936_v27 = vpack.c.bf16 %v82_v20, %v66_v18  ;;  %v96_v29 = vld [vmem:[#allocation4 + $0x160] sm:$0xff] }
  0x4a   :  { %873 = vmatmul.mubr.msk.f32.vlgmr.msra.gmra.mrb[2].mxu1 %vm200_vm0, %v1084_v26  ;;  %913 = vmatpush1.bf16.msra.mxu0 %v912_v1  ;;  %v930_v28 = vpack.c.bf16 %v113_v22, %v97_v21  ;;  %v112_v30 = vld [vmem:[#allocation4 + $0x1e0] sm:$0xff]  ;;  %v938_v31 = vpack.c.bf16 %v115_v24, %v99_v23  ;;  %v98_v32 = vld [vmem:[#allocation4 + $0x170] sm:$0xff] }
  0x4b   :  { %921 = vmatpush1.bf16.msra.mxu1 %v920_v2  ;;  %915 = vmatprep.subr.bf16.mxu0 %v914_v3  ;;  %v114_v33 = vld [vmem:[#allocation4 + $0x1f0] sm:$0xff]  ;;  %v932_v34 = vpack.c.bf16 %v112_v30, %v96_v29  ;;  %v116_v41 = vld [vmem:[#allocation6] sm:$0xff] }
  0x4c   :  { %923 = vmatprep.subr.bf16.mxu1 %v922_v7  ;;  %552 = vmatprep.mubr.f32.mxu0 %v1024_v0  ;;  %v940_v35 = vpack.c.bf16 %v114_v33, %v98_v32  ;;  %v123_v44 = vrot.slane %v116_v41, %v122_v38  ;;  %v131_v46 = vrot.slane %v116_v41, %v130_v42 }
  0x4d   :  { %623 = vmatprep.mubr.f32.mxu1 %v1024_v0  ;;  %v135_v48 = vrot.slane %v116_v41, %v134_v43  ;;  %v139_v63 = vrot.slane %v116_v41, %v138_v53  ;;  %v147_v2 = vrot.slane %v116_v41, %v146_v57  ;;  %v143_v3 = vrot.slane %v116_v41, %v142_v58 }
  0x4e   :  { %917 = vmatpush1.bf16.msra.mxu0 %v916_v13  ;;  %v151_v5 = vrot.slane %v116_v41, %v150_v60 }
  0x4f   :  { %925 = vmatpush1.bf16.msra.mxu1 %v924_v14  ;;  %927 = vmatprep.subr.bf16.mxu0 %v926_v15  ;;  %v117_v14 = vld [vmem:[#allocation6 + $0x8] sm:$0xff] }
  0x50   :  { %935 = vmatprep.subr.bf16.mxu1 %v934_v19  ;;  %v155_v18 = vrot.slane %v117_v14, %v122_v38  ;;  %v163_v20 = vrot.slane %v117_v14, %v130_v42  ;;  %v167_v23 = vrot.slane %v117_v14, %v134_v43  ;;  %v171_v36 = vrot.slane %v117_v14, %v138_v53 }
  0x51   :  { %874 = vmatmul.mubr.msk.f32.vlgmr.msra.gmra.mrb[4].mxu0 %vm200_vm0, %v1084_v26  ;;  %v179_v38 = vrot.slane %v117_v14, %v146_v57  ;;  %v175_v39 = vrot.slane %v117_v14, %v142_v58 }
  0x52   :  { %875 = vmatmul.mubr.msk.f32.vlgmr.msra.gmra.mrb[4].mxu1 %vm200_vm0, %v1084_v26  ;;  %929 = vmatpush1.bf16.msra.mxu0 %v928_v25 }
  0x53   :  { %937 = vmatpush1.bf16.msra.mxu1 %v936_v27  ;;  %931 = vmatprep.subr.bf16.mxu0 %v930_v28 }
  0x54   :  { %939 = vmatprep.subr.bf16.mxu1 %v938_v31  ;;  %694 = vmatprep.mubr.f32.mxu0 %v1024_v0 }
  0x55   :  { %765 = vmatprep.mubr.f32.mxu1 %v1024_v0  ;;  %v126_v0 = vsub.s32 1, %v1108_v37 }
  0x56   :  { %933 = vmatpush1.bf16.msra.mxu0 %v932_v34 }
  0x57   :  { %941 = vmatpush1.bf16.msra.mxu1 %v940_v35  ;;  %v127_v47 = vrot.slane %v116_v41, %v126_v0  ;;  %v159_v21 = vrot.slane %v117_v14, %v126_v0  ;;  %v183_v41 = vrot.slane %v117_v14, %v150_v60 }
  0x59   :  { %876 = vmatmul.mubr.msk.f32.vlgmr.msra.gmra.mrb[6].mxu0 %vm200_vm0, %v1084_v26 }
  0x5a   :  { %877 = vmatmul.mubr.msk.f32.vlgmr.msra.gmra.mrb[6].mxu1 %vm200_vm0, %v1084_v26 }
 0x114   :  { %v270_v26 = vpop.f32.mrb[0].mxu0 }
 0x115   :  { %v271_v49 = vadd.f32 %v270_v26, %v123_v44  ;;  %v341_v50 = vpop.f32.mrb[0].mxu1  ;;  %v272_v51 = vpop.f32.mrb[1].mxu0 }
 0x116   :  { %v342_v54 = vadd.f32 %v341_v50, %v131_v46  ;;  %v273_v55 = vadd.f32 %v272_v51, %v127_v47  ;;  %v343_v56 = vpop.f32.mrb[1].mxu1 }
 0x117   :  { %v344_v59 = vadd.f32 %v343_v56, %v135_v48 }
 0x118   :  { %v788_v61 = vcombine.low %v271_v49, %v273_v55 }
 0x119   :  { %v789_v62 = vcombine.low %v342_v54, %v344_v59 }
 0x11a   :  { %v796_v1 = vrot.slane %v788_v61, %v1115_v52 }
 0x11b   :  { %v803_v4 = vrot.slane %v789_v62, %v1115_v52 }
 0x11c   :  { %v412_v6 = vpop.f32.mrb[2].mxu0 }
 0x11d   :  { %v804_v7 = vcombine.low %v796_v1, %v803_v4  ;;  %v413_v8 = vadd.f32 %v412_v6, %v139_v63  ;;  %v483_v9 = vpop.f32.mrb[2].mxu1  ;;  %v414_v10 = vpop.f32.mrb[3].mxu0 }
 0x11e   :  { %v484_v11 = vadd.f32 %v483_v9, %v147_v2  ;;  %v415_v12 = vadd.f32 %v414_v10, %v143_v3  ;;  %v485_v13 = vpop.f32.mrb[3].mxu1 }
 0x11f   :  { %860 = vst [vmem:[%s1144_s3] sm:$0xff] %v804_v7  ;;  %v486_v15 = vadd.f32 %v485_v13, %v151_v5 }
 0x120   :  { %v805_v16 = vcombine.low %v413_v8, %v415_v12 }
 0x121   :  { %v806_v17 = vcombine.low %v484_v11, %v486_v15 }
 0x122   :  { %v813_v19 = vrot.slane %v805_v16, %v1115_v52 }
 0x123   :  { %v820_v22 = vrot.slane %v806_v17, %v1115_v52 }
 0x124   :  { %v554_v24 = vpop.f32.mrb[4].mxu0 }
 0x125   :  { %v821_v25 = vcombine.low %v813_v19, %v820_v22  ;;  %v555_v27 = vadd.f32 %v554_v24, %v155_v18  ;;  %v625_v28 = vpop.f32.mrb[4].mxu1  ;;  %v556_v29 = vpop.f32.mrb[5].mxu0 }
 0x126   :  { %v626_v30 = vadd.f32 %v625_v28, %v163_v20  ;;  %v557_v31 = vadd.f32 %v556_v29, %v159_v21  ;;  %v627_v32 = vpop.f32.mrb[5].mxu1 }
 0x127   :  { %861 = vst [vmem:[%s1144_s3 + $0x8] sm:$0xff] %v821_v25  ;;  %v628_v33 = vadd.f32 %v627_v32, %v167_v23 }
 0x128   :  { %v822_v34 = vcombine.low %v555_v27, %v557_v31 }
 0x129   :  { %v823_v35 = vcombine.low %v626_v30, %v628_v33 }
 0x12a   :  { %v830_v37 = vrot.slane %v822_v34, %v1115_v52 }
 0x12b   :  { %v837_v40 = vrot.slane %v823_v35, %v1115_v52 }
 0x12c   :  { %v696_v42 = vpop.f32.mrb[6].mxu0 }
 0x12d   :  { %v838_v0 = vcombine.low %v830_v37, %v837_v40  ;;  %v697_v43 = vadd.f32 %v696_v42, %v171_v36  ;;  %v767_v44 = vpop.f32.mrb[6].mxu1  ;;  %v698_v45 = vpop.f32.mrb[7].mxu0 }
 0x12e   :  { %v768_v46 = vadd.f32 %v767_v44, %v179_v38  ;;  %v699_v47 = vadd.f32 %v698_v45, %v175_v39  ;;  %v769_v48 = vpop.f32.mrb[7].mxu1 }
 0x12f   :  { %862 = vst [vmem:[%s1144_s3 + $0x10] sm:$0xff] %v838_v0  ;;  %v770_v26 = vadd.f32 %v769_v48, %v183_v41 }
 0x130   :  { %v839_v49 = vcombine.low %v697_v43, %v699_v47 }
 0x131   :  { %v840_v50 = vcombine.low %v768_v46, %v770_v26 }
 0x132   :  { %v847_v51 = vrot.slane %v839_v49, %v1115_v52 }
 0x133   :  { %v854_v53 = vrot.slane %v840_v50, %v1115_v52 }
 0x135   :  { %v855_v54 = vcombine.low %v847_v51, %v854_v53 }
 0x137   :  { %863 = vst [vmem:[%s1144_s3 + $0x18] sm:$0xff] %v855_v54 }
 0x138   :  { %868 = vsyncpa [#allocation3], 1 }
 0x139   :  { %869 = vsyncpa [#allocation5], 1 }

// kernel: generator_forward.6
= control target key start
LH: loop header
LB: loop body
LE: loop exit
PB: predicated region body
PF: predicated region fallthrough
CT: control target
= control target key end

     0   :  { %s5396_s5 = smov 127   ;;  %s5397_s18 = smov 126   ;;  %vm193_vm0 = vcmask 1039360   ;;  %vm1080_vm1 = vcmask 1031168   ;;  %vm508_vm2 = vcmask 998400   ;;  %vm726_vm3 = vcmask 990208   ;;  %s7106_s0 = inlined_call_operand.vmem [shape: f32[128,256], index: 0, kind: input, shape index: {}]   ;;  %s7107_s1 = inlined_call_operand.vmem [shape: f32[1024,128], index: 1, kind: input, shape index: {}]   ;;  %s7108_s2 = inlined_call_operand.vmem [shape: f32[64,1], index: 2, kind: input, shape index: {}]   ;;  %s7109_s3 = inlined_call_operand.vmem [shape: f32[64,1], index: 3, kind: input, shape index: {}]   ;;  %s7110_s4 = inlined_call_operand.vmem [shape: f32[256,128], index: 4, kind: output, shape index: {}]  }
   0x1   :  { %v5433_v0 = vld [vmem:[%s7106_s0 + $0x20] sm:$0xff]  ;;  %v54_v1 = vld [vmem:[%s7106_s0 + $0x28] sm:$0xff]  ;;  %v5452_v5 = vld [vmem:[%s7106_s0 + $0x30] sm:$0xff]  ;;  %s5398_s10 = smov 122   ;;  %s5399_s11 = smov 121   ;;  %vm1516_vm4 = vcmask 982016  }
   0x2   :  { %v5441_v2 = vld [vmem:[%s7106_s0] sm:$0xff]  ;;  %v5444_v3 = vpack.i.bf16 %v54_v1, %v5433_v0  ;;  %v50_v4 = vld [vmem:[%s7106_s0 + $0x8] sm:$0xff]  ;;  %v56_v6 = vld [vmem:[%s7106_s0 + $0x38] sm:$0xff]  ;;  %s5402_s12 = smov 115   ;;  %s5404_s22 = smov 114   ;;  %vm2008_vm5 = vcmask 949248  }
   0x3   :  { %v5458_v7 = vpack.i.bf16 %v50_v4, %v5441_v2  ;;  %v5463_v8 = vld [vmem:[%s7106_s0 + $0x10] sm:$0xff]  ;;  %v52_v9 = vld [vmem:[%s7106_s0 + $0x18] sm:$0xff]  ;;  %v5471_v10 = vpack.i.bf16 %v56_v6, %v5452_v5  ;;  %v5489_v14 = vld [vmem:[%s7106_s0 + $0x40] sm:$0xff]  ;;  %vm2226_vm6 = vcmask 941056   ;;  %vm2839_vm7 = vcmask 932864  }
   0x4   :  { %4753 = vrot.lane.b32.xlu1 %v5444_v3, %s5396_s5  ;;  %v5476_v11 = vpack.i.bf16 %v52_v9, %v5463_v8  ;;  %v5481_v12 = vld [vmem:[%s7106_s0 + $0x50] sm:$0xff]  ;;  %v60_v13 = vld [vmem:[%s7106_s0 + $0x58] sm:$0xff]  ;;  %v58_v15 = vld [vmem:[%s7106_s0 + $0x48] sm:$0xff] }
   0x5   :  { %4743 = vrot.lane.b32.xlu0 %v5458_v7, %s5396_s5  ;;  %v5497_v16 = vpack.i.bf16 %v60_v13, %v5481_v12  ;;  %v5502_v17 = vpack.i.bf16 %v58_v15, %v5489_v14  ;;  %v5507_v18 = vld [vmem:[%s7106_s0 + $0x60] sm:$0xff]  ;;  %v62_v19 = vld [vmem:[%s7106_s0 + $0x68] sm:$0xff]  ;;  %v5530_v21 = vld [vmem:[%s7106_s0 + $0x70] sm:$0xff] }
   0x6   :  { %v5517_v20 = vpack.i.bf16 %v62_v19, %v5507_v18  ;;  %v64_v22 = vld [vmem:[%s7106_s0 + $0x78] sm:$0xff]  ;;  %v5549_v24 = vld [vmem:[%s7106_s0 + $0x90] sm:$0xff]  ;;  %v5557_v26 = vld [vmem:[%s7106_s0 + $0x80] sm:$0xff] }
   0x7   :  { %v5538_v23 = vpack.i.bf16 %v64_v22, %v5530_v21  ;;  %v68_v25 = vld [vmem:[%s7106_s0 + $0x98] sm:$0xff]  ;;  %v66_v27 = vld [vmem:[%s7106_s0 + $0x88] sm:$0xff]  ;;  %v5579_v30 = vld [vmem:[%s7106_s0 + $0xb0] sm:$0xff] }
   0x8   :  { %4758 = vrot.lane.b32.xlu1 %v5471_v10, %s5396_s5  ;;  %v5565_v28 = vpack.i.bf16 %v68_v25, %v5549_v24  ;;  %v5570_v29 = vpack.i.bf16 %v66_v27, %v5557_v26  ;;  %v72_v31 = vld [vmem:[%s7106_s0 + $0xb8] sm:$0xff]  ;;  %v5587_v32 = vld [vmem:[%s7106_s0 + $0xa0] sm:$0xff]  ;;  %v70_v33 = vld [vmem:[%s7106_s0 + $0xa8] sm:$0xff] }
   0x9   :  { %4748 = vrot.lane.b32.xlu0 %v5476_v11, %s5396_s5  ;;  %v5595_v34 = vpack.i.bf16 %v72_v31, %v5579_v30  ;;  %v5600_v35 = vpack.i.bf16 %v70_v33, %v5587_v32  ;;  %v5609_v36 = vld [vmem:[%s7106_s0 + $0xd0] sm:$0xff]  ;;  %v76_v37 = vld [vmem:[%s7106_s0 + $0xd8] sm:$0xff]  ;;  %v5617_v38 = vld [vmem:[%s7106_s0 + $0xc0] sm:$0xff] }
   0xa   :  { %v74_v39 = vld [vmem:[%s7106_s0 + $0xc8] sm:$0xff]  ;;  %v5625_v40 = vpack.i.bf16 %v76_v37, %v5609_v36  ;;  %v5639_v42 = vld [vmem:[%s7106_s0 + $0xf0] sm:$0xff]  ;;  %v80_v43 = vld [vmem:[%s7106_s0 + $0xf8] sm:$0xff] }
   0xb   :  { %v5630_v41 = vpack.i.bf16 %v74_v39, %v5617_v38  ;;  %v5647_v44 = vld [vmem:[%s7106_s0 + $0xe0] sm:$0xff]  ;;  %v78_v45 = vld [vmem:[%s7106_s0 + $0xe8] sm:$0xff]  ;;  %v5655_v46 = vpack.i.bf16 %v80_v43, %v5639_v42 }
   0xc   :  { %4768 = vrot.lane.b32.xlu1 %v5497_v16, %s5396_s5  ;;  %v89_v47 = vld [vmem:[%s7107_s1 + $0x40] sm:$0xff]  ;;  %v5663_v48 = vpack.i.bf16 %v78_v45, %v5647_v44 }
   0xd   :  { %4763 = vrot.lane.b32.xlu0 %v5502_v17, %s5396_s5  ;;  %3453 = vmatprep.mubr.f32.mxu0 %v89_v47  ;;  %v1008_v49 = vld [vmem:[%s7107_s1 + $0x140] sm:$0xff] }
   0xe   :  { %3629 = vmatprep.mubr.f32.mxu1 %v1008_v49 }
  0x10   :  { %4778 = vrot.lane.b32.xlu1 %v5458_v7, %s5397_s18 }
  0x11   :  { %4773 = vrot.lane.b32.xlu0 %v5517_v20, %s5396_s5 }
  0x14   :  { %4788 = vrot.lane.b32.xlu1 %v5444_v3, %s5397_s18 }
  0x15   :  { %4783 = vrot.lane.b32.xlu0 %v5476_v11, %s5397_s18 }
  0x18   :  { %4798 = vrot.lane.b32.xlu1 %v5502_v17, %s5397_s18 }
  0x19   :  { %4793 = vrot.lane.b32.xlu0 %v5471_v10, %s5397_s18 }
  0x1c   :  { %4808 = vrot.lane.b32.xlu1 %v5538_v23, %s5396_s5 }
  0x1d   :  { %4803 = vrot.lane.b32.xlu0 %v5497_v16, %s5397_s18 }
  0x20   :  { %4818 = vrot.lane.b32.xlu1 %v5538_v23, %s5397_s18 }
  0x21   :  { %4813 = vrot.lane.b32.xlu0 %v5517_v20, %s5397_s18 }
  0x24   :  { %4828 = vrot.lane.b32.xlu1 %v5565_v28, %s5396_s5 }
  0x25   :  { %4823 = vrot.lane.b32.xlu0 %v5570_v29, %s5396_s5 }
  0x28   :  { %4838 = vrot.lane.b32.xlu1 %v5565_v28, %s5397_s18 }
  0x29   :  { %4833 = vrot.lane.b32.xlu0 %v5570_v29, %s5397_s18 }
  0x2c   :  { %4848 = vrot.lane.b32.xlu1 %v5595_v34, %s5396_s5 }
  0x2d   :  { %4843 = vrot.lane.b32.xlu0 %v5600_v35, %s5396_s5 }
  0x30   :  { %4858 = vrot.lane.b32.xlu1 %v5595_v34, %s5397_s18 }
  0x31   :  { %4853 = vrot.lane.b32.xlu0 %v5600_v35, %s5397_s18 }
  0x34   :  { %4868 = vrot.lane.b32.xlu1 %v5625_v40, %s5396_s5 }
  0x35   :  { %4863 = vrot.lane.b32.xlu0 %v5630_v41, %s5396_s5 }
  0x38   :  { %4878 = vrot.lane.b32.xlu1 %v5625_v40, %s5397_s18 }
  0x39   :  { %4873 = vrot.lane.b32.xlu0 %v5630_v41, %s5397_s18 }
  0x3c   :  { %4888 = vrot.lane.b32.xlu1 %v5655_v46, %s5396_s5 }
  0x3d   :  { %4883 = vrot.lane.b32.xlu0 %v5663_v48, %s5396_s5  ;;  %s5400_s5 = smov 120  }
  0x40   :  { %4898 = vrot.lane.b32.xlu1 %v5655_v46, %s5397_s18 }
  0x41   :  { %4893 = vrot.lane.b32.xlu0 %v5663_v48, %s5397_s18  ;;  %s5401_s18 = smov 116  }
  0x44   :  { %4908 = vrot.lane.b32.xlu1 %v5476_v11, %s5398_s10 }
  0x45   :  { %4903 = vrot.lane.b32.xlu0 %v5458_v7, %s5398_s10 }
  0x48   :  { %4918 = vrot.lane.b32.xlu1 %v5476_v11, %s5399_s11 }
  0x49   :  { %4913 = vrot.lane.b32.xlu0 %v5458_v7, %s5399_s11 }
  0x4c   :  { %4928 = vrot.lane.b32.xlu1 %v5471_v10, %s5398_s10 }
  0x4d   :  { %4923 = vrot.lane.b32.xlu0 %v5444_v3, %s5398_s10 }
  0x50   :  { %4938 = vrot.lane.b32.xlu1 %v5471_v10, %s5399_s11 }
  0x51   :  { %4933 = vrot.lane.b32.xlu0 %v5444_v3, %s5399_s11 }
  0x54   :  { %4948 = vrot.lane.b32.xlu1 %v5497_v16, %s5398_s10 }
  0x55   :  { %4943 = vrot.lane.b32.xlu0 %v5502_v17, %s5398_s10 }
  0x58   :  { %4958 = vrot.lane.b32.xlu1 %v5497_v16, %s5399_s11 }
  0x59   :  { %4953 = vrot.lane.b32.xlu0 %v5502_v17, %s5399_s11 }
  0x5c   :  { %4968 = vrot.lane.b32.xlu1 %v5538_v23, %s5398_s10 }
  0x5d   :  { %4963 = vrot.lane.b32.xlu0 %v5517_v20, %s5398_s10 }
  0x60   :  { %4978 = vrot.lane.b32.xlu1 %v5538_v23, %s5399_s11 }
  0x61   :  { %4973 = vrot.lane.b32.xlu0 %v5517_v20, %s5399_s11 }
  0x64   :  { %4988 = vrot.lane.b32.xlu1 %v5565_v28, %s5398_s10 }
  0x65   :  { %4983 = vrot.lane.b32.xlu0 %v5570_v29, %s5398_s10 }
  0x68   :  { %4998 = vrot.lane.b32.xlu1 %v5565_v28, %s5399_s11 }
  0x69   :  { %4993 = vrot.lane.b32.xlu0 %v5570_v29, %s5399_s11 }
  0x6c   :  { %5008 = vrot.lane.b32.xlu1 %v5595_v34, %s5398_s10 }
  0x6d   :  { %5003 = vrot.lane.b32.xlu0 %v5600_v35, %s5398_s10 }
  0x70   :  { %5018 = vrot.lane.b32.xlu1 %v5595_v34, %s5399_s11 }
  0x71   :  { %5013 = vrot.lane.b32.xlu0 %v5600_v35, %s5399_s11 }
  0x74   :  { %5028 = vrot.lane.b32.xlu1 %v5625_v40, %s5398_s10 }
  0x75   :  { %5023 = vrot.lane.b32.xlu0 %v5630_v41, %s5398_s10 }
  0x76   :  { %v4754_v50 = vpop.permute.xlu1 %4753 }
  0x77   :  { %v4744_v51 = vpop.permute.xlu0 %4743  ;;  %v4756_v58 = vunpack.i.h.bf16 %v4754_v50  ;;  %v4755_v59 = vunpack.i.l.bf16 %v4754_v50 }
  0x78   :  { %5038 = vrot.lane.b32.xlu1 %v5625_v40, %s5399_s11  ;;  %v4746_v52 = vunpack.i.h.bf16 %v4744_v51  ;;  %v4745_v53 = vunpack.i.l.bf16 %v4744_v51 }
  0x79   :  { %5033 = vrot.lane.b32.xlu0 %v5630_v41, %s5399_s11  ;;  %v196_v19 = vsel %vm193_vm0, %v4755_v59, %v4756_v58 }
  0x7a   :  { %v4759_v54 = vpop.permute.xlu1 %4758  ;;  %v194_v62 = vsel %vm193_vm0, %v4745_v53, %v4746_v52 }
  0x7b   :  { %v4761_v55 = vunpack.i.h.bf16 %v4759_v54  ;;  %v4760_v56 = vunpack.i.l.bf16 %v4759_v54  ;;  %v4749_v57 = vpop.permute.xlu0 %4748 }
  0x7c   :  { %v4751_v60 = vunpack.i.h.bf16 %v4749_v57  ;;  %v4750_v61 = vunpack.i.l.bf16 %v4749_v57  ;;  %5048 = vrot.lane.b32.xlu1 %v5655_v46, %s5398_s10 }
  0x7d   :  { %5043 = vrot.lane.b32.xlu0 %v5663_v48, %s5398_s10  ;;  %v197_v63 = vsel %vm193_vm0, %v4760_v56, %v4761_v55 }
  0x7e   :  { %v195_v1 = vsel %vm193_vm0, %v4750_v61, %v4751_v60  ;;  %v4769_v4 = vpop.permute.xlu1 %4768  ;;  %v5747_v27 = vpack.c.bf16 %v197_v63, %v196_v19 }
  0x7f   :  { %v4771_v6 = vunpack.i.h.bf16 %v4769_v4  ;;  %v4770_v9 = vunpack.i.l.bf16 %v4769_v4  ;;  %v4764_v13 = vpop.permute.xlu0 %4763  ;;  %v5739_v15 = vpack.c.bf16 %v195_v1, %v194_v62 }
  0x80   :  { %v4766_v22 = vunpack.i.h.bf16 %v4764_v13  ;;  %v4765_v25 = vunpack.i.l.bf16 %v4764_v13  ;;  %5058 = vrot.lane.b32.xlu1 %v5655_v46, %s5399_s11 }
  0x81   :  { %5053 = vrot.lane.b32.xlu0 %v5663_v48, %s5399_s11  ;;  %4126 = vmatprep.subr.bf16.mxu0 %v5739_v15  ;;  %v199_v31 = vsel %vm193_vm0, %v4770_v9, %v4771_v6 }
  0x82   :  { %v198_v33 = vsel %vm193_vm0, %v4765_v25, %v4766_v22  ;;  %4128 = vmatpush3.bf16.msra.mxu0 %v5739_v15  ;;  %v4779_v37 = vpop.permute.xlu1 %4778 }
  0x83   :  { %v4774_v39 = vpop.permute.xlu0 %4773  ;;  %4130 = vmatprep.subr.bf16.mxu0 %v5747_v27  ;;  %v5757_v43 = vpack.c.bf16 %v199_v31, %v198_v33  ;;  %v4781_v45 = vunpack.i.h.bf16 %v4779_v37  ;;  %v4780_v47 = vunpack.i.l.bf16 %v4779_v37 }
  0x84   :  { %5068 = vrot.lane.b32.xlu1 %v5476_v11, %s5400_s5  ;;  %v4776_v62 = vunpack.i.h.bf16 %v4774_v39  ;;  %v4775_v63 = vunpack.i.l.bf16 %v4774_v39 }
  0x85   :  { %5063 = vrot.lane.b32.xlu0 %v5458_v7, %s5400_s5  ;;  %v1081_v56 = vsel %vm1080_vm1, %v4780_v47, %v4781_v45 }
  0x86   :  { %4132 = vmatpush3.bf16.msra.mxu0 %v5747_v27  ;;  %v4789_v49 = vpop.permute.xlu1 %4788  ;;  %v200_v39 = vsel %vm193_vm0, %v4775_v63, %v4776_v62 }
  0x87   :  { %v4784_v50 = vpop.permute.xlu0 %4783  ;;  %4134 = vmatprep.subr.bf16.mxu0 %v5757_v43  ;;  %v4791_v53 = vunpack.i.h.bf16 %v4789_v49  ;;  %v4790_v54 = vunpack.i.l.bf16 %v4789_v49 }
  0x88   :  { %v4786_v51 = vunpack.i.h.bf16 %v4784_v50  ;;  %v4785_v52 = vunpack.i.l.bf16 %v4784_v50  ;;  %5078 = vrot.lane.b32.xlu1 %v5471_v10, %s5400_s5 }
  0x89   :  { %5073 = vrot.lane.b32.xlu0 %v5444_v3, %s5400_s5  ;;  %v1083_v9 = vsel %vm1080_vm1, %v4790_v54, %v4791_v53 }
  0x8a   :  { %4136 = vmatpush3.bf16.msra.mxu0 %v5757_v43  ;;  %v4799_v55 = vpop.permute.xlu1 %4798  ;;  %v1082_v57 = vsel %vm1080_vm1, %v4785_v52, %v4786_v51 }
  0x8b   :  { %v4794_v58 = vpop.permute.xlu0 %4793  ;;  %v4253_v59 = vpack.c.bf16 %v1082_v57, %v1081_v56  ;;  %v4801_v1 = vunpack.i.h.bf16 %v4799_v55  ;;  %v4800_v4 = vunpack.i.l.bf16 %v4799_v55 }
  0x8c   :  { %v4796_v60 = vunpack.i.h.bf16 %v4794_v58  ;;  %v4795_v61 = vunpack.i.l.bf16 %v4794_v58  ;;  %5088 = vrot.lane.b32.xlu1 %v5497_v16, %s5400_s5 }
  0x8d   :  { %5083 = vrot.lane.b32.xlu0 %v5502_v17, %s5400_s5  ;;  %4254 = vmatprep.subr.bf16.mxu1 %v4253_v59  ;;  %v1085_v50 = vsel %vm1080_vm1, %v4800_v4, %v4801_v1 }
  0x8e   :  { %4256 = vmatpush3.bf16.msra.mxu1 %v4253_v59  ;;  %v4809_v6 = vpop.permute.xlu1 %4808  ;;  %v1084_v13 = vsel %vm1080_vm1, %v4795_v61, %v4796_v60 }
  0x8f   :  { %v4811_v19 = vunpack.i.h.bf16 %v4809_v6  ;;  %v4810_v22 = vunpack.i.l.bf16 %v4809_v6  ;;  %v4804_v25 = vpop.permute.xlu0 %4803  ;;  %v4257_v31 = vpack.c.bf16 %v1084_v13, %v1083_v9 }
  0x90   :  { %v4806_v33 = vunpack.i.h.bf16 %v4804_v25  ;;  %v4805_v37 = vunpack.i.l.bf16 %v4804_v25  ;;  %5098 = vrot.lane.b32.xlu1 %v5538_v23, %s5400_s5 }
  0x91   :  { %v201_v45 = vsel %vm193_vm0, %v4810_v22, %v4811_v19  ;;  %5093 = vrot.lane.b32.xlu0 %v5517_v20, %s5400_s5  ;;  %4258 = vmatprep.subr.bf16.mxu1 %v4257_v31 }
  0x92   :  { %4260 = vmatpush3.bf16.msra.mxu1 %v4257_v31  ;;  %v4819_v47 = vpop.permute.xlu1 %4818  ;;  %v5780_v49 = vpack.c.bf16 %v201_v45, %v200_v39  ;;  %v1086_v51 = vsel %vm1080_vm1, %v4805_v37, %v4806_v33 }
  0x93   :  { %v4821_v52 = vunpack.i.h.bf16 %v4819_v47  ;;  %v4820_v53 = vunpack.i.l.bf16 %v4819_v47  ;;  %v4814_v54 = vpop.permute.xlu0 %4813  ;;  %v4261_v55 = vpack.c.bf16 %v1086_v51, %v1085_v50 }
  0x94   :  { %v4816_v56 = vunpack.i.h.bf16 %v4814_v54  ;;  %v4815_v57 = vunpack.i.l.bf16 %v4814_v54  ;;  %5108 = vrot.lane.b32.xlu1 %v5565_v28, %s5400_s5  ;;  %4138 = vmatprep.subr.bf16.mxu0 %v5780_v49 }
  0x95   :  { %5103 = vrot.lane.b32.xlu0 %v5570_v29, %s5400_s5  ;;  %4262 = vmatprep.subr.bf16.mxu1 %v4261_v55  ;;  %v1088_v58 = vsel %vm1080_vm1, %v4820_v53, %v4821_v52 }
  0x96   :  { %4140 = vmatpush3.bf16.msra.mxu0 %v5780_v49  ;;  %4264 = vmatpush3.bf16.msra.mxu1 %v4261_v55  ;;  %v4829_v59 = vpop.permute.xlu1 %4828  ;;  %v1087_v60 = vsel %vm1080_vm1, %v4815_v57, %v4816_v56 }
  0x97   :  { %v4831_v61 = vunpack.i.h.bf16 %v4829_v59  ;;  %v4830_v62 = vunpack.i.l.bf16 %v4829_v59  ;;  %v4824_v63 = vpop.permute.xlu0 %4823  ;;  %v4265_v1 = vpack.c.bf16 %v1088_v58, %v1087_v60 }
  0x98   :  { %v4826_v4 = vunpack.i.h.bf16 %v4824_v63  ;;  %v4825_v6 = vunpack.i.l.bf16 %v4824_v63  ;;  %5118 = vrot.lane.b32.xlu1 %v5595_v34, %s5400_s5 }
  0x99   :  { %v203_v9 = vsel %vm193_vm0, %v4830_v62, %v4831_v61  ;;  %5113 = vrot.lane.b32.xlu0 %v5600_v35, %s5400_s5  ;;  %4266 = vmatprep.subr.bf16.mxu1 %v4265_v1 }
  0x9a   :  { %v202_v13 = vsel %vm193_vm0, %v4825_v6, %v4826_v4  ;;  %4268 = vmatpush3.bf16.msra.mxu1 %v4265_v1  ;;  %v4839_v19 = vpop.permute.xlu1 %4838 }
  0x9b   :  { %v4841_v22 = vunpack.i.h.bf16 %v4839_v19  ;;  %v4840_v25 = vunpack.i.l.bf16 %v4839_v19  ;;  %v4834_v31 = vpop.permute.xlu0 %4833  ;;  %v5798_v33 = vpack.c.bf16 %v203_v9, %v202_v13 }
  0x9c   :  { %v4836_v37 = vunpack.i.h.bf16 %v4834_v31  ;;  %v4835_v39 = vunpack.i.l.bf16 %v4834_v31  ;;  %5128 = vrot.lane.b32.xlu1 %v5625_v40, %s5400_s5 }
  0x9d   :  { %5123 = vrot.lane.b32.xlu0 %v5630_v41, %s5400_s5  ;;  %4142 = vmatprep.subr.bf16.mxu0 %v5798_v33  ;;  %v1090_v45 = vsel %vm1080_vm1, %v4840_v25, %v4841_v22 }
  0x9e   :  { %4144 = vmatpush3.bf16.msra.mxu0 %v5798_v33  ;;  %v4849_v47 = vpop.permute.xlu1 %4848  ;;  %v1089_v50 = vsel %vm1080_vm1, %v4835_v39, %v4836_v37 }
  0x9f   :  { %v4851_v51 = vunpack.i.h.bf16 %v4849_v47  ;;  %v4850_v52 = vunpack.i.l.bf16 %v4849_v47  ;;  %v4844_v53 = vpop.permute.xlu0 %4843  ;;  %v4269_v54 = vpack.c.bf16 %v1090_v45, %v1089_v50 }
  0xa0   :  { %v4846_v55 = vunpack.i.h.bf16 %v4844_v53  ;;  %v4845_v56 = vunpack.i.l.bf16 %v4844_v53  ;;  %5138 = vrot.lane.b32.xlu1 %v5655_v46, %s5400_s5 }
  0xa1   :  { %v205_v57 = vsel %vm193_vm0, %v4850_v52, %v4851_v51  ;;  %5133 = vrot.lane.b32.xlu0 %v5663_v48, %s5400_s5  ;;  %4270 = vmatprep.subr.bf16.mxu1 %v4269_v54 }
  0xa2   :  { %v204_v58 = vsel %vm193_vm0, %v4845_v56, %v4846_v55  ;;  %4272 = vmatpush3.bf16.msra.mxu1 %v4269_v54  ;;  %v4859_v59 = vpop.permute.xlu1 %4858 }
  0xa3   :  { %v4861_v60 = vunpack.i.h.bf16 %v4859_v59  ;;  %v4860_v61 = vunpack.i.l.bf16 %v4859_v59  ;;  %v4854_v62 = vpop.permute.xlu0 %4853  ;;  %v5814_v63 = vpack.c.bf16 %v205_v57, %v204_v58 }
  0xa4   :  { %v4856_v1 = vunpack.i.h.bf16 %v4854_v62  ;;  %v4855_v4 = vunpack.i.l.bf16 %v4854_v62  ;;  %5148 = vrot.lane.b32.xlu1 %v5476_v11, %s5401_s18 }
  0xa5   :  { %4146 = vmatprep.subr.bf16.mxu0 %v5814_v63  ;;  %v1092_v46 = vsel %vm1080_vm1, %v4860_v61, %v4861_v60  ;;  %5143 = vrot.lane.b32.xlu0 %v5458_v7, %s5401_s18 }
  0xa6   :  { %4148 = vmatpush3.bf16.msra.mxu0 %v5814_v63  ;;  %v4869_v48 = vpop.permute.xlu1 %4868  ;;  %v1091_v6 = vsel %vm1080_vm1, %v4855_v4, %v4856_v1 }
  0xa7   :  { %v4871_v9 = vunpack.i.h.bf16 %v4869_v48  ;;  %v4870_v13 = vunpack.i.l.bf16 %v4869_v48  ;;  %v4864_v19 = vpop.permute.xlu0 %4863  ;;  %v4273_v22 = vpack.c.bf16 %v1092_v46, %v1091_v6 }
  0xa8   :  { %v4866_v25 = vunpack.i.h.bf16 %v4864_v19  ;;  %v4865_v31 = vunpack.i.l.bf16 %v4864_v19  ;;  %5158 = vrot.lane.b32.xlu1 %v5476_v11, %s5402_s12 }
  0xa9   :  { %v207_v37 = vsel %vm193_vm0, %v4870_v13, %v4871_v9  ;;  %4274 = vmatprep.subr.bf16.mxu1 %v4273_v22  ;;  %5153 = vrot.lane.b32.xlu0 %v5458_v7, %s5402_s12  ;;  %v4157_v13 = vpack.c.bf16 %v5463_v8, %v5441_v2  ;;  %v90_v2 = vld [vmem:[%s7107_s1 + $0x48] sm:$0xff] }
  0xaa   :  { %v206_v39 = vsel %vm193_vm0, %v4865_v31, %v4866_v25  ;;  %4276 = vmatpush3.bf16.msra.mxu1 %v4273_v22  ;;  %v4879_v45 = vpop.permute.xlu1 %4878 }
  0xab   :  { %v4881_v47 = vunpack.i.h.bf16 %v4879_v45  ;;  %v4880_v50 = vunpack.i.l.bf16 %v4879_v45  ;;  %v4874_v51 = vpop.permute.xlu0 %4873  ;;  %v5830_v52 = vpack.c.bf16 %v207_v37, %v206_v39  ;;  %v4161_v37 = vpack.c.bf16 %v5452_v5, %v5433_v0  ;;  %v91_v39 = vld [vmem:[%s7107_s1 + $0x50] sm:$0xff]  ;;  %v92_v0 = vld [vmem:[%s7107_s1 + $0x58] sm:$0xff] }
  0xac   :  { %v4876_v53 = vunpack.i.h.bf16 %v4874_v51  ;;  %v4875_v54 = vunpack.i.l.bf16 %v4874_v51  ;;  %5168 = vrot.lane.b32.xlu1 %v5471_v10, %s5401_s18  ;;  %v93_v51 = vld [vmem:[%s7107_s1 + $0x60] sm:$0xff] }
  0xad   :  { %4150 = vmatprep.subr.bf16.mxu0 %v5830_v52  ;;  %v1094_v11 = vsel %vm1080_vm1, %v4880_v50, %v4881_v47  ;;  %5163 = vrot.lane.b32.xlu0 %v5444_v3, %s5401_s18  ;;  %v1009_v47 = vld [vmem:[%s7107_s1 + $0x148] sm:$0xff]  ;;  %v4165_v50 = vpack.c.bf16 %v5481_v12, %v5489_v14  ;;  %v1011_v14 = vld [vmem:[%s7107_s1 + $0x158] sm:$0xff] }
  0xae   :  { %4152 = vmatpush3.bf16.msra.mxu0 %v5830_v52  ;;  %v4889_v7 = vpop.permute.xlu1 %4888  ;;  %v1093_v55 = vsel %vm1080_vm1, %v4875_v54, %v4876_v53  ;;  %v1010_v53 = vld [vmem:[%s7107_s1 + $0x150] sm:$0xff]  ;;  %v94_v12 = vld [vmem:[%s7107_s1 + $0x68] sm:$0xff] }
  0xaf   :  { %v4891_v56 = vunpack.i.h.bf16 %v4889_v7  ;;  %v4890_v57 = vunpack.i.l.bf16 %v4889_v7  ;;  %v4884_v58 = vpop.permute.xlu0 %4883  ;;  %v4277_v59 = vpack.c.bf16 %v1094_v11, %v1093_v55  ;;  %v4169_v7 = vpack.c.bf16 %v5530_v21, %v5507_v18  ;;  %v1012_v55 = vld [vmem:[%s7107_s1 + $0x160] sm:$0xff]  ;;  %v96_v18 = vld [vmem:[%s7107_s1 + $0x78] sm:$0xff]  ;;  %v1013_v21 = vld [vmem:[%s7107_s1 + $0x168] sm:$0xff] }
  0xb0   :  { %v4886_v60 = vunpack.i.h.bf16 %v4884_v58  ;;  %v4885_v61 = vunpack.i.l.bf16 %v4884_v58  ;;  %5178 = vrot.lane.b32.xlu1 %v5471_v10, %s5402_s12  ;;  %v4173_v58 = vpack.c.bf16 %v5549_v24, %v5557_v26  ;;  %v1015_v24 = vld [vmem:[%s7107_s1 + $0x178] sm:$0xff] }
  0xb1   :  { %v209_v62 = vsel %vm193_vm0, %v4890_v57, %v4891_v56  ;;  %4278 = vmatprep.subr.bf16.mxu1 %v4277_v59  ;;  %5173 = vrot.lane.b32.xlu0 %v5444_v3, %s5402_s12 }
  0xb2   :  { %v208_v1 = vsel %vm193_vm0, %v4885_v61, %v4886_v60  ;;  %4280 = vmatpush3.bf16.msra.mxu1 %v4277_v59  ;;  %v4899_v4 = vpop.permute.xlu1 %4898  ;;  %v1014_v59 = vld [vmem:[%s7107_s1 + $0x170] sm:$0xff]  ;;  %v4177_v61 = vpack.c.bf16 %v5579_v30, %v5587_v32 }
  0xb3   :  { %v4901_v46 = vunpack.i.h.bf16 %v4899_v4  ;;  %v4900_v48 = vunpack.i.l.bf16 %v4899_v4  ;;  %v4894_v6 = vpop.permute.xlu0 %4893  ;;  %v5846_v9 = vpack.c.bf16 %v209_v62, %v208_v1 }
  0xb4   :  { %v4896_v19 = vunpack.i.h.bf16 %v4894_v6  ;;  %v4895_v10 = vunpack.i.l.bf16 %v4894_v6  ;;  %5188 = vrot.lane.b32.xlu1 %v5497_v16, %s5401_s18 }
  0xb5   :  { %4154 = vmatprep.subr.bf16.mxu0 %v5846_v9  ;;  %v1096_v3 = vsel %vm1080_vm1, %v4900_v48, %v4901_v46  ;;  %5183 = vrot.lane.b32.xlu0 %v5502_v17, %s5401_s18  ;;  %v1000_v46 = vld [vmem:[%s7107_s1 + $0x100] sm:$0xff]  ;;  %v4181_v48 = vpack.c.bf16 %v5609_v36, %v5617_v38 }
  0xb6   :  { %4156 = vmatpush3.bf16.msra.mxu0 %v5846_v9  ;;  %v5857_v22 = vpop.permute.xlu1 %4908  ;;  %v1095_v25 = vsel %vm1080_vm1, %v4895_v10, %v4896_v19 }
  0xb7   :  { %v5863_v8 = vpop.permute.xlu0 %4903  ;;  %4158 = vmatprep.subr.bf16.mxu0 %v4157_v13  ;;  %v4281_v31 = vpack.c.bf16 %v1096_v3, %v1095_v25  ;;  %v4911_v62 = vunpack.i.h.bf16 %v5857_v22  ;;  %v4910_v1 = vunpack.i.l.bf16 %v5857_v22 }
  0xb8   :  { %5198 = vrot.lane.b32.xlu1 %v5497_v16, %s5402_s12  ;;  %v4905_v4 = vunpack.i.l.bf16 %v5863_v8 }
  0xb9   :  { %4282 = vmatprep.subr.bf16.mxu1 %v4281_v31  ;;  %3454 = vmatmul.mubr.f32.vlgmr.msra.gmra.mrb[0].mxu0 %v90_v2  ;;  %v510_v6 = vsel %vm508_vm2, %v4910_v1, %v4911_v62  ;;  %v83_v1 = vld [vmem:[%s7107_s1 + $0x10] sm:$0xff] }
  0xba   :  { %4160 = vmatpush3.bf16.msra.mxu0 %v4157_v13  ;;  %4284 = vmatpush3.bf16.msra.mxu1 %v4281_v31  ;;  %v5872_v45 = vpop.permute.xlu1 %4918  ;;  %v4185_v31 = vpack.c.bf16 %v5639_v42, %v5647_v44 }
  0xbb   :  { %v5880_v5 = vpop.permute.xlu0 %4913  ;;  %4286 = vmatprep.subr.bf16.mxu1 %v5739_v15  ;;  %4162 = vmatprep.subr.bf16.mxu0 %v4161_v37  ;;  %v4920_v19 = vunpack.i.l.bf16 %v5872_v45 }
  0xbc   :  { %3456 = vmatprep.mubr.f32.mxu0 %v91_v39  ;;  %5193 = vrot.lane.b32.xlu0 %v5502_v17, %s5402_s12  ;;  %v4916_v10 = vunpack.i.h.bf16 %v5880_v5  ;;  %v4915_v3 = vunpack.i.l.bf16 %v5880_v5 }
  0xbd   :  { %3630 = vmatmul.mubr.f32.vlgmr.msra.gmra.mrb[0].mxu1 %v1009_v47  ;;  %3457 = vmatmul.mubr.f32.gmra.mrb[2].mxu0 %v92_v0 }
  0xbe   :  { %4164 = vmatpush3.bf16.msra.mxu0 %v4161_v37  ;;  %4288 = vmatpush3.bf16.msra.mxu1 %v5739_v15  ;;  %v5894_v54 = vpop.permute.xlu1 %4928  ;;  %v95_v15 = vld [vmem:[%s7107_s1 + $0x70] sm:$0xff] }
  0xbf   :  { %v5902_v11 = vpop.permute.xlu0 %4923  ;;  %4290 = vmatprep.subr.bf16.mxu1 %v5747_v27  ;;  %4166 = vmatprep.subr.bf16.mxu0 %v4165_v50  ;;  %v4931_v36 = vunpack.i.h.bf16 %v5894_v54  ;;  %v4930_v38 = vunpack.i.l.bf16 %v5894_v54 }
  0xc0   :  { %3459 = vmatprep.mubr.f32.mxu0 %v93_v51  ;;  %3632 = vmatprep.mubr.f32.mxu1 %v1010_v53  ;;  %v4926_v22 = vunpack.i.h.bf16 %v5902_v11  ;;  %v4925_v25 = vunpack.i.l.bf16 %v5902_v11 }
  0xc1   :  { %3460 = vmatmul.mubr.f32.gmra.mrb[4].mxu0 %v94_v12  ;;  %3633 = vmatmul.mubr.f32.gmra.mrb[2].mxu1 %v1011_v14 }
  0xc2   :  { %4168 = vmatpush3.bf16.msra.mxu0 %v4165_v50  ;;  %4292 = vmatpush3.bf16.msra.mxu1 %v5747_v27  ;;  %v5914_v56 = vpop.permute.xlu1 %4938  ;;  %v81_v27 = vld [vmem:[%s7107_s1] sm:$0xff]  ;;  %v511_v47 = vsel %vm508_vm2, %v4925_v25, %v4926_v22 }
  0xc3   :  { %v5922_v57 = vpop.permute.xlu0 %4933  ;;  %4294 = vmatprep.subr.bf16.mxu1 %v5757_v43  ;;  %4170 = vmatprep.subr.bf16.mxu0 %v4169_v7  ;;  %v4941_v44 = vunpack.i.h.bf16 %v5914_v56  ;;  %v4940_v0 = vunpack.i.l.bf16 %v5914_v56 }
  0xc4   :  { %3462 = vmatprep.mubr.f32.mxu0 %v95_v15  ;;  %3635 = vmatprep.mubr.f32.mxu1 %v1012_v55  ;;  %v4936_v5 = vunpack.i.h.bf16 %v5922_v57  ;;  %v4935_v50 = vunpack.i.l.bf16 %v5922_v57 }
  0xc5   :  { %3463 = vmatmul.mubr.f32.gmra.mrb[6].mxu0 %v96_v18  ;;  %3636 = vmatmul.mubr.f32.gmra.mrb[4].mxu1 %v1013_v21 }
  0xc6   :  { %4172 = vmatpush3.bf16.msra.mxu0 %v4169_v7  ;;  %4296 = vmatpush3.bf16.msra.mxu1 %v5757_v43  ;;  %v5934_v60 = vpop.permute.xlu1 %4948  ;;  %v4906_v43 = vunpack.i.h.bf16 %v5863_v8 }
  0xc7   :  { %v5939_v26 = vpop.permute.xlu0 %4943  ;;  %4298 = vmatprep.subr.bf16.mxu1 %v5780_v49  ;;  %4174 = vmatprep.subr.bf16.mxu0 %v4173_v58  ;;  %v4951_v53 = vunpack.i.h.bf16 %v5934_v60  ;;  %v4950_v54 = vunpack.i.l.bf16 %v5934_v60  ;;  %v730_v60 = vsel %vm726_vm3, %v4940_v0, %v4941_v44 }
  0xc8   :  { %3497 = vmatprep.mubr.f32.mxu0 %v81_v27  ;;  %3638 = vmatprep.mubr.f32.mxu1 %v1014_v59  ;;  %v509_v13 = vsel %vm508_vm2, %v4905_v4, %v4906_v43  ;;  %v4945_v12 = vunpack.i.l.bf16 %v5939_v26 }
  0xc9   :  { %3639 = vmatmul.mubr.f32.gmra.mrb[6].mxu1 %v1015_v24  ;;  %5208 = vrot.lane.b32.xlu1 %v5538_v23, %s5401_s18  ;;  %v5982_v39 = vpack.c.bf16 %v510_v6, %v509_v13  ;;  %v729_v24 = vsel %vm726_vm3, %v4935_v50, %v4936_v5 }
  0xca   :  { %4176 = vmatpush3.bf16.msra.mxu0 %v4173_v58  ;;  %4300 = vmatpush3.bf16.msra.mxu1 %v5780_v49  ;;  %v5954_v30 = vpop.permute.xlu1 %4958  ;;  %v4921_v49 = vunpack.i.h.bf16 %v5872_v45  ;;  %v512_v45 = vsel %vm508_vm2, %v4930_v38, %v4931_v36  ;;  %v82_v58 = vld [vmem:[%s7107_s1 + $0x8] sm:$0xff]  ;;  %v6052_v22 = vpack.c.bf16 %v730_v60, %v729_v24  ;;  %v87_v60 = vld [vmem:[%s7107_s1 + $0x30] sm:$0xff]  ;;  %v1004_v24 = vld [vmem:[%s7107_s1 + $0x120] sm:$0xff] }
  0xcb   :  { %v5956_v32 = vpop.permute.xlu0 %4953  ;;  %4302 = vmatprep.subr.bf16.mxu1 %v5798_v33  ;;  %4178 = vmatprep.subr.bf16.mxu0 %v4177_v61  ;;  %v4961_v14 = vunpack.i.h.bf16 %v5954_v30  ;;  %v4960_v11 = vunpack.i.l.bf16 %v5954_v30 }
  0xcc   :  { %5203 = vrot.lane.b32.xlu0 %v5517_v20, %s5401_s18  ;;  %3673 = vmatprep.mubr.f32.mxu1 %v1000_v46  ;;  %v728_v37 = vsel %vm726_vm3, %v4920_v19, %v4921_v49  ;;  %v4956_v7 = vunpack.i.h.bf16 %v5956_v32  ;;  %v4955_v15 = vunpack.i.l.bf16 %v5956_v32  ;;  %v1001_v32 = vld [vmem:[%s7107_s1 + $0x108] sm:$0xff] }
  0xcd   :  { %5218 = vrot.lane.b32.xlu1 %v5538_v23, %s5402_s12  ;;  %v732_v62 = vsel %vm726_vm3, %v4960_v11, %v4961_v14 }
  0xce   :  { %4180 = vmatpush3.bf16.msra.mxu0 %v4177_v61  ;;  %4304 = vmatpush3.bf16.msra.mxu1 %v5798_v33  ;;  %v4969_v2 = vpop.permute.xlu1 %4968  ;;  %v727_v33 = vsel %vm726_vm3, %v4915_v3, %v4916_v10  ;;  %v731_v43 = vsel %vm726_vm3, %v4955_v15, %v4956_v7 }
  0xcf   :  { %v4964_v8 = vpop.permute.xlu0 %4963  ;;  %4306 = vmatprep.subr.bf16.mxu1 %v5814_v63  ;;  %4182 = vmatprep.subr.bf16.mxu0 %v4181_v48  ;;  %v4971_v55 = vunpack.i.h.bf16 %v4969_v2  ;;  %v4970_v56 = vunpack.i.l.bf16 %v4969_v2  ;;  %v6017_v59 = vpack.c.bf16 %v728_v37, %v727_v33  ;;  %v6064_v37 = vpack.c.bf16 %v732_v62, %v731_v43 }
  0xd0   :  { %5213 = vrot.lane.b32.xlu0 %v5517_v20, %s5402_s12  ;;  %v4966_v18 = vunpack.i.h.bf16 %v4964_v8  ;;  %v4965_v21 = vunpack.i.l.bf16 %v4964_v8  ;;  %v85_v8 = vld [vmem:[%s7107_s1 + $0x20] sm:$0xff] }
  0xd1   :  { %5228 = vrot.lane.b32.xlu1 %v5565_v28, %s5401_s18  ;;  %v516_v4 = vsel %vm508_vm2, %v4970_v56, %v4971_v55 }
  0xd2   :  { %4184 = vmatpush3.bf16.msra.mxu0 %v4181_v48  ;;  %4308 = vmatpush3.bf16.msra.mxu1 %v5814_v63  ;;  %v5990_v42 = vpop.permute.xlu1 %4978  ;;  %v4946_v63 = vunpack.i.h.bf16 %v5939_v26  ;;  %v6021_v26 = vpack.c.bf16 %v512_v45, %v511_v47  ;;  %v515_v46 = vsel %vm508_vm2, %v4965_v21, %v4966_v18  ;;  %v84_v48 = vld [vmem:[%s7107_s1 + $0x18] sm:$0xff] }
  0xd3   :  { %v5996_v51 = vpop.permute.xlu0 %4973  ;;  %4310 = vmatprep.subr.bf16.mxu1 %v5830_v52  ;;  %4186 = vmatprep.subr.bf16.mxu0 %v4185_v31  ;;  %v4981_v6 = vunpack.i.h.bf16 %v5990_v42  ;;  %v4980_v13 = vunpack.i.l.bf16 %v5990_v42  ;;  %v6069_v47 = vpack.c.bf16 %v516_v4, %v515_v46  ;;  %v88_v4 = vld [vmem:[%s7107_s1 + $0x38] sm:$0xff]  ;;  %v1005_v46 = vld [vmem:[%s7107_s1 + $0x128] sm:$0xff] }
  0xd4   :  { %5223 = vrot.lane.b32.xlu0 %v5570_v29, %s5401_s18  ;;  %v513_v61 = vsel %vm508_vm2, %v4945_v12, %v4946_v63  ;;  %v4976_v49 = vunpack.i.h.bf16 %v5996_v51  ;;  %v4975_v19 = vunpack.i.l.bf16 %v5996_v51  ;;  %v1003_v63 = vld [vmem:[%s7107_s1 + $0x118] sm:$0xff] }
  0xd5   :  { %5238 = vrot.lane.b32.xlu1 %v5565_v28, %s5402_s12  ;;  %v734_v33 = vsel %vm726_vm3, %v4980_v13, %v4981_v6 }
  0xd6   :  { %4188 = vmatpush3.bf16.msra.mxu0 %v4185_v31  ;;  %4312 = vmatpush3.bf16.msra.mxu1 %v5830_v52  ;;  %v4989_v57 = vpop.permute.xlu1 %4988  ;;  %v514_v52 = vsel %vm508_vm2, %v4950_v54, %v4951_v53  ;;  %v1002_v31 = vld [vmem:[%s7107_s1 + $0x110] sm:$0xff]  ;;  %v733_v42 = vsel %vm726_vm3, %v4975_v19, %v4976_v49  ;;  %v86_v54 = vld [vmem:[%s7107_s1 + $0x28] sm:$0xff] }
  0xd7   :  { %v4984_v27 = vpop.permute.xlu0 %4983  ;;  %4190 = vmatprep.subr.bf16.mxu0 %v5982_v39  ;;  %4314 = vmatprep.subr.bf16.mxu1 %v5846_v9  ;;  %v4990_v3 = vunpack.i.l.bf16 %v4989_v57  ;;  %v6054_v25 = vpack.c.bf16 %v514_v52, %v513_v61  ;;  %v6088_v56 = vpack.c.bf16 %v734_v33, %v733_v42 }
  0xd8   :  { %5233 = vrot.lane.b32.xlu0 %v5570_v29, %s5402_s12  ;;  %v4986_v36 = vunpack.i.h.bf16 %v4984_v27  ;;  %v4985_v38 = vunpack.i.l.bf16 %v4984_v27 }
  0xd9   :  { %3498 = vmatmul.mubr.f32.vlgmr.msra.gmra.mrb[0].mxu0 %v82_v58  ;;  %5248 = vrot.lane.b32.xlu1 %v5595_v34, %s5401_s18 }
  0xda   :  { %4192 = vmatpush3.bf16.msra.mxu0 %v5982_v39  ;;  %4316 = vmatpush3.bf16.msra.mxu1 %v5846_v9  ;;  %v4999_v30 = vpop.permute.xlu1 %4998  ;;  %v4991_v9 = vunpack.i.h.bf16 %v4989_v57  ;;  %v517_v0 = vsel %vm508_vm2, %v4985_v38, %v4986_v36 }
  0xdb   :  { %v4994_v10 = vpop.permute.xlu0 %4993  ;;  %4194 = vmatprep.subr.bf16.mxu0 %v6021_v26  ;;  %4318 = vmatprep.subr.bf16.mxu1 %v6017_v59  ;;  %v5001_v5 = vunpack.i.h.bf16 %v4999_v30  ;;  %v5000_v50 = vunpack.i.l.bf16 %v4999_v30 }
  0xdc   :  { %5243 = vrot.lane.b32.xlu0 %v5600_v35, %s5401_s18  ;;  %3500 = vmatprep.mubr.f32.mxu0 %v83_v1  ;;  %v518_v44 = vsel %vm508_vm2, %v4990_v3, %v4991_v9  ;;  %v4996_v51 = vunpack.i.h.bf16 %v4994_v10  ;;  %v4995_v53 = vunpack.i.l.bf16 %v4994_v10 }
  0xdd   :  { %3674 = vmatmul.mubr.f32.vlgmr.msra.gmra.mrb[0].mxu1 %v1001_v32  ;;  %3501 = vmatmul.mubr.f32.gmra.mrb[2].mxu0 %v84_v48  ;;  %v6090_v18 = vpack.c.bf16 %v518_v44, %v517_v0  ;;  %v736_v21 = vsel %vm726_vm3, %v5000_v50, %v5001_v5  ;;  %v5384_v0 = vld [vmem:[%s7106_s0 + $0xf0] sm:$0xff]  ;;  %v5385_v5 = vld [vmem:[%s7106_s0 + $0xf8] sm:$0xff] }
  0xde   :  { %4196 = vmatpush3.bf16.msra.mxu0 %v6021_v26  ;;  %4320 = vmatpush3.bf16.msra.mxu1 %v6017_v59  ;;  %v5009_v2 = vpop.permute.xlu1 %5008  ;;  %v735_v57 = vsel %vm726_vm3, %v4995_v53, %v4996_v51  ;;  %v6144_v50 = vpack.i.bf16 %v5385_v5, %v5384_v0 }
  0xdf   :  { %v5004_v45 = vpop.permute.xlu0 %5003  ;;  %4198 = vmatprep.subr.bf16.mxu0 %v6054_v25  ;;  %4322 = vmatprep.subr.bf16.mxu1 %v6052_v22  ;;  %v5011_v12 = vunpack.i.h.bf16 %v5009_v2  ;;  %v5010_v14 = vunpack.i.l.bf16 %v5009_v2  ;;  %v6116_v49 = vpack.c.bf16 %v736_v21, %v735_v57  ;;  %v436_v2 = vld [vmem:[%s7107_s1 + $0x80] sm:$0xff] }
  0xe0   :  { %5258 = vrot.lane.b32.xlu1 %v5595_v34, %s5402_s12  ;;  %5253 = vrot.lane.b32.xlu0 %v5600_v35, %s5402_s12  ;;  %v5006_v11 = vunpack.i.h.bf16 %v5004_v45  ;;  %v5005_v7 = vunpack.i.l.bf16 %v5004_v45 }
  0xe1   :  { %3503 = vmatprep.mubr.f32.mxu0 %v85_v8  ;;  %3676 = vmatprep.mubr.f32.mxu1 %v1002_v31  ;;  %v520_v52 = vsel %vm508_vm2, %v5010_v14, %v5011_v12  ;;  %v1006_v8 = vld [vmem:[%s7107_s1 + $0x130] sm:$0xff]  ;;  %v5387_v12 = vld [vmem:[%s7106_s0 + $0xe8] sm:$0xff] }
  0xe2   :  { %4200 = vmatpush3.bf16.msra.mxu0 %v6054_v25  ;;  %4324 = vmatpush3.bf16.msra.mxu1 %v6052_v22  ;;  %v5019_v15 = vpop.permute.xlu1 %5018  ;;  %v519_v61 = vsel %vm508_vm2, %v5005_v7, %v5006_v11 }
  0xe3   :  { %v5014_v55 = vpop.permute.xlu0 %5013  ;;  %4202 = vmatprep.subr.bf16.mxu0 %v6069_v47  ;;  %4326 = vmatprep.subr.bf16.mxu1 %v6064_v37  ;;  %v5021_v58 = vunpack.i.h.bf16 %v5019_v15  ;;  %v5020_v27 = vunpack.i.l.bf16 %v5019_v15  ;;  %v6118_v19 = vpack.c.bf16 %v520_v52, %v519_v61 }
  0xe4   :  { %3504 = vmatmul.mubr.f32.gmra.mrb[4].mxu0 %v86_v54  ;;  %3677 = vmatmul.mubr.f32.gmra.mrb[2].mxu1 %v1003_v63  ;;  %v5016_v62 = vunpack.i.h.bf16 %v5014_v55  ;;  %v5015_v1 = vunpack.i.l.bf16 %v5014_v55  ;;  %v1007_v54 = vld [vmem:[%s7107_s1 + $0x138] sm:$0xff]  ;;  %v5386_v63 = vld [vmem:[%s7106_s0 + $0xe0] sm:$0xff] }
  0xe5   :  { %5268 = vrot.lane.b32.xlu1 %v5625_v40, %s5401_s18  ;;  %5263 = vrot.lane.b32.xlu0 %v5630_v41, %s5401_s18  ;;  %v738_v10 = vsel %vm726_vm3, %v5020_v27, %v5021_v58  ;;  %v6159_v14 = vpack.i.bf16 %v5387_v12, %v5386_v63  ;;  %v1323_v55 = vld [vmem:[%s7107_s1 + $0x180] sm:$0xff]  ;;  %v5393_v63 = vld [vmem:[%s7106_s0 + $0x38] sm:$0xff] }
  0xe6   :  { %4204 = vmatpush3.bf16.msra.mxu0 %v6069_v47  ;;  %4328 = vmatpush3.bf16.msra.mxu1 %v6064_v37  ;;  %v5029_v43 = vpop.permute.xlu1 %5028  ;;  %v737_v9 = vsel %vm726_vm3, %v5015_v1, %v5016_v62 }
  0xe7   :  { %v5031_v30 = vunpack.i.h.bf16 %v5029_v43  ;;  %v5030_v32 = vunpack.i.l.bf16 %v5029_v43  ;;  %v5024_v48 = vpop.permute.xlu0 %5023  ;;  %4206 = vmatprep.subr.bf16.mxu0 %v6090_v18  ;;  %4330 = vmatprep.subr.bf16.mxu1 %v6088_v56  ;;  %v6146_v51 = vpack.c.bf16 %v738_v10, %v737_v9 }
  0xe8   :  { %v5026_v6 = vunpack.i.h.bf16 %v5024_v48  ;;  %v5025_v13 = vunpack.i.l.bf16 %v5024_v48  ;;  %3506 = vmatprep.mubr.f32.mxu0 %v87_v60  ;;  %3679 = vmatprep.mubr.f32.mxu1 %v1004_v24 }
  0xe9   :  { %3507 = vmatmul.mubr.f32.gmra.mrb[6].mxu0 %v88_v4  ;;  %3680 = vmatmul.mubr.f32.gmra.mrb[4].mxu1 %v1005_v46  ;;  %v522_v3 = vsel %vm508_vm2, %v5030_v32, %v5031_v30  ;;  %v5403_v30 = vmov 0  }
  0xea   :  { %v521_v36 = vsel %vm508_vm2, %v5025_v13, %v5026_v6  ;;  %4208 = vmatpush3.bf16.msra.mxu0 %v6090_v18  ;;  %4332 = vmatpush3.bf16.msra.mxu1 %v6088_v56  ;;  %v5039_v38 = vpop.permute.xlu1 %5038  ;;  %v5388_v6 = vld [vmem:[%s7106_s0 + $0x10] sm:$0xff]  ;;  %v5389_v13 = vld [vmem:[%s7106_s0 + $0x18] sm:$0xff] }
  0xeb   :  { %v5041_v31 = vunpack.i.h.bf16 %v5039_v38  ;;  %v5040_v33 = vunpack.i.l.bf16 %v5039_v38  ;;  %v5034_v45 = vpop.permute.xlu0 %5033  ;;  %4210 = vmatprep.subr.bf16.mxu0 %v6118_v19  ;;  %4334 = vmatprep.subr.bf16.mxu1 %v6116_v49  ;;  %v6148_v53 = vpack.c.bf16 %v522_v3, %v521_v36  ;;  %v5307_v10 = vpack.i.bf16 %v5389_v13, %v5388_v6  ;;  %v437_v38 = vld [vmem:[%s7107_s1 + $0x88] sm:$0xff]  ;;  %v440_v6 = vld [vmem:[%s7107_s1 + $0xa0] sm:$0xff] }
  0xec   :  { %v5036_v42 = vunpack.i.h.bf16 %v5034_v45  ;;  %v5035_v44 = vunpack.i.l.bf16 %v5034_v45  ;;  %5278 = vrot.lane.b32.xlu1 %v5625_v40, %s5402_s12  ;;  %5273 = vrot.lane.b32.xlu0 %v5630_v41, %s5402_s12  ;;  %v5390_v45 = vld [vmem:[%s7106_s0] sm:$0xff] }
  0xed   :  { %3541 = vmatprep.mubr.f32.mxu0 %v436_v2  ;;  %3682 = vmatprep.mubr.f32.mxu1 %v1006_v8  ;;  %v740_v11 = vsel %vm726_vm3, %v5040_v33, %v5041_v31 }
  0xee   :  { %v739_v7 = vsel %vm726_vm3, %v5035_v44, %v5036_v42  ;;  %4212 = vmatpush3.bf16.msra.mxu0 %v6118_v19  ;;  %4336 = vmatpush3.bf16.msra.mxu1 %v6116_v49  ;;  %v5049_v15 = vpop.permute.xlu1 %5048  ;;  %v5391_v42 = vld [vmem:[%s7106_s0 + $0x8] sm:$0xff] }
  0xef   :  { %v5051_v21 = vunpack.i.h.bf16 %v5049_v15  ;;  %v5050_v57 = vunpack.i.l.bf16 %v5049_v15  ;;  %v5044_v58 = vpop.permute.xlu0 %5043  ;;  %4214 = vmatprep.subr.bf16.mxu0 %v6148_v53  ;;  %4338 = vmatprep.subr.bf16.mxu1 %v6146_v51  ;;  %v6172_v24 = vpack.c.bf16 %v740_v11, %v739_v7  ;;  %v5302_v44 = vpack.i.bf16 %v5391_v42, %v5390_v45  ;;  %v438_v7 = vld [vmem:[%s7107_s1 + $0x90] sm:$0xff] }
  0xf0   :  { %v5046_v27 = vunpack.i.h.bf16 %v5044_v58  ;;  %v5045_v60 = vunpack.i.l.bf16 %v5044_v58  ;;  %3683 = vmatmul.mubr.f32.gmra.mrb[6].mxu1 %v1007_v54  ;;  %5288 = vrot.lane.b32.xlu1 %v6144_v50, %s5401_s18  ;;  %v5392_v54 = vld [vmem:[%s7106_s0 + $0x30] sm:$0xff] }
  0xf1   :  { %v524_v52 = vsel %vm508_vm2, %v5050_v57, %v5051_v21  ;;  %5283 = vrot.lane.b32.xlu0 %v6159_v14, %s5401_s18  ;;  %3717 = vmatprep.mubr.f32.mxu1 %v1323_v55  ;;  %v5317_v12 = vpack.i.bf16 %v5393_v63, %v5392_v54  ;;  %v1324_v21 = vld [vmem:[%s7107_s1 + $0x188] sm:$0xff] }
  0xf2   :  { %v523_v61 = vsel %vm508_vm2, %v5045_v60, %v5046_v27  ;;  %4216 = vmatpush3.bf16.msra.mxu0 %v6148_v53  ;;  %4340 = vmatpush3.bf16.msra.mxu1 %v6146_v51  ;;  %v5059_v62 = vpop.permute.xlu1 %5058 }
  0xf3   :  { %v6180_v1 = vpack.c.bf16 %v524_v52, %v523_v61  ;;  %v5061_v43 = vunpack.i.h.bf16 %v5059_v62  ;;  %v5060_v4 = vunpack.i.l.bf16 %v5059_v62  ;;  %v5054_v46 = vpop.permute.xlu0 %5053  ;;  %4342 = vmatprep.subr.bf16.mxu1 %v6172_v24  ;;  %5382 = vset.pattern.permute.xlu0 %v5403_v30  ;;  %v5394_v52 = vld [vmem:[%s7106_s0 + $0x20] sm:$0xff]  ;;  %v5395_v61 = vld [vmem:[%s7106_s0 + $0x28] sm:$0xff] }
  0xf4   :  { %v5056_v32 = vunpack.i.h.bf16 %v5054_v46  ;;  %v5055_v48 = vunpack.i.l.bf16 %v5054_v46  ;;  %5298 = vrot.lane.b32.xlu1 %v6144_v50, %s5402_s12  ;;  %v5312_v62 = vpack.i.bf16 %v5395_v61, %v5394_v52 }
  0xf5   :  { %v742_v9 = vsel %vm726_vm3, %v5060_v4, %v5061_v43  ;;  %4218 = vmatprep.subr.bf16.mxu0 %v6180_v1  ;;  %5293 = vrot.lane.b32.xlu0 %v6159_v14, %s5402_s12 }
  0xf6   :  { %v741_v3 = vsel %vm726_vm3, %v5055_v48, %v5056_v32  ;;  %4220 = vmatpush3.bf16.msra.mxu0 %v6180_v1  ;;  %4344 = vmatpush3.bf16.msra.mxu1 %v6172_v24  ;;  %v5069_v36 = vpop.permute.xlu1 %5068 }
  0xf7   :  { %v6201_v2 = vpack.c.bf16 %v742_v9, %v741_v3  ;;  %v5071_v8 = vunpack.i.h.bf16 %v5069_v36  ;;  %v5070_v31 = vunpack.i.l.bf16 %v5069_v36  ;;  %v5064_v33 = vpop.permute.xlu0 %5063  ;;  %4222 = vmatprep.subr.bf16.mxu0 %v6017_v59  ;;  %5383 = vset.pattern.permute.xlu1 %v5403_v30  ;;  %v439_v30 = vld [vmem:[%s7107_s1 + $0x98] sm:$0xff] }
  0xf8   :  { %v5066_v0 = vunpack.i.h.bf16 %v5064_v33  ;;  %v5065_v5 = vunpack.i.l.bf16 %v5064_v33  ;;  %5308 = vrot.lane.b32.xlu1 %v5307_v10, %s5404_s22 }
  0xf9   :  { %v1518_v11 = vsel %vm1516_vm4, %v5070_v31, %v5071_v8  ;;  %4346 = vmatprep.subr.bf16.mxu1 %v6201_v2  ;;  %3542 = vmatmul.mubr.f32.vlgmr.msra.gmra.mrb[0].mxu0 %v437_v38  ;;  %v1325_v31 = vld [vmem:[%s7107_s1 + $0x190] sm:$0xff] }
  0xfa   :  { %v1517_v15 = vsel %vm1516_vm4, %v5065_v5, %v5066_v0  ;;  %4224 = vmatpush3.bf16.msra.mxu0 %v6017_v59  ;;  %4348 = vmatpush3.bf16.msra.mxu1 %v6201_v2  ;;  %v5079_v55 = vpop.permute.xlu1 %5078 }
  0xfb   :  { %v6228_v57 = vpack.c.bf16 %v1518_v11, %v1517_v15  ;;  %v5081_v58 = vunpack.i.h.bf16 %v5079_v55  ;;  %v5080_v27 = vunpack.i.l.bf16 %v5079_v55  ;;  %v5074_v60 = vpop.permute.xlu0 %5073  ;;  %4226 = vmatprep.subr.bf16.mxu0 %v6052_v22  ;;  %5303 = vrot.lane.b32.xlu0 %v5302_v44, %s5404_s22  ;;  %v1326_v11 = vld [vmem:[%s7107_s1 + $0x198] sm:$0xff]  ;;  %v1327_v15 = vld [vmem:[%s7107_s1 + $0x1a0] sm:$0xff] }
  0xfc   :  { %v5076_v43 = vunpack.i.h.bf16 %v5074_v60  ;;  %v5075_v4 = vunpack.i.l.bf16 %v5074_v60  ;;  %5318 = vrot.lane.b32.xlu1 %v5317_v12, %s5404_s22  ;;  %3544 = vmatprep.mubr.f32.mxu0 %v438_v7  ;;  %v442_v7 = vld [vmem:[%s7107_s1 + $0xb0] sm:$0xff] }
  0xfd   :  { %v1520_v46 = vsel %vm1516_vm4, %v5080_v27, %v5081_v58  ;;  %4350 = vmatprep.subr.bf16.mxu1 %v6228_v57  ;;  %3718 = vmatmul.mubr.f32.vlgmr.msra.gmra.mrb[0].mxu1 %v1324_v21 }
  0xfe   :  { %v1519_v32 = vsel %vm1516_vm4, %v5075_v4, %v5076_v43  ;;  %4228 = vmatpush3.bf16.msra.mxu0 %v6052_v22  ;;  %4352 = vmatpush3.bf16.msra.mxu1 %v6228_v57  ;;  %v5089_v48 = vpop.permute.xlu1 %5088  ;;  %v1328_v4 = vld [vmem:[%s7107_s1 + $0x1a8] sm:$0xff] }
  0xff   :  { %v6250_v13 = vpack.c.bf16 %v1520_v46, %v1519_v32  ;;  %v5091_v10 = vunpack.i.h.bf16 %v5089_v48  ;;  %v5090_v9 = vunpack.i.l.bf16 %v5089_v48  ;;  %v5084_v3 = vpop.permute.xlu0 %5083  ;;  %4230 = vmatprep.subr.bf16.mxu0 %v6064_v37  ;;  %5313 = vrot.lane.b32.xlu0 %v5312_v62, %s5404_s22  ;;  %v443_v62 = vld [vmem:[%s7107_s1 + $0xb8] sm:$0xff] }
 0x100   :  { %v5086_v36 = vunpack.i.h.bf16 %v5084_v3  ;;  %v5085_v38 = vunpack.i.l.bf16 %v5084_v3  ;;  %5328 = vrot.lane.b32.xlu1 %v5497_v16, %s5404_s22  ;;  %3545 = vmatmul.mubr.f32.gmra.mrb[2].mxu0 %v439_v30  ;;  %v441_v16 = vld [vmem:[%s7107_s1 + $0xa8] sm:$0xff] }
 0x101   :  { %v1522_v8 = vsel %vm1516_vm4, %v5090_v9, %v5091_v10  ;;  %4354 = vmatprep.subr.bf16.mxu1 %v6250_v13  ;;  %3547 = vmatprep.mubr.f32.mxu0 %v440_v6  ;;  %v654_v9 = vld [vmem:[%s7107_s1 + $0xc0] sm:$0xff] }
 0x102   :  { %v1521_v33 = vsel %vm1516_vm4, %v5085_v38, %v5086_v36  ;;  %4232 = vmatpush3.bf16.msra.mxu0 %v6064_v37  ;;  %4356 = vmatpush3.bf16.msra.mxu1 %v6250_v13  ;;  %v5099_v45 = vpop.permute.xlu1 %5098  ;;  %v1329_v36 = vld [vmem:[%s7107_s1 + $0x1b0] sm:$0xff] }
 0x103   :  { %v6267_v42 = vpack.c.bf16 %v1522_v8, %v1521_v33  ;;  %v5101_v44 = vunpack.i.h.bf16 %v5099_v45  ;;  %v5100_v0 = vunpack.i.l.bf16 %v5099_v45  ;;  %v5094_v5 = vpop.permute.xlu0 %5093  ;;  %4234 = vmatprep.subr.bf16.mxu0 %v6088_v56  ;;  %5323 = vrot.lane.b32.xlu0 %v5502_v17, %s5404_s22 }
 0x104   :  { %v5096_v54 = vunpack.i.h.bf16 %v5094_v5  ;;  %v5095_v63 = vunpack.i.l.bf16 %v5094_v5  ;;  %3720 = vmatprep.mubr.f32.mxu1 %v1325_v31  ;;  %5338 = vrot.lane.b32.xlu1 %v5538_v23, %s5404_s22  ;;  %v1444_v5 = vld [vmem:[%s7107_s1 + $0x1c0] sm:$0xff] }
 0x105   :  { %v1524_v12 = vsel %vm1516_vm4, %v5100_v0, %v5101_v44  ;;  %4358 = vmatprep.subr.bf16.mxu1 %v6267_v42  ;;  %3548 = vmatmul.mubr.f32.gmra.mrb[4].mxu0 %v441_v16  ;;  %v1330_v44 = vld [vmem:[%s7107_s1 + $0x1b8] sm:$0xff] }
 0x106   :  { %v1523_v17 = vsel %vm1516_vm4, %v5095_v63, %v5096_v54  ;;  %4236 = vmatpush3.bf16.msra.mxu0 %v6088_v56  ;;  %4360 = vmatpush3.bf16.msra.mxu1 %v6267_v42  ;;  %v5109_v23 = vpop.permute.xlu1 %5108 }
 0x107   :  { %v6288_v55 = vpack.c.bf16 %v1524_v12, %v1523_v17  ;;  %v5111_v21 = vunpack.i.h.bf16 %v5109_v23  ;;  %v5110_v58 = vunpack.i.l.bf16 %v5109_v23  ;;  %v5104_v27 = vpop.permute.xlu0 %5103  ;;  %4238 = vmatprep.subr.bf16.mxu0 %v6116_v49  ;;  %5333 = vrot.lane.b32.xlu0 %v5517_v20, %s5404_s22 }
 0x108   :  { %v5106_v60 = vunpack.i.h.bf16 %v5104_v27  ;;  %v5105_v52 = vunpack.i.l.bf16 %v5104_v27  ;;  %3721 = vmatmul.mubr.f32.gmra.mrb[2].mxu1 %v1326_v11  ;;  %3550 = vmatprep.mubr.f32.mxu0 %v442_v7  ;;  %v657_v27 = vld [vmem:[%s7107_s1 + $0xd8] sm:$0xff] }
 0x109   :  { %v1526_v61 = vsel %vm1516_vm4, %v5110_v58, %v5111_v21  ;;  %4362 = vmatprep.subr.bf16.mxu1 %v6288_v55  ;;  %3723 = vmatprep.mubr.f32.mxu1 %v1327_v15  ;;  %v655_v21 = vld [vmem:[%s7107_s1 + $0xc8] sm:$0xff] }
 0x10a   :  { %v1525_v43 = vsel %vm1516_vm4, %v5105_v52, %v5106_v60  ;;  %4240 = vmatpush3.bf16.msra.mxu0 %v6116_v49  ;;  %4364 = vmatpush3.bf16.msra.mxu1 %v6288_v55  ;;  %v5119_v20 = vpop.permute.xlu1 %5118  ;;  %v1445_v60 = vld [vmem:[%s7107_s1 + $0x1c8] sm:$0xff]  ;;  %v658_v52 = vld [vmem:[%s7107_s1 + $0xe0] sm:$0xff] }
 0x10b   :  { %v6304_v46 = vpack.c.bf16 %v1526_v61, %v1525_v43  ;;  %v5121_v30 = vunpack.i.h.bf16 %v5119_v20  ;;  %v5120_v32 = vunpack.i.l.bf16 %v5119_v20  ;;  %v5114_v48 = vpop.permute.xlu0 %5113  ;;  %4242 = vmatprep.subr.bf16.mxu0 %v6146_v51  ;;  %5348 = vrot.lane.b32.xlu1 %v5565_v28, %s5404_s22  ;;  %v1446_v61 = vld [vmem:[%s7107_s1 + $0x1d0] sm:$0xff]  ;;  %v1447_v43 = vld [vmem:[%s7107_s1 + $0x1d8] sm:$0xff] }
 0x10c   :  { %v5116_v6 = vunpack.i.h.bf16 %v5114_v48  ;;  %v5115_v10 = vunpack.i.l.bf16 %v5114_v48  ;;  %5343 = vrot.lane.b32.xlu0 %v5570_v29, %s5404_s22  ;;  %3551 = vmatmul.mubr.f32.gmra.mrb[6].mxu0 %v443_v62 }
 0x10d   :  { %v1528_v3 = vsel %vm1516_vm4, %v5120_v32, %v5121_v30  ;;  %4366 = vmatprep.subr.bf16.mxu1 %v6304_v46  ;;  %3724 = vmatmul.mubr.f32.gmra.mrb[4].mxu1 %v1328_v4  ;;  %v1448_v4 = vld [vmem:[%s7107_s1 + $0x1e0] sm:$0xff]  ;;  %v661_v30 = vld [vmem:[%s7107_s1 + $0xf8] sm:$0xff]  ;;  %v1449_v32 = vld [vmem:[%s7107_s1 + $0x1e8] sm:$0xff] }
 0x10e   :  { %v1527_v28 = vsel %vm1516_vm4, %v5115_v10, %v5116_v6  ;;  %4244 = vmatpush3.bf16.msra.mxu0 %v6146_v51  ;;  %4368 = vmatpush3.bf16.msra.mxu1 %v6304_v46  ;;  %v5129_v29 = vpop.permute.xlu1 %5128  ;;  %v1718_v6 = vld [vmem:[%s7107_s1 + $0x240] sm:$0xff]  ;;  %v1451_v10 = vld [vmem:[%s7107_s1 + $0x1f8] sm:$0xff] }
 0x10f   :  { %v6322_v38 = vpack.c.bf16 %v1528_v3, %v1527_v28  ;;  %v5131_v8 = vunpack.i.h.bf16 %v5129_v29  ;;  %v5130_v31 = vunpack.i.l.bf16 %v5129_v29  ;;  %v5124_v33 = vpop.permute.xlu0 %5123  ;;  %4246 = vmatprep.subr.bf16.mxu0 %v6172_v24  ;;  %3585 = vmatprep.mubr.f32.mxu0 %v654_v9  ;;  %v17_v3 = vld [vmem:[%s7108_s2] sm:$0xff]  ;;  %v18_v28 = vld [vmem:[%s7108_s2 + $0x8] sm:$0xff]  ;;  %v20_v29 = vld [vmem:[%s7108_s2 + $0x18] sm:$0xff] }
 0x110   :  { %v5126_v45 = vunpack.i.h.bf16 %v5124_v33  ;;  %v5125_v16 = vunpack.i.l.bf16 %v5124_v33  ;;  %3726 = vmatprep.mubr.f32.mxu1 %v1329_v36  ;;  %5358 = vrot.lane.b32.xlu1 %v5595_v34, %s5404_s22 }
 0x111   :  { %v1530_v0 = vsel %vm1516_vm4, %v5130_v31, %v5131_v8  ;;  %4370 = vmatprep.subr.bf16.mxu1 %v6322_v38  ;;  %5353 = vrot.lane.b32.xlu0 %v5600_v35, %s5404_s22  ;;  %v19_v31 = vld [vmem:[%s7108_s2 + $0x10] sm:$0xff] }
 0x112   :  { %v1529_v54 = vsel %vm1516_vm4, %v5125_v16, %v5126_v45  ;;  %4248 = vmatpush3.bf16.msra.mxu0 %v6172_v24  ;;  %4372 = vmatpush3.bf16.msra.mxu1 %v6322_v38  ;;  %v5139_v34 = vpop.permute.xlu1 %5138  ;;  %v21_v45 = vld [vmem:[%s7108_s2 + $0x20] sm:$0xff]  ;;  %v24_v16 = vld [vmem:[%s7108_s2 + $0x38] sm:$0xff] }
 0x113   :  { %v6340_v63 = vpack.c.bf16 %v1530_v0, %v1529_v54  ;;  %v5141_v12 = vunpack.i.h.bf16 %v5139_v34  ;;  %v5140_v11 = vunpack.i.l.bf16 %v5139_v34  ;;  %v5134_v7 = vpop.permute.xlu0 %5133  ;;  %4250 = vmatprep.subr.bf16.mxu0 %v6201_v2  ;;  %3727 = vmatmul.mubr.f32.gmra.mrb[6].mxu1 %v1330_v44  ;;  %v23_v0 = vld [vmem:[%s7108_s2 + $0x30] sm:$0xff] }
 0x114   :  { %v5136_v35 = vunpack.i.h.bf16 %v5134_v7  ;;  %v5135_v17 = vunpack.i.l.bf16 %v5134_v7  ;;  %3761 = vmatprep.mubr.f32.mxu1 %v1444_v5  ;;  %5368 = vrot.lane.b32.xlu1 %v5625_v40, %s5404_s22  ;;  %v26_v5 = vld [vmem:[%s7109_s3 + $0x8] sm:$0xff]  ;;  %v1720_v34 = vld [vmem:[%s7107_s1 + $0x250] sm:$0xff] }
 0x115   :  { %v1532_v23 = vsel %vm1516_vm4, %v5140_v11, %v5141_v12  ;;  %4374 = vmatprep.subr.bf16.mxu1 %v6340_v63  ;;  %5363 = vrot.lane.b32.xlu0 %v5630_v41, %s5404_s22  ;;  %v656_v41 = vld [vmem:[%s7107_s1 + $0xd0] sm:$0xff]  ;;  %v2429_v12 = vld [vmem:[%s7107_s1 + $0x348] sm:$0xff]  ;;  %v1721_v11 = vld [vmem:[%s7107_s1 + $0x258] sm:$0xff] }
 0x116   :  { %v1531_v15 = vsel %vm1516_vm4, %v5135_v17, %v5136_v35  ;;  %4252 = vmatpush3.bf16.msra.mxu0 %v6201_v2  ;;  %4376 = vmatpush3.bf16.msra.mxu1 %v6340_v63  ;;  %v6358_v40 = vpop.permute.xlu1 %5148  ;;  %v2430_v35 = vld [vmem:[%s7107_s1 + $0x350] sm:$0xff] }
 0x117   :  { %v6355_v58 = vpack.c.bf16 %v1532_v23, %v1531_v15  ;;  %4382 = vmatprep.subr.bf16.mxu0 %v6017_v59  ;;  %v1723_v23 = vld [vmem:[%s7107_s1 + $0x268] sm:$0xff]  ;;  %v2431_v15 = vld [vmem:[%s7107_s1 + $0x358] sm:$0xff] }
 0x118   :  { %5378 = vrot.lane.b32.xlu1 %v6144_v50, %s5404_s22  ;;  %v6374_v50 = vpop.permute.xlu0 %5143 }
 0x119   :  { %3586 = vmatmul.mubr.f32.vlgmr.msra.gmra.mrb[0].mxu0 %v655_v21  ;;  %4378 = vmatprep.subr.bf16.mxu1 %v6355_v58 }
 0x11a   :  { %4380 = vmatpush3.bf16.msra.mxu1 %v6355_v58  ;;  %4384 = vmatpush3.bf16.msra.mxu0 %v6017_v59  ;;  %v6386_v62 = vpop.permute.xlu1 %5158 }
 0x11b   :  { %4386 = vmatprep.subr.bf16.mxu0 %v6052_v22  ;;  %4510 = vmatprep.subr.bf16.mxu1 %v6228_v57 }
 0x11c   :  { %3588 = vmatprep.mubr.f32.mxu0 %v656_v41  ;;  %5373 = vrot.lane.b32.xlu0 %v6159_v14, %s5404_s22  ;;  %v659_v14 = vld [vmem:[%s7107_s1 + $0xe8] sm:$0xff]  ;;  %v6398_v20 = vpop.permute.xlu0 %5153  ;;  %v1725_v41 = vld [vmem:[%s7107_s1 + $0x278] sm:$0xff] }
 0x11d   :  { %3589 = vmatmul.mubr.f32.gmra.mrb[2].mxu0 %v657_v27  ;;  %3762 = vmatmul.mubr.f32.vlgmr.msra.gmra.mrb[0].mxu1 %v1445_v60  ;;  %v2433_v27 = vld [vmem:[%s7107_s1 + $0x368] sm:$0xff] }
 0x11e   :  { %4388 = vmatpush3.bf16.msra.mxu0 %v6052_v22  ;;  %4512 = vmatpush3.bf16.msra.mxu1 %v6228_v57  ;;  %v660_v57 = vld [vmem:[%s7107_s1 + $0xf0] sm:$0xff]  ;;  %v6416_v48 = vpop.permute.xlu1 %5168 }
 0x11f   :  { %4390 = vmatprep.subr.bf16.mxu0 %v6064_v37  ;;  %4514 = vmatprep.subr.bf16.mxu1 %v6250_v13 }
 0x120   :  { %3591 = vmatprep.mubr.f32.mxu0 %v658_v52  ;;  %3764 = vmatprep.mubr.f32.mxu1 %v1446_v61  ;;  %v6429_v9 = vpop.permute.xlu0 %5163  ;;  %v2435_v61 = vld [vmem:[%s7107_s1 + $0x378] sm:$0xff] }
 0x121   :  { %3592 = vmatmul.mubr.f32.gmra.mrb[4].mxu0 %v659_v14  ;;  %3765 = vmatmul.mubr.f32.gmra.mrb[2].mxu1 %v1447_v43  ;;  %v28_v14 = vld [vmem:[%s7109_s3 + $0x18] sm:$0xff] }
 0x122   :  { %4392 = vmatpush3.bf16.msra.mxu0 %v6064_v37  ;;  %4516 = vmatpush3.bf16.msra.mxu1 %v6250_v13  ;;  %v1450_v13 = vld [vmem:[%s7107_s1 + $0x1f0] sm:$0xff]  ;;  %v6439_v36 = vpop.permute.xlu1 %5178 }
 0x123   :  { %4394 = vmatprep.subr.bf16.mxu0 %v6088_v56  ;;  %4518 = vmatprep.subr.bf16.mxu1 %v6267_v42 }
 0x124   :  { %3594 = vmatprep.mubr.f32.mxu0 %v660_v57  ;;  %3767 = vmatprep.mubr.f32.mxu1 %v1448_v4  ;;  %v6451_v8 = vpop.permute.xlu0 %5173  ;;  %v5151_v57 = vunpack.i.h.bf16 %v6358_v40  ;;  %v5150_v4 = vunpack.i.l.bf16 %v6358_v40  ;;  %v5156_v40 = vunpack.i.h.bf16 %v6398_v20 }
 0x125   :  { %3595 = vmatmul.mubr.f32.gmra.mrb[6].mxu0 %v661_v30  ;;  %3768 = vmatmul.mubr.f32.gmra.mrb[4].mxu1 %v1449_v32  ;;  %v5146_v30 = vunpack.i.h.bf16 %v6374_v50  ;;  %v5145_v32 = vunpack.i.l.bf16 %v6374_v50  ;;  %v5166_v50 = vunpack.i.h.bf16 %v6429_v9 }
 0x126   :  { %4396 = vmatpush3.bf16.msra.mxu0 %v6088_v56  ;;  %4520 = vmatpush3.bf16.msra.mxu1 %v6267_v42  ;;  %v2428_v42 = vld [vmem:[%s7107_s1 + $0x340] sm:$0xff]  ;;  %v6463_v33 = vpop.permute.xlu1 %5188 }
 0x127   :  { %4398 = vmatprep.subr.bf16.mxu0 %v6116_v49  ;;  %4522 = vmatprep.subr.bf16.mxu1 %v6288_v55 }
 0x128   :  { %3770 = vmatprep.mubr.f32.mxu1 %v1450_v13  ;;  %3805 = vmatprep.mubr.f32.mxu0 %v1718_v6  ;;  %v30_v6 = vld [vmem:[%s7109_s3 + $0x28] sm:$0xff] }
 0x129   :  { %3771 = vmatmul.mubr.f32.gmra.mrb[6].mxu1 %v1451_v10  ;;  %874 = vperm.xlu0 %5382, %v17_v3   ;;  %v5161_v10 = vunpack.i.h.bf16 %v6386_v62  ;;  %v5160_v3 = vunpack.i.l.bf16 %v6386_v62  ;;  %v29_v62 = vld [vmem:[%s7109_s3 + $0x20] sm:$0xff] }
 0x12a   :  { %4400 = vmatpush3.bf16.msra.mxu0 %v6116_v49  ;;  %4524 = vmatpush3.bf16.msra.mxu1 %v6288_v55  ;;  %v22_v55 = vld [vmem:[%s7108_s2 + $0x28] sm:$0xff]  ;;  %v6477_v44 = vpop.permute.xlu1 %5198 }
 0x12b   :  { %4402 = vmatprep.subr.bf16.mxu0 %v6146_v51  ;;  %4526 = vmatprep.subr.bf16.mxu1 %v6304_v46 }
 0x12c   :  { %3981 = vmatprep.mubr.f32.mxu1 %v2428_v42  ;;  %879 = vperm.xlu1 %5383, %v18_v28   ;;  %v5155_v42 = vunpack.i.l.bf16 %v6398_v20  ;;  %v5165_v28 = vunpack.i.l.bf16 %v6429_v9  ;;  %v2009_v9 = vsel %vm2008_vm5, %v5145_v32, %v5146_v30 }
 0x12d   :  { %889 = vperm.xlu0 %5382, %v20_v29  }
 0x12e   :  { %4404 = vmatpush3.bf16.msra.mxu0 %v6146_v51  ;;  %4528 = vmatpush3.bf16.msra.mxu1 %v6304_v46  ;;  %v6470_v46 = vpop.permute.xlu0 %5183 }
 0x12f   :  { %4406 = vmatprep.subr.bf16.mxu0 %v6172_v24  ;;  %4530 = vmatprep.subr.bf16.mxu1 %v6322_v38 }
 0x130   :  { %884 = vperm.xlu1 %5383, %v19_v31   ;;  %v2010_v31 = vsel %vm2008_vm5, %v5150_v4, %v5151_v57 }
 0x131   :  { %899 = vperm.xlu0 %5382, %v22_v55   ;;  %v2228_v55 = vsel %vm2226_vm6, %v5160_v3, %v5161_v10 }
 0x132   :  { %4408 = vmatpush3.bf16.msra.mxu0 %v6172_v24  ;;  %4532 = vmatpush3.bf16.msra.mxu1 %v6322_v38  ;;  %v1719_v38 = vld [vmem:[%s7107_s1 + $0x248] sm:$0xff]  ;;  %v6492_v54 = vpop.permute.xlu0 %5193 }
 0x133   :  { %4410 = vmatprep.subr.bf16.mxu0 %v6201_v2  ;;  %4534 = vmatprep.subr.bf16.mxu1 %v6340_v63 }
 0x134   :  { %894 = vperm.xlu1 %5383, %v21_v45  }
 0x135   :  { %909 = vperm.xlu0 %5382, %v24_v16   ;;  %v5181_v16 = vunpack.i.h.bf16 %v6439_v36 }
 0x136   :  { %4412 = vmatpush3.bf16.msra.mxu0 %v6201_v2  ;;  %4536 = vmatpush3.bf16.msra.mxu1 %v6340_v63  ;;  %v25_v63 = vld [vmem:[%s7109_s3] sm:$0xff] }
 0x137   :  { %4414 = vmatprep.subr.bf16.mxu0 %v5982_v39  ;;  %4538 = vmatprep.subr.bf16.mxu1 %v6355_v58 }
 0x138   :  { %904 = vperm.xlu1 %5383, %v23_v0   ;;  %v5180_v0 = vunpack.i.l.bf16 %v6439_v36 }
 0x139   :  { %3806 = vmatmul.mubr.f32.vlgmr.msra.gmra.mrb[8].mxu0 %v1719_v38  ;;  %927 = vperm.xlu0 %5382, %v26_v5   ;;  %v5176_v38 = vunpack.i.h.bf16 %v6451_v8  ;;  %v5175_v5 = vunpack.i.l.bf16 %v6451_v8 }
 0x13a   :  { %4416 = vmatpush3.bf16.msra.mxu0 %v5982_v39  ;;  %4540 = vmatpush3.bf16.msra.mxu1 %v6355_v58  ;;  %v1722_v39 = vld [vmem:[%s7107_s1 + $0x260] sm:$0xff] }
 0x13b   :  { %4418 = vmatprep.subr.bf16.mxu0 %v6021_v26  ;;  %4542 = vmatprep.subr.bf16.mxu1 %v6017_v59  ;;  %v6510_v7 = vpop.permute.xlu1 %5208 }
 0x13c   :  { %3808 = vmatprep.mubr.f32.mxu0 %v1720_v34  ;;  %922 = vperm.xlu1 %5383, %v25_v63   ;;  %v31_v34 = vld [vmem:[%s7109_s3 + $0x30] sm:$0xff]  ;;  %v5191_v63 = vunpack.i.h.bf16 %v6463_v33 }
 0x13d   :  { %3982 = vmatmul.mubr.f32.vlgmr.msra.gmra.mrb[8].mxu1 %v2429_v12  ;;  %3809 = vmatmul.mubr.f32.gmra.mrb[10].mxu0 %v1721_v11  ;;  %v5190_v12 = vunpack.i.l.bf16 %v6463_v33  ;;  %v5186_v11 = vunpack.i.h.bf16 %v6470_v46  ;;  %v2230_v33 = vsel %vm2226_vm6, %v5180_v0, %v5181_v16 }
 0x13e   :  { %4420 = vmatpush3.bf16.msra.mxu0 %v6021_v26  ;;  %4544 = vmatpush3.bf16.msra.mxu1 %v6017_v59  ;;  %v6520_v17 = vpop.permute.xlu0 %5203  ;;  %v1724_v59 = vld [vmem:[%s7107_s1 + $0x270] sm:$0xff]  ;;  %v2432_v26 = vld [vmem:[%s7107_s1 + $0x360] sm:$0xff] }
 0x13f   :  { %4422 = vmatprep.subr.bf16.mxu0 %v6054_v25  ;;  %4546 = vmatprep.subr.bf16.mxu1 %v6052_v22  ;;  %v6530_v21 = vpop.permute.xlu1 %5218 }
 0x140   :  { %3811 = vmatprep.mubr.f32.mxu0 %v1722_v39  ;;  %3984 = vmatprep.mubr.f32.mxu1 %v2430_v35  ;;  %v5185_v39 = vunpack.i.l.bf16 %v6470_v46  ;;  %v4445_v35 = vpack.c.bf16 %v2010_v31, %v2009_v9  ;;  %v2229_v46 = vsel %vm2226_vm6, %v5175_v5, %v5176_v38 }
 0x141   :  { %3812 = vmatmul.mubr.f32.gmra.mrb[12].mxu0 %v1723_v23  ;;  %3985 = vmatmul.mubr.f32.gmra.mrb[10].mxu1 %v2431_v15  ;;  %v6680_v32 = vpack.c.bf16 %v2230_v33, %v2229_v46 }
 0x142   :  { %4424 = vmatpush3.bf16.msra.mxu0 %v6054_v25  ;;  %4548 = vmatpush3.bf16.msra.mxu1 %v6052_v22  ;;  %v6540_v58 = vpop.permute.xlu0 %5213  ;;  %v1710_v22 = vld [vmem:[%s7107_s1 + $0x200] sm:$0xff]  ;;  %v2434_v25 = vld [vmem:[%s7107_s1 + $0x370] sm:$0xff] }
 0x143   :  { %4426 = vmatprep.subr.bf16.mxu0 %v6069_v47  ;;  %4550 = vmatprep.subr.bf16.mxu1 %v6064_v37  ;;  %v6550_v60 = vpop.permute.xlu1 %5228  ;;  %v5215_v57 = vunpack.i.l.bf16 %v6540_v58 }
 0x144   :  { %3814 = vmatprep.mubr.f32.mxu0 %v1724_v59  ;;  %3987 = vmatprep.mubr.f32.mxu1 %v2432_v26  ;;  %v1711_v59 = vld [vmem:[%s7107_s1 + $0x208] sm:$0xff]  ;;  %v2013_v26 = vsel %vm2008_vm5, %v5185_v39, %v5186_v11  ;;  %v5230_v4 = vunpack.i.l.bf16 %v6550_v60  ;;  %v1717_v39 = vld [vmem:[%s7107_s1 + $0x238] sm:$0xff] }
 0x145   :  { %3815 = vmatmul.mubr.f32.gmra.mrb[14].mxu0 %v1725_v41  ;;  %3988 = vmatmul.mubr.f32.gmra.mrb[12].mxu1 %v2433_v27  ;;  %v2014_v41 = vsel %vm2008_vm5, %v5190_v12, %v5191_v63  ;;  %v5196_v27 = vunpack.i.h.bf16 %v6492_v54 }
 0x146   :  { %4428 = vmatpush3.bf16.msra.mxu0 %v6069_v47  ;;  %4552 = vmatpush3.bf16.msra.mxu1 %v6064_v37  ;;  %v6560_v52 = vpop.permute.xlu0 %5223  ;;  %v2420_v37 = vld [vmem:[%s7107_s1 + $0x300] sm:$0xff]  ;;  %v27_v47 = vld [vmem:[%s7109_s3 + $0x10] sm:$0xff] }
 0x147   :  { %4430 = vmatprep.subr.bf16.mxu0 %v6090_v18  ;;  %4554 = vmatprep.subr.bf16.mxu1 %v6088_v56  ;;  %v6570_v43 = vpop.permute.xlu1 %5238  ;;  %v5226_v30 = vunpack.i.h.bf16 %v6560_v52 }
 0x148   :  { %3849 = vmatprep.mubr.f32.mxu0 %v1710_v22  ;;  %3990 = vmatprep.mubr.f32.mxu1 %v2434_v25  ;;  %v5195_v22 = vunpack.i.l.bf16 %v6492_v54  ;;  %v5211_v25 = vunpack.i.h.bf16 %v6510_v7  ;;  %v5216_v54 = vunpack.i.h.bf16 %v6540_v58  ;;  %v2421_v58 = vld [vmem:[%s7107_s1 + $0x308] sm:$0xff] }
 0x149   :  { %3991 = vmatmul.mubr.f32.gmra.mrb[14].mxu1 %v2435_v61  ;;  %937 = vperm.xlu0 %5382, %v28_v14   ;;  %v5221_v61 = vunpack.i.h.bf16 %v6530_v21  ;;  %v5220_v14 = vunpack.i.l.bf16 %v6530_v21  ;;  %v5225_v21 = vunpack.i.l.bf16 %v6560_v52 }
 0x14a   :  { %4432 = vmatpush3.bf16.msra.mxu0 %v6090_v18  ;;  %4556 = vmatpush3.bf16.msra.mxu1 %v6088_v56  ;;  %v6584_v13 = vpop.permute.xlu0 %5233  ;;  %v5171_v56 = vunpack.i.h.bf16 %v6416_v48  ;;  %v5170_v18 = vunpack.i.l.bf16 %v6416_v48  ;;  %v32_v48 = vld [vmem:[%s7109_s3 + $0x38] sm:$0xff]  ;;  %v2231_v52 = vsel %vm2226_vm6, %v5195_v22, %v5196_v27 }
 0x14b   :  { %4434 = vmatprep.subr.bf16.mxu0 %v6118_v19  ;;  %4558 = vmatprep.subr.bf16.mxu1 %v6116_v49  ;;  %v6599_v29 = vpop.permute.xlu1 %5248  ;;  %v5235_v9 = vunpack.i.l.bf16 %v6584_v13  ;;  %v2017_v31 = vsel %vm2008_vm5, %v5225_v21, %v5226_v30 }
 0x14c   :  { %4025 = vmatprep.mubr.f32.mxu1 %v2420_v37  ;;  %932 = vperm.xlu1 %5383, %v27_v47   ;;  %v2012_v45 = vsel %vm2008_vm5, %v5170_v18, %v5171_v56  ;;  %v5241_v56 = vunpack.i.h.bf16 %v6570_v43 }
 0x14d   :  { %947 = vperm.xlu0 %5382, %v30_v6   ;;  %v4453_v6 = vpack.c.bf16 %v2014_v41, %v2013_v26 }
 0x14e   :  { %4436 = vmatpush3.bf16.msra.mxu0 %v6118_v19  ;;  %4560 = vmatpush3.bf16.msra.mxu1 %v6116_v49  ;;  %v6606_v20 = vpop.permute.xlu0 %5243  ;;  %v2227_v19 = vsel %vm2226_vm6, %v5155_v42, %v5156_v40  ;;  %v2011_v49 = vsel %vm2008_vm5, %v5165_v28, %v5166_v50  ;;  %v2234_v40 = vsel %vm2226_vm6, %v5220_v14, %v5221_v61  ;;  %v1714_v50 = vld [vmem:[%s7107_s1 + $0x220] sm:$0xff]  ;;  %v2422_v28 = vld [vmem:[%s7107_s1 + $0x310] sm:$0xff] }
 0x14f   :  { %4438 = vmatprep.subr.bf16.mxu0 %v6148_v53  ;;  %4562 = vmatprep.subr.bf16.mxu1 %v6146_v51  ;;  %v6638_v23 = vpack.c.bf16 %v2228_v55, %v2227_v19  ;;  %v4449_v15 = vpack.c.bf16 %v2012_v45, %v2011_v49  ;;  %v2233_v42 = vsel %vm2226_vm6, %v5215_v57, %v5216_v54  ;;  %v1715_v49 = vld [vmem:[%s7107_s1 + $0x228] sm:$0xff]  ;;  %v5251_v45 = vunpack.i.h.bf16 %v6599_v29 }
 0x150   :  { %942 = vperm.xlu1 %5383, %v29_v62   ;;  %v5240_v62 = vunpack.i.l.bf16 %v6570_v43  ;;  %v2423_v43 = vld [vmem:[%s7107_s1 + $0x318] sm:$0xff]  ;;  %v5246_v16 = vunpack.i.h.bf16 %v6606_v20  ;;  %v5245_v0 = vunpack.i.l.bf16 %v6606_v20  ;;  %v6725_v63 = vpack.c.bf16 %v2234_v40, %v2233_v42 }
 0x151   :  { %957 = vperm.xlu0 %5382, %v32_v48   ;;  %v5236_v48 = vunpack.i.h.bf16 %v6584_v13  ;;  %v5250_v13 = vunpack.i.l.bf16 %v6599_v29  ;;  %v2424_v29 = vld [vmem:[%s7107_s1 + $0x320] sm:$0xff] }
 0x152   :  { %4440 = vmatpush3.bf16.msra.mxu0 %v6148_v53  ;;  %4564 = vmatpush3.bf16.msra.mxu1 %v6146_v51  ;;  %v6632_v36 = vpop.permute.xlu1 %5258  ;;  %v6634_v8 = vpop.permute.xlu0 %5253  ;;  %v5201_v53 = vunpack.i.h.bf16 %v6477_v44  ;;  %v5200_v51 = vunpack.i.l.bf16 %v6477_v44  ;;  %v5210_v44 = vunpack.i.l.bf16 %v6510_v7  ;;  %v5231_v7 = vunpack.i.h.bf16 %v6550_v60  ;;  %v1713_v60 = vld [vmem:[%s7107_s1 + $0x218] sm:$0xff] }
 0x153   :  { %4442 = vmatprep.subr.bf16.mxu0 %v6180_v1  ;;  %4566 = vmatprep.subr.bf16.mxu1 %v6172_v24  ;;  %v2236_v20 = vsel %vm2226_vm6, %v5240_v62, %v5241_v56  ;;  %v2235_v33 = vsel %vm2226_vm6, %v5235_v9, %v5236_v48  ;;  %v2019_v46 = vsel %vm2008_vm5, %v5245_v0, %v5246_v16  ;;  %v5256_v26 = vunpack.i.h.bf16 %v6634_v8 }
 0x154   :  { %952 = vperm.xlu1 %5383, %v31_v34   ;;  %v2232_v10 = vsel %vm2226_vm6, %v5200_v51, %v5201_v53  ;;  %v2016_v3 = vsel %vm2008_vm5, %v5210_v44, %v5211_v25  ;;  %v2018_v18 = vsel %vm2008_vm5, %v5230_v4, %v5231_v7  ;;  %v1716_v34 = vld [vmem:[%s7107_s1 + $0x230] sm:$0xff]  ;;  %v5261_v51 = vunpack.i.h.bf16 %v6632_v36 }
 0x155   :  { %v6717_v38 = vpack.c.bf16 %v2232_v10, %v2231_v52  ;;  %v4461_v12 = vpack.c.bf16 %v2018_v18, %v2017_v31  ;;  %v5255_v41 = vunpack.i.l.bf16 %v6634_v8  ;;  %v2426_v8 = vld [vmem:[%s7107_s1 + $0x330] sm:$0xff]  ;;  %v6757_v61 = vpack.c.bf16 %v2236_v20, %v2235_v33 }
 0x156   :  { %4444 = vmatpush3.bf16.msra.mxu0 %v6180_v1  ;;  %4568 = vmatpush3.bf16.msra.mxu1 %v6172_v24  ;;  %v5206_v24 = vunpack.i.h.bf16 %v6520_v17  ;;  %v5205_v1 = vunpack.i.l.bf16 %v6520_v17  ;;  %v1712_v17 = vld [vmem:[%s7107_s1 + $0x210] sm:$0xff] }
 0x157   :  { %4446 = vmatprep.subr.bf16.mxu0 %v4445_v35  ;;  %4570 = vmatprep.subr.bf16.mxu1 %v6201_v2  ;;  %v6660_v37 = vpop.permute.xlu1 %5268  ;;  %v6662_v47 = vpop.permute.xlu0 %5263 }
 0x158   :  { %v5271_v27 = vunpack.i.h.bf16 %v6660_v37  ;;  %v5270_v22 = vunpack.i.l.bf16 %v6660_v37  ;;  %v5266_v25 = vunpack.i.h.bf16 %v6662_v47  ;;  %v5265_v44 = vunpack.i.l.bf16 %v6662_v47 }
 0x159   :  { %3850 = vmatmul.mubr.f32.vlgmr.msra.gmra.mrb[8].mxu0 %v1711_v59  ;;  %v5260_v59 = vunpack.i.l.bf16 %v6632_v36  ;;  %v1936_v36 = vld [vmem:[%s7107_s1 + $0x280] sm:$0xff] }
 0x15a   :  { %4448 = vmatpush3.bf16.msra.mxu0 %v4445_v35  ;;  %4572 = vmatpush3.bf16.msra.mxu1 %v6201_v2  ;;  %v2015_v2 = vsel %vm2008_vm5, %v5205_v1, %v5206_v24  ;;  %v2425_v35 = vld [vmem:[%s7107_s1 + $0x328] sm:$0xff]  ;;  %v2427_v1 = vld [vmem:[%s7107_s1 + $0x338] sm:$0xff]  ;;  %v2021_v30 = vsel %vm2008_vm5, %v5265_v44, %v5266_v25  ;;  %v2022_v21 = vsel %vm2008_vm5, %v5270_v22, %v5271_v27 }
 0x15b   :  { %4450 = vmatprep.subr.bf16.mxu0 %v4449_v15  ;;  %4574 = vmatprep.subr.bf16.mxu1 %v6638_v23  ;;  %v4457_v5 = vpack.c.bf16 %v2016_v3, %v2015_v2  ;;  %v2238_v4 = vsel %vm2226_vm6, %v5260_v59, %v5261_v51  ;;  %v4469_v62 = vpack.c.bf16 %v2022_v21, %v2021_v30  ;;  %v2648_v30 = vld [vmem:[%s7107_s1 + $0x390] sm:$0xff] }
 0x15c   :  { %3852 = vmatprep.mubr.f32.mxu0 %v1712_v17  ;;  %v2237_v17 = vsel %vm2226_vm6, %v5255_v41, %v5256_v26 }
 0x15d   :  { %4026 = vmatmul.mubr.f32.vlgmr.msra.gmra.mrb[8].mxu1 %v2421_v58  ;;  %3853 = vmatmul.mubr.f32.gmra.mrb[10].mxu0 %v1713_v60  ;;  %v2646_v58 = vld [vmem:[%s7107_s1 + $0x380] sm:$0xff] }
 0x15e   :  { %4452 = vmatpush3.bf16.msra.mxu0 %v4449_v15  ;;  %4576 = vmatpush3.bf16.msra.mxu1 %v6638_v23  ;;  %v6702_v55 = vpop.permute.xlu1 %5278  ;;  %v6704_v19 = vpop.permute.xlu0 %5273  ;;  %v2020_v15 = vsel %vm2008_vm5, %v5250_v13, %v5251_v45 }
 0x15f   :  { %4454 = vmatprep.subr.bf16.mxu0 %v4453_v6  ;;  %4578 = vmatprep.subr.bf16.mxu1 %v6680_v32  ;;  %v4465_v14 = vpack.c.bf16 %v2020_v15, %v2019_v46  ;;  %v5281_v60 = vunpack.i.h.bf16 %v6702_v55  ;;  %v5276_v10 = vunpack.i.h.bf16 %v6704_v19  ;;  %v5275_v52 = vunpack.i.l.bf16 %v6704_v19 }
 0x160   :  { %3855 = vmatprep.mubr.f32.mxu0 %v1714_v50  ;;  %4028 = vmatprep.mubr.f32.mxu1 %v2422_v28  ;;  %v6775_v28 = vpack.c.bf16 %v2238_v4, %v2237_v17  ;;  %v1940_v17 = vld [vmem:[%s7107_s1 + $0x2a0] sm:$0xff] }
 0x161   :  { %3856 = vmatmul.mubr.f32.gmra.mrb[12].mxu0 %v1715_v49  ;;  %4029 = vmatmul.mubr.f32.gmra.mrb[10].mxu1 %v2423_v43  ;;  %v2239_v31 = vsel %vm2226_vm6, %v5275_v52, %v5276_v10 }
 0x162   :  { %4456 = vmatpush3.bf16.msra.mxu0 %v4453_v6  ;;  %4580 = vmatpush3.bf16.msra.mxu1 %v6680_v32  ;;  %v5289_v11 = vpop.permute.xlu1 %5288  ;;  %v5280_v6 = vunpack.i.l.bf16 %v6702_v55 }
 0x163   :  { %4458 = vmatprep.subr.bf16.mxu0 %v4457_v5  ;;  %4582 = vmatprep.subr.bf16.mxu1 %v6717_v38  ;;  %v5284_v53 = vpop.permute.xlu0 %5283  ;;  %v5291_v47 = vunpack.i.h.bf16 %v5289_v11  ;;  %v5290_v54 = vunpack.i.l.bf16 %v5289_v11 }
 0x164   :  { %3858 = vmatprep.mubr.f32.mxu0 %v1716_v34  ;;  %4031 = vmatprep.mubr.f32.mxu1 %v2424_v29  ;;  %v5286_v57 = vunpack.i.h.bf16 %v5284_v53  ;;  %v5285_v7 = vunpack.i.l.bf16 %v5284_v53  ;;  %v2240_v9 = vsel %vm2226_vm6, %v5280_v6, %v5281_v60  ;;  %v1937_v53 = vld [vmem:[%s7107_s1 + $0x288] sm:$0xff]  ;;  %v2649_v60 = vld [vmem:[%s7107_s1 + $0x398] sm:$0xff] }
 0x165   :  { %3859 = vmatmul.mubr.f32.gmra.mrb[14].mxu0 %v1717_v39  ;;  %4032 = vmatmul.mubr.f32.gmra.mrb[12].mxu1 %v2425_v35  ;;  %v2024_v50 = vsel %vm2008_vm5, %v5290_v54, %v5291_v47 }
 0x166   :  { %4460 = vmatpush3.bf16.msra.mxu0 %v4457_v5  ;;  %4584 = vmatpush3.bf16.msra.mxu1 %v6717_v38  ;;  %v5299_v24 = vpop.permute.xlu1 %5298  ;;  %v2023_v18 = vsel %vm2008_vm5, %v5285_v7, %v5286_v57  ;;  %v6783_v5 = vpack.c.bf16 %v2240_v9, %v2239_v31 }
 0x167   :  { %4462 = vmatprep.subr.bf16.mxu0 %v4461_v12  ;;  %4586 = vmatprep.subr.bf16.mxu1 %v6725_v63  ;;  %v5294_v37 = vpop.permute.xlu0 %5293  ;;  %v5301_v3 = vunpack.i.h.bf16 %v5299_v24  ;;  %v5300_v40 = vunpack.i.l.bf16 %v5299_v24  ;;  %v4473_v43 = vpack.c.bf16 %v2024_v50, %v2023_v18  ;;  %v2647_v24 = vld [vmem:[%s7107_s1 + $0x388] sm:$0xff]  ;;  %v1943_v50 = vld [vmem:[%s7107_s1 + $0x2b8] sm:$0xff] }
 0x168   :  { %3893 = vmatprep.mubr.f32.mxu0 %v1936_v36  ;;  %4034 = vmatprep.mubr.f32.mxu1 %v2426_v8  ;;  %v5296_v42 = vunpack.i.h.bf16 %v5294_v37  ;;  %v5295_v56 = vunpack.i.l.bf16 %v5294_v37  ;;  %v1938_v8 = vld [vmem:[%s7107_s1 + $0x290] sm:$0xff] }
 0x169   :  { %4035 = vmatmul.mubr.f32.gmra.mrb[14].mxu1 %v2427_v1  ;;  %v2242_v19 = vsel %vm2226_vm6, %v5300_v40, %v5301_v3 }
 0x16a   :  { %4464 = vmatpush3.bf16.msra.mxu0 %v4461_v12  ;;  %4588 = vmatpush3.bf16.msra.mxu1 %v6725_v63  ;;  %v5309_v2 = vpop.permute.xlu1 %5308  ;;  %v2241_v49 = vsel %vm2226_vm6, %v5295_v56, %v5296_v42  ;;  %v1942_v42 = vld [vmem:[%s7107_s1 + $0x2b0] sm:$0xff]  ;;  %v2650_v56 = vld [vmem:[%s7107_s1 + $0x3a0] sm:$0xff] }
 0x16b   :  { %4466 = vmatprep.subr.bf16.mxu0 %v4465_v14  ;;  %4590 = vmatprep.subr.bf16.mxu1 %v6757_v61  ;;  %v5311_v45 = vunpack.i.h.bf16 %v5309_v2  ;;  %v5310_v13 = vunpack.i.l.bf16 %v5309_v2  ;;  %v6786_v29 = vpack.c.bf16 %v2242_v19, %v2241_v49 }
 0x16c   :  { %4069 = vmatprep.mubr.f32.mxu1 %v2646_v58  ;;  %v1941_v58 = vld [vmem:[%s7107_s1 + $0x2a8] sm:$0xff] }
 0x16d   :  { %v5304_v48 = vpop.permute.xlu0 %5303  ;;  %v2841_v46 = vsel %vm2839_vm7, %v5310_v13, %v5311_v45  ;;  %v2154_v45 = vld [vmem:[%s7107_s1 + $0x2c0] sm:$0xff]  ;;  %v2652_v13 = vld [vmem:[%s7107_s1 + $0x3b0] sm:$0xff] }
 0x16e   :  { %4468 = vmatpush3.bf16.msra.mxu0 %v4465_v14  ;;  %4592 = vmatpush3.bf16.msra.mxu1 %v6757_v61  ;;  %v5319_v55 = vpop.permute.xlu1 %5318  ;;  %v5306_v16 = vunpack.i.h.bf16 %v5304_v48  ;;  %v5305_v0 = vunpack.i.l.bf16 %v5304_v48  ;;  %v1939_v14 = vld [vmem:[%s7107_s1 + $0x298] sm:$0xff] }
 0x16f   :  { %4470 = vmatprep.subr.bf16.mxu0 %v4469_v62  ;;  %4594 = vmatprep.subr.bf16.mxu1 %v6775_v28  ;;  %v5321_v12 = vunpack.i.h.bf16 %v5319_v55  ;;  %v5320_v11 = vunpack.i.l.bf16 %v5319_v55 }
 0x170   :  { %v2840_v33 = vsel %vm2839_vm7, %v5305_v0, %v5306_v16  ;;  %v2653_v0 = vld [vmem:[%s7107_s1 + $0x3b8] sm:$0xff] }
 0x171   :  { %v5314_v34 = vpop.permute.xlu0 %5313  ;;  %v4605_v51 = vpack.c.bf16 %v2841_v46, %v2840_v33  ;;  %v2843_v26 = vsel %vm2839_vm7, %v5320_v11, %v5321_v12 }
 0x172   :  { %4472 = vmatpush3.bf16.msra.mxu0 %v4469_v62  ;;  %4596 = vmatpush3.bf16.msra.mxu1 %v6775_v28  ;;  %v5329_v20 = vpop.permute.xlu1 %5328  ;;  %v5316_v39 = vunpack.i.h.bf16 %v5314_v34  ;;  %v5315_v35 = vunpack.i.l.bf16 %v5314_v34  ;;  %v2651_v62 = vld [vmem:[%s7107_s1 + $0x3a8] sm:$0xff] }
 0x173   :  { %4598 = vmatprep.subr.bf16.mxu1 %v6783_v5  ;;  %4474 = vmatprep.subr.bf16.mxu0 %v4473_v43  ;;  %v5331_v27 = vunpack.i.h.bf16 %v5329_v20  ;;  %v5330_v22 = vunpack.i.l.bf16 %v5329_v20 }
 0x174   :  { %v2842_v59 = vsel %vm2839_vm7, %v5315_v35, %v5316_v39 }
 0x175   :  { %v5324_v15 = vpop.permute.xlu0 %5323  ;;  %v4609_v1 = vpack.c.bf16 %v2843_v26, %v2842_v59  ;;  %v2845_v7 = vsel %vm2839_vm7, %v5330_v22, %v5331_v27 }
 0x176   :  { %4476 = vmatpush3.bf16.msra.mxu0 %v4473_v43  ;;  %4600 = vmatpush3.bf16.msra.mxu1 %v6783_v5  ;;  %v5339_v41 = vpop.permute.xlu1 %5338  ;;  %v5326_v25 = vunpack.i.h.bf16 %v5324_v15  ;;  %v5325_v44 = vunpack.i.l.bf16 %v5324_v15 }
 0x177   :  { %4478 = vmatprep.subr.bf16.mxu0 %v6638_v23  ;;  %4602 = vmatprep.subr.bf16.mxu1 %v6786_v29  ;;  %v5341_v37 = vunpack.i.h.bf16 %v5339_v41  ;;  %v5340_v47 = vunpack.i.l.bf16 %v5339_v41 }
 0x179   :  { %3894 = vmatmul.mubr.f32.vlgmr.msra.gmra.mrb[8].mxu0 %v1937_v53  ;;  %v5334_v36 = vpop.permute.xlu0 %5333  ;;  %v2847_v52 = vsel %vm2839_vm7, %v5340_v47, %v5341_v37  ;;  %v2159_v37 = vld [vmem:[%s7107_s1 + $0x2e8] sm:$0xff]  ;;  %v2770_v47 = vld [vmem:[%s7107_s1 + $0x3d8] sm:$0xff] }
 0x17a   :  { %4480 = vmatpush3.bf16.msra.mxu0 %v6638_v23  ;;  %4604 = vmatpush3.bf16.msra.mxu1 %v6786_v29  ;;  %v5336_v54 = vunpack.i.h.bf16 %v5334_v36  ;;  %v5335_v57 = vunpack.i.l.bf16 %v5334_v36  ;;  %v2844_v23 = vsel %vm2839_vm7, %v5325_v44, %v5326_v25 }
 0x17b   :  { %4482 = vmatprep.subr.bf16.mxu0 %v6680_v32  ;;  %4606 = vmatprep.subr.bf16.mxu1 %v4605_v51  ;;  %v4613_v6 = vpack.c.bf16 %v2845_v7, %v2844_v23  ;;  %v2161_v23 = vld [vmem:[%s7107_s1 + $0x2f8] sm:$0xff]  ;;  %v2772_v7 = vld [vmem:[%s7107_s1 + $0x3e8] sm:$0xff] }
 0x17c   :  { %3896 = vmatprep.mubr.f32.mxu0 %v1938_v8  ;;  %v2846_v10 = vsel %vm2839_vm7, %v5335_v57, %v5336_v54  ;;  %v2160_v54 = vld [vmem:[%s7107_s1 + $0x2f0] sm:$0xff]  ;;  %v2771_v57 = vld [vmem:[%s7107_s1 + $0x3e0] sm:$0xff] }
 0x17d   :  { %4070 = vmatmul.mubr.f32.vlgmr.msra.gmra.mrb[8].mxu1 %v2647_v24  ;;  %v5349_v4 = vpop.permute.xlu1 %5348  ;;  %3897 = vmatmul.mubr.f32.gmra.mrb[10].mxu0 %v1939_v14  ;;  %v4617_v48 = vpack.c.bf16 %v2847_v52, %v2846_v10  ;;  %v2156_v24 = vld [vmem:[%s7107_s1 + $0x2d0] sm:$0xff] }
 0x17e   :  { %4484 = vmatpush3.bf16.msra.mxu0 %v6680_v32  ;;  %4608 = vmatpush3.bf16.msra.mxu1 %v4605_v51  ;;  %v5344_v21 = vpop.permute.xlu0 %5343  ;;  %v5351_v2 = vunpack.i.h.bf16 %v5349_v4  ;;  %v5350_v32 = vunpack.i.l.bf16 %v5349_v4  ;;  %v2769_v14 = vld [vmem:[%s7107_s1 + $0x3d0] sm:$0xff] }
 0x17f   :  { %4486 = vmatprep.subr.bf16.mxu0 %v6717_v38  ;;  %4610 = vmatprep.subr.bf16.mxu1 %v4609_v1  ;;  %v5346_v3 = vunpack.i.h.bf16 %v5344_v21  ;;  %v5345_v40 = vunpack.i.l.bf16 %v5344_v21  ;;  %v2773_v4 = vld [vmem:[%s7107_s1 + $0x3f0] sm:$0xff] }
 0x180   :  { %3899 = vmatprep.mubr.f32.mxu0 %v1940_v17  ;;  %4072 = vmatprep.mubr.f32.mxu1 %v2648_v30  ;;  %v2849_v43 = vsel %vm2839_vm7, %v5350_v32, %v5351_v2  ;;  %v2774_v17 = vld [vmem:[%s7107_s1 + $0x3f8] sm:$0xff] }
 0x181   :  { %3900 = vmatmul.mubr.f32.gmra.mrb[12].mxu0 %v1941_v58  ;;  %4073 = vmatmul.mubr.f32.gmra.mrb[10].mxu1 %v2649_v60 }
 0x182   :  { %4488 = vmatpush3.bf16.msra.mxu0 %v6717_v38  ;;  %4612 = vmatpush3.bf16.msra.mxu1 %v4609_v1  ;;  %v5359_v18 = vpop.permute.xlu1 %5358  ;;  %v2848_v38 = vsel %vm2839_vm7, %v5345_v40, %v5346_v3  ;;  %v2158_v1 = vld [vmem:[%s7107_s1 + $0x2e0] sm:$0xff] }
 0x183   :  { %4490 = vmatprep.subr.bf16.mxu0 %v6725_v63  ;;  %4614 = vmatprep.subr.bf16.mxu1 %v4613_v6  ;;  %v5361_v9 = vunpack.i.h.bf16 %v5359_v18  ;;  %v5360_v31 = vunpack.i.l.bf16 %v5359_v18  ;;  %v5354_v55 = vpop.permute.xlu0 %5353  ;;  %v4621_v34 = vpack.c.bf16 %v2849_v43, %v2848_v38 }
 0x184   :  { %v5356_v19 = vunpack.i.h.bf16 %v5354_v55  ;;  %v5355_v49 = vunpack.i.l.bf16 %v5354_v55  ;;  %3902 = vmatprep.mubr.f32.mxu0 %v1942_v42  ;;  %4075 = vmatprep.mubr.f32.mxu1 %v2650_v56 }
 0x185   :  { %3903 = vmatmul.mubr.f32.gmra.mrb[14].mxu0 %v1943_v50  ;;  %4076 = vmatmul.mubr.f32.gmra.mrb[12].mxu1 %v2651_v62  ;;  %v2851_v11 = vsel %vm2839_vm7, %v5360_v31, %v5361_v9 }
 0x186   :  { %4492 = vmatpush3.bf16.msra.mxu0 %v6725_v63  ;;  %4616 = vmatpush3.bf16.msra.mxu1 %v4613_v6  ;;  %v5369_v16 = vpop.permute.xlu1 %5368  ;;  %v2850_v12 = vsel %vm2839_vm7, %v5355_v49, %v5356_v19  ;;  %v2767_v63 = vld [vmem:[%s7107_s1 + $0x3c0] sm:$0xff] }
 0x187   :  { %4494 = vmatprep.subr.bf16.mxu0 %v6757_v61  ;;  %4618 = vmatprep.subr.bf16.mxu1 %v4617_v48  ;;  %v5364_v20 = vpop.permute.xlu0 %5363  ;;  %v5371_v39 = vunpack.i.h.bf16 %v5369_v16  ;;  %v5370_v35 = vunpack.i.l.bf16 %v5369_v16  ;;  %v4625_v53 = vpack.c.bf16 %v2851_v11, %v2850_v12 }
 0x188   :  { %v5366_v33 = vunpack.i.h.bf16 %v5364_v20  ;;  %v5365_v46 = vunpack.i.l.bf16 %v5364_v20  ;;  %3937 = vmatprep.mubr.f32.mxu0 %v2154_v45  ;;  %4078 = vmatprep.mubr.f32.mxu1 %v2652_v13 }
 0x189   :  { %4079 = vmatmul.mubr.f32.gmra.mrb[14].mxu1 %v2653_v0  ;;  %v2853_v41 = vsel %vm2839_vm7, %v5370_v35, %v5371_v39 }
 0x18a   :  { %4496 = vmatpush3.bf16.msra.mxu0 %v6757_v61  ;;  %4620 = vmatpush3.bf16.msra.mxu1 %v4617_v48  ;;  %v5379_v15 = vpop.permute.xlu1 %5378  ;;  %v2852_v26 = vsel %vm2839_vm7, %v5365_v46, %v5366_v33 }
 0x18b   :  { %4498 = vmatprep.subr.bf16.mxu0 %v6775_v28  ;;  %4622 = vmatprep.subr.bf16.mxu1 %v4621_v34  ;;  %v5381_v51 = vunpack.i.h.bf16 %v5379_v15  ;;  %v5380_v59 = vunpack.i.l.bf16 %v5379_v15  ;;  %v4629_v25 = vpack.c.bf16 %v2853_v41, %v2852_v26 }
 0x18c   :  { %4113 = vmatprep.mubr.f32.mxu1 %v2767_v63 }
 0x18d   :  { %v2855_v44 = vsel %vm2839_vm7, %v5380_v59, %v5381_v51 }
 0x18e   :  { %4500 = vmatpush3.bf16.msra.mxu0 %v6775_v28  ;;  %4624 = vmatpush3.bf16.msra.mxu1 %v4621_v34  ;;  %v5374_v27 = vpop.permute.xlu0 %5373  ;;  %v2155_v28 = vld [vmem:[%s7107_s1 + $0x2c8] sm:$0xff] }
 0x18f   :  { %4502 = vmatprep.subr.bf16.mxu0 %v6783_v5  ;;  %4626 = vmatprep.subr.bf16.mxu1 %v4625_v53  ;;  %v5376_v61 = vunpack.i.h.bf16 %v5374_v27  ;;  %v5375_v22 = vunpack.i.l.bf16 %v5374_v27 }
 0x191   :  { %v2854_v36 = vsel %vm2839_vm7, %v5375_v22, %v5376_v61 }
 0x192   :  { %4504 = vmatpush3.bf16.msra.mxu0 %v6783_v5  ;;  %4628 = vmatpush3.bf16.msra.mxu1 %v4625_v53  ;;  %v4633_v8 = vpack.c.bf16 %v2855_v44, %v2854_v36  ;;  %v2157_v5 = vld [vmem:[%s7107_s1 + $0x2d8] sm:$0xff] }
 0x193   :  { %4506 = vmatprep.subr.bf16.mxu0 %v6786_v29  ;;  %4630 = vmatprep.subr.bf16.mxu1 %v4629_v25 }
 0x196   :  { %4508 = vmatpush3.bf16.msra.mxu0 %v6786_v29  ;;  %4632 = vmatpush3.bf16.msra.mxu1 %v4629_v25  ;;  %v2768_v29 = vld [vmem:[%s7107_s1 + $0x3c8] sm:$0xff] }
 0x197   :  { %4634 = vmatprep.subr.bf16.mxu1 %v4633_v8 }
 0x199   :  { %3938 = vmatmul.mubr.f32.vlgmr.msra.gmra.mrb[8].mxu0 %v2155_v28 }
 0x19a   :  { %4636 = vmatpush3.bf16.msra.mxu1 %v4633_v8  ;;  %3940 = vmatprep.mubr.f32.mxu0 %v2156_v24 }
 0x19d   :  { %3941 = vmatmul.mubr.f32.gmra.mrb[10].mxu0 %v2157_v5  ;;  %4114 = vmatmul.mubr.f32.vlgmr.msra.gmra.mrb[8].mxu1 %v2768_v29 }
 0x19e   :  { %3943 = vmatprep.mubr.f32.mxu0 %v2158_v1  ;;  %4116 = vmatprep.mubr.f32.mxu1 %v2769_v14 }
 0x1a1   :  { %3944 = vmatmul.mubr.f32.gmra.mrb[12].mxu0 %v2159_v37  ;;  %4117 = vmatmul.mubr.f32.gmra.mrb[10].mxu1 %v2770_v47 }
 0x1a2   :  { %3946 = vmatprep.mubr.f32.mxu0 %v2160_v54  ;;  %4119 = vmatprep.mubr.f32.mxu1 %v2771_v57 }
 0x1a5   :  { %3947 = vmatmul.mubr.f32.gmra.mrb[14].mxu0 %v2161_v23  ;;  %4120 = vmatmul.mubr.f32.gmra.mrb[12].mxu1 %v2772_v7 }
 0x1a6   :  { %4122 = vmatprep.mubr.f32.mxu1 %v2773_v4 }
 0x1a8   :  { %v6914_v30 = vpop.permute.xlu0 %874 }
 0x1a9   :  { %4123 = vmatmul.mubr.f32.gmra.mrb[14].mxu1 %v2774_v17 }
 0x1ab   :  { %v6916_v21 = vpop.permute.xlu1 %879 }
 0x1ac   :  { %v6918_v58 = vpop.permute.xlu0 %889 }
 0x1af   :  { %v6920_v60 = vpop.permute.xlu1 %884 }
 0x1b0   :  { %v6922_v6 = vpop.permute.xlu0 %899 }
 0x1b3   :  { %v6924_v10 = vpop.permute.xlu1 %894 }
 0x1b4   :  { %v6926_v52 = vpop.permute.xlu0 %909 }
 0x1b7   :  { %v6928_v2 = vpop.permute.xlu1 %904 }
 0x1b8   :  { %v6930_v32 = vpop.permute.xlu0 %927 }
 0x1bb   :  { %v6932_v3 = vpop.permute.xlu1 %922 }
 0x1c8   :  { %v6937_v62 = vpop.permute.xlu0 %937 }
 0x1cb   :  { %v6939_v48 = vpop.permute.xlu1 %932 }
 0x1cc   :  { %v6956_v53 = vpop.permute.xlu0 %947 }
 0x1cf   :  { %v6958_v51 = vpop.permute.xlu1 %942 }
 0x1ec   :  { %v3587_v40 = vpop.f32.mrb[0].mxu0 }
 0x1ed   :  { %v913_v42 = vmul.f32 %v3587_v40, %v6916_v21  ;;  %v825_v56 = vpop.f32.mrb[1].mxu0 }
 0x1ee   :  { %v912_v18 = vmul.f32 %v6914_v30, %v825_v56  ;;  %v6984_v56 = vpop.permute.xlu0 %957 }
 0x1ef   :  { %v961_v50 = vadd.f32 %v6930_v32, %v913_v42 }
 0x1f0   :  { %v960_v9 = vadd.f32 %v6932_v3, %v912_v18  ;;  %v3590_v31 = vpop.f32.mrb[2].mxu0  ;;  %v3763_v55 = vpop.f32.mrb[0].mxu1 }
 0x1f1   :  { %vm969_vm8 = vcmp.gt.f32.partialorder %v961_v50, 0.0  ;;  %v977_v19 = vmul.f32 0.1, %v961_v50  ;;  %v915_v49 = vmul.f32 %v3590_v31, %v6918_v58  ;;  %v1663_v38 = vmul.f32 %v3763_v55, %v6916_v21  ;;  %v835_v43 = vpop.f32.mrb[3].mxu0  ;;  %v1615_v45 = vpop.f32.mrb[1].mxu1 }
 0x1f2   :  { %vm968_vm9 = vcmp.gt.f32.partialorder %v960_v9, 0.0  ;;  %v976_v13 = vmul.f32 0.1, %v960_v9  ;;  %v914_v16 = vmul.f32 %v6920_v60, %v835_v43  ;;  %v1662_v0 = vmul.f32 %v1615_v45, %v6914_v30  ;;  %v6986_v18 = vpop.permute.xlu1 %952 }
 0x1f3   :  { %v985_v34 = vsel %vm969_vm8, %v961_v50, %v977_v19  ;;  %v1671_v20 = vadd.f32 %v1663_v38, %v6930_v32  ;;  %v963_v12 = vadd.f32 %v6937_v62, %v915_v49 }
 0x1f4   :  { %993 = vst [vmem:[%s7110_s4 + $0x8] sm:$0xff] %v985_v34  ;;  %v984_v11 = vsel %vm968_vm9, %v960_v9, %v976_v13  ;;  %v1670_v39 = vadd.f32 %v1662_v0, %v6932_v3  ;;  %v962_v35 = vadd.f32 %v6939_v48, %v914_v16  ;;  %v3593_v33 = vpop.f32.mrb[4].mxu0  ;;  %v3766_v46 = vpop.f32.mrb[2].mxu1 }
 0x1f5   :  { %992 = vst [vmem:[%s7110_s4] sm:$0xff] %v984_v11  ;;  %vm1679_vm10 = vcmp.gt.f32.partialorder %v1671_v20, 0.0  ;;  %v1687_v63 = vmul.f32 0.1, %v1671_v20  ;;  %vm971_vm11 = vcmp.gt.f32.partialorder %v963_v12, 0.0  ;;  %v979_v15 = vmul.f32 0.1, %v963_v12 }
 0x1f6   :  { %vm1678_vm12 = vcmp.gt.f32.partialorder %v1670_v39, 0.0  ;;  %v1686_v59 = vmul.f32 0.1, %v1670_v39  ;;  %vm970_vm13 = vcmp.gt.f32.partialorder %v962_v35, 0.0  ;;  %v978_v26 = vmul.f32 0.1, %v962_v35 }
 0x1f7   :  { %v1695_v41 = vsel %vm1679_vm10, %v1671_v20, %v1687_v63  ;;  %v987_v27 = vsel %vm971_vm11, %v963_v12, %v979_v15  ;;  %v917_v61 = vmul.f32 %v3593_v33, %v6922_v6  ;;  %v1665_v22 = vmul.f32 %v3766_v46, %v6918_v58  ;;  %v845_v25 = vpop.f32.mrb[5].mxu0  ;;  %v1625_v44 = vpop.f32.mrb[3].mxu1 }
 0x1f8   :  { %1703 = vst [vmem:[%s7110_s4 + $0x48] sm:$0xff] %v1695_v41  ;;  %v1694_v36 = vsel %vm1678_vm12, %v1670_v39, %v1686_v59  ;;  %995 = vst [vmem:[%s7110_s4 + $0x18] sm:$0xff] %v987_v27  ;;  %v986_v8 = vsel %vm970_vm13, %v962_v35, %v978_v26  ;;  %v916_v28 = vmul.f32 %v6924_v10, %v845_v25  ;;  %v3596_v5 = vpop.f32.mrb[6].mxu0  ;;  %v3769_v29 = vpop.f32.mrb[4].mxu1 }
 0x1f9   :  { %v1664_v24 = vmul.f32 %v1625_v44, %v6920_v60  ;;  %1702 = vst [vmem:[%s7110_s4 + $0x40] sm:$0xff] %v1694_v36  ;;  %994 = vst [vmem:[%s7110_s4 + $0x10] sm:$0xff] %v986_v8  ;;  %v1673_v1 = vadd.f32 %v1665_v22, %v6937_v62  ;;  %v965_v14 = vadd.f32 %v6956_v53, %v917_v61  ;;  %v855_v54 = vpop.f32.mrb[7].mxu0  ;;  %v1635_v57 = vpop.f32.mrb[5].mxu1 }
 0x1fa   :  { %v919_v37 = vmul.f32 %v3596_v5, %v6926_v52  ;;  %v1667_v47 = vmul.f32 %v3769_v29, %v6922_v6  ;;  %v964_v7 = vadd.f32 %v6958_v51, %v916_v28  ;;  %v918_v4 = vmul.f32 %v6928_v2, %v855_v54 }
 0x1fb   :  { %v1672_v23 = vadd.f32 %v1664_v24, %v6939_v48  ;;  %v1666_v17 = vmul.f32 %v1635_v57, %v6924_v10  ;;  %vm1681_vm14 = vcmp.gt.f32.partialorder %v1673_v1, 0.0  ;;  %v1689_v40 = vmul.f32 0.1, %v1673_v1 }
 0x1fc   :  { %vm973_vm15 = vcmp.gt.f32.partialorder %v965_v14, 0.0  ;;  %v981_v42 = vmul.f32 0.1, %v965_v14  ;;  %vm972_vm1 = vcmp.gt.f32.partialorder %v964_v7, 0.0  ;;  %v980_v9 = vmul.f32 0.1, %v964_v7 }
 0x1fd   :  { %vm1680_vm0 = vcmp.gt.f32.partialorder %v1672_v23, 0.0  ;;  %v1688_v50 = vmul.f32 0.1, %v1672_v23  ;;  %v1697_v31 = vsel %vm1681_vm14, %v1673_v1, %v1689_v40  ;;  %v1675_v19 = vadd.f32 %v1667_v47, %v6956_v53  ;;  %v3772_v38 = vpop.f32.mrb[6].mxu1 }
 0x1fe   :  { %v989_v55 = vsel %vm973_vm15, %v965_v14, %v981_v42  ;;  %v1674_v49 = vadd.f32 %v1666_v17, %v6958_v51  ;;  %1705 = vst [vmem:[%s7110_s4 + $0x58] sm:$0xff] %v1697_v31  ;;  %v988_v45 = vsel %vm972_vm1, %v964_v7, %v980_v9  ;;  %v967_v13 = vadd.f32 %v6984_v56, %v919_v37  ;;  %v1645_v0 = vpop.f32.mrb[7].mxu1 }
 0x1ff   :  { %v1696_v43 = vsel %vm1680_vm0, %v1672_v23, %v1688_v50  ;;  %997 = vst [vmem:[%s7110_s4 + $0x28] sm:$0xff] %v989_v55  ;;  %v966_v16 = vadd.f32 %v6986_v18, %v918_v4  ;;  %996 = vst [vmem:[%s7110_s4 + $0x20] sm:$0xff] %v988_v45  ;;  %vm1683_vm2 = vcmp.gt.f32.partialorder %v1675_v19, 0.0  ;;  %v1691_v34 = vmul.f32 0.1, %v1675_v19 }
 0x200   :  { %1704 = vst [vmem:[%s7110_s4 + $0x50] sm:$0xff] %v1696_v43  ;;  %vm1682_vm3 = vcmp.gt.f32.partialorder %v1674_v49, 0.0  ;;  %v1690_v20 = vmul.f32 0.1, %v1674_v49  ;;  %vm975_vm4 = vcmp.gt.f32.partialorder %v967_v13, 0.0  ;;  %v1669_v33 = vmul.f32 %v3772_v38, %v6926_v52 }
 0x201   :  { %v983_v12 = vmul.f32 0.1, %v967_v13  ;;  %vm974_vm5 = vcmp.gt.f32.partialorder %v966_v16, 0.0  ;;  %v982_v11 = vmul.f32 0.1, %v966_v16  ;;  %v1699_v39 = vsel %vm1683_vm2, %v1675_v19, %v1691_v34 }
 0x202   :  { %v1698_v35 = vsel %vm1682_vm3, %v1674_v49, %v1690_v20  ;;  %v1668_v46 = vmul.f32 %v1645_v0, %v6928_v2  ;;  %1707 = vst [vmem:[%s7110_s4 + $0x68] sm:$0xff] %v1699_v39  ;;  %v1677_v59 = vadd.f32 %v1669_v33, %v6984_v56 }
 0x203   :  { %1706 = vst [vmem:[%s7110_s4 + $0x60] sm:$0xff] %v1698_v35  ;;  %v991_v63 = vsel %vm975_vm4, %v967_v13, %v983_v12  ;;  %v990_v15 = vsel %vm974_vm5, %v966_v16, %v982_v11 }
 0x204   :  { %999 = vst [vmem:[%s7110_s4 + $0x38] sm:$0xff] %v991_v63  ;;  %998 = vst [vmem:[%s7110_s4 + $0x30] sm:$0xff] %v990_v15  ;;  %v1676_v26 = vadd.f32 %v1668_v46, %v6986_v18  ;;  %vm1685_vm6 = vcmp.gt.f32.partialorder %v1677_v59, 0.0  ;;  %v1693_v41 = vmul.f32 0.1, %v1677_v59 }
 0x206   :  { %vm1684_vm7 = vcmp.gt.f32.partialorder %v1676_v26, 0.0  ;;  %v1692_v27 = vmul.f32 0.1, %v1676_v26  ;;  %v1701_v61 = vsel %vm1685_vm6, %v1677_v59, %v1693_v41 }
 0x207   :  { %1709 = vst [vmem:[%s7110_s4 + $0x78] sm:$0xff] %v1701_v61 }
 0x208   :  { %v1700_v22 = vsel %vm1684_vm7, %v1676_v26, %v1692_v27 }
 0x209   :  { %1708 = vst [vmem:[%s7110_s4 + $0x70] sm:$0xff] %v1700_v22 }
 0x26c   :  { %v3939_v25 = vpop.f32.mrb[8].mxu0 }
 0x26d   :  { %v2373_v44 = vmul.f32 %v3939_v25, %v6916_v21  ;;  %v2325_v36 = vpop.f32.mrb[9].mxu0 }
 0x26e   :  { %v2372_v8 = vmul.f32 %v2325_v36, %v6914_v30 }
 0x26f   :  { %v2381_v28 = vadd.f32 %v2373_v44, %v6930_v32 }
 0x270   :  { %v2380_v24 = vadd.f32 %v2372_v8, %v6932_v3  ;;  %v3942_v5 = vpop.f32.mrb[10].mxu0  ;;  %v4115_v29 = vpop.f32.mrb[8].mxu1 }
 0x271   :  { %vm2389_vm8 = vcmp.gt.f32.partialorder %v2381_v28, 0.0  ;;  %v2397_v1 = vmul.f32 0.1, %v2381_v28  ;;  %v2375_v14 = vmul.f32 %v3942_v5, %v6918_v58  ;;  %v2986_v37 = vmul.f32 %v4115_v29, %v6916_v21  ;;  %v2335_v47 = vpop.f32.mrb[11].mxu0  ;;  %v2938_v54 = vpop.f32.mrb[9].mxu1 }
 0x272   :  { %vm2388_vm9 = vcmp.gt.f32.partialorder %v2380_v24, 0.0  ;;  %v2396_v57 = vmul.f32 0.1, %v2380_v24  ;;  %v2374_v23 = vmul.f32 %v2335_v47, %v6920_v60  ;;  %v2985_v7 = vmul.f32 %v2938_v54, %v6914_v30 }
 0x273   :  { %v2405_v4 = vsel %vm2389_vm8, %v2381_v28, %v2397_v1  ;;  %v2383_v17 = vadd.f32 %v2375_v14, %v6937_v62  ;;  %v2994_v40 = vadd.f32 %v2986_v37, %v6930_v32 }
 0x274   :  { %2413 = vst [vmem:[%s7110_s4 + $0x88] sm:$0xff] %v2405_v4  ;;  %v2404_v42 = vsel %vm2388_vm9, %v2380_v24, %v2396_v57  ;;  %v2382_v21 = vadd.f32 %v2374_v23, %v6939_v48  ;;  %v2993_v50 = vadd.f32 %v2985_v7, %v6932_v3  ;;  %v3945_v9 = vpop.f32.mrb[12].mxu0  ;;  %v4118_v31 = vpop.f32.mrb[10].mxu1 }
 0x275   :  { %2412 = vst [vmem:[%s7110_s4 + $0x80] sm:$0xff] %v2404_v42  ;;  %vm2391_vm10 = vcmp.gt.f32.partialorder %v2383_v17, 0.0  ;;  %v2399_v30 = vmul.f32 0.1, %v2383_v17  ;;  %vm3002_vm11 = vcmp.gt.f32.partialorder %v2994_v40, 0.0  ;;  %v2377_v43 = vmul.f32 %v3945_v9, %v6922_v6  ;;  %v2345_v45 = vpop.f32.mrb[13].mxu0 }
 0x276   :  { %v3010_v55 = vmul.f32 0.1, %v2994_v40  ;;  %vm2390_vm12 = vcmp.gt.f32.partialorder %v2382_v21, 0.0  ;;  %v2398_v32 = vmul.f32 0.1, %v2382_v21  ;;  %vm3001_vm13 = vcmp.gt.f32.partialorder %v2993_v50, 0.0 }
 0x277   :  { %v3009_v19 = vmul.f32 0.1, %v2993_v50  ;;  %v2407_v49 = vsel %vm2391_vm10, %v2383_v17, %v2399_v30  ;;  %v2988_v3 = vmul.f32 %v4118_v31, %v6918_v58  ;;  %v2948_v13 = vpop.f32.mrb[11].mxu1  ;;  %v2376_v34 = vmul.f32 %v2345_v45, %v6924_v10 }
 0x278   :  { %v3018_v38 = vsel %vm3002_vm11, %v2994_v40, %v3010_v55  ;;  %2415 = vst [vmem:[%s7110_s4 + $0x98] sm:$0xff] %v2407_v49  ;;  %v2406_v16 = vsel %vm2390_vm12, %v2382_v21, %v2398_v32  ;;  %v2987_v20 = vmul.f32 %v2948_v13, %v6920_v60  ;;  %v3948_v12 = vpop.f32.mrb[14].mxu0  ;;  %v4121_v11 = vpop.f32.mrb[12].mxu1  ;;  %v2385_v58 = vadd.f32 %v2377_v43, %v6956_v53 }
 0x279   :  { %3026 = vst [vmem:[%s7110_s4 + $0xc8] sm:$0xff] %v3018_v38  ;;  %v3017_v0 = vsel %vm3001_vm13, %v2993_v50, %v3009_v19  ;;  %2414 = vst [vmem:[%s7110_s4 + $0x90] sm:$0xff] %v2406_v16  ;;  %v2996_v39 = vadd.f32 %v2988_v3, %v6937_v62  ;;  %v2379_v35 = vmul.f32 %v3948_v12, %v6926_v52  ;;  %v2355_v46 = vpop.f32.mrb[15].mxu0  ;;  %v2958_v60 = vpop.f32.mrb[13].mxu1 }
 0x27a   :  { %3025 = vst [vmem:[%s7110_s4 + $0xc0] sm:$0xff] %v3017_v0  ;;  %v2990_v33 = vmul.f32 %v4121_v11, %v6922_v6  ;;  %v2384_v63 = vadd.f32 %v2376_v34, %v6958_v51  ;;  %v2995_v15 = vadd.f32 %v2987_v20, %v6939_v48  ;;  %v2378_v59 = vmul.f32 %v2355_v46, %v6928_v2 }
 0x27b   :  { %v2989_v26 = vmul.f32 %v2958_v60, %v6924_v10  ;;  %vm2393_vm14 = vcmp.gt.f32.partialorder %v2385_v58, 0.0  ;;  %v2401_v41 = vmul.f32 0.1, %v2385_v58  ;;  %vm3004_vm15 = vcmp.gt.f32.partialorder %v2996_v39, 0.0 }
 0x27c   :  { %v3012_v27 = vmul.f32 0.1, %v2996_v39  ;;  %vm2392_vm0 = vcmp.gt.f32.partialorder %v2384_v63, 0.0  ;;  %v2400_v62 = vmul.f32 0.1, %v2384_v63  ;;  %vm3003_vm1 = vcmp.gt.f32.partialorder %v2995_v15, 0.0 }
 0x27d   :  { %v3011_v61 = vmul.f32 0.1, %v2995_v15  ;;  %v2409_v22 = vsel %vm2393_vm14, %v2385_v58, %v2401_v41  ;;  %v2387_v25 = vadd.f32 %v2379_v35, %v6984_v56  ;;  %v2998_v44 = vadd.f32 %v2990_v33, %v6956_v53  ;;  %v4124_v36 = vpop.f32.mrb[14].mxu1 }
 0x27e   :  { %v3020_v6 = vsel %vm3004_vm15, %v2996_v39, %v3012_v27  ;;  %2417 = vst [vmem:[%s7110_s4 + $0xa8] sm:$0xff] %v2409_v22  ;;  %v2408_v10 = vsel %vm2392_vm0, %v2384_v63, %v2400_v62  ;;  %v2386_v8 = vadd.f32 %v2378_v59, %v6986_v18  ;;  %v2997_v28 = vadd.f32 %v2989_v26, %v6958_v51  ;;  %v2968_v24 = vpop.f32.mrb[15].mxu1 }
 0x27f   :  { %3028 = vst [vmem:[%s7110_s4 + $0xd8] sm:$0xff] %v3020_v6  ;;  %v3019_v48 = vsel %vm3003_vm1, %v2995_v15, %v3011_v61  ;;  %2416 = vst [vmem:[%s7110_s4 + $0xa0] sm:$0xff] %v2408_v10  ;;  %vm2395_vm2 = vcmp.gt.f32.partialorder %v2387_v25, 0.0  ;;  %v2403_v53 = vmul.f32 0.1, %v2387_v25  ;;  %vm3006_vm3 = vcmp.gt.f32.partialorder %v2998_v44, 0.0 }
 0x280   :  { %3027 = vst [vmem:[%s7110_s4 + $0xd0] sm:$0xff] %v3019_v48  ;;  %v3014_v5 = vmul.f32 0.1, %v2998_v44  ;;  %vm2394_vm4 = vcmp.gt.f32.partialorder %v2386_v8, 0.0  ;;  %v2402_v29 = vmul.f32 0.1, %v2386_v8  ;;  %v2992_v51 = vmul.f32 %v4124_v36, %v6926_v52 }
 0x281   :  { %vm3005_vm5 = vcmp.gt.f32.partialorder %v2997_v28, 0.0  ;;  %v3013_v1 = vmul.f32 0.1, %v2997_v28  ;;  %v2411_v14 = vsel %vm2395_vm2, %v2387_v25, %v2403_v53  ;;  %v2991_v47 = vmul.f32 %v2968_v24, %v6928_v2 }
 0x282   :  { %v3022_v37 = vsel %vm3006_vm3, %v2998_v44, %v3014_v5  ;;  %2419 = vst [vmem:[%s7110_s4 + $0xb8] sm:$0xff] %v2411_v14  ;;  %v2410_v54 = vsel %vm2394_vm4, %v2386_v8, %v2402_v29  ;;  %v3000_v52 = vadd.f32 %v2992_v51, %v6984_v56 }
 0x283   :  { %3030 = vst [vmem:[%s7110_s4 + $0xe8] sm:$0xff] %v3022_v37  ;;  %v3021_v57 = vsel %vm3005_vm5, %v2997_v28, %v3013_v1  ;;  %2418 = vst [vmem:[%s7110_s4 + $0xb0] sm:$0xff] %v2410_v54  ;;  %v2999_v2 = vadd.f32 %v2991_v47, %v6986_v18 }
 0x284   :  { %3029 = vst [vmem:[%s7110_s4 + $0xe0] sm:$0xff] %v3021_v57  ;;  %vm3008_vm6 = vcmp.gt.f32.partialorder %v3000_v52, 0.0  ;;  %v3016_v23 = vmul.f32 0.1, %v3000_v52 }
 0x285   :  { %vm3007_vm7 = vcmp.gt.f32.partialorder %v2999_v2, 0.0  ;;  %v3015_v7 = vmul.f32 0.1, %v2999_v2 }
 0x286   :  { %v3024_v4 = vsel %vm3008_vm6, %v3000_v52, %v3016_v23 }
 0x287   :  { %v3023_v17 = vsel %vm3007_vm7, %v2999_v2, %v3015_v7  ;;  %3032 = vst [vmem:[%s7110_s4 + $0xf8] sm:$0xff] %v3024_v4 }
 0x288   :  { %3031 = vst [vmem:[%s7110_s4 + $0xf0] sm:$0xff] %v3023_v17 }

// kernel: generator_forward.7
= control target key start
LH: loop header
LB: loop body
LE: loop exit
PB: predicated region body
PF: predicated region fallthrough
CT: control target
= control target key end

     0   :  { %s3626_s23 = smov 126   ;;  %s3627_s24 = smov 127   ;;  %v3628_v38 = vmov 0.0   ;;  %vm145_vm0 = vcmask 1039360   ;;  %vm913_vm1 = vcmask 1031168   ;;  %vm178_vm2 = vcmask 523264   ;;  %s4921_s0 = inlined_call_operand.vmem [shape: f32[64,384], index: 0, kind: input, shape index: {}]   ;;  %s4922_s1 = inlined_call_operand.vmem [shape: f32[512,64], index: 1, kind: input, shape index: {}]   ;;  %s4923_s2 = inlined_call_operand.vmem [shape: f32[32,1], index: 2, kind: input, shape index: {}]   ;;  %s4924_s3 = inlined_call_operand.vmem [shape: f32[32,1], index: 3, kind: input, shape index: {}]   ;;  %s4925_s4 = inlined_call_operand.vmem [shape: f32[128,256], index: 4, kind: output, shape index: {}]  }
   0x1   :  { %v3664_v0 = vld [vmem:[%s4921_s0 + $0x8] sm:$0xff]  ;;  %v43_v1 = vld [vmem:[%s4921_s0 + $0x10] sm:$0xff]  ;;  %v3672_v2 = vld [vmem:[%s4921_s0 + $0x20] sm:$0xff]  ;;  %255 = vmatprep.mubr.f32.mxu0 %v3628_v38  ;;  %1022 = vmatprep.mubr.f32.mxu1 %v3628_v38  ;;  %s3632_s15 = smov 108   ;;  %s3633_s16 = smov 107   ;;  %vm433_vm3 = vcmask 965632  }
   0x2   :  { %v3675_v3 = vpack.i.bf16 %v43_v1, %v3664_v0  ;;  %v46_v4 = vld [vmem:[%s4921_s0 + $0x28] sm:$0xff]  ;;  %v3690_v6 = vld [vmem:[%s4921_s0] sm:$0xff]  ;;  %v3695_v7 = vld [vmem:[%s4921_s0 + $0x18] sm:$0xff]  ;;  %v2798_v35 = vpack.c.bf16 %v3672_v2, %v3664_v0  ;;  %s3634_s21 = smov 106   ;;  %vm627_vm4 = vcmask 957440   ;;  %vm1313_vm5 = vcmask 949248  }
   0x3   :  { %v3685_v5 = vpack.i.bf16 %v46_v4, %v3672_v2  ;;  %v3703_v8 = vpack.i.bf16 %v3695_v7, %v3690_v6  ;;  %v3708_v9 = vld [vmem:[%s4921_s0 + $0x50] sm:$0xff]  ;;  %v52_v10 = vld [vmem:[%s4921_s0 + $0x58] sm:$0xff]  ;;  %v49_v12 = vld [vmem:[%s4921_s0 + $0x40] sm:$0xff]  ;;  %v2800_v37 = vpack.c.bf16 %v3695_v7, %v3690_v6  ;;  %vm1765_vm6 = vcmask 883712  }
   0x4   :  { %3155 = vrot.lane.b32.xlu1 %v3675_v3, %s3626_s23  ;;  %3145 = vrot.lane.b32.xlu0 %v3675_v3, %s3627_s24  ;;  %v3716_v11 = vld [vmem:[%s4921_s0 + $0x38] sm:$0xff]  ;;  %v3726_v13 = vpack.i.bf16 %v52_v10, %v3708_v9  ;;  %v3738_v15 = vld [vmem:[%s4921_s0 + $0x30] sm:$0xff]  ;;  %vm1959_vm7 = vcmask 875520   ;;  %vm2524_vm8 = vcmask 867328  }
   0x5   :  { %v3729_v14 = vpack.i.bf16 %v49_v12, %v3716_v11  ;;  %v3743_v16 = vld [vmem:[%s4921_s0 + $0x48] sm:$0xff]  ;;  %v3756_v18 = vld [vmem:[%s4921_s0 + $0x80] sm:$0xff]  ;;  %v55_v21 = vld [vmem:[%s4921_s0 + $0x70] sm:$0xff]  ;;  %v2802_v39 = vpack.c.bf16 %v3708_v9, %v3716_v11 }
   0x6   :  { %v3751_v17 = vpack.i.bf16 %v3743_v16, %v3738_v15  ;;  %v58_v19 = vld [vmem:[%s4921_s0 + $0x88] sm:$0xff]  ;;  %v3786_v24 = vld [vmem:[%s4921_s0 + $0x60] sm:$0xff]  ;;  %v3791_v25 = vld [vmem:[%s4921_s0 + $0x78] sm:$0xff]  ;;  %v2804_v40 = vpack.c.bf16 %v3743_v16, %v3738_v15 }
   0x7   :  { %v3764_v20 = vld [vmem:[%s4921_s0 + $0x68] sm:$0xff]  ;;  %v3774_v22 = vpack.i.bf16 %v58_v19, %v3756_v18  ;;  %v3799_v26 = vpack.i.bf16 %v3791_v25, %v3786_v24  ;;  %v3804_v27 = vld [vmem:[%s4921_s0 + $0xb0] sm:$0xff]  ;;  %v64_v28 = vld [vmem:[%s4921_s0 + $0xb8] sm:$0xff]  ;;  %v2808_v42 = vpack.c.bf16 %v3791_v25, %v3786_v24 }
   0x8   :  { %3160 = vrot.lane.b32.xlu1 %v3685_v5, %s3626_s23  ;;  %3150 = vrot.lane.b32.xlu0 %v3685_v5, %s3627_s24  ;;  %v3777_v23 = vpack.i.bf16 %v55_v21, %v3764_v20  ;;  %v3812_v29 = vld [vmem:[%s4921_s0 + $0x98] sm:$0xff]  ;;  %v61_v30 = vld [vmem:[%s4921_s0 + $0xa0] sm:$0xff]  ;;  %v3822_v31 = vpack.i.bf16 %v64_v28, %v3804_v27  ;;  %v2806_v41 = vpack.c.bf16 %v3756_v18, %v3764_v20 }
   0x9   :  { %v3825_v32 = vpack.i.bf16 %v61_v30, %v3812_v29  ;;  %v3834_v33 = vld [vmem:[%s4921_s0 + $0x90] sm:$0xff]  ;;  %v3839_v34 = vld [vmem:[%s4921_s0 + $0xa8] sm:$0xff]  ;;  %s3629_s0 = smov 118   ;;  %v2810_v43 = vpack.c.bf16 %v3804_v27, %v3812_v29  ;;  %v864_v24 = vld [vmem:[%s4922_s1 + $0xb8] sm:$0xff] }
   0xa   :  { %v3849_v36 = vpack.i.bf16 %v3839_v34, %v3834_v33  ;;  %v2812_v44 = vpack.c.bf16 %v3839_v34, %v3834_v33  ;;  %v70_v0 = vld [vmem:[%s4922_s1 + $0x28] sm:$0xff]  ;;  %v71_v15 = vld [vmem:[%s4922_s1 + $0x30] sm:$0xff]  ;;  %v65_v33 = vld [vmem:[%s4922_s1] sm:$0xff] }
   0xb   :  { %v862_v9 = vld [vmem:[%s4922_s1 + $0xa8] sm:$0xff]  ;;  %v863_v16 = vld [vmem:[%s4922_s1 + $0xb0] sm:$0xff]  ;;  %v857_v34 = vld [vmem:[%s4922_s1 + $0x80] sm:$0xff] }
   0xc   :  { %3170 = vrot.lane.b32.xlu1 %v3703_v8, %s3626_s23  ;;  %3165 = vrot.lane.b32.xlu0 %v3703_v8, %s3627_s24 }
  0x10   :  { %3180 = vrot.lane.b32.xlu1 %v3726_v13, %s3627_s24  ;;  %3175 = vrot.lane.b32.xlu0 %v3729_v14, %s3627_s24 }
  0x14   :  { %3190 = vrot.lane.b32.xlu1 %v3726_v13, %s3626_s23  ;;  %3185 = vrot.lane.b32.xlu0 %v3729_v14, %s3626_s23 }
  0x18   :  { %3200 = vrot.lane.b32.xlu1 %v3751_v17, %s3626_s23  ;;  %3195 = vrot.lane.b32.xlu0 %v3751_v17, %s3627_s24 }
  0x1c   :  { %3210 = vrot.lane.b32.xlu1 %v3774_v22, %s3627_s24  ;;  %3205 = vrot.lane.b32.xlu0 %v3777_v23, %s3627_s24 }
  0x20   :  { %3220 = vrot.lane.b32.xlu1 %v3774_v22, %s3626_s23  ;;  %3215 = vrot.lane.b32.xlu0 %v3777_v23, %s3626_s23 }
  0x24   :  { %3230 = vrot.lane.b32.xlu1 %v3799_v26, %s3626_s23  ;;  %3225 = vrot.lane.b32.xlu0 %v3799_v26, %s3627_s24 }
  0x28   :  { %3240 = vrot.lane.b32.xlu1 %v3822_v31, %s3627_s24  ;;  %3235 = vrot.lane.b32.xlu0 %v3825_v32, %s3627_s24 }
  0x2c   :  { %3250 = vrot.lane.b32.xlu1 %v3822_v31, %s3626_s23  ;;  %3245 = vrot.lane.b32.xlu0 %v3825_v32, %s3626_s23 }
  0x30   :  { %3260 = vrot.lane.b32.xlu1 %v3849_v36, %s3626_s23  ;;  %3255 = vrot.lane.b32.xlu0 %v3849_v36, %s3627_s24  ;;  %s3630_s23 = smov 117   ;;  %s3631_s24 = smov 116  }
  0x34   :  { %3270 = vrot.lane.b32.xlu1 %v3685_v5, %s3629_s0  ;;  %3265 = vrot.lane.b32.xlu0 %v3675_v3, %s3629_s0 }
  0x38   :  { %3280 = vrot.lane.b32.xlu1 %v3685_v5, %s3630_s23  ;;  %3275 = vrot.lane.b32.xlu0 %v3675_v3, %s3630_s23 }
  0x3c   :  { %3290 = vrot.lane.b32.xlu1 %v3703_v8, %s3630_s23  ;;  %3285 = vrot.lane.b32.xlu0 %v3703_v8, %s3629_s0 }
  0x40   :  { %3300 = vrot.lane.b32.xlu1 %v3726_v13, %s3629_s0  ;;  %3295 = vrot.lane.b32.xlu0 %v3729_v14, %s3629_s0 }
  0x44   :  { %3310 = vrot.lane.b32.xlu1 %v3726_v13, %s3630_s23  ;;  %3305 = vrot.lane.b32.xlu0 %v3729_v14, %s3630_s23 }
  0x48   :  { %3320 = vrot.lane.b32.xlu1 %v3751_v17, %s3630_s23  ;;  %3315 = vrot.lane.b32.xlu0 %v3751_v17, %s3629_s0 }
  0x4c   :  { %3330 = vrot.lane.b32.xlu1 %v3774_v22, %s3629_s0  ;;  %3325 = vrot.lane.b32.xlu0 %v3777_v23, %s3629_s0 }
  0x50   :  { %3340 = vrot.lane.b32.xlu1 %v3774_v22, %s3630_s23  ;;  %3335 = vrot.lane.b32.xlu0 %v3777_v23, %s3630_s23 }
  0x54   :  { %3350 = vrot.lane.b32.xlu1 %v3799_v26, %s3630_s23  ;;  %3345 = vrot.lane.b32.xlu0 %v3799_v26, %s3629_s0 }
  0x58   :  { %3360 = vrot.lane.b32.xlu1 %v3822_v31, %s3629_s0  ;;  %3355 = vrot.lane.b32.xlu0 %v3825_v32, %s3629_s0 }
  0x5c   :  { %3370 = vrot.lane.b32.xlu1 %v3822_v31, %s3630_s23  ;;  %3365 = vrot.lane.b32.xlu0 %v3825_v32, %s3630_s23 }
  0x60   :  { %3380 = vrot.lane.b32.xlu1 %v3849_v36, %s3630_s23  ;;  %3375 = vrot.lane.b32.xlu0 %v3849_v36, %s3629_s0 }
  0x64   :  { %3390 = vrot.lane.b32.xlu1 %v3685_v5, %s3631_s24  ;;  %3385 = vrot.lane.b32.xlu0 %v3675_v3, %s3631_s24 }
  0x68   :  { %3400 = vrot.lane.b32.xlu1 %v3729_v14, %s3631_s24  ;;  %3395 = vrot.lane.b32.xlu0 %v3703_v8, %s3631_s24 }
  0x6c   :  { %3410 = vrot.lane.b32.xlu1 %v3751_v17, %s3631_s24  ;;  %3405 = vrot.lane.b32.xlu0 %v3726_v13, %s3631_s24 }
  0x70   :  { %3420 = vrot.lane.b32.xlu1 %v3774_v22, %s3631_s24  ;;  %3415 = vrot.lane.b32.xlu0 %v3777_v23, %s3631_s24 }
  0x74   :  { %3430 = vrot.lane.b32.xlu1 %v3825_v32, %s3631_s24  ;;  %3425 = vrot.lane.b32.xlu0 %v3799_v26, %s3631_s24 }
  0x76   :  { %v3156_v45 = vpop.permute.xlu1 %3155  ;;  %v3146_v46 = vpop.permute.xlu0 %3145 }
  0x77   :  { %v3158_v47 = vunpack.i.h.bf16 %v3156_v45  ;;  %v3157_v48 = vunpack.i.l.bf16 %v3156_v45  ;;  %v3148_v49 = vunpack.i.h.bf16 %v3146_v46  ;;  %v3147_v50 = vunpack.i.l.bf16 %v3146_v46 }
  0x78   :  { %3440 = vrot.lane.b32.xlu1 %v3849_v36, %s3631_s24  ;;  %3435 = vrot.lane.b32.xlu0 %v3822_v31, %s3631_s24 }
  0x79   :  { %v147_v57 = vsel %vm145_vm0, %v3147_v50, %v3148_v49  ;;  %v915_v59 = vsel %vm913_vm1, %v3157_v48, %v3158_v47 }
  0x7a   :  { %v3161_v51 = vpop.permute.xlu1 %3160  ;;  %v3151_v52 = vpop.permute.xlu0 %3150 }
  0x7b   :  { %v3163_v53 = vunpack.i.h.bf16 %v3161_v51  ;;  %v3162_v54 = vunpack.i.l.bf16 %v3161_v51  ;;  %v3153_v55 = vunpack.i.h.bf16 %v3151_v52  ;;  %v3152_v56 = vunpack.i.l.bf16 %v3151_v52 }
  0x7c   :  { %3450 = vrot.lane.b32.xlu1 %v3685_v5, %s3632_s15  ;;  %3445 = vrot.lane.b32.xlu0 %v3675_v3, %s3632_s15 }
  0x7d   :  { %v149_v58 = vsel %vm145_vm0, %v3152_v56, %v3153_v55  ;;  %v917_v60 = vsel %vm913_vm1, %v3162_v54, %v3163_v53 }
  0x7e   :  { %v3171_v61 = vpop.permute.xlu1 %3170  ;;  %v3166_v62 = vpop.permute.xlu0 %3165  ;;  %v3915_v63 = vpack.c.bf16 %v149_v58, %v147_v57  ;;  %v2846_v1 = vpack.c.bf16 %v917_v60, %v915_v59 }
  0x7f   :  { %v3173_v4 = vunpack.i.h.bf16 %v3171_v61  ;;  %v3172_v10 = vunpack.i.l.bf16 %v3171_v61  ;;  %v3168_v12 = vunpack.i.h.bf16 %v3166_v62  ;;  %v3167_v19 = vunpack.i.l.bf16 %v3166_v62 }
  0x80   :  { %2783 = vmatprep.subr.bf16.mxu0 %v3915_v63  ;;  %2847 = vmatprep.subr.bf16.mxu1 %v2846_v1 }
  0x81   :  { %3460 = vrot.lane.b32.xlu1 %v3685_v5, %s3633_s16  ;;  %3455 = vrot.lane.b32.xlu0 %v3675_v3, %s3633_s16  ;;  %v914_v21 = vsel %vm913_vm1, %v3172_v10, %v3157_v48  ;;  %v916_v28 = vsel %vm913_vm1, %v3173_v4, %v3162_v54  ;;  %v146_v30 = vsel %vm145_vm0, %v3167_v19, %v3147_v50 }
  0x82   :  { %v3181_v45 = vpop.permute.xlu1 %3180  ;;  %v3176_v46 = vpop.permute.xlu0 %3175  ;;  %v2848_v47 = vpack.c.bf16 %v916_v28, %v914_v21  ;;  %v148_v49 = vsel %vm145_vm0, %v3168_v12, %v3152_v56 }
  0x83   :  { %v3183_v51 = vunpack.i.h.bf16 %v3181_v45  ;;  %v3182_v52 = vunpack.i.l.bf16 %v3181_v45  ;;  %v3178_v53 = vunpack.i.h.bf16 %v3176_v46  ;;  %v3177_v55 = vunpack.i.l.bf16 %v3176_v46 }
  0x84   :  { %2849 = vmatpush1.bf16.msra.mxu1 %v2848_v47  ;;  %v3926_v57 = vpack.c.bf16 %v148_v49, %v146_v30 }
  0x85   :  { %3470 = vrot.lane.b32.xlu1 %v3703_v8, %s3633_s16  ;;  %3465 = vrot.lane.b32.xlu0 %v3703_v8, %s3632_s15  ;;  %v151_v48 = vsel %vm145_vm0, %v3177_v55, %v3178_v53  ;;  %v153_v50 = vsel %vm145_vm0, %v3182_v52, %v3183_v51 }
  0x86   :  { %2785 = vmatpush1.bf16.msra.mxu0 %v3926_v57  ;;  %v3191_v54 = vpop.permute.xlu1 %3190  ;;  %v3186_v56 = vpop.permute.xlu0 %3185  ;;  %v3935_v58 = vpack.c.bf16 %v153_v50, %v151_v48 }
  0x87   :  { %v3193_v59 = vunpack.i.h.bf16 %v3191_v54  ;;  %v3192_v60 = vunpack.i.l.bf16 %v3191_v54  ;;  %v3188_v61 = vunpack.i.h.bf16 %v3186_v56  ;;  %v3187_v62 = vunpack.i.l.bf16 %v3186_v56 }
  0x88   :  { %2787 = vmatprep.subr.bf16.mxu0 %v3935_v58 }
  0x89   :  { %3480 = vrot.lane.b32.xlu1 %v3726_v13, %s3632_s15  ;;  %3475 = vrot.lane.b32.xlu0 %v3729_v14, %s3632_s15  ;;  %v919_v1 = vsel %vm913_vm1, %v3187_v62, %v3188_v61  ;;  %v921_v4 = vsel %vm913_vm1, %v3192_v60, %v3193_v59 }
  0x8a   :  { %v3201_v10 = vpop.permute.xlu1 %3200  ;;  %v3196_v12 = vpop.permute.xlu0 %3195  ;;  %v2850_v19 = vpack.c.bf16 %v921_v4, %v919_v1 }
  0x8b   :  { %v3203_v21 = vunpack.i.h.bf16 %v3201_v10  ;;  %v3202_v28 = vunpack.i.l.bf16 %v3201_v10  ;;  %v3198_v30 = vunpack.i.h.bf16 %v3196_v12  ;;  %v3197_v45 = vunpack.i.l.bf16 %v3196_v12 }
  0x8c   :  { %2851 = vmatprep.subr.bf16.mxu1 %v2850_v19 }
  0x8d   :  { %3490 = vrot.lane.b32.xlu1 %v3726_v13, %s3633_s16  ;;  %3485 = vrot.lane.b32.xlu0 %v3729_v14, %s3633_s16  ;;  %v150_v46 = vsel %vm145_vm0, %v3197_v45, %v3177_v55  ;;  %v152_v47 = vsel %vm145_vm0, %v3198_v30, %v3182_v52  ;;  %v918_v49 = vsel %vm913_vm1, %v3202_v28, %v3187_v62 }
  0x8e   :  { %v3211_v51 = vpop.permute.xlu1 %3210  ;;  %v3206_v53 = vpop.permute.xlu0 %3205  ;;  %v3951_v48 = vpack.c.bf16 %v152_v47, %v150_v46  ;;  %v920_v50 = vsel %vm913_vm1, %v3203_v21, %v3192_v60 }
  0x8f   :  { %v3213_v54 = vunpack.i.h.bf16 %v3211_v51  ;;  %v3212_v56 = vunpack.i.l.bf16 %v3211_v51  ;;  %v3208_v59 = vunpack.i.h.bf16 %v3206_v53  ;;  %v3207_v61 = vunpack.i.l.bf16 %v3206_v53 }
  0x90   :  { %2789 = vmatpush1.bf16.msra.mxu0 %v3951_v48  ;;  %v2852_v1 = vpack.c.bf16 %v920_v50, %v918_v49 }
  0x91   :  { %3500 = vrot.lane.b32.xlu1 %v3751_v17, %s3633_s16  ;;  %3495 = vrot.lane.b32.xlu0 %v3751_v17, %s3632_s15  ;;  %v155_v52 = vsel %vm145_vm0, %v3207_v61, %v3208_v59  ;;  %v157_v55 = vsel %vm145_vm0, %v3212_v56, %v3213_v54 }
  0x92   :  { %2853 = vmatpush1.bf16.msra.mxu1 %v2852_v1  ;;  %v3221_v62 = vpop.permute.xlu1 %3220  ;;  %v3216_v60 = vpop.permute.xlu0 %3215  ;;  %v3961_v4 = vpack.c.bf16 %v157_v55, %v155_v52 }
  0x93   :  { %v3223_v10 = vunpack.i.h.bf16 %v3221_v62  ;;  %v3222_v12 = vunpack.i.l.bf16 %v3221_v62  ;;  %v3218_v19 = vunpack.i.h.bf16 %v3216_v60  ;;  %v3217_v21 = vunpack.i.l.bf16 %v3216_v60 }
  0x94   :  { %2791 = vmatprep.subr.bf16.mxu0 %v3961_v4 }
  0x95   :  { %3510 = vrot.lane.b32.xlu1 %v3774_v22, %s3632_s15  ;;  %3505 = vrot.lane.b32.xlu0 %v3777_v23, %s3632_s15  ;;  %v923_v28 = vsel %vm913_vm1, %v3217_v21, %v3218_v19  ;;  %v925_v30 = vsel %vm913_vm1, %v3222_v12, %v3223_v10 }
  0x96   :  { %v3231_v45 = vpop.permute.xlu1 %3230  ;;  %v3226_v46 = vpop.permute.xlu0 %3225  ;;  %v2854_v47 = vpack.c.bf16 %v925_v30, %v923_v28 }
  0x97   :  { %v3233_v49 = vunpack.i.h.bf16 %v3231_v45  ;;  %v3232_v51 = vunpack.i.l.bf16 %v3231_v45  ;;  %v3228_v53 = vunpack.i.h.bf16 %v3226_v46  ;;  %v3227_v50 = vunpack.i.l.bf16 %v3226_v46 }
  0x98   :  { %2855 = vmatprep.subr.bf16.mxu1 %v2854_v47 }
  0x99   :  { %3520 = vrot.lane.b32.xlu1 %v3774_v22, %s3633_s16  ;;  %3515 = vrot.lane.b32.xlu0 %v3777_v23, %s3633_s16  ;;  %v154_v54 = vsel %vm145_vm0, %v3227_v50, %v3207_v61  ;;  %v156_v59 = vsel %vm145_vm0, %v3228_v53, %v3212_v56  ;;  %v922_v1 = vsel %vm913_vm1, %v3232_v51, %v3217_v21 }
  0x9a   :  { %v3241_v52 = vpop.permute.xlu1 %3240  ;;  %v3236_v55 = vpop.permute.xlu0 %3235  ;;  %v3977_v62 = vpack.c.bf16 %v156_v59, %v154_v54  ;;  %v924_v60 = vsel %vm913_vm1, %v3233_v49, %v3222_v12 }
  0x9b   :  { %v3243_v10 = vunpack.i.h.bf16 %v3241_v52  ;;  %v3242_v19 = vunpack.i.l.bf16 %v3241_v52  ;;  %v3238_v28 = vunpack.i.h.bf16 %v3236_v55  ;;  %v3237_v30 = vunpack.i.l.bf16 %v3236_v55 }
  0x9c   :  { %2793 = vmatpush1.bf16.msra.mxu0 %v3977_v62  ;;  %v2856_v45 = vpack.c.bf16 %v924_v60, %v922_v1 }
  0x9d   :  { %3530 = vrot.lane.b32.xlu1 %v3799_v26, %s3633_s16  ;;  %3525 = vrot.lane.b32.xlu0 %v3799_v26, %s3632_s15  ;;  %v159_v56 = vsel %vm145_vm0, %v3237_v30, %v3238_v28  ;;  %v161_v61 = vsel %vm145_vm0, %v3242_v19, %v3243_v10 }
  0x9e   :  { %2857 = vmatpush1.bf16.msra.mxu1 %v2856_v45  ;;  %v3251_v21 = vpop.permute.xlu1 %3250  ;;  %v3246_v12 = vpop.permute.xlu0 %3245  ;;  %v3987_v46 = vpack.c.bf16 %v161_v61, %v159_v56 }
  0x9f   :  { %v3253_v47 = vunpack.i.h.bf16 %v3251_v21  ;;  %v3252_v49 = vunpack.i.l.bf16 %v3251_v21  ;;  %v3248_v51 = vunpack.i.h.bf16 %v3246_v12  ;;  %v3247_v53 = vunpack.i.l.bf16 %v3246_v12 }
  0xa0   :  { %2795 = vmatprep.subr.bf16.mxu0 %v3987_v46 }
  0xa1   :  { %3540 = vrot.lane.b32.xlu1 %v3822_v31, %s3632_s15  ;;  %3535 = vrot.lane.b32.xlu0 %v3825_v32, %s3632_s15  ;;  %v927_v50 = vsel %vm913_vm1, %v3247_v53, %v3248_v51  ;;  %v929_v54 = vsel %vm913_vm1, %v3252_v49, %v3253_v47 }
  0xa2   :  { %v3261_v59 = vpop.permute.xlu1 %3260  ;;  %v3256_v1 = vpop.permute.xlu0 %3255  ;;  %v2858_v52 = vpack.c.bf16 %v929_v54, %v927_v50  ;;  %v69_v54 = vld [vmem:[%s4922_s1 + $0x20] sm:$0xff] }
  0xa3   :  { %v3263_v55 = vunpack.i.h.bf16 %v3261_v59  ;;  %v3262_v60 = vunpack.i.l.bf16 %v3261_v59  ;;  %v3258_v10 = vunpack.i.h.bf16 %v3256_v1  ;;  %v3257_v28 = vunpack.i.l.bf16 %v3256_v1 }
  0xa4   :  { %2859 = vmatprep.subr.bf16.mxu1 %v2858_v52 }
  0xa5   :  { %3550 = vrot.lane.b32.xlu1 %v3822_v31, %s3633_s16  ;;  %3545 = vrot.lane.b32.xlu0 %v3825_v32, %s3633_s16  ;;  %v158_v45 = vsel %vm145_vm0, %v3257_v28, %v3237_v30  ;;  %v160_v56 = vsel %vm145_vm0, %v3258_v10, %v3242_v19  ;;  %v926_v61 = vsel %vm913_vm1, %v3262_v60, %v3247_v53 }
  0xa6   :  { %v4003_v21 = vpop.permute.xlu1 %3270  ;;  %v4005_v12 = vpop.permute.xlu0 %3265  ;;  %v4007_v47 = vpack.c.bf16 %v160_v56, %v158_v45  ;;  %v928_v51 = vsel %vm913_vm1, %v3263_v55, %v3252_v49  ;;  %v861_v49 = vld [vmem:[%s4922_s1 + $0xa0] sm:$0xff] }
  0xa7   :  { %v2860_v50 = vpack.c.bf16 %v928_v51, %v926_v61  ;;  %v3273_v6 = vunpack.i.h.bf16 %v4003_v21  ;;  %v3267_v7 = vunpack.i.l.bf16 %v4005_v12  ;;  %v72_v61 = vld [vmem:[%s4922_s1 + $0x38] sm:$0xff] }
  0xa8   :  { %2797 = vmatpush1.bf16.msra.mxu0 %v4007_v47 }
  0xa9   :  { %3560 = vrot.lane.b32.xlu1 %v3849_v36, %s3633_s16  ;;  %3555 = vrot.lane.b32.xlu0 %v3849_v36, %s3632_s15 }
  0xaa   :  { %2861 = vmatpush1.bf16.msra.mxu1 %v2860_v50  ;;  %v4018_v19 = vpop.permute.xlu1 %3280  ;;  %v4020_v30 = vpop.permute.xlu0 %3275  ;;  %2799 = vmatprep.subr.bf16.mxu0 %v2798_v35 }
  0xab   :  { %2863 = vmatprep.subr.bf16.mxu1 %v3915_v63  ;;  %2718 = vmatmul.mubr.msk.f32.vlgmr.msra.gmra.mrb[0].mxu0 %vm178_vm2, %v69_v54  ;;  %v3283_v11 = vunpack.i.h.bf16 %v4018_v19  ;;  %v3277_v63 = vunpack.i.l.bf16 %v4020_v30 }
  0xac   :  { %2801 = vmatpush1.bf16.msra.mxu0 %v2800_v37  ;;  %261 = vmatprep.mubr.f32.mxu0 %v3628_v38  ;;  %v3282_v37 = vunpack.i.l.bf16 %v4018_v19 }
  0xad   :  { %3570 = vrot.lane.b32.xlu1 %v3685_v5, %s3634_s21  ;;  %3565 = vrot.lane.b32.xlu0 %v3675_v3, %s3634_s21  ;;  %v3272_v5 = vunpack.i.l.bf16 %v4003_v21  ;;  %v3268_v3 = vunpack.i.h.bf16 %v4005_v12 }
  0xae   :  { %2734 = vmatmul.mubr.msk.f32.vlgmr.msra.gmra.mrb[0].mxu1 %vm178_vm2, %v861_v49  ;;  %v4042_v2 = vpop.permute.xlu1 %3290  ;;  %v4044_v35 = vpop.permute.xlu0 %3285  ;;  %2803 = vmatprep.subr.bf16.mxu0 %v2802_v39  ;;  %v3278_v39 = vunpack.i.h.bf16 %v4020_v30 }
  0xaf   :  { %2865 = vmatpush1.bf16.msra.mxu1 %v3926_v57  ;;  %1028 = vmatprep.mubr.f32.mxu1 %v3628_v38  ;;  %v3293_v60 = vunpack.i.h.bf16 %v4042_v2 }
  0xb0   :  { %2867 = vmatprep.subr.bf16.mxu1 %v3935_v58  ;;  %2719 = vmatmul.mubr.msk.f32.gmra.mrb[2].mxu0 %vm178_vm2, %v70_v0  ;;  %v629_v53 = vsel %vm627_vm4, %v3277_v63, %v3278_v39 }
  0xb1   :  { %3580 = vrot.lane.b32.xlu1 %v3729_v14, %s3634_s21  ;;  %3575 = vrot.lane.b32.xlu0 %v3703_v8, %s3634_s21  ;;  %v435_v14 = vsel %vm433_vm3, %v3267_v7, %v3268_v3  ;;  %v437_v8 = vsel %vm433_vm3, %v3272_v5, %v3273_v6  ;;  %v630_v49 = vsel %vm627_vm4, %v3293_v60, %v3282_v37  ;;  %v67_v60 = vld [vmem:[%s4922_s1 + $0x10] sm:$0xff] }
  0xb2   :  { %2805 = vmatpush1.bf16.msra.mxu0 %v2804_v40  ;;  %v4071_v57 = vpop.permute.xlu1 %3300  ;;  %v4073_v58 = vpop.permute.xlu0 %3295  ;;  %2735 = vmatmul.mubr.msk.f32.gmra.mrb[2].mxu1 %vm178_vm2, %v862_v9  ;;  %v631_v40 = vsel %vm627_vm4, %v3282_v37, %v3283_v11 }
  0xb3   :  { %267 = vmatprep.mubr.f32.mxu0 %v3628_v38  ;;  %2869 = vmatpush1.bf16.msra.mxu1 %v3951_v48  ;;  %v3292_v48 = vunpack.i.l.bf16 %v4042_v2  ;;  %v4106_v55 = vpack.c.bf16 %v631_v40, %v629_v53  ;;  %v3303_v10 = vunpack.i.h.bf16 %v4071_v57  ;;  %v3302_v28 = vunpack.i.l.bf16 %v4071_v57  ;;  %v66_v40 = vld [vmem:[%s4922_s1 + $0x8] sm:$0xff] }
  0xb4   :  { %2807 = vmatprep.subr.bf16.mxu0 %v2806_v41  ;;  %2871 = vmatprep.subr.bf16.mxu1 %v3961_v4  ;;  %v4102_v41 = vpack.c.bf16 %v437_v8, %v435_v14  ;;  %v3298_v45 = vunpack.i.h.bf16 %v4073_v58  ;;  %v3297_v56 = vunpack.i.l.bf16 %v4073_v58 }
  0xb5   :  { %1034 = vmatprep.mubr.f32.mxu1 %v3628_v38  ;;  %3590 = vrot.lane.b32.xlu1 %v3751_v17, %s3634_s21  ;;  %v3288_v17 = vunpack.i.h.bf16 %v4044_v35  ;;  %v628_v25 = vsel %vm627_vm4, %v3292_v48, %v3277_v63 }
  0xb6   :  { %3585 = vrot.lane.b32.xlu0 %v3726_v13, %s3634_s21  ;;  %v3311_v18 = vpop.permute.xlu1 %3310  ;;  %v3306_v20 = vpop.permute.xlu0 %3305  ;;  %2720 = vmatmul.mubr.msk.f32.gmra.mrb[4].mxu0 %vm178_vm2, %v71_v15  ;;  %v3287_v13 = vunpack.i.l.bf16 %v4044_v35  ;;  %v4169_v3 = vpack.c.bf16 %v630_v49, %v628_v25 }
  0xb7   :  { %2736 = vmatmul.mubr.msk.f32.gmra.mrb[4].mxu1 %vm178_vm2, %v863_v16  ;;  %v3313_v59 = vunpack.i.h.bf16 %v3311_v18  ;;  %v3312_v4 = vunpack.i.l.bf16 %v3311_v18  ;;  %v3308_v1 = vunpack.i.h.bf16 %v3306_v20  ;;  %v3307_v52 = vunpack.i.l.bf16 %v3306_v20  ;;  %2809 = vmatpush1.bf16.msra.mxu0 %v2808_v42  ;;  %v858_v20 = vld [vmem:[%s4922_s1 + $0x88] sm:$0xff] }
  0xb8   :  { %2873 = vmatpush1.bf16.msra.mxu1 %v3977_v62  ;;  %273 = vmatprep.mubr.f32.mxu0 %v3628_v38  ;;  %v436_v27 = vsel %vm433_vm3, %v3288_v17, %v3272_v5  ;;  %v434_v29 = vsel %vm433_vm3, %v3287_v13, %v3267_v7  ;;  %v18_v17 = vld [vmem:[%s4923_s2 + $0x8] sm:$0xff] }
  0xb9   :  { %2875 = vmatprep.subr.bf16.mxu1 %v3987_v46  ;;  %v635_v42 = vsel %vm627_vm4, %v3312_v4, %v3313_v59  ;;  %v633_v62 = vsel %vm627_vm4, %v3307_v52, %v3308_v1  ;;  %2811 = vmatprep.subr.bf16.mxu0 %v2810_v43  ;;  %v441_v43 = vsel %vm433_vm3, %v3302_v28, %v3303_v10 }
  0xba   :  { %1040 = vmatprep.mubr.f32.mxu1 %v3628_v38  ;;  %v3321_v46 = vpop.permute.xlu1 %3320  ;;  %v3316_v51 = vpop.permute.xlu0 %3315  ;;  %3600 = vrot.lane.b32.xlu1 %v3774_v22, %s3634_s21  ;;  %v4147_v22 = vpack.c.bf16 %v635_v42, %v633_v62  ;;  %v4171_v7 = vpack.c.bf16 %v436_v27, %v434_v29  ;;  %v859_v42 = vld [vmem:[%s4922_s1 + $0x90] sm:$0xff]  ;;  %v3635_v62 = vmov 0  }
  0xbb   :  { %3595 = vrot.lane.b32.xlu0 %v3777_v23, %s3634_s21  ;;  %v3323_v50 = vunpack.i.h.bf16 %v3321_v46  ;;  %v3322_v54 = vunpack.i.l.bf16 %v3321_v46  ;;  %v3318_v19 = vunpack.i.h.bf16 %v3316_v51  ;;  %v3317_v30 = vunpack.i.l.bf16 %v3316_v51  ;;  %2721 = vmatmul.mubr.msk.f32.gmra.mrb[6].mxu0 %vm178_vm2, %v72_v61 }
  0xbc   :  { %2737 = vmatmul.mubr.msk.f32.gmra.mrb[6].mxu1 %vm178_vm2, %v864_v24  ;;  %2813 = vmatpush1.bf16.msra.mxu0 %v2812_v44  ;;  %v439_v23 = vsel %vm433_vm3, %v3297_v56, %v3298_v45 }
  0xbd   :  { %2877 = vmatpush1.bf16.msra.mxu1 %v4007_v47  ;;  %2815 = vmatprep.subr.bf16.mxu0 %v4102_v41  ;;  %v632_v21 = vsel %vm627_vm4, %v3322_v54, %v3307_v52  ;;  %v634_v12 = vsel %vm627_vm4, %v3323_v50, %v3312_v4  ;;  %v440_v0 = vsel %vm433_vm3, %v3318_v19, %v3302_v28  ;;  %v68_v19 = vld [vmem:[%s4922_s1 + $0x18] sm:$0xff] }
  0xbe   :  { %2879 = vmatprep.subr.bf16.mxu1 %v4106_v55  ;;  %v3331_v44 = vpop.permute.xlu1 %3330  ;;  %v3326_v47 = vpop.permute.xlu0 %3325  ;;  %v438_v2 = vsel %vm433_vm3, %v3317_v30, %v3297_v56  ;;  %356 = vmatprep.mubr.f32.mxu0 %v3628_v38  ;;  %v4179_v11 = vpack.c.bf16 %v441_v43, %v439_v23  ;;  %v4182_v39 = vpack.c.bf16 %v634_v12, %v632_v21  ;;  %v19_v30 = vld [vmem:[%s4923_s2 + $0x10] sm:$0xff]  ;;  %v860_v21 = vld [vmem:[%s4922_s1 + $0x98] sm:$0xff]  ;;  %v17_v12 = vld [vmem:[%s4923_s2] sm:$0xff] }
  0xbf   :  { %1123 = vmatprep.mubr.f32.mxu1 %v3628_v38  ;;  %v3333_v35 = vunpack.i.h.bf16 %v3331_v44  ;;  %v3332_v6 = vunpack.i.l.bf16 %v3331_v44  ;;  %v3328_v5 = vunpack.i.h.bf16 %v3326_v47  ;;  %3610 = vrot.lane.b32.xlu1 %v3825_v32, %s3634_s21  ;;  %v3327_v9 = vunpack.i.l.bf16 %v3326_v47  ;;  %v21_v47 = vld [vmem:[%s4924_s3] sm:$0xff] }
  0xc0   :  { %3605 = vrot.lane.b32.xlu0 %v3799_v26, %s3634_s21  ;;  %2722 = vmatmul.mubr.msk.f32.vlgmr.msra.gmra.mrb[0].mxu0 %vm178_vm2, %v65_v33  ;;  %v4184_v63 = vpack.c.bf16 %v440_v0, %v438_v2 }
  0xc1   :  { %2738 = vmatmul.mubr.msk.f32.vlgmr.msra.gmra.mrb[0].mxu1 %vm178_vm2, %v857_v34  ;;  %v445_v37 = vsel %vm433_vm3, %v3332_v6, %v3333_v35  ;;  %2817 = vmatpush1.bf16.msra.mxu0 %v4171_v7  ;;  %v443_v26 = vsel %vm433_vm3, %v3327_v9, %v3328_v5 }
  0xc2   :  { %2881 = vmatpush1.bf16.msra.mxu1 %v4169_v3  ;;  %v3341_v32 = vpop.permute.xlu1 %3340  ;;  %v3336_v57 = vpop.permute.xlu0 %3335  ;;  %2819 = vmatprep.subr.bf16.mxu0 %v4179_v11  ;;  %v4195_v16 = vpack.c.bf16 %v445_v37, %v443_v26  ;;  %v20_v37 = vld [vmem:[%s4923_s2 + $0x18] sm:$0xff] }
  0xc3   :  { %2883 = vmatprep.subr.bf16.mxu1 %v4147_v22  ;;  %v3343_v58 = vunpack.i.h.bf16 %v3341_v32  ;;  %v3342_v14 = vunpack.i.l.bf16 %v3341_v32  ;;  %v3338_v8 = vunpack.i.h.bf16 %v3336_v57  ;;  %v3337_v15 = vunpack.i.l.bf16 %v3336_v57  ;;  %3620 = vrot.lane.b32.xlu1 %v3849_v36, %s3634_s21 }
  0xc4   :  { %3615 = vrot.lane.b32.xlu0 %v3822_v31, %s3634_s21  ;;  %362 = vmatprep.mubr.f32.mxu0 %v3628_v38 }
  0xc5   :  { %v639_v53 = vsel %vm627_vm4, %v3342_v14, %v3343_v58  ;;  %v637_v48 = vsel %vm627_vm4, %v3337_v15, %v3338_v8  ;;  %1129 = vmatprep.mubr.f32.mxu1 %v3628_v38  ;;  %2821 = vmatpush1.bf16.msra.mxu0 %v4184_v63 }
  0xc6   :  { %2885 = vmatpush1.bf16.msra.mxu1 %v4182_v39  ;;  %v4206_v36 = vpack.c.bf16 %v639_v53, %v637_v48  ;;  %v3351_v31 = vpop.permute.xlu1 %3350  ;;  %v3346_v18 = vpop.permute.xlu0 %3345  ;;  %2823 = vmatprep.subr.bf16.mxu0 %v4195_v16 }
  0xc7   :  { %v3353_v59 = vunpack.i.h.bf16 %v3351_v31  ;;  %v3352_v4 = vunpack.i.l.bf16 %v3351_v31  ;;  %v3348_v1 = vunpack.i.h.bf16 %v3346_v18  ;;  %v3347_v52 = vunpack.i.l.bf16 %v3346_v18  ;;  %2723 = vmatmul.mubr.msk.f32.gmra.mrb[2].mxu0 %vm178_vm2, %v66_v40  ;;  %2739 = vmatmul.mubr.msk.f32.gmra.mrb[2].mxu1 %vm178_vm2, %v858_v20 }
  0xc8   :  { %2887 = vmatprep.subr.bf16.mxu1 %v4206_v36  ;;  %368 = vmatprep.mubr.f32.mxu0 %v3628_v38 }
  0xc9   :  { %v636_v13 = vsel %vm627_vm4, %v3352_v4, %v3337_v15  ;;  %v638_v10 = vsel %vm627_vm4, %v3353_v59, %v3342_v14  ;;  %v444_v28 = vsel %vm433_vm3, %v3348_v1, %v3332_v6  ;;  %v442_v45 = vsel %vm433_vm3, %v3347_v52, %v3327_v9  ;;  %1135 = vmatprep.mubr.f32.mxu1 %v3628_v38  ;;  %v23_v14 = vld [vmem:[%s4924_s3 + $0x10] sm:$0xff]  ;;  %v22_v59 = vld [vmem:[%s4924_s3 + $0x8] sm:$0xff] }
  0xca   :  { %v4226_v56 = vpack.c.bf16 %v638_v10, %v636_v13  ;;  %v4228_v61 = vpack.c.bf16 %v444_v28, %v442_v45  ;;  %v3361_v24 = vpop.permute.xlu1 %3360  ;;  %v3356_v25 = vpop.permute.xlu0 %3355  ;;  %3625 = vset.pattern.permute.xlu1 %v3635_v62  ;;  %3624 = vset.pattern.permute.xlu0 %v3635_v62  ;;  %v1148_v13 = vld [vmem:[%s4922_s1 + $0xc0] sm:$0xff] }
  0xcb   :  { %v3363_v46 = vunpack.i.h.bf16 %v3361_v24  ;;  %v3362_v51 = vunpack.i.l.bf16 %v3361_v24  ;;  %v3358_v50 = vunpack.i.h.bf16 %v3356_v25  ;;  %v3357_v54 = vunpack.i.l.bf16 %v3356_v25  ;;  %2724 = vmatmul.mubr.msk.f32.gmra.mrb[4].mxu0 %vm178_vm2, %v67_v60  ;;  %776 = vperm.xlu1 %3625, %v18_v17   ;;  %v381_v17 = vld [vmem:[%s4922_s1 + $0x40] sm:$0xff] }
  0xcc   :  { %2825 = vmatpush1.bf16.msra.mxu0 %v4228_v61  ;;  %2889 = vmatpush1.bf16.msra.mxu1 %v4226_v56 }
  0xcd   :  { %v447_v49 = vsel %vm433_vm3, %v3357_v54, %v3358_v50  ;;  %v449_v27 = vsel %vm433_vm3, %v3362_v51, %v3363_v46  ;;  %374 = vmatprep.mubr.f32.mxu0 %v3628_v38  ;;  %2740 = vmatmul.mubr.msk.f32.gmra.mrb[4].mxu1 %vm178_vm2, %v859_v42  ;;  %v24_v46 = vld [vmem:[%s4924_s3 + $0x18] sm:$0xff] }
  0xce   :  { %v3371_v29 = vpop.permute.xlu1 %3370  ;;  %v3366_v23 = vpop.permute.xlu0 %3365  ;;  %v4247_v43 = vpack.c.bf16 %v449_v27, %v447_v49  ;;  %1141 = vmatprep.mubr.f32.mxu1 %v3628_v38  ;;  %771 = vperm.xlu0 %3624, %v17_v12  }
  0xcf   :  { %v3373_v0 = vunpack.i.h.bf16 %v3371_v29  ;;  %v3372_v33 = vunpack.i.l.bf16 %v3371_v29  ;;  %v3368_v34 = vunpack.i.h.bf16 %v3366_v23  ;;  %v3367_v44 = vunpack.i.l.bf16 %v3366_v23  ;;  %2725 = vmatmul.mubr.msk.f32.gmra.mrb[6].mxu0 %vm178_vm2, %v68_v19  ;;  %781 = vperm.xlu1 %3625, %v19_v30   ;;  %v1149_v19 = vld [vmem:[%s4922_s1 + $0xc8] sm:$0xff] }
  0xd0   :  { %2827 = vmatprep.subr.bf16.mxu0 %v4247_v43  ;;  %542 = vmatprep.mubr.f32.mxu0 %v3628_v38 }
  0xd1   :  { %v643_v2 = vsel %vm627_vm4, %v3372_v33, %v3373_v0  ;;  %v641_v35 = vsel %vm627_vm4, %v3367_v44, %v3368_v34  ;;  %2741 = vmatmul.mubr.msk.f32.gmra.mrb[6].mxu1 %vm178_vm2, %v860_v21  ;;  %v383_v34 = vld [vmem:[%s4922_s1 + $0x50] sm:$0xff] }
  0xd2   :  { %v4265_v6 = vpack.c.bf16 %v643_v2, %v641_v35  ;;  %v3381_v5 = vpop.permute.xlu1 %3380  ;;  %v3376_v9 = vpop.permute.xlu0 %3375  ;;  %1228 = vmatprep.mubr.f32.mxu1 %v3628_v38  ;;  %786 = vperm.xlu0 %3624, %v20_v37  }
  0xd3   :  { %v3383_v32 = vunpack.i.h.bf16 %v3381_v5  ;;  %v3382_v57 = vunpack.i.l.bf16 %v3381_v5  ;;  %v3378_v26 = vunpack.i.h.bf16 %v3376_v9  ;;  %v3377_v58 = vunpack.i.l.bf16 %v3376_v9  ;;  %799 = vperm.xlu1 %3625, %v21_v47   ;;  %v1150_v47 = vld [vmem:[%s4922_s1 + $0xd0] sm:$0xff] }
  0xd4   :  { %2891 = vmatprep.subr.bf16.mxu1 %v4265_v6 }
  0xd5   :  { %v640_v8 = vsel %vm627_vm4, %v3382_v57, %v3367_v44  ;;  %v642_v15 = vsel %vm627_vm4, %v3383_v32, %v3372_v33  ;;  %v448_v40 = vsel %vm433_vm3, %v3378_v26, %v3362_v51  ;;  %v446_v53 = vsel %vm433_vm3, %v3377_v58, %v3357_v54  ;;  %v382_v54 = vld [vmem:[%s4922_s1 + $0x48] sm:$0xff] }
  0xd6   :  { %v4279_v48 = vpack.c.bf16 %v642_v15, %v640_v8  ;;  %v4281_v31 = vpack.c.bf16 %v448_v40, %v446_v53  ;;  %v3391_v18 = vpop.permute.xlu1 %3390  ;;  %v3386_v20 = vpop.permute.xlu0 %3385  ;;  %804 = vperm.xlu0 %3624, %v22_v59   ;;  %v384_v15 = vld [vmem:[%s4922_s1 + $0x58] sm:$0xff] }
  0xd7   :  { %v3393_v4 = vunpack.i.h.bf16 %v3391_v18  ;;  %v3392_v1 = vunpack.i.l.bf16 %v3391_v18  ;;  %v3388_v52 = vunpack.i.h.bf16 %v3386_v20  ;;  %v3387_v60 = vunpack.i.l.bf16 %v3386_v20  ;;  %809 = vperm.xlu1 %3625, %v23_v14   ;;  %v1151_v40 = vld [vmem:[%s4922_s1 + $0xd8] sm:$0xff] }
  0xd8   :  { %2829 = vmatpush1.bf16.msra.mxu0 %v4281_v31  ;;  %2893 = vmatpush1.bf16.msra.mxu1 %v4279_v48 }
  0xd9   :  { %2831 = vmatprep.subr.bf16.mxu0 %v4106_v55  ;;  %v1315_v10 = vsel %vm1313_vm5, %v3387_v60, %v3388_v52  ;;  %v1317_v28 = vsel %vm1313_vm5, %v3392_v1, %v3393_v4 }
  0xda   :  { %v3401_v45 = vpop.permute.xlu1 %3400  ;;  %v3396_v24 = vpop.permute.xlu0 %3395  ;;  %v4297_v25 = vpack.c.bf16 %v1317_v28, %v1315_v10  ;;  %814 = vperm.xlu0 %3624, %v24_v46  }
  0xdb   :  { %v3398_v42 = vunpack.i.h.bf16 %v3396_v24  ;;  %v3397_v62 = vunpack.i.l.bf16 %v3396_v24  ;;  %2726 = vmatmul.mubr.msk.f32.vlgmr.msra.gmra.mrb[0].mxu0 %vm178_vm2, %v381_v17  ;;  %2742 = vmatmul.mubr.msk.f32.vlgmr.msra.gmra.mrb[0].mxu1 %vm178_vm2, %v1148_v13  ;;  %v3403_v51 = vunpack.i.h.bf16 %v3401_v45  ;;  %v3402_v50 = vunpack.i.l.bf16 %v3401_v45  ;;  %v575_v13 = vld [vmem:[%s4922_s1 + $0x60] sm:$0xff] }
  0xdc   :  { %2833 = vmatpush1.bf16.msra.mxu0 %v4169_v3  ;;  %2895 = vmatprep.subr.bf16.mxu1 %v4297_v25 }
  0xdd   :  { %v1316_v30 = vsel %vm1313_vm5, %v3398_v42, %v3392_v1  ;;  %v1314_v49 = vsel %vm1313_vm5, %v3397_v62, %v3387_v60  ;;  %2835 = vmatprep.subr.bf16.mxu0 %v4147_v22  ;;  %548 = vmatprep.mubr.f32.mxu0 %v3628_v38  ;;  %v1319_v44 = vsel %vm1313_vm5, %v3402_v50, %v3403_v51 }
  0xde   :  { %v4316_v27 = vpack.c.bf16 %v1316_v30, %v1314_v49  ;;  %v3411_v29 = vpop.permute.xlu1 %3410  ;;  %v3406_v23 = vpop.permute.xlu0 %3405  ;;  %1234 = vmatprep.mubr.f32.mxu1 %v3628_v38 }
  0xdf   :  { %v3413_v21 = vunpack.i.h.bf16 %v3411_v29  ;;  %v3412_v12 = vunpack.i.l.bf16 %v3411_v29  ;;  %v3408_v0 = vunpack.i.h.bf16 %v3406_v23  ;;  %v3407_v33 = vunpack.i.l.bf16 %v3406_v23  ;;  %2727 = vmatmul.mubr.msk.f32.gmra.mrb[2].mxu0 %vm178_vm2, %v382_v54  ;;  %2743 = vmatmul.mubr.msk.f32.gmra.mrb[2].mxu1 %vm178_vm2, %v1149_v19  ;;  %v576_v54 = vld [vmem:[%s4922_s1 + $0x68] sm:$0xff] }
  0xe0   :  { %2837 = vmatpush1.bf16.msra.mxu0 %v4182_v39  ;;  %2897 = vmatpush1.bf16.msra.mxu1 %v4316_v27 }
  0xe1   :  { %v1318_v2 = vsel %vm1313_vm5, %v3412_v12, %v3402_v50  ;;  %v1320_v35 = vsel %vm1313_vm5, %v3413_v21, %v3407_v33  ;;  %2839 = vmatprep.subr.bf16.mxu0 %v4206_v36  ;;  %554 = vmatprep.mubr.f32.mxu0 %v3628_v38  ;;  %v1321_v5 = vsel %vm1313_vm5, %v3407_v33, %v3408_v0  ;;  %v577_v33 = vld [vmem:[%s4922_s1 + $0x70] sm:$0xff] }
  0xe2   :  { %v4335_v9 = vpack.c.bf16 %v1320_v35, %v1318_v2  ;;  %v3421_v37 = vpop.permute.xlu1 %3420  ;;  %v3416_v32 = vpop.permute.xlu0 %3415  ;;  %v4337_v57 = vpack.c.bf16 %v1321_v5, %v1319_v44  ;;  %1240 = vmatprep.mubr.f32.mxu1 %v3628_v38  ;;  %v578_v2 = vld [vmem:[%s4922_s1 + $0x78] sm:$0xff] }
  0xe3   :  { %v3423_v26 = vunpack.i.h.bf16 %v3421_v37  ;;  %v3422_v58 = vunpack.i.l.bf16 %v3421_v37  ;;  %v3418_v14 = vunpack.i.h.bf16 %v3416_v32  ;;  %v3417_v8 = vunpack.i.l.bf16 %v3416_v32  ;;  %2728 = vmatmul.mubr.msk.f32.gmra.mrb[4].mxu0 %vm178_vm2, %v383_v34  ;;  %2744 = vmatmul.mubr.msk.f32.gmra.mrb[4].mxu1 %vm178_vm2, %v1150_v47  ;;  %v1261_v34 = vld [vmem:[%s4922_s1 + $0xe0] sm:$0xff] }
  0xe4   :  { %2841 = vmatpush1.bf16.msra.mxu0 %v4226_v56  ;;  %2899 = vmatprep.subr.bf16.mxu1 %v4337_v57  ;;  %v1507_v37 = vld [vmem:[%s4922_s1 + $0x120] sm:$0xff] }
  0xe5   :  { %2843 = vmatprep.subr.bf16.mxu0 %v4265_v6  ;;  %2901 = vmatpush1.bf16.msra.mxu1 %v4335_v9  ;;  %v1323_v53 = vsel %vm1313_vm5, %v3417_v8, %v3418_v14  ;;  %v1325_v18 = vsel %vm1313_vm5, %v3422_v58, %v3423_v26 }
  0xe6   :  { %v3431_v20 = vpop.permute.xlu1 %3430  ;;  %v3426_v59 = vpop.permute.xlu0 %3425  ;;  %560 = vmatprep.mubr.f32.mxu0 %v3628_v38  ;;  %v4355_v4 = vpack.c.bf16 %v1325_v18, %v1323_v53  ;;  %1246 = vmatprep.mubr.f32.mxu1 %v3628_v38 }
  0xe7   :  { %v3428_v1 = vunpack.i.h.bf16 %v3426_v59  ;;  %v3427_v52 = vunpack.i.l.bf16 %v3426_v59  ;;  %2729 = vmatmul.mubr.msk.f32.gmra.mrb[6].mxu0 %vm178_vm2, %v384_v15  ;;  %2745 = vmatmul.mubr.msk.f32.gmra.mrb[6].mxu1 %vm178_vm2, %v1151_v40  ;;  %v3433_v60 = vunpack.i.h.bf16 %v3431_v20  ;;  %v3432_v17 = vunpack.i.l.bf16 %v3431_v20  ;;  %v2153_v40 = vld [vmem:[%s4922_s1 + $0x1a0] sm:$0xff] }
  0xe8   :  { %2845 = vmatpush1.bf16.msra.mxu0 %v4279_v48  ;;  %2903 = vmatprep.subr.bf16.mxu1 %v4355_v4 }
  0xe9   :  { %v1324_v10 = vsel %vm1313_vm5, %v3428_v1, %v3422_v58  ;;  %v1322_v28 = vsel %vm1313_vm5, %v3427_v52, %v3417_v8  ;;  %2911 = vmatprep.subr.bf16.mxu0 %v4106_v55  ;;  %736 = vmatprep.mubr.f32.mxu0 %v3628_v38  ;;  %v1327_v19 = vsel %vm1313_vm5, %v3432_v17, %v3433_v60  ;;  %v1510_v60 = vld [vmem:[%s4922_s1 + $0x138] sm:$0xff] }
  0xea   :  { %v2904_v45 = vpack.c.bf16 %v1324_v10, %v1322_v28  ;;  %v3441_v24 = vpop.permute.xlu1 %3440  ;;  %v3436_v42 = vpop.permute.xlu0 %3435  ;;  %1422 = vmatprep.mubr.f32.mxu1 %v3628_v38  ;;  %v2154_v10 = vld [vmem:[%s4922_s1 + $0x1a8] sm:$0xff] }
  0xeb   :  { %v3443_v62 = vunpack.i.h.bf16 %v3441_v24  ;;  %v3442_v46 = vunpack.i.l.bf16 %v3441_v24  ;;  %v3438_v51 = vunpack.i.h.bf16 %v3436_v42  ;;  %v3437_v50 = vunpack.i.l.bf16 %v3436_v42  ;;  %2730 = vmatmul.mubr.msk.f32.vlgmr.msra.gmra.mrb[0].mxu0 %vm178_vm2, %v575_v13 }
  0xec   :  { %2905 = vmatpush1.bf16.msra.mxu1 %v2904_v45  ;;  %2913 = vmatpush1.bf16.msra.mxu0 %v4169_v3 }
  0xed   :  { %v1326_v30 = vsel %vm1313_vm5, %v3442_v46, %v3432_v17  ;;  %v1328_v49 = vsel %vm1313_vm5, %v3443_v62, %v3437_v50  ;;  %2915 = vmatprep.subr.bf16.mxu0 %v4147_v22  ;;  %742 = vmatprep.mubr.f32.mxu0 %v3628_v38  ;;  %v1329_v29 = vsel %vm1313_vm5, %v3437_v50, %v3438_v51 }
  0xee   :  { %v2908_v23 = vpack.c.bf16 %v1328_v49, %v1326_v30  ;;  %v4381_v21 = vpop.permute.xlu1 %3450  ;;  %v4383_v12 = vpop.permute.xlu0 %3445  ;;  %v2906_v0 = vpack.c.bf16 %v1329_v29, %v1327_v19  ;;  %v1503_v30 = vld [vmem:[%s4922_s1 + $0x100] sm:$0xff] }
  0xef   :  { %2731 = vmatmul.mubr.msk.f32.gmra.mrb[2].mxu0 %vm178_vm2, %v576_v54  ;;  %v3453_v26 = vunpack.i.h.bf16 %v4381_v21  ;;  %v3452_v58 = vunpack.i.l.bf16 %v4381_v21  ;;  %v3448_v14 = vunpack.i.h.bf16 %v4383_v12 }
  0xf0   :  { %2907 = vmatprep.subr.bf16.mxu1 %v2906_v0  ;;  %2917 = vmatpush1.bf16.msra.mxu0 %v4182_v39 }
  0xf1   :  { %2909 = vmatpush1.bf16.msra.mxu1 %v2908_v23  ;;  %2919 = vmatprep.subr.bf16.mxu0 %v4206_v36 }
  0xf2   :  { %748 = vmatprep.mubr.f32.mxu0 %v3628_v38  ;;  %2975 = vmatprep.subr.bf16.mxu1 %v4297_v25  ;;  %v1262_v25 = vld [vmem:[%s4922_s1 + $0xe8] sm:$0xff] }
  0xf3   :  { %v4396_v44 = vpop.permute.xlu1 %3460  ;;  %v4398_v47 = vpop.permute.xlu0 %3455  ;;  %2732 = vmatmul.mubr.msk.f32.gmra.mrb[4].mxu0 %vm178_vm2, %v577_v33 }
  0xf4   :  { %2746 = vmatmul.mubr.msk.f32.vlgmr.msra.gmra.mrb[0].mxu1 %vm178_vm2, %v1261_v34  ;;  %2921 = vmatpush1.bf16.msra.mxu0 %v4226_v56  ;;  %v3463_v17 = vunpack.i.h.bf16 %v4396_v44  ;;  %v3458_v28 = vunpack.i.h.bf16 %v4398_v47  ;;  %v3462_v49 = vunpack.i.l.bf16 %v4396_v44 }
  0xf5   :  { %2923 = vmatprep.subr.bf16.mxu0 %v4265_v6  ;;  %2977 = vmatpush1.bf16.msra.mxu1 %v4316_v27  ;;  %v1263_v27 = vld [vmem:[%s4922_s1 + $0xf0] sm:$0xff] }
  0xf6   :  { %754 = vmatprep.mubr.f32.mxu0 %v3628_v38  ;;  %2979 = vmatprep.subr.bf16.mxu1 %v4337_v57 }
  0xf7   :  { %v4413_v35 = vpop.permute.xlu1 %3470  ;;  %v4415_v5 = vpop.permute.xlu0 %3465  ;;  %2733 = vmatmul.mubr.msk.f32.gmra.mrb[6].mxu0 %vm178_vm2, %v578_v2  ;;  %1428 = vmatprep.mubr.f32.mxu1 %v3628_v38 }
  0xf8   :  { %2747 = vmatmul.mubr.msk.f32.gmra.mrb[2].mxu1 %vm178_vm2, %v1262_v25  ;;  %2925 = vmatpush1.bf16.msra.mxu0 %v4279_v48  ;;  %v3468_v53 = vunpack.i.h.bf16 %v4415_v5  ;;  %v3467_v18 = vunpack.i.l.bf16 %v4415_v5  ;;  %v3473_v29 = vunpack.i.h.bf16 %v4413_v35 }
  0xf9   :  { %2927 = vmatprep.subr.bf16.mxu0 %v4102_v41  ;;  %2981 = vmatpush1.bf16.msra.mxu1 %v4335_v9  ;;  %v1264_v41 = vld [vmem:[%s4922_s1 + $0xf8] sm:$0xff]  ;;  %v1508_v9 = vld [vmem:[%s4922_s1 + $0x128] sm:$0xff] }
  0xfa   :  { %2983 = vmatprep.subr.bf16.mxu1 %v4355_v4  ;;  %1434 = vmatprep.mubr.f32.mxu1 %v3628_v38  ;;  %v1769_v4 = vsel %vm1765_vm6, %v3452_v58, %v3453_v26 }
  0xfb   :  { %v4430_v32 = vpop.permute.xlu1 %3480  ;;  %v4432_v57 = vpop.permute.xlu0 %3475  ;;  %1587 = vmatprep.mubr.f32.mxu0 %v3628_v38 }
  0xfc   :  { %2748 = vmatmul.mubr.msk.f32.gmra.mrb[4].mxu1 %vm178_vm2, %v1263_v27  ;;  %2750 = vmatmul.mubr.msk.f32.vlgmr.msra.gmra.mrb[8].mxu0 %vm178_vm2, %v1507_v37  ;;  %v3483_v1 = vunpack.i.h.bf16 %v4430_v32  ;;  %v3477_v52 = vunpack.i.l.bf16 %v4432_v57  ;;  %v1962_v37 = vsel %vm1959_vm7, %v3473_v29, %v3462_v49 }
  0xfd   :  { %2929 = vmatpush1.bf16.msra.mxu0 %v4171_v7  ;;  %2985 = vmatpush1.bf16.msra.mxu1 %v2904_v45  ;;  %v3447_v7 = vunpack.i.l.bf16 %v4383_v12 }
  0xfe   :  { %2931 = vmatprep.subr.bf16.mxu0 %v4179_v11  ;;  %2987 = vmatprep.subr.bf16.mxu1 %v2906_v0  ;;  %v1509_v11 = vld [vmem:[%s4922_s1 + $0x130] sm:$0xff] }
  0xff   :  { %v4450_v8 = vpop.permute.xlu1 %3490  ;;  %v4452_v15 = vpop.permute.xlu0 %3485  ;;  %1440 = vmatprep.mubr.f32.mxu1 %v3628_v38  ;;  %1593 = vmatprep.mubr.f32.mxu0 %v3628_v38  ;;  %v1767_v59 = vsel %vm1765_vm6, %v3447_v7, %v3448_v14  ;;  %v1766_v45 = vsel %vm1765_vm6, %v3467_v18, %v3447_v7 }
 0x100   :  { %2749 = vmatmul.mubr.msk.f32.gmra.mrb[6].mxu1 %vm178_vm2, %v1264_v41  ;;  %2751 = vmatmul.mubr.msk.f32.gmra.mrb[10].mxu0 %vm178_vm2, %v1508_v9  ;;  %v2942_v13 = vpack.c.bf16 %v1769_v4, %v1767_v59  ;;  %v3493_v12 = vunpack.i.h.bf16 %v4450_v8  ;;  %v3492_v0 = vunpack.i.l.bf16 %v4450_v8  ;;  %v3488_v33 = vunpack.i.h.bf16 %v4452_v15 }
 0x101   :  { %2933 = vmatpush1.bf16.msra.mxu0 %v4184_v63  ;;  %2989 = vmatpush1.bf16.msra.mxu1 %v2908_v23  ;;  %v3472_v23 = vunpack.i.l.bf16 %v4413_v35  ;;  %v3487_v34 = vunpack.i.l.bf16 %v4452_v15 }
 0x102   :  { %2935 = vmatprep.subr.bf16.mxu0 %v4195_v16  ;;  %2991 = vmatprep.subr.bf16.mxu1 %v4106_v55  ;;  %v3482_v16 = vunpack.i.l.bf16 %v4430_v32  ;;  %v3478_v55 = vunpack.i.h.bf16 %v4432_v57  ;;  %v2156_v32 = vld [vmem:[%s4922_s1 + $0x1b8] sm:$0xff]  ;;  %v1963_v57 = vsel %vm1959_vm7, %v3462_v49, %v3463_v17 }
 0x103   :  { %v4469_v20 = vpop.permute.xlu1 %3500  ;;  %v3496_v63 = vpop.permute.xlu0 %3495  ;;  %1599 = vmatprep.mubr.f32.mxu0 %v3628_v38  ;;  %2233 = vmatprep.mubr.f32.mxu1 %v3628_v38  ;;  %v1965_v14 = vsel %vm1959_vm7, %v3487_v34, %v3488_v33 }
 0x104   :  { %2752 = vmatmul.mubr.msk.f32.gmra.mrb[12].mxu0 %vm178_vm2, %v1509_v11  ;;  %2766 = vmatmul.mubr.msk.f32.vlgmr.msra.gmra.mrb[8].mxu1 %vm178_vm2, %v2153_v40  ;;  %v3497_v62 = vunpack.i.l.bf16 %v3496_v63  ;;  %v1771_v46 = vsel %vm1765_vm6, %v3477_v52, %v3478_v55  ;;  %v1773_v51 = vsel %vm1765_vm6, %v3482_v16, %v3483_v1  ;;  %v3502_v41 = vunpack.i.l.bf16 %v4469_v20 }
 0x105   :  { %2937 = vmatpush1.bf16.msra.mxu0 %v4228_v61  ;;  %2993 = vmatpush1.bf16.msra.mxu1 %v4169_v3  ;;  %v3457_v61 = vunpack.i.l.bf16 %v4398_v47  ;;  %v1768_v3 = vsel %vm1765_vm6, %v3468_v53, %v3452_v58  ;;  %v2946_v25 = vpack.c.bf16 %v1773_v51, %v1771_v46  ;;  %v3503_v7 = vunpack.i.h.bf16 %v4469_v20  ;;  %v1504_v20 = vld [vmem:[%s4922_s1 + $0x108] sm:$0xff] }
 0x106   :  { %2939 = vmatprep.subr.bf16.mxu0 %v4247_v43  ;;  %2995 = vmatprep.subr.bf16.mxu1 %v4147_v22  ;;  %v3498_v43 = vunpack.i.h.bf16 %v3496_v63  ;;  %v2944_v21 = vpack.c.bf16 %v1768_v3, %v1766_v45  ;;  %v1770_v2 = vsel %vm1765_vm6, %v3497_v62, %v3477_v52  ;;  %v1964_v55 = vsel %vm1959_vm7, %v3502_v41, %v3487_v34 }
 0x107   :  { %v4495_v24 = vpop.permute.xlu1 %3510  ;;  %v4497_v42 = vpop.permute.xlu0 %3505  ;;  %1605 = vmatprep.mubr.f32.mxu0 %v3628_v38  ;;  %2239 = vmatprep.mubr.f32.mxu1 %v3628_v38  ;;  %v1960_v27 = vsel %vm1959_vm7, %v3472_v23, %v3457_v61 }
 0x108   :  { %2753 = vmatmul.mubr.msk.f32.gmra.mrb[14].mxu0 %vm178_vm2, %v1510_v60  ;;  %v3513_v50 = vunpack.i.h.bf16 %v4495_v24  ;;  %v3512_v54 = vunpack.i.l.bf16 %v4495_v24  ;;  %v3508_v19 = vunpack.i.h.bf16 %v4497_v42  ;;  %v3507_v22 = vunpack.i.l.bf16 %v4497_v42  ;;  %2767 = vmatmul.mubr.msk.f32.gmra.mrb[10].mxu1 %vm178_vm2, %v2154_v10 }
 0x109   :  { %2941 = vmatpush1.bf16.msra.mxu0 %v4281_v31  ;;  %2997 = vmatpush1.bf16.msra.mxu1 %v4182_v39  ;;  %v2155_v31 = vld [vmem:[%s4922_s1 + $0x1b0] sm:$0xff]  ;;  %v1772_v39 = vsel %vm1765_vm6, %v3498_v43, %v3482_v16  ;;  %v4565_v59 = vpack.c.bf16 %v1962_v37, %v1960_v27 }
 0x10a   :  { %2943 = vmatprep.subr.bf16.mxu0 %v2942_v13  ;;  %2999 = vmatprep.subr.bf16.mxu1 %v4206_v36  ;;  %v1775_v35 = vsel %vm1765_vm6, %v3507_v22, %v3508_v19  ;;  %v1777_v5 = vsel %vm1765_vm6, %v3512_v54, %v3513_v50  ;;  %v1961_v36 = vsel %vm1959_vm7, %v3457_v61, %v3458_v28  ;;  %v2149_v13 = vld [vmem:[%s4922_s1 + $0x180] sm:$0xff]  ;;  %v1505_v43 = vld [vmem:[%s4922_s1 + $0x110] sm:$0xff] }
 0x10b   :  { %v4525_v44 = vpop.permute.xlu1 %3520  ;;  %v4527_v47 = vpop.permute.xlu0 %3515  ;;  %1688 = vmatprep.mubr.f32.mxu0 %v3628_v38  ;;  %2245 = vmatprep.mubr.f32.mxu1 %v3628_v38  ;;  %v2948_v9 = vpack.c.bf16 %v1772_v39, %v1770_v2  ;;  %v2950_v40 = vpack.c.bf16 %v1777_v5, %v1775_v35  ;;  %v4569_v16 = vpack.c.bf16 %v1963_v57, %v1961_v36  ;;  %v2151_v2 = vld [vmem:[%s4922_s1 + $0x190] sm:$0xff] }
 0x10c   :  { %2754 = vmatmul.mubr.msk.f32.vlgmr.msra.gmra.mrb[8].mxu0 %vm178_vm2, %v1503_v30  ;;  %2768 = vmatmul.mubr.msk.f32.gmra.mrb[12].mxu1 %vm178_vm2, %v2155_v31  ;;  %v3523_v53 = vunpack.i.h.bf16 %v4525_v44  ;;  %v3522_v18 = vunpack.i.l.bf16 %v4525_v44  ;;  %v3517_v63 = vunpack.i.l.bf16 %v4527_v47 }
 0x10d   :  { %2945 = vmatpush1.bf16.msra.mxu0 %v2944_v21  ;;  %3001 = vmatpush1.bf16.msra.mxu1 %v4226_v56  ;;  %v1967_v56 = vsel %vm1959_vm7, %v3492_v0, %v3493_v12  ;;  %v1506_v12 = vld [vmem:[%s4922_s1 + $0x118] sm:$0xff] }
 0x10e   :  { %2947 = vmatprep.subr.bf16.mxu0 %v2946_v25  ;;  %3003 = vmatprep.subr.bf16.mxu1 %v4265_v6  ;;  %v3518_v6 = vunpack.i.h.bf16 %v4527_v47  ;;  %v4577_v10 = vpack.c.bf16 %v1967_v56, %v1965_v14  ;;  %v1971_v42 = vsel %vm1959_vm7, %v3522_v18, %v3523_v53 }
 0x10f   :  { %v4547_v26 = vpop.permute.xlu1 %3530  ;;  %v3526_v58 = vpop.permute.xlu0 %3525  ;;  %2251 = vmatprep.mubr.f32.mxu1 %v3628_v38  ;;  %1694 = vmatprep.mubr.f32.mxu0 %v3628_v38 }
 0x110   :  { %v3528_v15 = vunpack.i.h.bf16 %v3526_v58  ;;  %v3527_v11 = vunpack.i.l.bf16 %v3526_v58  ;;  %2769 = vmatmul.mubr.msk.f32.gmra.mrb[14].mxu1 %vm178_vm2, %v2156_v32  ;;  %2755 = vmatmul.mubr.msk.f32.gmra.mrb[10].mxu0 %vm178_vm2, %v1504_v20  ;;  %v1969_v24 = vsel %vm1959_vm7, %v3517_v63, %v3518_v6  ;;  %v3533_v62 = vunpack.i.h.bf16 %v4547_v26 }
 0x111   :  { %2949 = vmatpush1.bf16.msra.mxu0 %v2948_v9  ;;  %3005 = vmatpush1.bf16.msra.mxu1 %v4279_v48  ;;  %v1966_v48 = vsel %vm1959_vm7, %v3503_v7, %v3492_v0  ;;  %v3532_v46 = vunpack.i.l.bf16 %v4547_v26  ;;  %v4604_v31 = vpack.c.bf16 %v1971_v42, %v1969_v24  ;;  %v2152_v7 = vld [vmem:[%s4922_s1 + $0x198] sm:$0xff] }
 0x112   :  { %v1776_v4 = vsel %vm1765_vm6, %v3528_v15, %v3512_v54  ;;  %v1774_v1 = vsel %vm1765_vm6, %v3527_v11, %v3507_v22  ;;  %2951 = vmatprep.subr.bf16.mxu0 %v2950_v40  ;;  %2334 = vmatprep.mubr.f32.mxu1 %v3628_v38  ;;  %v2150_v22 = vld [vmem:[%s4922_s1 + $0x188] sm:$0xff]  ;;  %v4602_v21 = vpack.c.bf16 %v1966_v48, %v1964_v55  ;;  %v2359_v55 = vld [vmem:[%s4922_s1 + $0x1c0] sm:$0xff] }
 0x113   :  { %v2952_v52 = vpack.c.bf16 %v1776_v4, %v1774_v1  ;;  %v3541_v60 = vpop.permute.xlu1 %3540  ;;  %v3536_v17 = vpop.permute.xlu0 %3535  ;;  %3007 = vmatprep.subr.bf16.mxu1 %v4569_v16  ;;  %1700 = vmatprep.mubr.f32.mxu0 %v3628_v38  ;;  %v1968_v0 = vsel %vm1959_vm7, %v3532_v46, %v3517_v63  ;;  %v1970_v33 = vsel %vm1959_vm7, %v3533_v62, %v3522_v18  ;;  %v1713_v18 = vld [vmem:[%s4922_s1 + $0x140] sm:$0xff]  ;;  %v1715_v62 = vld [vmem:[%s4922_s1 + $0x150] sm:$0xff] }
 0x114   :  { %v3543_v28 = vunpack.i.h.bf16 %v3541_v60  ;;  %v3542_v61 = vunpack.i.l.bf16 %v3541_v60  ;;  %v3538_v3 = vunpack.i.h.bf16 %v3536_v17  ;;  %v3537_v45 = vunpack.i.l.bf16 %v3536_v17  ;;  %2770 = vmatmul.mubr.msk.f32.vlgmr.msra.gmra.mrb[8].mxu1 %vm178_vm2, %v2149_v13  ;;  %2756 = vmatmul.mubr.msk.f32.gmra.mrb[12].mxu0 %vm178_vm2, %v1505_v43  ;;  %v1714_v60 = vld [vmem:[%s4922_s1 + $0x148] sm:$0xff] }
 0x115   :  { %2953 = vmatpush1.bf16.msra.mxu0 %v2952_v52  ;;  %3009 = vmatpush1.bf16.msra.mxu1 %v4565_v59  ;;  %v4622_v27 = vpack.c.bf16 %v1970_v33, %v1968_v0 }
 0x116   :  { %v1779_v8 = vsel %vm1765_vm6, %v3537_v45, %v3538_v3  ;;  %v1781_v51 = vsel %vm1765_vm6, %v3542_v61, %v3543_v28  ;;  %2340 = vmatprep.mubr.f32.mxu1 %v3628_v38  ;;  %3011 = vmatprep.subr.bf16.mxu1 %v4577_v10 }
 0x117   :  { %v3551_v50 = vpop.permute.xlu1 %3550  ;;  %v3546_v54 = vpop.permute.xlu0 %3545  ;;  %v2954_v19 = vpack.c.bf16 %v1781_v51, %v1779_v8  ;;  %1706 = vmatprep.mubr.f32.mxu0 %v3628_v38 }
 0x118   :  { %v3553_v30 = vunpack.i.h.bf16 %v3551_v50  ;;  %v3552_v49 = vunpack.i.l.bf16 %v3551_v50  ;;  %v3548_v29 = vunpack.i.h.bf16 %v3546_v54  ;;  %v3547_v23 = vunpack.i.l.bf16 %v3546_v54  ;;  %2771 = vmatmul.mubr.msk.f32.gmra.mrb[10].mxu1 %vm178_vm2, %v2150_v22  ;;  %2757 = vmatmul.mubr.msk.f32.gmra.mrb[14].mxu0 %vm178_vm2, %v1506_v12 }
 0x119   :  { %2955 = vmatprep.subr.bf16.mxu0 %v2954_v19  ;;  %3013 = vmatpush1.bf16.msra.mxu1 %v4602_v21 }
 0x11a   :  { %v1973_v34 = vsel %vm1959_vm7, %v3547_v23, %v3548_v29  ;;  %v1975_v44 = vsel %vm1959_vm7, %v3552_v49, %v3553_v30  ;;  %2346 = vmatprep.mubr.f32.mxu1 %v3628_v38  ;;  %3015 = vmatprep.subr.bf16.mxu1 %v4604_v31  ;;  %v2361_v29 = vld [vmem:[%s4922_s1 + $0x1d0] sm:$0xff] }
 0x11b   :  { %v3561_v47 = vpop.permute.xlu1 %3560  ;;  %v3556_v39 = vpop.permute.xlu0 %3555  ;;  %v4624_v37 = vpack.c.bf16 %v1975_v44, %v1973_v34  ;;  %1874 = vmatprep.mubr.f32.mxu0 %v3628_v38  ;;  %v1907_v44 = vld [vmem:[%s4922_s1 + $0x160] sm:$0xff] }
 0x11c   :  { %v3563_v25 = vunpack.i.h.bf16 %v3561_v47  ;;  %v3562_v35 = vunpack.i.l.bf16 %v3561_v47  ;;  %v3558_v5 = vunpack.i.h.bf16 %v3556_v39  ;;  %v3557_v36 = vunpack.i.l.bf16 %v3556_v39  ;;  %2772 = vmatmul.mubr.msk.f32.gmra.mrb[12].mxu1 %vm178_vm2, %v2151_v2  ;;  %v2362_v47 = vld [vmem:[%s4922_s1 + $0x1d8] sm:$0xff] }
 0x11d   :  { %3017 = vmatpush1.bf16.msra.mxu1 %v4622_v27  ;;  %2352 = vmatprep.mubr.f32.mxu1 %v3628_v38 }
 0x11e   :  { %v1972_v32 = vsel %vm1959_vm7, %v3562_v35, %v3547_v23  ;;  %v1974_v57 = vsel %vm1959_vm7, %v3563_v25, %v3552_v49  ;;  %v1780_v41 = vsel %vm1765_vm6, %v3558_v5, %v3542_v61  ;;  %v1778_v9 = vsel %vm1765_vm6, %v3557_v36, %v3537_v45  ;;  %3019 = vmatprep.subr.bf16.mxu1 %v4624_v37  ;;  %v1716_v49 = vld [vmem:[%s4922_s1 + $0x158] sm:$0xff] }
 0x11f   :  { %v4632_v26 = vpack.c.bf16 %v1974_v57, %v1972_v32  ;;  %v2956_v58 = vpack.c.bf16 %v1780_v41, %v1778_v9  ;;  %v3571_v14 = vpop.permute.xlu1 %3570  ;;  %v3566_v56 = vpop.permute.xlu0 %3565  ;;  %v1908_v32 = vld [vmem:[%s4922_s1 + $0x168] sm:$0xff] }
 0x120   :  { %v3573_v15 = vunpack.i.h.bf16 %v3571_v14  ;;  %v3572_v11 = vunpack.i.l.bf16 %v3571_v14  ;;  %v3568_v40 = vunpack.i.h.bf16 %v3566_v56  ;;  %v3567_v53 = vunpack.i.l.bf16 %v3566_v56  ;;  %2773 = vmatmul.mubr.msk.f32.gmra.mrb[14].mxu1 %vm178_vm2, %v2152_v7 }
 0x121   :  { %2957 = vmatpush1.bf16.msra.mxu0 %v2956_v58  ;;  %3021 = vmatpush1.bf16.msra.mxu1 %v4632_v26 }
 0x122   :  { %2959 = vmatprep.subr.bf16.mxu0 %v4569_v16  ;;  %v2526_v6 = vsel %vm2524_vm8, %v3567_v53, %v3568_v40  ;;  %v2528_v63 = vsel %vm2524_vm8, %v3572_v11, %v3573_v15  ;;  %2439 = vmatprep.mubr.f32.mxu1 %v3628_v38 }
 0x123   :  { %v3581_v20 = vpop.permute.xlu1 %3580  ;;  %v3022_v4 = vpack.c.bf16 %v2528_v63, %v2526_v6  ;;  %v3576_v1 = vpop.permute.xlu0 %3575  ;;  %v2472_v63 = vld [vmem:[%s4922_s1 + $0x1e0] sm:$0xff] }
 0x124   :  { %2758 = vmatmul.mubr.msk.f32.vlgmr.msra.gmra.mrb[8].mxu0 %vm178_vm2, %v1713_v18  ;;  %v3578_v16 = vunpack.i.h.bf16 %v3576_v1  ;;  %v3577_v52 = vunpack.i.l.bf16 %v3576_v1  ;;  %v3583_v17 = vunpack.i.h.bf16 %v3581_v20  ;;  %v3582_v13 = vunpack.i.l.bf16 %v3581_v20  ;;  %2774 = vmatmul.mubr.msk.f32.vlgmr.msra.gmra.mrb[8].mxu1 %vm178_vm2, %v2359_v55  ;;  %v1910_v20 = vld [vmem:[%s4922_s1 + $0x178] sm:$0xff]  ;;  %v2474_v1 = vld [vmem:[%s4922_s1 + $0x1f0] sm:$0xff] }
 0x125   :  { %2961 = vmatpush1.bf16.msra.mxu0 %v4565_v59  ;;  %3023 = vmatprep.subr.bf16.mxu1 %v3022_v4  ;;  %v2473_v4 = vld [vmem:[%s4922_s1 + $0x1e8] sm:$0xff]  ;;  %v2475_v55 = vld [vmem:[%s4922_s1 + $0x1f8] sm:$0xff] }
 0x126   :  { %2963 = vmatprep.subr.bf16.mxu0 %v4577_v10  ;;  %1880 = vmatprep.mubr.f32.mxu0 %v3628_v38  ;;  %v2527_v28 = vsel %vm2524_vm8, %v3578_v16, %v3572_v11  ;;  %v2525_v61 = vsel %vm2524_vm8, %v3577_v52, %v3567_v53  ;;  %v2360_v10 = vld [vmem:[%s4922_s1 + $0x1c8] sm:$0xff]  ;;  %v2530_v51 = vsel %vm2524_vm8, %v3582_v13, %v3583_v17  ;;  %v1909_v53 = vld [vmem:[%s4922_s1 + $0x170] sm:$0xff] }
 0x127   :  { %v3024_v3 = vpack.c.bf16 %v2527_v28, %v2525_v61  ;;  %v3591_v45 = vpop.permute.xlu1 %3590  ;;  %2445 = vmatprep.mubr.f32.mxu1 %v3628_v38 }
 0x128   :  { %v3586_v59 = vpop.permute.xlu0 %3585  ;;  %2759 = vmatmul.mubr.msk.f32.gmra.mrb[10].mxu0 %vm178_vm2, %v1714_v60  ;;  %v3593_v48 = vunpack.i.h.bf16 %v3591_v45  ;;  %v3592_v24 = vunpack.i.l.bf16 %v3591_v45  ;;  %2775 = vmatmul.mubr.msk.f32.gmra.mrb[10].mxu1 %vm178_vm2, %v2360_v10 }
 0x129   :  { %v3588_v42 = vunpack.i.h.bf16 %v3586_v59  ;;  %v3587_v43 = vunpack.i.l.bf16 %v3586_v59  ;;  %2965 = vmatpush1.bf16.msra.mxu0 %v4602_v21  ;;  %1886 = vmatprep.mubr.f32.mxu0 %v3628_v38 }
 0x12a   :  { %3025 = vmatpush1.bf16.msra.mxu1 %v3024_v3  ;;  %2967 = vmatprep.subr.bf16.mxu0 %v4604_v31  ;;  %v2529_v46 = vsel %vm2524_vm8, %v3592_v24, %v3582_v13 }
 0x12b   :  { %v2531_v8 = vsel %vm2524_vm8, %v3593_v48, %v3587_v43  ;;  %v2532_v50 = vsel %vm2524_vm8, %v3587_v43, %v3588_v42  ;;  %2451 = vmatprep.mubr.f32.mxu1 %v3628_v38 }
 0x12c   :  { %v3028_v54 = vpack.c.bf16 %v2531_v8, %v2529_v46  ;;  %2760 = vmatmul.mubr.msk.f32.gmra.mrb[12].mxu0 %vm178_vm2, %v1715_v62  ;;  %v3026_v19 = vpack.c.bf16 %v2532_v50, %v2530_v51  ;;  %v3601_v22 = vpop.permute.xlu1 %3600  ;;  %2776 = vmatmul.mubr.msk.f32.gmra.mrb[12].mxu1 %vm178_vm2, %v2361_v29 }
 0x12d   :  { %v3596_v30 = vpop.permute.xlu0 %3595  ;;  %2969 = vmatpush1.bf16.msra.mxu0 %v4622_v27  ;;  %1892 = vmatprep.mubr.f32.mxu0 %v3628_v38  ;;  %v3603_v23 = vunpack.i.h.bf16 %v3601_v22  ;;  %v3602_v21 = vunpack.i.l.bf16 %v3601_v22 }
 0x12e   :  { %v3598_v31 = vunpack.i.h.bf16 %v3596_v30  ;;  %v3597_v12 = vunpack.i.l.bf16 %v3596_v30  ;;  %3027 = vmatprep.subr.bf16.mxu1 %v3026_v19  ;;  %2971 = vmatprep.subr.bf16.mxu0 %v4624_v37 }
 0x12f   :  { %3029 = vmatpush1.bf16.msra.mxu1 %v3028_v54  ;;  %v2536_v33 = vsel %vm2524_vm8, %v3602_v21, %v3603_v23  ;;  %2457 = vmatprep.mubr.f32.mxu1 %v3628_v38 }
 0x130   :  { %2761 = vmatmul.mubr.msk.f32.gmra.mrb[14].mxu0 %vm178_vm2, %v1716_v49  ;;  %v2534_v0 = vsel %vm2524_vm8, %v3597_v12, %v3598_v31  ;;  %2777 = vmatmul.mubr.msk.f32.gmra.mrb[14].mxu1 %vm178_vm2, %v2362_v47 }
 0x131   :  { %2973 = vmatpush1.bf16.msra.mxu0 %v4632_v26  ;;  %v3030_v34 = vpack.c.bf16 %v2536_v33, %v2534_v0  ;;  %2068 = vmatprep.mubr.f32.mxu0 %v3628_v38  ;;  %v3611_v39 = vpop.permute.xlu1 %3610 }
 0x132   :  { %v3606_v2 = vpop.permute.xlu0 %3605  ;;  %v3613_v5 = vunpack.i.h.bf16 %v3611_v39  ;;  %v3612_v36 = vunpack.i.l.bf16 %v3611_v39  ;;  %2633 = vmatprep.mubr.f32.mxu1 %v3628_v38 }
 0x133   :  { %v3608_v25 = vunpack.i.h.bf16 %v3606_v2  ;;  %v3607_v35 = vunpack.i.l.bf16 %v3606_v2  ;;  %3031 = vmatprep.subr.bf16.mxu1 %v3030_v34 }
 0x134   :  { %2762 = vmatmul.mubr.msk.f32.vlgmr.msra.gmra.mrb[8].mxu0 %vm178_vm2, %v1907_v44  ;;  %v2538_v11 = vsel %vm2524_vm8, %v3612_v36, %v3613_v5 }
 0x135   :  { %v2535_v27 = vsel %vm2524_vm8, %v3608_v25, %v3602_v21  ;;  %v2533_v37 = vsel %vm2524_vm8, %v3607_v35, %v3597_v12  ;;  %2074 = vmatprep.mubr.f32.mxu0 %v3628_v38  ;;  %v3621_v41 = vpop.permute.xlu1 %3620 }
 0x136   :  { %v3032_v57 = vpack.c.bf16 %v2535_v27, %v2533_v37  ;;  %v3616_v9 = vpop.permute.xlu0 %3615  ;;  %v3623_v26 = vunpack.i.h.bf16 %v3621_v41  ;;  %v3622_v58 = vunpack.i.l.bf16 %v3621_v41 }
 0x137   :  { %v3618_v14 = vunpack.i.h.bf16 %v3616_v9  ;;  %v3617_v56 = vunpack.i.l.bf16 %v3616_v9 }
 0x138   :  { %3033 = vmatpush1.bf16.msra.mxu1 %v3032_v57  ;;  %2763 = vmatmul.mubr.msk.f32.gmra.mrb[10].mxu0 %vm178_vm2, %v1908_v32  ;;  %v2537_v7 = vsel %vm2524_vm8, %v3622_v58, %v3612_v36 }
 0x139   :  { %v2539_v15 = vsel %vm2524_vm8, %v3623_v26, %v3617_v56  ;;  %v2540_v40 = vsel %vm2524_vm8, %v3617_v56, %v3618_v14  ;;  %2080 = vmatprep.mubr.f32.mxu0 %v3628_v38 }
 0x13a   :  { %v3036_v18 = vpack.c.bf16 %v2539_v15, %v2537_v7  ;;  %v3034_v6 = vpack.c.bf16 %v2540_v40, %v2538_v11 }
 0x13c   :  { %3035 = vmatprep.subr.bf16.mxu1 %v3034_v6  ;;  %2764 = vmatmul.mubr.msk.f32.gmra.mrb[12].mxu0 %vm178_vm2, %v1909_v53 }
 0x13d   :  { %3037 = vmatpush1.bf16.msra.mxu1 %v3036_v18  ;;  %2086 = vmatprep.mubr.f32.mxu0 %v3628_v38 }
 0x140   :  { %2778 = vmatmul.mubr.msk.f32.vlgmr.msra.gmra.mrb[8].mxu1 %vm178_vm2, %v2472_v63  ;;  %2765 = vmatmul.mubr.msk.f32.gmra.mrb[14].mxu0 %vm178_vm2, %v1910_v20 }
 0x141   :  { %2639 = vmatprep.mubr.f32.mxu1 %v3628_v38 }
 0x144   :  { %2779 = vmatmul.mubr.msk.f32.gmra.mrb[10].mxu1 %vm178_vm2, %v2473_v4 }
 0x145   :  { %2645 = vmatprep.mubr.f32.mxu1 %v3628_v38 }
 0x148   :  { %2780 = vmatmul.mubr.msk.f32.gmra.mrb[12].mxu1 %vm178_vm2, %v2474_v1 }
 0x149   :  { %2651 = vmatprep.mubr.f32.mxu1 %v3628_v38 }
 0x14a   :  { %v4745_v16 = vpop.permute.xlu1 %776 }
 0x14c   :  { %2781 = vmatmul.mubr.msk.f32.gmra.mrb[14].mxu1 %vm178_vm2, %v2475_v55 }
 0x14d   :  { %v4747_v52 = vpop.permute.xlu0 %771 }
 0x14e   :  { %v4749_v60 = vpop.permute.xlu1 %781 }
 0x151   :  { %v4751_v17 = vpop.permute.xlu0 %786 }
 0x152   :  { %v4753_v28 = vpop.permute.xlu1 %799 }
 0x155   :  { %v4759_v48 = vpop.permute.xlu0 %804 }
 0x156   :  { %v4768_v22 = vpop.permute.xlu1 %809 }
 0x159   :  { %v4783_v35 = vpop.permute.xlu0 %814 }
 0x1be   :  { %v738_v13 = vpop.f32.mrb[0].mxu0 }
 0x1bf   :  { %v789_v61 = vmul.f32 %v4747_v52, %v738_v13  ;;  %v740_v38 = vpop.f32.mrb[1].mxu0 }
 0x1c0   :  { %v790_v3 = vmul.f32 %v4747_v52, %v740_v38 }
 0x1c1   :  { %v817_v45 = vadd.f32 %v4753_v28, %v789_v61 }
 0x1c2   :  { %v818_v59 = vadd.f32 %v4753_v28, %v790_v3  ;;  %v744_v10 = vpop.f32.mrb[2].mxu0 }
 0x1c3   :  { %vm825_vm9 = vcmp.gt.f32.partialorder %v817_v45, 0.0  ;;  %v833_v24 = vmul.f32 0.1, %v817_v45  ;;  %v791_v42 = vmul.f32 %v4745_v16, %v744_v10  ;;  %v746_v43 = vpop.f32.mrb[3].mxu0 }
 0x1c4   :  { %vm826_vm10 = vcmp.gt.f32.partialorder %v818_v59, 0.0  ;;  %v834_v62 = vmul.f32 0.1, %v818_v59  ;;  %v792_v46 = vmul.f32 %v4745_v16, %v746_v43 }
 0x1c5   :  { %v841_v8 = vsel %vm825_vm9, %v817_v45, %v833_v24  ;;  %v819_v51 = vadd.f32 %v4759_v48, %v791_v42 }
 0x1c6   :  { %v842_v50 = vsel %vm826_vm10, %v818_v59, %v834_v62  ;;  %849 = vst [vmem:[%s4925_s4] sm:$0xff] %v841_v8  ;;  %v820_v54 = vadd.f32 %v4759_v48, %v792_v46  ;;  %v750_v19 = vpop.f32.mrb[4].mxu0 }
 0x1c7   :  { %850 = vst [vmem:[%s4925_s4 + $0x8] sm:$0xff] %v842_v50  ;;  %vm827_vm11 = vcmp.gt.f32.partialorder %v819_v51, 0.0  ;;  %v835_v30 = vmul.f32 0.1, %v819_v51  ;;  %v793_v49 = vmul.f32 %v4749_v60, %v750_v19  ;;  %v752_v29 = vpop.f32.mrb[5].mxu0  ;;  %v1424_v23 = vpop.f32.mrb[0].mxu1 }
 0x1c8   :  { %vm828_vm12 = vcmp.gt.f32.partialorder %v820_v54, 0.0  ;;  %v836_v21 = vmul.f32 0.1, %v820_v54  ;;  %v794_v31 = vmul.f32 %v4749_v60, %v752_v29  ;;  %v1455_v12 = vmul.f32 %v1424_v23, %v4747_v52  ;;  %v1426_v0 = vpop.f32.mrb[1].mxu1 }
 0x1c9   :  { %v843_v33 = vsel %vm827_vm11, %v819_v51, %v835_v30  ;;  %v821_v34 = vadd.f32 %v4768_v22, %v793_v49  ;;  %v1456_v44 = vmul.f32 %v1426_v0, %v4747_v52 }
 0x1ca   :  { %v844_v47 = vsel %vm828_vm12, %v820_v54, %v836_v21  ;;  %851 = vst [vmem:[%s4925_s4 + $0x10] sm:$0xff] %v843_v33  ;;  %v1463_v39 = vadd.f32 %v1455_v12, %v4753_v28  ;;  %v822_v2 = vadd.f32 %v4768_v22, %v794_v31  ;;  %v756_v25 = vpop.f32.mrb[6].mxu0 }
 0x1cb   :  { %852 = vst [vmem:[%s4925_s4 + $0x18] sm:$0xff] %v844_v47  ;;  %vm829_vm13 = vcmp.gt.f32.partialorder %v821_v34, 0.0  ;;  %v837_v5 = vmul.f32 0.1, %v821_v34  ;;  %v1464_v36 = vadd.f32 %v1456_v44, %v4753_v28  ;;  %v795_v27 = vmul.f32 %v4751_v17, %v756_v25  ;;  %v758_v37 = vpop.f32.mrb[7].mxu0  ;;  %v1430_v32 = vpop.f32.mrb[2].mxu1 }
 0x1cc   :  { %vm1471_vm14 = vcmp.gt.f32.partialorder %v1463_v39, 0.0  ;;  %v1479_v57 = vmul.f32 0.1, %v1463_v39  ;;  %vm830_vm15 = vcmp.gt.f32.partialorder %v822_v2, 0.0  ;;  %v838_v41 = vmul.f32 0.1, %v822_v2 }
 0x1cd   :  { %v845_v9 = vsel %vm829_vm13, %v821_v34, %v837_v5  ;;  %vm1472_vm0 = vcmp.gt.f32.partialorder %v1464_v36, 0.0  ;;  %v1480_v26 = vmul.f32 0.1, %v1464_v36  ;;  %v796_v58 = vmul.f32 %v4751_v17, %v758_v37  ;;  %v1432_v14 = vpop.f32.mrb[3].mxu1 }
 0x1ce   :  { %v1487_v56 = vsel %vm1471_vm14, %v1463_v39, %v1479_v57  ;;  %v846_v7 = vsel %vm830_vm15, %v822_v2, %v838_v41  ;;  %853 = vst [vmem:[%s4925_s4 + $0x20] sm:$0xff] %v845_v9  ;;  %v1457_v15 = vmul.f32 %v1430_v32, %v4745_v16  ;;  %v823_v11 = vadd.f32 %v4783_v35, %v795_v27 }
 0x1cf   :  { %1495 = vst [vmem:[%s4925_s4 + $0x40] sm:$0xff] %v1487_v56  ;;  %854 = vst [vmem:[%s4925_s4 + $0x28] sm:$0xff] %v846_v7  ;;  %v1488_v40 = vsel %vm1472_vm0, %v1464_v36, %v1480_v26  ;;  %v824_v53 = vadd.f32 %v4783_v35, %v796_v58  ;;  %v1458_v18 = vmul.f32 %v1432_v14, %v4745_v16  ;;  %v1436_v6 = vpop.f32.mrb[4].mxu1 }
 0x1d0   :  { %1496 = vst [vmem:[%s4925_s4 + $0x48] sm:$0xff] %v1488_v40  ;;  %v1465_v63 = vadd.f32 %v1457_v15, %v4759_v48  ;;  %vm831_vm1 = vcmp.gt.f32.partialorder %v823_v11, 0.0  ;;  %v839_v20 = vmul.f32 0.1, %v823_v11  ;;  %v1459_v4 = vmul.f32 %v1436_v6, %v4749_v60  ;;  %v1438_v1 = vpop.f32.mrb[5].mxu1 }
 0x1d1   :  { %vm832_vm2 = vcmp.gt.f32.partialorder %v824_v53, 0.0  ;;  %v840_v55 = vmul.f32 0.1, %v824_v53  ;;  %v1466_v13 = vadd.f32 %v1458_v18, %v4759_v48  ;;  %v1460_v61 = vmul.f32 %v1438_v1, %v4749_v60 }
 0x1d2   :  { %vm1473_vm3 = vcmp.gt.f32.partialorder %v1465_v63, 0.0  ;;  %v1481_v38 = vmul.f32 0.1, %v1465_v63  ;;  %v847_v3 = vsel %vm831_vm1, %v823_v11, %v839_v20  ;;  %v1467_v45 = vadd.f32 %v1459_v4, %v4768_v22 }
 0x1d3   :  { %v848_v59 = vsel %vm832_vm2, %v824_v53, %v840_v55  ;;  %855 = vst [vmem:[%s4925_s4 + $0x30] sm:$0xff] %v847_v3  ;;  %vm1474_vm4 = vcmp.gt.f32.partialorder %v1466_v13, 0.0  ;;  %v1482_v10 = vmul.f32 0.1, %v1466_v13  ;;  %v1468_v24 = vadd.f32 %v1460_v61, %v4768_v22  ;;  %v1442_v42 = vpop.f32.mrb[6].mxu1 }
 0x1d4   :  { %v1489_v43 = vsel %vm1473_vm3, %v1465_v63, %v1481_v38  ;;  %856 = vst [vmem:[%s4925_s4 + $0x38] sm:$0xff] %v848_v59  ;;  %vm1475_vm5 = vcmp.gt.f32.partialorder %v1467_v45, 0.0  ;;  %v1483_v62 = vmul.f32 0.1, %v1467_v45  ;;  %v1461_v46 = vmul.f32 %v1442_v42, %v4751_v17  ;;  %v1444_v8 = vpop.f32.mrb[7].mxu1 }
 0x1d5   :  { %1497 = vst [vmem:[%s4925_s4 + $0x50] sm:$0xff] %v1489_v43  ;;  %v1490_v51 = vsel %vm1474_vm4, %v1466_v13, %v1482_v10  ;;  %vm1476_vm6 = vcmp.gt.f32.partialorder %v1468_v24, 0.0  ;;  %v1484_v50 = vmul.f32 0.1, %v1468_v24  ;;  %v1462_v54 = vmul.f32 %v1444_v8, %v4751_v17 }
 0x1d6   :  { %1498 = vst [vmem:[%s4925_s4 + $0x58] sm:$0xff] %v1490_v51  ;;  %v1491_v19 = vsel %vm1475_vm5, %v1467_v45, %v1483_v62  ;;  %v1469_v30 = vadd.f32 %v1461_v46, %v4783_v35 }
 0x1d7   :  { %1499 = vst [vmem:[%s4925_s4 + $0x60] sm:$0xff] %v1491_v19  ;;  %v1492_v49 = vsel %vm1476_vm6, %v1468_v24, %v1484_v50  ;;  %v1470_v29 = vadd.f32 %v1462_v54, %v4783_v35 }
 0x1d8   :  { %1500 = vst [vmem:[%s4925_s4 + $0x68] sm:$0xff] %v1492_v49  ;;  %vm1477_vm7 = vcmp.gt.f32.partialorder %v1469_v30, 0.0  ;;  %v1485_v23 = vmul.f32 0.1, %v1469_v30 }
 0x1d9   :  { %vm1478_vm8 = vcmp.gt.f32.partialorder %v1470_v29, 0.0  ;;  %v1486_v21 = vmul.f32 0.1, %v1470_v29 }
 0x1da   :  { %v1493_v31 = vsel %vm1477_vm7, %v1469_v30, %v1485_v23 }
 0x1db   :  { %1501 = vst [vmem:[%s4925_s4 + $0x70] sm:$0xff] %v1493_v31  ;;  %v1494_v12 = vsel %vm1478_vm8, %v1470_v29, %v1486_v21 }
 0x1dc   :  { %1502 = vst [vmem:[%s4925_s4 + $0x78] sm:$0xff] %v1494_v12 }
 0x207   :  { %v2070_v0 = vpop.f32.mrb[8].mxu0 }
 0x208   :  { %v2101_v33 = vmul.f32 %v2070_v0, %v4747_v52  ;;  %v2072_v34 = vpop.f32.mrb[9].mxu0 }
 0x209   :  { %v2102_v44 = vmul.f32 %v2072_v34, %v4747_v52 }
 0x20a   :  { %v2109_v47 = vadd.f32 %v2101_v33, %v4753_v28 }
 0x20b   :  { %v2110_v39 = vadd.f32 %v2102_v44, %v4753_v28  ;;  %v2076_v2 = vpop.f32.mrb[10].mxu0 }
 0x20c   :  { %vm2117_vm9 = vcmp.gt.f32.partialorder %v2109_v47, 0.0  ;;  %v2125_v25 = vmul.f32 0.1, %v2109_v47  ;;  %v2103_v5 = vmul.f32 %v2076_v2, %v4745_v16  ;;  %v2078_v36 = vpop.f32.mrb[11].mxu0 }
 0x20d   :  { %vm2118_vm10 = vcmp.gt.f32.partialorder %v2110_v39, 0.0  ;;  %v2126_v27 = vmul.f32 0.1, %v2110_v39  ;;  %v2104_v37 = vmul.f32 %v2078_v36, %v4745_v16 }
 0x20e   :  { %v2133_v32 = vsel %vm2117_vm9, %v2109_v47, %v2125_v25  ;;  %v2111_v57 = vadd.f32 %v2103_v5, %v4759_v48 }
 0x20f   :  { %2141 = vst [vmem:[%s4925_s4 + $0x80] sm:$0xff] %v2133_v32  ;;  %v2134_v41 = vsel %vm2118_vm10, %v2110_v39, %v2126_v27  ;;  %v2112_v9 = vadd.f32 %v2104_v37, %v4759_v48  ;;  %v2082_v26 = vpop.f32.mrb[12].mxu0 }
 0x210   :  { %2142 = vst [vmem:[%s4925_s4 + $0x88] sm:$0xff] %v2134_v41  ;;  %vm2119_vm11 = vcmp.gt.f32.partialorder %v2111_v57, 0.0  ;;  %v2127_v58 = vmul.f32 0.1, %v2111_v57  ;;  %v2105_v14 = vmul.f32 %v2082_v26, %v4749_v60  ;;  %v2084_v56 = vpop.f32.mrb[13].mxu0 }
 0x211   :  { %vm2120_vm12 = vcmp.gt.f32.partialorder %v2112_v9, 0.0  ;;  %v2128_v7 = vmul.f32 0.1, %v2112_v9  ;;  %v2106_v15 = vmul.f32 %v2084_v56, %v4749_v60 }
 0x212   :  { %v2135_v11 = vsel %vm2119_vm11, %v2111_v57, %v2127_v58  ;;  %v2113_v40 = vadd.f32 %v2105_v14, %v4768_v22 }
 0x213   :  { %2143 = vst [vmem:[%s4925_s4 + $0x90] sm:$0xff] %v2135_v11  ;;  %v2136_v53 = vsel %vm2120_vm12, %v2112_v9, %v2128_v7  ;;  %v2114_v18 = vadd.f32 %v2106_v15, %v4768_v22  ;;  %v2635_v6 = vpop.f32.mrb[8].mxu1  ;;  %v2088_v63 = vpop.f32.mrb[14].mxu0 }
 0x214   :  { %2144 = vst [vmem:[%s4925_s4 + $0x98] sm:$0xff] %v2136_v53  ;;  %vm2121_vm13 = vcmp.gt.f32.partialorder %v2113_v40, 0.0  ;;  %v2129_v20 = vmul.f32 0.1, %v2113_v40  ;;  %v2666_v4 = vmul.f32 %v2635_v6, %v4747_v52  ;;  %v2637_v1 = vpop.f32.mrb[9].mxu1  ;;  %v2107_v55 = vmul.f32 %v2088_v63, %v4751_v17  ;;  %v2090_v13 = vpop.f32.mrb[15].mxu0 }
 0x215   :  { %vm2122_vm14 = vcmp.gt.f32.partialorder %v2114_v18, 0.0  ;;  %v2130_v61 = vmul.f32 0.1, %v2114_v18  ;;  %v2667_v38 = vmul.f32 %v2637_v1, %v4747_v52  ;;  %v2108_v3 = vmul.f32 %v2090_v13, %v4751_v17 }
 0x216   :  { %v2137_v45 = vsel %vm2121_vm13, %v2113_v40, %v2129_v20  ;;  %v2674_v59 = vadd.f32 %v2666_v4, %v4753_v28  ;;  %v2115_v10 = vadd.f32 %v2107_v55, %v4783_v35 }
 0x217   :  { %2145 = vst [vmem:[%s4925_s4 + $0xa0] sm:$0xff] %v2137_v45  ;;  %v2138_v24 = vsel %vm2122_vm14, %v2114_v18, %v2130_v61  ;;  %v2675_v42 = vadd.f32 %v2667_v38, %v4753_v28  ;;  %v2116_v43 = vadd.f32 %v2108_v3, %v4783_v35  ;;  %v2641_v62 = vpop.f32.mrb[10].mxu1 }
 0x218   :  { %2146 = vst [vmem:[%s4925_s4 + $0xa8] sm:$0xff] %v2138_v24  ;;  %vm2682_vm15 = vcmp.gt.f32.partialorder %v2674_v59, 0.0  ;;  %v2690_v52 = vmul.f32 0.1, %v2674_v59  ;;  %vm2123_vm0 = vcmp.gt.f32.partialorder %v2115_v10, 0.0  ;;  %v2668_v19 = vmul.f32 %v2641_v62, %v4745_v16  ;;  %v2643_v28 = vpop.f32.mrb[11].mxu1 }
 0x219   :  { %v2131_v46 = vmul.f32 0.1, %v2115_v10  ;;  %vm2683_vm1 = vcmp.gt.f32.partialorder %v2675_v42, 0.0  ;;  %v2691_v8 = vmul.f32 0.1, %v2675_v42  ;;  %vm2124_vm2 = vcmp.gt.f32.partialorder %v2116_v43, 0.0 }
 0x21a   :  { %v2132_v51 = vmul.f32 0.1, %v2116_v43  ;;  %v2698_v50 = vsel %vm2682_vm15, %v2674_v59, %v2690_v52  ;;  %v2669_v29 = vmul.f32 %v2643_v28, %v4745_v16  ;;  %v2676_v21 = vadd.f32 %v2668_v19, %v4759_v48 }
 0x21b   :  { %v2139_v54 = vsel %vm2123_vm0, %v2115_v10, %v2131_v46  ;;  %2706 = vst [vmem:[%s4925_s4 + $0xc0] sm:$0xff] %v2698_v50  ;;  %v2699_v30 = vsel %vm2683_vm1, %v2675_v42, %v2691_v8  ;;  %v2647_v23 = vpop.f32.mrb[12].mxu1 }
 0x21c   :  { %2147 = vst [vmem:[%s4925_s4 + $0xb0] sm:$0xff] %v2139_v54  ;;  %v2140_v49 = vsel %vm2124_vm2, %v2116_v43, %v2132_v51  ;;  %2707 = vst [vmem:[%s4925_s4 + $0xc8] sm:$0xff] %v2699_v30  ;;  %v2670_v31 = vmul.f32 %v2647_v23, %v4749_v60  ;;  %v2649_v12 = vpop.f32.mrb[13].mxu1  ;;  %v2677_v0 = vadd.f32 %v2669_v29, %v4759_v48  ;;  %vm2684_vm3 = vcmp.gt.f32.partialorder %v2676_v21, 0.0 }
 0x21d   :  { %2148 = vst [vmem:[%s4925_s4 + $0xb8] sm:$0xff] %v2140_v49  ;;  %v2671_v33 = vmul.f32 %v2649_v12, %v4749_v60  ;;  %v2692_v16 = vmul.f32 0.1, %v2676_v21 }
 0x21e   :  { %v2678_v34 = vadd.f32 %v2670_v31, %v4768_v22  ;;  %vm2685_vm4 = vcmp.gt.f32.partialorder %v2677_v0, 0.0  ;;  %v2693_v44 = vmul.f32 0.1, %v2677_v0 }
 0x21f   :  { %v2679_v47 = vadd.f32 %v2671_v33, %v4768_v22  ;;  %v2653_v39 = vpop.f32.mrb[14].mxu1  ;;  %v2700_v2 = vsel %vm2684_vm3, %v2676_v21, %v2692_v16 }
 0x220   :  { %vm2686_vm5 = vcmp.gt.f32.partialorder %v2678_v34, 0.0  ;;  %v2694_v25 = vmul.f32 0.1, %v2678_v34  ;;  %v2672_v5 = vmul.f32 %v2653_v39, %v4751_v17  ;;  %v2655_v36 = vpop.f32.mrb[15].mxu1  ;;  %2708 = vst [vmem:[%s4925_s4 + $0xd0] sm:$0xff] %v2700_v2  ;;  %v2701_v60 = vsel %vm2685_vm4, %v2677_v0, %v2693_v44 }
 0x221   :  { %vm2687_vm6 = vcmp.gt.f32.partialorder %v2679_v47, 0.0  ;;  %v2695_v48 = vmul.f32 0.1, %v2679_v47  ;;  %v2673_v27 = vmul.f32 %v2655_v36, %v4751_v17  ;;  %2709 = vst [vmem:[%s4925_s4 + $0xd8] sm:$0xff] %v2701_v60 }
 0x222   :  { %v2702_v22 = vsel %vm2686_vm5, %v2678_v34, %v2694_v25  ;;  %v2680_v37 = vadd.f32 %v2672_v5, %v4783_v35 }
 0x223   :  { %2710 = vst [vmem:[%s4925_s4 + $0xe0] sm:$0xff] %v2702_v22  ;;  %v2703_v32 = vsel %vm2687_vm6, %v2679_v47, %v2695_v48  ;;  %v2681_v57 = vadd.f32 %v2673_v27, %v4783_v35 }
 0x224   :  { %2711 = vst [vmem:[%s4925_s4 + $0xe8] sm:$0xff] %v2703_v32  ;;  %vm2688_vm7 = vcmp.gt.f32.partialorder %v2680_v37, 0.0  ;;  %v2696_v17 = vmul.f32 0.1, %v2680_v37 }
 0x225   :  { %vm2689_vm8 = vcmp.gt.f32.partialorder %v2681_v57, 0.0  ;;  %v2697_v41 = vmul.f32 0.1, %v2681_v57 }
 0x226   :  { %v2704_v9 = vsel %vm2688_vm7, %v2680_v37, %v2696_v17 }
 0x227   :  { %2712 = vst [vmem:[%s4925_s4 + $0xf0] sm:$0xff] %v2704_v9  ;;  %v2705_v26 = vsel %vm2689_vm8, %v2681_v57, %v2697_v41 }
 0x228   :  { %2713 = vst [vmem:[%s4925_s4 + $0xf8] sm:$0xff] %v2705_v26 }

// kernel: generator_forward.8
= control target key start
LH: loop header
LB: loop body
LE: loop exit
PB: predicated region body
PF: predicated region fallthrough
CT: control target
= control target key end

     0   :  { %s6382_s23 = smov 126   ;;  %s6383_s24 = smov 127   ;;  %v8551_v22 = vmov 0.0   ;;  %vm161_vm0 = vcmask 1039360   ;;  %vm1549_vm1 = vcmask 1031168   ;;  %vm210_vm2 = vcmask 261120   ;;  %s8542_s0 = inlined_call_operand.vmem [shape: f32[32,896], index: 0, kind: input, shape index: {}]   ;;  %s8543_s1 = inlined_call_operand.vmem [shape: f32[256,32], index: 1, kind: input, shape index: {}]   ;;  %s8544_s2 = inlined_call_operand.vmem [shape: f32[16,1], index: 2, kind: input, shape index: {}]   ;;  %s8545_s3 = inlined_call_operand.vmem [shape: f32[16,1], index: 3, kind: input, shape index: {}]   ;;  %s8546_s4 = inlined_call_operand.vmem [shape: f32[64,768], index: 4, kind: output, shape index: {}]  }
   0x1   :  { %v6420_v0 = vld [vmem:[%s8542_s0 + $0x8] sm:$0xff]  ;;  %v6425_v1 = vld [vmem:[%s8542_s0 + $0x10] sm:$0xff]  ;;  %v6430_v2 = vld [vmem:[%s8542_s0 + $0x40] sm:$0xff]  ;;  %281 = vmatprep.mubr.f32.mxu0 %v8551_v22  ;;  %1668 = vmatprep.mubr.f32.mxu1 %v8551_v22  ;;  %s6385_s25 = smov 110   ;;  %s6386_s26 = smov 109   ;;  %vm743_vm3 = vcmask 900096  }
   0x2   :  { %v6434_v3 = vpack.i.bf16 %v6425_v1, %v6420_v0  ;;  %v6439_v4 = vld [vmem:[%s8542_s0 + $0x48] sm:$0xff]  ;;  %v6452_v6 = vld [vmem:[%s8542_s0] sm:$0xff]  ;;  %v6457_v7 = vld [vmem:[%s8542_s0 + $0x38] sm:$0xff]  ;;  %s6388_s28 = smov 92   ;;  %s6389_s5 = smov 91   ;;  %vm1099_vm4 = vcmask 891904  }
   0x3   :  { %v6447_v5 = vpack.i.bf16 %v6439_v4, %v6430_v2  ;;  %v6465_v8 = vpack.i.bf16 %v6457_v7, %v6452_v6  ;;  %v6470_v9 = vld [vmem:[%s8542_s0 + $0xb0] sm:$0xff]  ;;  %v6475_v10 = vld [vmem:[%s8542_s0 + $0xb8] sm:$0xff]  ;;  %v6485_v12 = vld [vmem:[%s8542_s0 + $0x80] sm:$0xff]  ;;  %s6390_s22 = smov 90   ;;  %vm2381_vm5 = vcmask 883712   ;;  %vm3643_vm6 = vcmask 744448  }
   0x4   :  { %8577 = vst [vmem:[#allocation2_spill] sm:$0xff] %v6434_v3  ;;  %5819 = vrot.lane.b32.xlu1 %v6434_v3, %s6382_s23  ;;  %5809 = vrot.lane.b32.xlu0 %v6434_v3, %s6383_s24  ;;  %v6480_v11 = vld [vmem:[%s8542_s0 + $0x78] sm:$0xff]  ;;  %v6493_v13 = vpack.i.bf16 %v6475_v10, %v6470_v9  ;;  %v6506_v15 = vld [vmem:[%s8542_s0 + $0x70] sm:$0xff]  ;;  %vm3287_vm7 = vcmask 752640   ;;  %vm4800_vm8 = vcmask 736256  }
   0x5   :  { %8578 = vst [vmem:[#allocation3_spill] sm:$0xff] %v6447_v5  ;;  %8579 = vst [vmem:[#allocation4_spill] sm:$0xff] %v6465_v8  ;;  %v6497_v14 = vpack.i.bf16 %v6485_v12, %v6480_v11  ;;  %v6511_v16 = vld [vmem:[%s8542_s0 + $0xa8] sm:$0xff]  ;;  %v6524_v18 = vld [vmem:[%s8542_s0 + $0x50] sm:$0xff] }
   0x6   :  { %v6519_v17 = vpack.i.bf16 %v6511_v16, %v6506_v15  ;;  %v6529_v19 = vld [vmem:[%s8542_s0 + $0x58] sm:$0xff]  ;;  %v6539_v21 = vld [vmem:[%s8542_s0 + $0x20] sm:$0xff]  ;;  %v70_v26 = vld [vmem:[%s8542_s0 + $0xc8] sm:$0xff] }
   0x7   :  { %8580 = vst [vmem:[#allocation5_spill] sm:$0xff] %v6529_v19  ;;  %v6534_v20 = vld [vmem:[%s8542_s0 + $0x18] sm:$0xff]  ;;  %v6549_v23 = vpack.i.bf16 %v6529_v19, %v6524_v18  ;;  %v6562_v25 = vld [vmem:[%s8542_s0 + $0xc0] sm:$0xff]  ;;  %v6570_v27 = vld [vmem:[%s8542_s0 + $0x88] sm:$0xff] }
   0x8   :  { %5824 = vrot.lane.b32.xlu1 %v6447_v5, %s6382_s23  ;;  %5814 = vrot.lane.b32.xlu0 %v6447_v5, %s6383_s24  ;;  %v6553_v24 = vpack.i.bf16 %v6539_v21, %v6534_v20  ;;  %v63_v28 = vld [vmem:[%s8542_s0 + $0x90] sm:$0xff]  ;;  %v6580_v29 = vpack.i.bf16 %v70_v26, %v6562_v25  ;;  %v6592_v31 = vld [vmem:[%s8542_s0 + $0x60] sm:$0xff] }
   0x9   :  { %v6583_v30 = vpack.i.bf16 %v63_v28, %v6570_v27  ;;  %v58_v32 = vld [vmem:[%s8542_s0 + $0x68] sm:$0xff]  ;;  %v51_v34 = vld [vmem:[%s8542_s0 + $0x30] sm:$0xff]  ;;  %v72_v38 = vld [vmem:[%s8542_s0 + $0xd8] sm:$0xff] }
   0xa   :  { %v6600_v33 = vld [vmem:[%s8542_s0 + $0x28] sm:$0xff]  ;;  %v6610_v35 = vpack.i.bf16 %v58_v32, %v6592_v31  ;;  %v6622_v37 = vld [vmem:[%s8542_s0 + $0xd0] sm:$0xff]  ;;  %v6630_v39 = vld [vmem:[%s8542_s0 + $0x98] sm:$0xff] }
   0xb   :  { %v6613_v36 = vpack.i.bf16 %v51_v34, %v6600_v33  ;;  %8581 = vst [vmem:[#allocation6_spill] sm:$0xff] %v6622_v37  ;;  %8582 = vst [vmem:[#allocation7_spill] sm:$0xff] %v6630_v39  ;;  %v65_v40 = vld [vmem:[%s8542_s0 + $0xa0] sm:$0xff]  ;;  %v6640_v41 = vpack.i.bf16 %v72_v38, %v6622_v37 }
   0xc   :  { %5834 = vrot.lane.b32.xlu1 %v6465_v8, %s6382_s23  ;;  %5829 = vrot.lane.b32.xlu0 %v6465_v8, %s6383_s24  ;;  %v6643_v42 = vpack.i.bf16 %v65_v40, %v6630_v39 }
   0xd   :  { %8583 = vst [vmem:[#allocation8_spill] sm:$0xff] %v6640_v41 }
   0xe   :  { %8584 = vst [vmem:[#allocation9_spill] sm:$0xff] %v6643_v42 }
  0x10   :  { %5844 = vrot.lane.b32.xlu1 %v6493_v13, %s6383_s24  ;;  %5839 = vrot.lane.b32.xlu0 %v6497_v14, %s6383_s24 }
  0x14   :  { %5854 = vrot.lane.b32.xlu1 %v6493_v13, %s6382_s23  ;;  %5849 = vrot.lane.b32.xlu0 %v6497_v14, %s6382_s23 }
  0x18   :  { %5864 = vrot.lane.b32.xlu1 %v6519_v17, %s6382_s23  ;;  %5859 = vrot.lane.b32.xlu0 %v6519_v17, %s6383_s24 }
  0x1c   :  { %5874 = vrot.lane.b32.xlu1 %v6549_v23, %s6383_s24  ;;  %5869 = vrot.lane.b32.xlu0 %v6553_v24, %s6383_s24 }
  0x20   :  { %5884 = vrot.lane.b32.xlu1 %v6549_v23, %s6382_s23  ;;  %5879 = vrot.lane.b32.xlu0 %v6553_v24, %s6382_s23 }
  0x24   :  { %5894 = vrot.lane.b32.xlu1 %v6580_v29, %s6383_s24  ;;  %5889 = vrot.lane.b32.xlu0 %v6583_v30, %s6383_s24 }
  0x28   :  { %5904 = vrot.lane.b32.xlu1 %v6580_v29, %s6382_s23  ;;  %5899 = vrot.lane.b32.xlu0 %v6583_v30, %s6382_s23 }
  0x2c   :  { %5914 = vrot.lane.b32.xlu1 %v6610_v35, %s6383_s24  ;;  %5909 = vrot.lane.b32.xlu0 %v6613_v36, %s6383_s24 }
  0x30   :  { %5924 = vrot.lane.b32.xlu1 %v6610_v35, %s6382_s23  ;;  %5919 = vrot.lane.b32.xlu0 %v6613_v36, %s6382_s23 }
  0x34   :  { %5934 = vrot.lane.b32.xlu1 %v6640_v41, %s6383_s24  ;;  %5929 = vrot.lane.b32.xlu0 %v6643_v42, %s6383_s24 }
  0x38   :  { %5944 = vrot.lane.b32.xlu1 %v6640_v41, %s6382_s23  ;;  %5939 = vrot.lane.b32.xlu0 %v6643_v42, %s6382_s23  ;;  %s6387_s23 = smov 108  }
  0x3c   :  { %5954 = vrot.lane.b32.xlu1 %v6447_v5, %s6385_s25  ;;  %5949 = vrot.lane.b32.xlu0 %v6434_v3, %s6385_s25 }
  0x40   :  { %5964 = vrot.lane.b32.xlu1 %v6447_v5, %s6386_s26  ;;  %5959 = vrot.lane.b32.xlu0 %v6434_v3, %s6386_s26 }
  0x44   :  { %5974 = vrot.lane.b32.xlu1 %v6465_v8, %s6386_s26  ;;  %5969 = vrot.lane.b32.xlu0 %v6465_v8, %s6385_s25 }
  0x48   :  { %5984 = vrot.lane.b32.xlu1 %v6493_v13, %s6385_s25  ;;  %5979 = vrot.lane.b32.xlu0 %v6497_v14, %s6385_s25 }
  0x4c   :  { %5994 = vrot.lane.b32.xlu1 %v6493_v13, %s6386_s26  ;;  %5989 = vrot.lane.b32.xlu0 %v6497_v14, %s6386_s26 }
  0x50   :  { %6004 = vrot.lane.b32.xlu1 %v6519_v17, %s6386_s26  ;;  %5999 = vrot.lane.b32.xlu0 %v6519_v17, %s6385_s25 }
  0x54   :  { %6014 = vrot.lane.b32.xlu1 %v6549_v23, %s6385_s25  ;;  %6009 = vrot.lane.b32.xlu0 %v6553_v24, %s6385_s25 }
  0x58   :  { %6024 = vrot.lane.b32.xlu1 %v6549_v23, %s6386_s26  ;;  %6019 = vrot.lane.b32.xlu0 %v6553_v24, %s6386_s26 }
  0x5c   :  { %6034 = vrot.lane.b32.xlu1 %v6580_v29, %s6385_s25  ;;  %6029 = vrot.lane.b32.xlu0 %v6583_v30, %s6385_s25 }
  0x60   :  { %6044 = vrot.lane.b32.xlu1 %v6580_v29, %s6386_s26  ;;  %6039 = vrot.lane.b32.xlu0 %v6583_v30, %s6386_s26 }
  0x64   :  { %6054 = vrot.lane.b32.xlu1 %v6610_v35, %s6385_s25  ;;  %6049 = vrot.lane.b32.xlu0 %v6613_v36, %s6385_s25 }
  0x68   :  { %6064 = vrot.lane.b32.xlu1 %v6610_v35, %s6386_s26  ;;  %6059 = vrot.lane.b32.xlu0 %v6613_v36, %s6386_s26 }
  0x6c   :  { %6074 = vrot.lane.b32.xlu1 %v6640_v41, %s6385_s25  ;;  %6069 = vrot.lane.b32.xlu0 %v6643_v42, %s6385_s25 }
  0x70   :  { %6084 = vrot.lane.b32.xlu1 %v6640_v41, %s6386_s26  ;;  %6079 = vrot.lane.b32.xlu0 %v6643_v42, %s6386_s26 }
  0x74   :  { %6094 = vrot.lane.b32.xlu1 %v6447_v5, %s6387_s23  ;;  %6089 = vrot.lane.b32.xlu0 %v6434_v3, %s6387_s23 }
  0x76   :  { %v6685_v43 = vpop.permute.xlu1 %5819  ;;  %v6687_v44 = vpop.permute.xlu0 %5809 }
  0x77   :  { %v8547_v45 = vunpack.i.h.bf16 %v6685_v43  ;;  %v5821_v46 = vunpack.i.l.bf16 %v6685_v43  ;;  %v8554_v47 = vunpack.i.h.bf16 %v6687_v44  ;;  %v5811_v48 = vunpack.i.l.bf16 %v6687_v44 }
  0x78   :  { %6104 = vrot.lane.b32.xlu1 %v6497_v14, %s6387_s23  ;;  %6099 = vrot.lane.b32.xlu0 %v6465_v8, %s6387_s23 }
  0x79   :  { %v163_v55 = vsel %vm161_vm0, %v5811_v48, %v8554_v47  ;;  %v1551_v57 = vsel %vm1549_vm1, %v5821_v46, %v8547_v45 }
  0x7a   :  { %v6697_v49 = vpop.permute.xlu1 %5824  ;;  %v6699_v50 = vpop.permute.xlu0 %5814 }
  0x7b   :  { %v8550_v51 = vunpack.i.h.bf16 %v6697_v49  ;;  %v5826_v52 = vunpack.i.l.bf16 %v6697_v49  ;;  %v8556_v53 = vunpack.i.h.bf16 %v6699_v50  ;;  %v5816_v54 = vunpack.i.l.bf16 %v6699_v50 }
  0x7c   :  { %6114 = vrot.lane.b32.xlu1 %v6519_v17, %s6387_s23  ;;  %6109 = vrot.lane.b32.xlu0 %v6493_v13, %s6387_s23 }
  0x7d   :  { %v169_v56 = vsel %vm161_vm0, %v5816_v54, %v8556_v53  ;;  %v1557_v58 = vsel %vm1549_vm1, %v5826_v52, %v8550_v51 }
  0x7e   :  { %v5835_v59 = vpop.permute.xlu1 %5834  ;;  %v5830_v60 = vpop.permute.xlu0 %5829  ;;  %v6721_v61 = vpack.c.bf16 %v169_v56, %v163_v55  ;;  %v5366_v62 = vpack.c.bf16 %v1557_v58, %v1551_v57 }
  0x7f   :  { %v5837_v63 = vunpack.i.h.bf16 %v5835_v59  ;;  %v5836_v26 = vunpack.i.l.bf16 %v5835_v59  ;;  %v5832_v28 = vunpack.i.h.bf16 %v5830_v60  ;;  %v5831_v32 = vunpack.i.l.bf16 %v5830_v60 }
  0x80   :  { %5271 = vmatprep.subr.bf16.mxu0 %v6721_v61  ;;  %5367 = vmatprep.subr.bf16.mxu1 %v5366_v62 }
  0x81   :  { %6124 = vrot.lane.b32.xlu1 %v6549_v23, %s6387_s23  ;;  %6119 = vrot.lane.b32.xlu0 %v6553_v24, %s6387_s23  ;;  %v1550_v34 = vsel %vm1549_vm1, %v5836_v26, %v5821_v46  ;;  %v1556_v38 = vsel %vm1549_vm1, %v5837_v63, %v5826_v52  ;;  %v162_v40 = vsel %vm161_vm0, %v5831_v32, %v5811_v48 }
  0x82   :  { %v6731_v55 = vpop.permute.xlu1 %5844  ;;  %v6733_v56 = vpop.permute.xlu0 %5839  ;;  %v5368_v57 = vpack.c.bf16 %v1556_v38, %v1550_v34  ;;  %v168_v58 = vsel %vm161_vm0, %v5832_v28, %v5816_v54 }
  0x83   :  { %v8549_v59 = vunpack.i.h.bf16 %v6731_v55  ;;  %v5846_v60 = vunpack.i.l.bf16 %v6731_v55  ;;  %v8548_v62 = vunpack.i.h.bf16 %v6733_v56  ;;  %v5841_v45 = vunpack.i.l.bf16 %v6733_v56 }
  0x84   :  { %5369 = vmatpush1.bf16.msra.mxu1 %v5368_v57  ;;  %v6740_v46 = vpack.c.bf16 %v168_v58, %v162_v40 }
  0x85   :  { %6134 = vrot.lane.b32.xlu1 %v6580_v29, %s6387_s23  ;;  %6129 = vrot.lane.b32.xlu0 %v6583_v30, %s6387_s23  ;;  %v175_v48 = vsel %vm161_vm0, %v5841_v45, %v8548_v62  ;;  %v181_v52 = vsel %vm161_vm0, %v5846_v60, %v8549_v59 }
  0x86   :  { %5273 = vmatpush1.bf16.msra.mxu0 %v6740_v46  ;;  %v6753_v54 = vpop.permute.xlu1 %5854  ;;  %v6755_v63 = vpop.permute.xlu0 %5849  ;;  %v6757_v26 = vpack.c.bf16 %v181_v52, %v175_v48 }
  0x87   :  { %v8555_v28 = vunpack.i.h.bf16 %v6753_v54  ;;  %v5856_v32 = vunpack.i.l.bf16 %v6753_v54  ;;  %v8553_v34 = vunpack.i.h.bf16 %v6755_v63  ;;  %v5851_v38 = vunpack.i.l.bf16 %v6755_v63 }
  0x88   :  { %5275 = vmatprep.subr.bf16.mxu0 %v6757_v26 }
  0x89   :  { %6144 = vrot.lane.b32.xlu1 %v6610_v35, %s6387_s23  ;;  %6139 = vrot.lane.b32.xlu0 %v6613_v36, %s6387_s23  ;;  %v1563_v40 = vsel %vm1549_vm1, %v5851_v38, %v8553_v34  ;;  %v1569_v57 = vsel %vm1549_vm1, %v5856_v32, %v8555_v28 }
  0x8a   :  { %v5865_v58 = vpop.permute.xlu1 %5864  ;;  %v5860_v48 = vpop.permute.xlu0 %5859  ;;  %v5370_v52 = vpack.c.bf16 %v1569_v57, %v1563_v40 }
  0x8b   :  { %v5867_v62 = vunpack.i.h.bf16 %v5865_v58  ;;  %v5866_v59 = vunpack.i.l.bf16 %v5865_v58  ;;  %v5862_v51 = vunpack.i.h.bf16 %v5860_v48  ;;  %v5861_v22 = vunpack.i.l.bf16 %v5860_v48 }
  0x8c   :  { %5371 = vmatprep.subr.bf16.mxu1 %v5370_v52 }
  0x8d   :  { %6154 = vrot.lane.b32.xlu1 %v6640_v41, %s6387_s23  ;;  %6149 = vrot.lane.b32.xlu0 %v6643_v42, %s6387_s23  ;;  %v174_v34 = vsel %vm161_vm0, %v5861_v22, %v5841_v45  ;;  %v180_v47 = vsel %vm161_vm0, %v5862_v51, %v5846_v60  ;;  %v1562_v28 = vsel %vm1549_vm1, %v5866_v59, %v5851_v38  ;;  %v6796_v51 = vld [vmem:[%s8543_s1 + $0x10] sm:$0xff]  ;;  %v8586_v60 = vunpack.i.h.bf16 %v6687_v44 }
  0x8e   :  { %v6781_v53 = vpop.permute.xlu1 %5874  ;;  %v6783_v40 = vpop.permute.xlu0 %5869  ;;  %v6785_v57 = vpack.c.bf16 %v180_v47, %v174_v34  ;;  %v1568_v58 = vsel %vm1549_vm1, %v5867_v62, %v5856_v32  ;;  %v8585_v47 = vunpack.i.h.bf16 %v6699_v50 }
  0x8f   :  { %v8560_v48 = vunpack.i.h.bf16 %v6781_v53  ;;  %v5876_v52 = vunpack.i.l.bf16 %v6781_v53  ;;  %v8559_v42 = vunpack.i.h.bf16 %v6783_v40  ;;  %v5871_v22 = vunpack.i.l.bf16 %v6783_v40 }
  0x90   :  { %5277 = vmatpush1.bf16.msra.mxu0 %v6785_v57  ;;  %v5372_v45 = vpack.c.bf16 %v1568_v58, %v1562_v28 }
  0x91   :  { %v170_v59 = vsel %vm161_vm0, %v8585_v47, %v5876_v52  ;;  %v164_v62 = vsel %vm161_vm0, %v8586_v60, %v5871_v22  ;;  %6164 = vrot.lane.b32.xlu1 %v6447_v5, %s6388_s28  ;;  %6159 = vrot.lane.b32.xlu0 %v6434_v3, %s6388_s28  ;;  %v165_v28 = vsel %vm161_vm0, %v5871_v22, %v8559_v42  ;;  %v6829_v22 = vld [vmem:[%s8543_s1 + $0x50] sm:$0xff]  ;;  %v8590_v42 = vunpack.i.h.bf16 %v6685_v43 }
  0x92   :  { %5373 = vmatpush1.bf16.msra.mxu1 %v5372_v45  ;;  %v6811_v32 = vpop.permute.xlu1 %5884  ;;  %v6813_v50 = vpop.permute.xlu0 %5879  ;;  %v171_v44 = vsel %vm161_vm0, %v5876_v52, %v8560_v48  ;;  %v6818_v34 = vpack.c.bf16 %v170_v59, %v164_v62  ;;  %v8588_v52 = vmov 0.0   ;;  %v8589_v59 = vunpack.i.h.bf16 %v6697_v49  ;;  %v6850_v49 = vld [vmem:[%s8543_s1 + $0x18] sm:$0xff] }
  0x93   :  { %v8566_v38 = vunpack.i.h.bf16 %v6811_v32  ;;  %v5886_v58 = vunpack.i.l.bf16 %v6811_v32  ;;  %v8561_v47 = vunpack.i.h.bf16 %v6813_v50  ;;  %v5881_v60 = vunpack.i.l.bf16 %v6813_v50  ;;  %5174 = vmatmul.mubr.msk.f32.vlgmr.msra.gmra.mrb[0].mxu0 %vm210_vm2, %v6796_v51 }
  0x94   :  { %8587 = vst [vmem:[#allocation10_spill] sm:$0xff] %v6818_v34  ;;  %v6831_v45 = vpack.c.bf16 %v171_v44, %v165_v28  ;;  %287 = vmatprep.mubr.f32.mxu0 %v8588_v52 }
  0x95   :  { %v1558_v62 = vsel %vm1549_vm1, %v8589_v59, %v5886_v58  ;;  %v1552_v48 = vsel %vm1549_vm1, %v8590_v42, %v5881_v60  ;;  %6174 = vrot.lane.b32.xlu1 %v6447_v5, %s6389_s5  ;;  %6169 = vrot.lane.b32.xlu0 %v6434_v3, %s6389_s5  ;;  %v1553_v28 = vsel %vm1549_vm1, %v5881_v60, %v8561_v47 }
  0x96   :  { %5279 = vmatprep.subr.bf16.mxu0 %v6831_v45  ;;  %v6853_v43 = vpop.permute.xlu1 %5894  ;;  %v6855_v42 = vpop.permute.xlu0 %5889  ;;  %v1559_v44 = vsel %vm1549_vm1, %v5886_v58, %v8566_v38  ;;  %5198 = vmatmul.mubr.msk.f32.vlgmr.msra.gmra.mrb[0].mxu1 %vm210_vm2, %v6829_v22  ;;  %v5376_v59 = vpack.c.bf16 %v1558_v62, %v1552_v48  ;;  %v8591_v58 = vunpack.i.h.bf16 %v6731_v55  ;;  %v8592_v62 = vunpack.i.h.bf16 %v6733_v56  ;;  %v6886_v55 = vld [vmem:[%s8543_s1 + $0x58] sm:$0xff] }
  0x97   :  { %5281 = vmatpush1.bf16.msra.mxu0 %v6818_v34  ;;  %v8570_v60 = vunpack.i.h.bf16 %v6853_v43  ;;  %v5896_v47 = vunpack.i.l.bf16 %v6853_v43  ;;  %v8567_v3 = vunpack.i.h.bf16 %v6855_v42  ;;  %v5891_v5 = vunpack.i.l.bf16 %v6855_v42  ;;  %1674 = vmatprep.mubr.f32.mxu1 %v8588_v52 }
  0x98   :  { %v5374_v41 = vpack.c.bf16 %v1559_v44, %v1553_v28  ;;  %5175 = vmatmul.mubr.msk.f32.gmra.mrb[2].mxu0 %vm210_vm2, %v6850_v49 }
  0x99   :  { %v182_v48 = vsel %vm161_vm0, %v8591_v58, %v5896_v47  ;;  %v176_v38 = vsel %vm161_vm0, %v8592_v62, %v5891_v5  ;;  %6184 = vrot.lane.b32.xlu1 %v6465_v8, %s6389_s5  ;;  %6179 = vrot.lane.b32.xlu0 %v6465_v8, %s6388_s28  ;;  %v177_v28 = vsel %vm161_vm0, %v5891_v5, %v8567_v3 }
  0x9a   :  { %5375 = vmatprep.subr.bf16.mxu1 %v5374_v41  ;;  %v6888_v44 = vpop.permute.xlu1 %5904  ;;  %v6890_v56 = vpop.permute.xlu0 %5899  ;;  %v183_v58 = vsel %vm161_vm0, %v5896_v47, %v8570_v60  ;;  %v6895_v62 = vpack.c.bf16 %v182_v48, %v176_v38  ;;  %358 = vmatprep.mubr.f32.mxu0 %v8588_v52  ;;  %v8593_v47 = vunpack.i.h.bf16 %v6753_v54  ;;  %v8594_v48 = vunpack.i.h.bf16 %v6755_v63 }
  0x9b   :  { %5377 = vmatpush1.bf16.msra.mxu1 %v5376_v59  ;;  %v8575_v5 = vunpack.i.h.bf16 %v6888_v44  ;;  %v5906_v3 = vunpack.i.l.bf16 %v6888_v44  ;;  %v8574_v8 = vunpack.i.h.bf16 %v6890_v56  ;;  %v5901_v41 = vunpack.i.l.bf16 %v6890_v56 }
  0x9c   :  { %v6902_v34 = vpack.c.bf16 %v183_v58, %v177_v28  ;;  %5199 = vmatmul.mubr.msk.f32.gmra.mrb[2].mxu1 %vm210_vm2, %v6886_v55 }
  0x9d   :  { %v1570_v38 = vsel %vm1549_vm1, %v8593_v47, %v5906_v3  ;;  %v1564_v59 = vsel %vm1549_vm1, %v8594_v48, %v5901_v41  ;;  %6194 = vrot.lane.b32.xlu1 %v6493_v13, %s6388_s28  ;;  %6189 = vrot.lane.b32.xlu0 %v6497_v14, %s6388_s28  ;;  %v1565_v28 = vsel %vm1549_vm1, %v5901_v41, %v8574_v8  ;;  %v8595_v41 = vunpack.i.h.bf16 %v6781_v53 }
  0x9e   :  { %v5380_v58 = vpack.c.bf16 %v1570_v38, %v1564_v59  ;;  %5283 = vmatprep.subr.bf16.mxu0 %v6902_v34  ;;  %v5915_v54 = vpop.permute.xlu1 %5914  ;;  %v5910_v60 = vpop.permute.xlu0 %5909  ;;  %v1571_v63 = vsel %vm1549_vm1, %v5906_v3, %v8575_v5  ;;  %1745 = vmatprep.mubr.f32.mxu1 %v8588_v52  ;;  %v8596_v59 = vunpack.i.h.bf16 %v6783_v40 }
  0x9f   :  { %5285 = vmatpush1.bf16.msra.mxu0 %v6895_v62  ;;  %v5917_v47 = vunpack.i.h.bf16 %v5915_v54  ;;  %v5916_v48 = vunpack.i.l.bf16 %v5915_v54  ;;  %v5912_v37 = vunpack.i.h.bf16 %v5910_v60  ;;  %v5911_v39 = vunpack.i.l.bf16 %v5910_v60 }
  0xa0   :  { %v5378_v19 = vpack.c.bf16 %v1571_v63, %v1565_v28 }
  0xa1   :  { %v172_v38 = vsel %vm161_vm0, %v8595_v41, %v5916_v48  ;;  %v166_v8 = vsel %vm161_vm0, %v8596_v59, %v5911_v39  ;;  %6204 = vrot.lane.b32.xlu1 %v6493_v13, %s6389_s5  ;;  %6199 = vrot.lane.b32.xlu0 %v6497_v14, %s6389_s5  ;;  %v167_v3 = vsel %vm161_vm0, %v5911_v39, %v5912_v37  ;;  %v8598_v37 = vunpack.i.h.bf16 %v6813_v50 }
  0xa2   :  { %v6936_v54 = vpack.c.bf16 %v172_v38, %v166_v8  ;;  %5379 = vmatprep.subr.bf16.mxu1 %v5378_v19  ;;  %v5925_v60 = vpop.permute.xlu1 %5924  ;;  %v5920_v28 = vpop.permute.xlu0 %5919  ;;  %v173_v53 = vsel %vm161_vm0, %v5916_v48, %v5917_v47  ;;  %5176 = vmatmul.mubr.msk.f32.vlgmr.msra.gmra.mrb[4].mxu0 %vm210_vm2, %v6796_v51  ;;  %v8597_v8 = vunpack.i.h.bf16 %v6811_v32 }
  0xa3   :  { %5381 = vmatpush1.bf16.msra.mxu1 %v5380_v58  ;;  %v5927_v40 = vunpack.i.h.bf16 %v5925_v60  ;;  %v5926_v63 = vunpack.i.l.bf16 %v5925_v60  ;;  %v5922_v41 = vunpack.i.h.bf16 %v5920_v28  ;;  %v5921_v59 = vunpack.i.l.bf16 %v5920_v28  ;;  %364 = vmatprep.mubr.f32.mxu0 %v8588_v52 }
  0xa4   :  { %v6942_v5 = vpack.c.bf16 %v173_v53, %v167_v3 }
  0xa5   :  { %v1560_v19 = vsel %vm1549_vm1, %v8597_v8, %v5926_v63  ;;  %v1554_v39 = vsel %vm1549_vm1, %v8598_v37, %v5921_v59  ;;  %6214 = vrot.lane.b32.xlu1 %v6519_v17, %s6389_s5  ;;  %6209 = vrot.lane.b32.xlu0 %v6519_v17, %s6388_s28  ;;  %v1555_v58 = vsel %vm1549_vm1, %v5921_v59, %v5922_v41  ;;  %v8599_v41 = vunpack.i.h.bf16 %v6853_v43 }
  0xa6   :  { %v5384_v47 = vpack.c.bf16 %v1560_v19, %v1554_v39  ;;  %5287 = vmatprep.subr.bf16.mxu0 %v6942_v5  ;;  %v5935_v48 = vpop.permute.xlu1 %5934  ;;  %v5930_v38 = vpop.permute.xlu0 %5929  ;;  %v1561_v32 = vsel %vm1549_vm1, %v5926_v63, %v5927_v40  ;;  %5200 = vmatmul.mubr.msk.f32.vlgmr.msra.gmra.mrb[4].mxu1 %vm210_vm2, %v6829_v22  ;;  %v8600_v40 = vunpack.i.h.bf16 %v6855_v42 }
  0xa7   :  { %5289 = vmatpush1.bf16.msra.mxu0 %v6936_v54  ;;  %v5937_v50 = vunpack.i.h.bf16 %v5935_v48  ;;  %v5936_v3 = vunpack.i.l.bf16 %v5935_v48  ;;  %v5932_v60 = vunpack.i.h.bf16 %v5930_v38  ;;  %v5931_v28 = vunpack.i.l.bf16 %v5930_v38  ;;  %1751 = vmatprep.mubr.f32.mxu1 %v8588_v52 }
  0xa8   :  { %v5382_v53 = vpack.c.bf16 %v1561_v32, %v1555_v58  ;;  %5177 = vmatmul.mubr.msk.f32.gmra.mrb[6].mxu0 %vm210_vm2, %v6850_v49 }
  0xa9   :  { %v184_v59 = vsel %vm161_vm0, %v8599_v41, %v5936_v3  ;;  %v178_v63 = vsel %vm161_vm0, %v8600_v40, %v5931_v28  ;;  %6224 = vrot.lane.b32.xlu1 %v6549_v23, %s6388_s28  ;;  %6219 = vrot.lane.b32.xlu0 %v6553_v24, %s6388_s28  ;;  %v179_v8 = vsel %vm161_vm0, %v5931_v28, %v5932_v60  ;;  %v8601_v60 = vunpack.i.h.bf16 %v6888_v44 }
  0xaa   :  { %v6974_v19 = vpack.c.bf16 %v184_v59, %v178_v63  ;;  %5383 = vmatprep.subr.bf16.mxu1 %v5382_v53  ;;  %v5945_v37 = vpop.permute.xlu1 %5944  ;;  %v5940_v39 = vpop.permute.xlu0 %5939  ;;  %v185_v43 = vsel %vm161_vm0, %v5936_v3, %v5937_v50  ;;  %435 = vmatprep.mubr.f32.mxu0 %v8588_v52  ;;  %v5294_v41 = vpack.c.bf16 %v6430_v2, %v6420_v0  ;;  %v8602_v50 = vunpack.i.h.bf16 %v6890_v56 }
  0xab   :  { %5385 = vmatpush1.bf16.msra.mxu1 %v5384_v47  ;;  %v5947_v42 = vunpack.i.h.bf16 %v5945_v37  ;;  %v5946_v58 = vunpack.i.l.bf16 %v5945_v37  ;;  %v5942_v48 = vunpack.i.h.bf16 %v5940_v39  ;;  %v5941_v38 = vunpack.i.l.bf16 %v5940_v39 }
  0xac   :  { %v6978_v32 = vpack.c.bf16 %v185_v43, %v179_v8  ;;  %5201 = vmatmul.mubr.msk.f32.gmra.mrb[6].mxu1 %vm210_vm2, %v6886_v55  ;;  %v5296_v53 = vpack.c.bf16 %v6457_v7, %v6452_v6  ;;  %v5298_v8 = vpack.c.bf16 %v6470_v9, %v6480_v11  ;;  %v5300_v6 = vpack.c.bf16 %v6511_v16, %v6506_v15  ;;  %v7041_v15 = vld [vmem:[%s8543_s1] sm:$0xff] }
  0xad   :  { %v1572_v28 = vsel %vm1549_vm1, %v8601_v60, %v5946_v58  ;;  %v1566_v47 = vsel %vm1549_vm1, %v8602_v50, %v5941_v38  ;;  %6234 = vrot.lane.b32.xlu1 %v6549_v23, %s6389_s5  ;;  %6229 = vrot.lane.b32.xlu0 %v6553_v24, %s6389_s5  ;;  %v1567_v3 = vsel %vm1549_vm1, %v5941_v38, %v5942_v48  ;;  %v7132_v60 = vld [vmem:[%s8543_s1 + $0x48] sm:$0xff] }
  0xae   :  { %5291 = vmatprep.subr.bf16.mxu0 %v6978_v32  ;;  %v6996_v0 = vpop.permute.xlu1 %5954  ;;  %v6998_v2 = vpop.permute.xlu0 %5949  ;;  %v1573_v44 = vsel %vm1549_vm1, %v5946_v58, %v5947_v42  ;;  %1822 = vmatprep.mubr.f32.mxu1 %v8588_v52  ;;  %v5388_v56 = vpack.c.bf16 %v1572_v28, %v1566_v47  ;;  %v5302_v11 = vpack.c.bf16 %v6524_v18, %v6534_v20 }
  0xaf   :  { %5293 = vmatpush1.bf16.msra.mxu0 %v6974_v19  ;;  %v5386_v59 = vpack.c.bf16 %v1573_v44, %v1567_v3  ;;  %v5304_v16 = vpack.c.bf16 %v6439_v4, %v6425_v1  ;;  %v5306_v1 = vpack.c.bf16 %v6562_v25, %v6570_v27  ;;  %v5308_v4 = vpack.c.bf16 %v6475_v10, %v6485_v12  ;;  %v7083_v10 = vld [vmem:[%s8543_s1 + $0x8] sm:$0xff]  ;;  %v7088_v12 = vld [vmem:[%s8543_s1 + $0x40] sm:$0xff]  ;;  %v8608_v3 = vld [vmem:[#allocation9_spill] sm:$0xff] }
  0xb0   :  { %5295 = vmatprep.subr.bf16.mxu0 %v5294_v41  ;;  %v5956_v25 = vunpack.i.l.bf16 %v6996_v0  ;;  %v5952_v27 = vunpack.i.h.bf16 %v6998_v2  ;;  %v8607_v41 = vld [vmem:[#allocation8_spill] sm:$0xff] }
  0xb1   :  { %6244 = vrot.lane.b32.xlu1 %v6580_v29, %s6388_s28  ;;  %6239 = vrot.lane.b32.xlu0 %v6583_v30, %s6388_s28 }
  0xb2   :  { %5387 = vmatprep.subr.bf16.mxu1 %v5386_v59  ;;  %5178 = vmatmul.mubr.msk.f32.vlgmr.msra.gmra.mrb[8].mxu0 %vm210_vm2, %v6796_v51  ;;  %v7011_v40 = vpop.permute.xlu1 %5964  ;;  %v7013_v63 = vpop.permute.xlu0 %5959  ;;  %v8603_v51 = vld [vmem:[#allocation5_spill] sm:$0xff] }
  0xb3   :  { %5297 = vmatpush1.bf16.msra.mxu0 %v5296_v53  ;;  %5389 = vmatpush1.bf16.msra.mxu1 %v5388_v56  ;;  %v5966_v42 = vunpack.i.l.bf16 %v7011_v40  ;;  %v5962_v58 = vunpack.i.h.bf16 %v7013_v63  ;;  %v5961_v48 = vunpack.i.l.bf16 %v7013_v63 }
  0xb4   :  { %5391 = vmatprep.subr.bf16.mxu1 %v6721_v61  ;;  %441 = vmatprep.mubr.f32.mxu0 %v8588_v52  ;;  %v5957_v61 = vunpack.i.h.bf16 %v6996_v0 }
  0xb5   :  { %6254 = vrot.lane.b32.xlu1 %v6580_v29, %s6389_s5  ;;  %6249 = vrot.lane.b32.xlu0 %v6583_v30, %s6389_s5  ;;  %v7066_v29 = vld [vmem:[%s8542_s0 + $0x90] sm:$0xff]  ;;  %v7071_v30 = vld [vmem:[%s8542_s0 + $0xc8] sm:$0xff] }
  0xb6   :  { %5299 = vmatprep.subr.bf16.mxu0 %v5298_v8  ;;  %5179 = vmatmul.mubr.msk.f32.gmra.mrb[10].mxu0 %vm210_vm2, %v6850_v49  ;;  %v7027_v7 = vpop.permute.xlu1 %5974  ;;  %v7029_v9 = vpop.permute.xlu0 %5969  ;;  %v8605_v49 = vld [vmem:[#allocation6_spill] sm:$0xff]  ;;  %v5316_v37 = vpack.c.bf16 %v7071_v30, %v7066_v29  ;;  %v751_v43 = vsel %vm743_vm3, %v5956_v25, %v5957_v61 }
  0xb7   :  { %5301 = vmatpush1.bf16.msra.mxu0 %v5300_v6  ;;  %5202 = vmatmul.mubr.msk.f32.vlgmr.msra.gmra.mrb[8].mxu1 %vm210_vm2, %v6829_v22  ;;  %v5312_v22 = vpack.c.bf16 %v8603_v51, %v6539_v21  ;;  %v5976_v38 = vunpack.i.l.bf16 %v7027_v7  ;;  %v5977_v28 = vunpack.i.h.bf16 %v7027_v7  ;;  %v5972_v50 = vunpack.i.h.bf16 %v7029_v9 }
  0xb8   :  { %5393 = vmatpush1.bf16.msra.mxu1 %v6740_v46  ;;  %518 = vmatprep.mubr.f32.mxu0 %v8588_v52  ;;  %v5951_v46 = vunpack.i.l.bf16 %v6998_v2  ;;  %v5971_v47 = vunpack.i.l.bf16 %v7029_v9  ;;  %v1101_v9 = vsel %vm1099_vm4, %v5961_v48, %v5962_v58 }
  0xb9   :  { %5395 = vmatprep.subr.bf16.mxu1 %v6757_v26  ;;  %6264 = vrot.lane.b32.xlu1 %v6610_v35, %s6388_s28 }
  0xba   :  { %6259 = vrot.lane.b32.xlu0 %v6613_v36, %s6388_s28  ;;  %v7049_v18 = vpop.permute.xlu1 %5984  ;;  %v7051_v20 = vpop.permute.xlu0 %5979  ;;  %5303 = vmatprep.subr.bf16.mxu0 %v5302_v11  ;;  %v745_v39 = vsel %vm743_vm3, %v5951_v46, %v5952_v27  ;;  %v1100_v11 = vsel %vm1099_vm4, %v5976_v38, %v5961_v48 }
  0xbb   :  { %1828 = vmatprep.mubr.f32.mxu1 %v8588_v52  ;;  %5180 = vmatmul.mubr.msk.f32.vlgmr.msra.gmra.mrb[0].mxu0 %vm210_vm2, %v7041_v15  ;;  %v5986_v44 = vunpack.i.l.bf16 %v7049_v18  ;;  %v5982_v56 = vunpack.i.h.bf16 %v7051_v20  ;;  %v5981_v53 = vunpack.i.l.bf16 %v7051_v20  ;;  %v7153_v6 = vpack.c.bf16 %v751_v43, %v745_v39 }
  0xbc   :  { %5203 = vmatmul.mubr.msk.f32.gmra.mrb[10].mxu1 %vm210_vm2, %v6886_v55  ;;  %5305 = vmatpush1.bf16.msra.mxu0 %v5304_v16  ;;  %v1106_v16 = vsel %vm1099_vm4, %v5977_v28, %v5966_v42 }
  0xbd   :  { %5397 = vmatpush1.bf16.msra.mxu1 %v6785_v57  ;;  %6274 = vrot.lane.b32.xlu1 %v6610_v35, %s6389_s5  ;;  %v5310_v35 = vpack.c.bf16 %v6592_v31, %v6600_v33  ;;  %v5967_v31 = vunpack.i.h.bf16 %v7011_v40  ;;  %v8606_v33 = vld [vmem:[#allocation10_spill] sm:$0xff]  ;;  %v7199_v48 = vpack.c.bf16 %v1106_v16, %v1100_v11 }
  0xbe   :  { %5399 = vmatprep.subr.bf16.mxu1 %v6831_v45  ;;  %v7090_v26 = vpop.permute.xlu1 %5994  ;;  %v7092_v57 = vpop.permute.xlu0 %5989  ;;  %6269 = vrot.lane.b32.xlu0 %v6613_v36, %s6389_s5  ;;  %v8604_v45 = vld [vmem:[#allocation7_spill] sm:$0xff] }
  0xbf   :  { %524 = vmatprep.mubr.f32.mxu0 %v8588_v52  ;;  %5307 = vmatprep.subr.bf16.mxu0 %v5306_v1  ;;  %v5314_v55 = vpack.c.bf16 %v8605_v49, %v8604_v45  ;;  %v1107_v7 = vsel %vm1099_vm4, %v5966_v42, %v5967_v31  ;;  %v750_v1 = vsel %vm743_vm3, %v5972_v50, %v5956_v25  ;;  %v5996_v51 = vunpack.i.l.bf16 %v7090_v26 }
  0xc0   :  { %1905 = vmatprep.mubr.f32.mxu1 %v8588_v52  ;;  %5181 = vmatmul.mubr.msk.f32.gmra.mrb[2].mxu0 %vm210_vm2, %v7083_v10  ;;  %v5992_v25 = vunpack.i.h.bf16 %v7092_v57 }
  0xc1   :  { %5204 = vmatmul.mubr.msk.f32.vlgmr.msra.gmra.mrb[0].mxu1 %vm210_vm2, %v7088_v12  ;;  %5309 = vmatpush1.bf16.msra.mxu0 %v5308_v4  ;;  %v744_v4 = vsel %vm743_vm3, %v5971_v47, %v5951_v46  ;;  %v5991_v46 = vunpack.i.l.bf16 %v7092_v57  ;;  %v8610_v47 = vld [vmem:[#allocation2_spill] sm:$0xff] }
  0xc2   :  { %5401 = vmatpush1.bf16.msra.mxu1 %v8606_v33  ;;  %v7112_v36 = vpop.permute.xlu1 %6004  ;;  %v7114_v21 = vpop.permute.xlu0 %5999  ;;  %6284 = vrot.lane.b32.xlu1 %v8607_v41, %s6388_s28  ;;  %v7205_v38 = vpack.c.bf16 %v750_v1, %v744_v4 }
  0xc3   :  { %5403 = vmatprep.subr.bf16.mxu1 %v6902_v34  ;;  %6279 = vrot.lane.b32.xlu0 %v8608_v3, %s6388_s28  ;;  %v5987_v34 = vunpack.i.h.bf16 %v7049_v18  ;;  %v6001_v45 = vunpack.i.l.bf16 %v7114_v21  ;;  %v1113_v50 = vsel %vm1099_vm4, %v5991_v46, %v5992_v25  ;;  %v6007_v29 = vunpack.i.h.bf16 %v7112_v36 }
  0xc4   :  { %595 = vmatprep.mubr.f32.mxu0 %v8588_v52  ;;  %5311 = vmatprep.subr.bf16.mxu0 %v5310_v35  ;;  %v5997_v35 = vunpack.i.h.bf16 %v7090_v26 }
  0xc5   :  { %1911 = vmatprep.mubr.f32.mxu1 %v8588_v52  ;;  %5182 = vmatmul.mubr.msk.f32.vlgmr.msra.gmra.mrb[4].mxu0 %vm210_vm2, %v7041_v15 }
  0xc6   :  { %5205 = vmatmul.mubr.msk.f32.gmra.mrb[2].mxu1 %vm210_vm2, %v7132_v60  ;;  %v7149_v59 = vpop.permute.xlu1 %6014  ;;  %v7151_v8 = vpop.permute.xlu0 %6009  ;;  %5313 = vmatpush1.bf16.msra.mxu0 %v5312_v22  ;;  %v6002_v22 = vunpack.i.h.bf16 %v7114_v21  ;;  %v7197_v21 = vpack.c.bf16 %v1107_v7, %v1101_v9  ;;  %v756_v7 = vsel %vm743_vm3, %v6001_v45, %v5981_v53  ;;  %v1118_v45 = vsel %vm1099_vm4, %v6007_v29, %v5996_v51 }
  0xc7   :  { %5405 = vmatpush1.bf16.msra.mxu1 %v6895_v62  ;;  %6294 = vrot.lane.b32.xlu1 %v8607_v41, %s6389_s5  ;;  %v757_v62 = vsel %vm743_vm3, %v5981_v53, %v5982_v56  ;;  %v6017_v39 = vunpack.i.h.bf16 %v7149_v59  ;;  %v6016_v43 = vunpack.i.l.bf16 %v7149_v59  ;;  %v6012_v42 = vunpack.i.h.bf16 %v7151_v8 }
  0xc8   :  { %5407 = vmatprep.subr.bf16.mxu1 %v6942_v5  ;;  %6289 = vrot.lane.b32.xlu0 %v8608_v3, %s6389_s5  ;;  %v763_v5 = vsel %vm743_vm3, %v5986_v44, %v5987_v34  ;;  %v1119_v41 = vsel %vm1099_vm4, %v5996_v51, %v5997_v35  ;;  %v762_v30 = vsel %vm743_vm3, %v6002_v22, %v5986_v44  ;;  %v8611_v51 = vld [vmem:[#allocation4_spill] sm:$0xff] }
  0xc9   :  { %601 = vmatprep.mubr.f32.mxu0 %v8588_v52  ;;  %5315 = vmatprep.subr.bf16.mxu0 %v5314_v55  ;;  %v6011_v55 = vunpack.i.l.bf16 %v7151_v8  ;;  %v7212_v28 = vpack.c.bf16 %v763_v5, %v757_v62  ;;  %v753_v9 = vsel %vm743_vm3, %v6016_v43, %v6017_v39  ;;  %v7246_v4 = vpack.c.bf16 %v1119_v41, %v1113_v50 }
  0xca   :  { %1982 = vmatprep.mubr.f32.mxu1 %v8588_v52  ;;  %v7185_v49 = vpop.permute.xlu1 %6024  ;;  %v7187_v33 = vpop.permute.xlu0 %6019  ;;  %5183 = vmatmul.mubr.msk.f32.gmra.mrb[6].mxu0 %vm210_vm2, %v7083_v10 }
  0xcb   :  { %5206 = vmatmul.mubr.msk.f32.vlgmr.msra.gmra.mrb[4].mxu1 %vm210_vm2, %v7088_v12  ;;  %5317 = vmatpush1.bf16.msra.mxu0 %v5316_v37  ;;  %v8609_v37 = vld [vmem:[#allocation3_spill] sm:$0xff]  ;;  %v747_v44 = vsel %vm743_vm3, %v6011_v55, %v6012_v42  ;;  %v6026_v53 = vunpack.i.l.bf16 %v7185_v49  ;;  %v6022_v11 = vunpack.i.h.bf16 %v7187_v33  ;;  %v6021_v16 = vunpack.i.l.bf16 %v7187_v33 }
  0xcc   :  { %5409 = vmatpush1.bf16.msra.mxu1 %v6936_v54  ;;  %5319 = vmatprep.subr.bf16.mxu0 %v7153_v6  ;;  %v6006_v54 = vunpack.i.l.bf16 %v7112_v36  ;;  %v6027_v36 = vunpack.i.h.bf16 %v7185_v49  ;;  %v7273_v29 = vpack.c.bf16 %v753_v9, %v747_v44  ;;  %v7435_v49 = vld [vmem:[%s8543_s1 + $0x68] sm:$0xff] }
  0xcd   :  { %5411 = vmatprep.subr.bf16.mxu1 %v6978_v32  ;;  %6304 = vrot.lane.b32.xlu1 %v8609_v37, %s6390_s22  ;;  %v7255_v37 = vpack.c.bf16 %v762_v30, %v756_v7  ;;  %v1103_v0 = vsel %vm1099_vm4, %v6021_v16, %v6022_v11  ;;  %v7314_v30 = vld [vmem:[%s8543_s1 + $0x20] sm:$0xff]  ;;  %v1108_v44 = vsel %vm1099_vm4, %v5967_v31, %v6026_v53 }
  0xce   :  { %6299 = vrot.lane.b32.xlu0 %v8610_v47, %s6390_s22  ;;  %v7224_v32 = vpop.permute.xlu1 %6034  ;;  %v7226_v3 = vpop.permute.xlu0 %6029  ;;  %672 = vmatprep.mubr.f32.mxu0 %v8588_v52  ;;  %v1112_v22 = vsel %vm1099_vm4, %v6006_v54, %v5991_v46  ;;  %v746_v46 = vsel %vm743_vm3, %v5952_v27, %v6011_v55  ;;  %v1109_v54 = vsel %vm1099_vm4, %v6026_v53, %v6027_v36 }
  0xcf   :  { %1988 = vmatprep.mubr.f32.mxu1 %v8588_v52  ;;  %5184 = vmatmul.mubr.msk.f32.vlgmr.msra.gmra.mrb[8].mxu0 %vm210_vm2, %v7041_v15  ;;  %v6036_v1 = vunpack.i.l.bf16 %v7224_v32  ;;  %v6037_v62 = vunpack.i.h.bf16 %v7224_v32  ;;  %v6032_v15 = vunpack.i.h.bf16 %v7226_v3  ;;  %v6031_v5 = vunpack.i.l.bf16 %v7226_v3 }
  0xd0   :  { %5207 = vmatmul.mubr.msk.f32.gmra.mrb[6].mxu1 %vm210_vm2, %v7132_v60  ;;  %5321 = vmatpush1.bf16.msra.mxu0 %v7205_v38  ;;  %v1102_v9 = vsel %vm1099_vm4, %v5962_v58, %v6021_v16 }
  0xd1   :  { %5413 = vmatpush1.bf16.msra.mxu1 %v6974_v19  ;;  %5323 = vmatprep.subr.bf16.mxu0 %v7212_v28  ;;  %v752_v19 = vsel %vm743_vm3, %v5957_v61, %v6016_v43  ;;  %v758_v2 = vsel %vm743_vm3, %v5982_v56, %v6031_v5  ;;  %v759_v61 = vsel %vm743_vm3, %v6031_v5, %v6032_v15 }
  0xd2   :  { %5415 = vmatprep.subr.bf16.mxu1 %v7197_v21  ;;  %v7259_v41 = vpop.permute.xlu1 %6044  ;;  %v7261_v50 = vpop.permute.xlu0 %6039  ;;  %6314 = vrot.lane.b32.xlu1 %v6497_v14, %s6390_s22  ;;  %v764_v14 = vsel %vm743_vm3, %v5987_v34, %v6036_v1  ;;  %v765_v18 = vsel %vm743_vm3, %v6036_v1, %v6037_v62  ;;  %v7305_v43 = vpack.c.bf16 %v1118_v45, %v1112_v22 }
  0xd3   :  { %6309 = vrot.lane.b32.xlu0 %v8611_v51, %s6390_s22  ;;  %678 = vmatprep.mubr.f32.mxu0 %v8588_v52  ;;  %v6047_v27 = vunpack.i.h.bf16 %v7259_v41  ;;  %v6042_v20 = vunpack.i.h.bf16 %v7261_v50  ;;  %v7307_v55 = vpack.c.bf16 %v752_v19, %v746_v46  ;;  %v7326_v22 = vpack.c.bf16 %v1109_v54, %v1103_v0  ;;  %v7356_v51 = vld [vmem:[%s8543_s1 + $0x60] sm:$0xff]  ;;  %v6371_v0 = vld [vmem:[%s8542_s0 + $0xc8] sm:$0xff] }
  0xd4   :  { %2059 = vmatprep.mubr.f32.mxu1 %v8588_v52  ;;  %5185 = vmatmul.mubr.msk.f32.gmra.mrb[10].mxu0 %vm210_vm2, %v7083_v10  ;;  %v6046_v10 = vunpack.i.l.bf16 %v7259_v41  ;;  %v7328_v45 = vpack.c.bf16 %v764_v14, %v758_v2  ;;  %v7332_v40 = vpack.c.bf16 %v765_v18, %v759_v61  ;;  %v7348_v46 = vpack.c.bf16 %v1108_v44, %v1102_v9  ;;  %v6370_v54 = vld [vmem:[%s8542_s0 + $0xc0] sm:$0xff]  ;;  %v6372_v2 = vld [vmem:[%s8542_s0 + $0x88] sm:$0xff] }
  0xd5   :  { %5208 = vmatmul.mubr.msk.f32.vlgmr.msra.gmra.mrb[8].mxu1 %vm210_vm2, %v7088_v12  ;;  %5325 = vmatpush1.bf16.msra.mxu0 %v7255_v37  ;;  %v6041_v12 = vunpack.i.l.bf16 %v7261_v50  ;;  %v6343_v14 = vpack.i.bf16 %v6371_v0, %v6370_v54  ;;  %v6374_v9 = vld [vmem:[%s8542_s0 + $0x60] sm:$0xff] }
  0xd6   :  { %5417 = vmatpush1.bf16.msra.mxu1 %v7199_v48  ;;  %v6055_v34 = vpop.permute.xlu1 %6054  ;;  %v6050_v56 = vpop.permute.xlu0 %6049  ;;  %5327 = vmatprep.subr.bf16.mxu0 %v7273_v29 }
  0xd7   :  { %5419 = vmatprep.subr.bf16.mxu1 %v7246_v4  ;;  %v6057_v47 = vunpack.i.h.bf16 %v6055_v34  ;;  %v6056_v7 = vunpack.i.l.bf16 %v6055_v34  ;;  %6324 = vrot.lane.b32.xlu1 %v6519_v17, %s6390_s22  ;;  %v6052_v1 = vunpack.i.h.bf16 %v6050_v56  ;;  %v6051_v5 = vunpack.i.l.bf16 %v6050_v56 }
  0xd8   :  { %6319 = vrot.lane.b32.xlu0 %v6493_v13, %s6390_s22  ;;  %862 = vmatprep.mubr.f32.mxu0 %v8588_v52  ;;  %v1121_v13 = vsel %vm1099_vm4, %v6046_v10, %v6047_v27  ;;  %v1115_v17 = vsel %vm1099_vm4, %v6041_v12, %v6042_v20  ;;  %v1120_v34 = vsel %vm1099_vm4, %v5997_v35, %v6046_v10 }
  0xd9   :  { %2065 = vmatprep.mubr.f32.mxu1 %v8588_v52  ;;  %5186 = vmatmul.mubr.msk.f32.vlgmr.msra.gmra.mrb[0].mxu0 %vm210_vm2, %v7314_v30  ;;  %v755_v58 = vsel %vm743_vm3, %v6056_v7, %v6057_v47  ;;  %v1114_v56 = vsel %vm1099_vm4, %v5992_v25, %v6041_v12  ;;  %v7376_v47 = vpack.c.bf16 %v1121_v13, %v1115_v17 }
  0xda   :  { %5209 = vmatmul.mubr.msk.f32.gmra.mrb[10].mxu1 %vm210_vm2, %v7132_v60  ;;  %v6065_v63 = vpop.permute.xlu1 %6064  ;;  %v6060_v31 = vpop.permute.xlu0 %6059  ;;  %5329 = vmatpush1.bf16.msra.mxu0 %v7307_v55  ;;  %v749_v60 = vsel %vm743_vm3, %v6051_v5, %v6052_v1  ;;  %v754_v44 = vsel %vm743_vm3, %v6017_v39, %v6056_v7  ;;  %v748_v26 = vsel %vm743_vm3, %v6012_v42, %v6051_v5  ;;  %v6375_v1 = vld [vmem:[%s8542_s0 + $0x68] sm:$0xff] }
  0xdb   :  { %5421 = vmatpush1.bf16.msra.mxu1 %v7305_v43  ;;  %v6067_v53 = vunpack.i.h.bf16 %v6065_v63  ;;  %v6066_v16 = vunpack.i.l.bf16 %v6065_v63  ;;  %v6062_v19 = vunpack.i.h.bf16 %v6060_v31  ;;  %6334 = vrot.lane.b32.xlu1 %v6549_v23, %s6390_s22  ;;  %v6373_v23 = vld [vmem:[%s8542_s0 + $0x90] sm:$0xff]  ;;  %v6061_v18 = vunpack.i.l.bf16 %v6060_v31  ;;  %v6376_v63 = vld [vmem:[%s8542_s0 + $0x28] sm:$0xff] }
  0xdc   :  { %5423 = vmatprep.subr.bf16.mxu1 %v7326_v22  ;;  %v6338_v61 = vpack.i.bf16 %v6373_v23, %v6372_v2  ;;  %6329 = vrot.lane.b32.xlu0 %v6553_v24, %s6390_s22  ;;  %v7389_v57 = vpack.c.bf16 %v755_v58, %v749_v60  ;;  %v7397_v24 = vld [vmem:[%s8543_s1 + $0x28] sm:$0xff]  ;;  %v7401_v10 = vpack.c.bf16 %v1120_v34, %v1114_v56  ;;  %v6377_v31 = vld [vmem:[%s8542_s0 + $0x30] sm:$0xff]  ;;  %v6379_v23 = vld [vmem:[%s8542_s0 + $0xd8] sm:$0xff] }
  0xdd   :  { %5331 = vmatprep.subr.bf16.mxu0 %v7332_v40  ;;  %2144 = vmatprep.mubr.f32.mxu1 %v8588_v52  ;;  %v1111_v59 = vsel %vm1099_vm4, %v6066_v16, %v6067_v53  ;;  %v1105_v8 = vsel %vm1099_vm4, %v6061_v18, %v6062_v19  ;;  %v6353_v5 = vpack.i.bf16 %v6375_v1, %v6374_v9  ;;  %v6378_v2 = vld [vmem:[%s8542_s0 + $0xd0] sm:$0xff]  ;;  %v6381_v34 = vld [vmem:[%s8542_s0 + $0xa0] sm:$0xff] }
  0xde   :  { %868 = vmatprep.mubr.f32.mxu0 %v8588_v52  ;;  %v6075_v35 = vpop.permute.xlu1 %6074  ;;  %v6070_v25 = vpop.permute.xlu0 %6069  ;;  %5333 = vmatpush1.bf16.msra.mxu0 %v7328_v45  ;;  %v7411_v13 = vpack.c.bf16 %v754_v44, %v748_v26  ;;  %v1110_v17 = vsel %vm1099_vm4, %v6027_v36, %v6066_v16  ;;  %v6348_v58 = vpack.i.bf16 %v6377_v31, %v6376_v63 }
  0xdf   :  { %5210 = vmatmul.mubr.msk.f32.vlgmr.msra.gmra.mrb[0].mxu1 %vm210_vm2, %v7356_v51  ;;  %v6077_v39 = vunpack.i.h.bf16 %v6075_v35  ;;  %v6076_v42 = vunpack.i.l.bf16 %v6075_v35  ;;  %6344 = vrot.lane.b32.xlu1 %v6343_v14, %s6390_s22  ;;  %v6072_v12 = vunpack.i.h.bf16 %v6070_v25  ;;  %v6071_v7 = vunpack.i.l.bf16 %v6070_v25 }
  0xe0   :  { %5425 = vmatpush1.bf16.msra.mxu1 %v7348_v46  ;;  %6339 = vrot.lane.b32.xlu0 %v6338_v61, %s6390_s22  ;;  %v1104_v53 = vsel %vm1099_vm4, %v6022_v11, %v6061_v18  ;;  %v7429_v19 = vpack.c.bf16 %v1111_v59, %v1105_v8  ;;  %v6363_v61 = vpack.i.bf16 %v6379_v23, %v6378_v2  ;;  %v6380_v18 = vld [vmem:[%s8542_s0 + $0x98] sm:$0xff]  ;;  %v18_v23 = vld [vmem:[%s8544_s2 + $0x8] sm:$0xff] }
  0xe1   :  { %5427 = vmatprep.subr.bf16.mxu1 %v7376_v47  ;;  %5187 = vmatmul.mubr.msk.f32.gmra.mrb[2].mxu0 %vm210_vm2, %v7397_v24  ;;  %v767_v60 = vsel %vm743_vm3, %v6076_v42, %v6077_v39  ;;  %v761_v0 = vsel %vm743_vm3, %v6071_v7, %v6072_v12  ;;  %v6358_v56 = vpack.i.bf16 %v6381_v34, %v6380_v18 }
  0xe2   :  { %5335 = vmatprep.subr.bf16.mxu0 %v7389_v57  ;;  %v6085_v36 = vpop.permute.xlu1 %6084  ;;  %v6080_v16 = vpop.permute.xlu0 %6079  ;;  %939 = vmatprep.mubr.f32.mxu0 %v8588_v52  ;;  %v766_v44 = vsel %vm743_vm3, %v6037_v62, %v6076_v42  ;;  %v760_v26 = vsel %vm743_vm3, %v6032_v15, %v6071_v7  ;;  %v7465_v25 = vpack.c.bf16 %v1110_v17, %v1104_v53 }
  0xe3   :  { %2150 = vmatprep.mubr.f32.mxu1 %v8588_v52  ;;  %v6087_v33 = vunpack.i.h.bf16 %v6085_v36  ;;  %v6086_v54 = vunpack.i.l.bf16 %v6085_v36  ;;  %v6082_v11 = vunpack.i.h.bf16 %v6080_v16  ;;  %6354 = vrot.lane.b32.xlu1 %v6353_v5, %s6390_s22  ;;  %v6081_v14 = vunpack.i.l.bf16 %v6080_v16 }
  0xe4   :  { %5429 = vmatpush1.bf16.msra.mxu1 %v7401_v10  ;;  %6349 = vrot.lane.b32.xlu0 %v6348_v58, %s6390_s22  ;;  %v7471_v32 = vpack.c.bf16 %v767_v60, %v761_v0  ;;  %v7487_v12 = vpack.c.bf16 %v766_v44, %v760_v26 }
  0xe5   :  { %5211 = vmatmul.mubr.msk.f32.gmra.mrb[2].mxu1 %vm210_vm2, %v7435_v49  ;;  %v1123_v35 = vsel %vm1099_vm4, %v6086_v54, %v6087_v33  ;;  %5188 = vmatmul.mubr.msk.f32.vlgmr.msra.gmra.mrb[4].mxu0 %vm210_vm2, %v7314_v30  ;;  %v1117_v59 = vsel %vm1099_vm4, %v6081_v14, %v6082_v11  ;;  %v1122_v15 = vsel %vm1099_vm4, %v6047_v27, %v6086_v54  ;;  %v6391_v54 = vmov 0  }
  0xe6   :  { %2221 = vmatprep.mubr.f32.mxu1 %v8588_v52  ;;  %v7473_v62 = vpop.permute.xlu1 %6094  ;;  %v7475_v3 = vpop.permute.xlu0 %6089  ;;  %5337 = vmatpush1.bf16.msra.mxu0 %v7411_v13  ;;  %v1116_v8 = vsel %vm1099_vm4, %v6042_v20, %v6081_v14  ;;  %v7489_v7 = vpack.c.bf16 %v1123_v35, %v1117_v59  ;;  %v7560_v59 = vld [vmem:[%s8543_s1 + $0x30] sm:$0xff] }
  0xe7   :  { %5431 = vmatprep.subr.bf16.mxu1 %v7429_v19  ;;  %v6097_v39 = vunpack.i.h.bf16 %v7473_v62  ;;  %v6096_v42 = vunpack.i.l.bf16 %v7473_v62  ;;  %945 = vmatprep.mubr.f32.mxu0 %v8588_v52  ;;  %v6092_v41 = vunpack.i.h.bf16 %v7475_v3  ;;  %v6091_v27 = vunpack.i.l.bf16 %v7475_v3  ;;  %v7585_v62 = vld [vmem:[%s8543_s1 + $0x38] sm:$0xff] }
  0xe8   :  { %6364 = vrot.lane.b32.xlu1 %v6363_v61, %s6390_s22  ;;  %6359 = vrot.lane.b32.xlu0 %v6358_v56, %s6390_s22  ;;  %v7499_v50 = vpack.c.bf16 %v1122_v15, %v1116_v8 }
  0xe9   :  { %5212 = vmatmul.mubr.msk.f32.vlgmr.msra.gmra.mrb[4].mxu1 %vm210_vm2, %v7356_v51  ;;  %5189 = vmatmul.mubr.msk.f32.gmra.mrb[6].mxu0 %vm210_vm2, %v7397_v24  ;;  %v2383_v1 = vsel %vm2381_vm5, %v6091_v27, %v6092_v41  ;;  %v2389_v5 = vsel %vm2381_vm5, %v6096_v42, %v6097_v39 }
  0xea   :  { %5433 = vmatpush1.bf16.msra.mxu1 %v7465_v25  ;;  %v7503_v20 = vpop.permute.xlu1 %6104  ;;  %v6100_v9 = vpop.permute.xlu0 %6099  ;;  %5339 = vmatprep.subr.bf16.mxu0 %v7471_v32  ;;  %v7519_v53 = vpack.c.bf16 %v2389_v5, %v2383_v1 }
  0xeb   :  { %1016 = vmatprep.mubr.f32.mxu0 %v8588_v52  ;;  %v6102_v17 = vunpack.i.h.bf16 %v6100_v9  ;;  %v6101_v63 = vunpack.i.l.bf16 %v6100_v9  ;;  %5341 = vmatpush1.bf16.msra.mxu0 %v7487_v12  ;;  %v6107_v31 = vunpack.i.h.bf16 %v7503_v20  ;;  %v6106_v58 = vunpack.i.l.bf16 %v7503_v20 }
  0xec   :  { %5435 = vmatprep.subr.bf16.mxu1 %v7489_v7  ;;  %5343 = vmatprep.subr.bf16.mxu0 %v7197_v21 }
  0xed   :  { %2227 = vmatprep.mubr.f32.mxu1 %v8588_v52  ;;  %v2388_v36 = vsel %vm2381_vm5, %v6102_v17, %v6096_v42  ;;  %v2382_v16 = vsel %vm2381_vm5, %v6101_v63, %v6091_v27  ;;  %6369 = vset.pattern.permute.xlu1 %v6391_v54 }
  0xee   :  { %5437 = vmatpush1.bf16.msra.mxu1 %v7499_v50  ;;  %v6115_v60 = vpop.permute.xlu1 %6114  ;;  %v7524_v33 = vpop.permute.xlu0 %6109  ;;  %5190 = vmatmul.mubr.msk.f32.vlgmr.msra.gmra.mrb[8].mxu0 %vm210_vm2, %v7314_v30  ;;  %v7538_v61 = vpack.c.bf16 %v2388_v36, %v2382_v16  ;;  %v2395_v30 = vsel %vm2381_vm5, %v6106_v58, %v6107_v31  ;;  %v7597_v16 = vld [vmem:[%s8543_s1 + $0x70] sm:$0xff] }
  0xef   :  { %5213 = vmatmul.mubr.msk.f32.gmra.mrb[6].mxu1 %vm210_vm2, %v7435_v49  ;;  %v6117_v11 = vunpack.i.h.bf16 %v6115_v60  ;;  %v6116_v0 = vunpack.i.l.bf16 %v6115_v60  ;;  %v6112_v14 = vunpack.i.h.bf16 %v7524_v33  ;;  %v6111_v2 = vunpack.i.l.bf16 %v7524_v33  ;;  %5345 = vmatpush1.bf16.msra.mxu0 %v7199_v48 }
  0xf0   :  { %1022 = vmatprep.mubr.f32.mxu0 %v8588_v52  ;;  %5347 = vmatprep.subr.bf16.mxu0 %v7246_v4 }
  0xf1   :  { %5439 = vmatprep.subr.bf16.mxu1 %v7519_v53  ;;  %v2401_v18 = vsel %vm2381_vm5, %v6111_v2, %v6112_v14  ;;  %v2394_v34 = vsel %vm2381_vm5, %v6116_v0, %v6106_v58  ;;  %v2400_v56 = vsel %vm2381_vm5, %v6117_v11, %v6111_v2  ;;  %2298 = vmatprep.mubr.f32.mxu1 %v8588_v52 }
  0xf2   :  { %v7549_v44 = vpack.c.bf16 %v2401_v18, %v2395_v30  ;;  %1404 = vperm.xlu1 %6369, %v18_v23   ;;  %5191 = vmatmul.mubr.msk.f32.gmra.mrb[10].mxu0 %vm210_vm2, %v7397_v24  ;;  %v7562_v9 = vpack.c.bf16 %v2400_v56, %v2394_v34 }
  0xf3   :  { %5214 = vmatmul.mubr.msk.f32.vlgmr.msra.gmra.mrb[8].mxu1 %vm210_vm2, %v7356_v51  ;;  %v6125_v26 = vpop.permute.xlu1 %6124  ;;  %v6120_v35 = vpop.permute.xlu0 %6119  ;;  %5349 = vmatpush1.bf16.msra.mxu0 %v7305_v43 }
  0xf4   :  { %1218 = vmatprep.mubr.f32.mxu0 %v8588_v52  ;;  %v6127_v15 = vunpack.i.h.bf16 %v6125_v26  ;;  %v6126_v8 = vunpack.i.l.bf16 %v6125_v26  ;;  %v6122_v42 = vunpack.i.h.bf16 %v6120_v35  ;;  %v6121_v27 = vunpack.i.l.bf16 %v6120_v35  ;;  %5351 = vmatprep.subr.bf16.mxu0 %v7326_v22 }
  0xf5   :  { %5441 = vmatpush1.bf16.msra.mxu1 %v7538_v61  ;;  %2304 = vmatprep.mubr.f32.mxu1 %v8588_v52 }
  0xf6   :  { %5443 = vmatprep.subr.bf16.mxu1 %v7549_v44  ;;  %v2385_v51 = vsel %vm2381_vm5, %v6121_v27, %v6122_v42  ;;  %5192 = vmatmul.mubr.msk.f32.vlgmr.msra.gmra.mrb[0].mxu0 %vm210_vm2, %v7560_v59  ;;  %v2390_v24 = vsel %vm2381_vm5, %v6097_v39, %v6126_v8  ;;  %v2384_v1 = vsel %vm2381_vm5, %v6092_v41, %v6121_v27 }
  0xf7   :  { %5215 = vmatmul.mubr.msk.f32.gmra.mrb[10].mxu1 %vm210_vm2, %v7435_v49  ;;  %v6135_v5 = vpop.permute.xlu1 %6134  ;;  %v6130_v17 = vpop.permute.xlu0 %6129  ;;  %v2391_v63 = vsel %vm2381_vm5, %v6126_v8, %v6127_v15  ;;  %5353 = vmatpush1.bf16.msra.mxu0 %v7348_v46  ;;  %v7591_v36 = vpack.c.bf16 %v2390_v24, %v2384_v1 }
  0xf8   :  { %1224 = vmatprep.mubr.f32.mxu0 %v8588_v52  ;;  %v6137_v39 = vunpack.i.h.bf16 %v6135_v5  ;;  %v6136_v3 = vunpack.i.l.bf16 %v6135_v5  ;;  %v6132_v58 = vunpack.i.h.bf16 %v6130_v17  ;;  %v6131_v41 = vunpack.i.l.bf16 %v6130_v17  ;;  %5355 = vmatprep.subr.bf16.mxu0 %v7376_v47 }
  0xf9   :  { %5445 = vmatpush1.bf16.msra.mxu1 %v7562_v9  ;;  %v7589_v49 = vpack.c.bf16 %v2391_v63, %v2385_v51  ;;  %2500 = vmatprep.mubr.f32.mxu1 %v8588_v52 }
  0xfa   :  { %v2397_v60 = vsel %vm2381_vm5, %v6131_v41, %v6132_v58  ;;  %v2403_v33 = vsel %vm2381_vm5, %v6136_v3, %v6137_v39  ;;  %5193 = vmatmul.mubr.msk.f32.gmra.mrb[2].mxu0 %vm210_vm2, %v7585_v62  ;;  %v2402_v11 = vsel %vm2381_vm5, %v6112_v14, %v6136_v3  ;;  %v2396_v0 = vsel %vm2381_vm5, %v6107_v31, %v6131_v41  ;;  %v7622_v31 = vld [vmem:[%s8543_s1 + $0x78] sm:$0xff] }
  0xfb   :  { %5447 = vmatprep.subr.bf16.mxu1 %v7589_v49  ;;  %v6145_v2 = vpop.permute.xlu1 %6144  ;;  %v6140_v23 = vpop.permute.xlu0 %6139  ;;  %v7608_v30 = vpack.c.bf16 %v2403_v33, %v2397_v60  ;;  %5357 = vmatpush1.bf16.msra.mxu0 %v7401_v10  ;;  %v7615_v20 = vpack.c.bf16 %v2402_v11, %v2396_v0 }
  0xfc   :  { %1295 = vmatprep.mubr.f32.mxu0 %v8588_v52  ;;  %v6147_v18 = vunpack.i.h.bf16 %v6145_v2  ;;  %v6146_v34 = vunpack.i.l.bf16 %v6145_v2  ;;  %v6142_v56 = vunpack.i.h.bf16 %v6140_v23  ;;  %v6141_v26 = vunpack.i.l.bf16 %v6140_v23  ;;  %5359 = vmatprep.subr.bf16.mxu0 %v7429_v19 }
  0xfd   :  { %5216 = vmatmul.mubr.msk.f32.vlgmr.msra.gmra.mrb[0].mxu1 %vm210_vm2, %v7597_v16  ;;  %6368 = vset.pattern.permute.xlu0 %v6391_v54  ;;  %v4015_v54 = vld [vmem:[%s8543_s1 + $0xd0] sm:$0xff] }
  0xfe   :  { %5449 = vmatpush1.bf16.msra.mxu1 %v7591_v36  ;;  %2506 = vmatprep.mubr.f32.mxu1 %v8588_v52  ;;  %v2387_v14 = vsel %vm2381_vm5, %v6141_v26, %v6142_v56  ;;  %v2392_v35 = vsel %vm2381_vm5, %v6127_v15, %v6146_v34  ;;  %v2386_v8 = vsel %vm2381_vm5, %v6122_v42, %v6141_v26  ;;  %v2754_v56 = vld [vmem:[%s8543_s1 + $0x98] sm:$0xff] }
  0xff   :  { %5194 = vmatmul.mubr.msk.f32.vlgmr.msra.gmra.mrb[4].mxu0 %vm210_vm2, %v7560_v59  ;;  %5451 = vmatprep.subr.bf16.mxu1 %v7608_v30  ;;  %v6155_v27 = vpop.permute.xlu1 %6154  ;;  %v6150_v51 = vpop.permute.xlu0 %6149  ;;  %v2393_v24 = vsel %vm2381_vm5, %v6146_v34, %v6147_v18  ;;  %v7638_v42 = vpack.c.bf16 %v2392_v35, %v2386_v8  ;;  %v2753_v34 = vld [vmem:[%s8543_s1 + $0x90] sm:$0xff] }
 0x100   :  { %5361 = vmatpush1.bf16.msra.mxu0 %v7465_v25  ;;  %1301 = vmatprep.mubr.f32.mxu0 %v8588_v52  ;;  %v6157_v1 = vunpack.i.h.bf16 %v6155_v27  ;;  %v6156_v5 = vunpack.i.l.bf16 %v6155_v27  ;;  %v6152_v17 = vunpack.i.h.bf16 %v6150_v51  ;;  %v6151_v63 = vunpack.i.l.bf16 %v6150_v51 }
 0x101   :  { %5363 = vmatprep.subr.bf16.mxu0 %v7489_v7  ;;  %5217 = vmatmul.mubr.msk.f32.gmra.mrb[2].mxu1 %vm210_vm2, %v7622_v31  ;;  %v7636_v15 = vpack.c.bf16 %v2393_v24, %v2387_v14 }
 0x102   :  { %5453 = vmatpush1.bf16.msra.mxu1 %v7615_v20  ;;  %2577 = vmatprep.mubr.f32.mxu1 %v8588_v52  ;;  %v2399_v3 = vsel %vm2381_vm5, %v6151_v63, %v6152_v17  ;;  %v2404_v41 = vsel %vm2381_vm5, %v6137_v39, %v6156_v5  ;;  %v2398_v60 = vsel %vm2381_vm5, %v6132_v58, %v6151_v63 }
 0x103   :  { %5195 = vmatmul.mubr.msk.f32.gmra.mrb[6].mxu0 %vm210_vm2, %v7585_v62  ;;  %5455 = vmatprep.subr.bf16.mxu1 %v7636_v15  ;;  %v7648_v33 = vpop.permute.xlu1 %6164  ;;  %v7650_v11 = vpop.permute.xlu0 %6159  ;;  %v2405_v0 = vsel %vm2381_vm5, %v6156_v5, %v6157_v1  ;;  %v7660_v58 = vpack.c.bf16 %v2404_v41, %v2398_v60 }
 0x104   :  { %5365 = vmatpush1.bf16.msra.mxu0 %v7499_v50  ;;  %1372 = vmatprep.mubr.f32.mxu0 %v8588_v52  ;;  %v7658_v39 = vpack.c.bf16 %v2405_v0, %v2399_v3  ;;  %v6166_v35 = vunpack.i.l.bf16 %v7648_v33  ;;  %v6162_v8 = vunpack.i.h.bf16 %v7650_v11  ;;  %v6161_v27 = vunpack.i.l.bf16 %v7650_v11  ;;  %v7825_v3 = vld [vmem:[%s8543_s1 + $0xc0] sm:$0xff] }
 0x105   :  { %5463 = vmatprep.subr.bf16.mxu0 %v7197_v21  ;;  %5218 = vmatmul.mubr.msk.f32.vlgmr.msra.gmra.mrb[4].mxu1 %vm210_vm2, %v7597_v16 }
 0x106   :  { %5457 = vmatpush1.bf16.msra.mxu1 %v7638_v42  ;;  %2583 = vmatprep.mubr.f32.mxu1 %v8588_v52  ;;  %v3289_v0 = vsel %vm3287_vm7, %v6161_v27, %v6162_v8 }
 0x107   :  { %5196 = vmatmul.mubr.msk.f32.vlgmr.msra.gmra.mrb[8].mxu0 %vm210_vm2, %v7560_v59  ;;  %5459 = vmatprep.subr.bf16.mxu1 %v7658_v39  ;;  %v7667_v2 = vpop.permute.xlu1 %6174  ;;  %v7669_v23 = vpop.permute.xlu0 %6169 }
 0x108   :  { %5465 = vmatpush1.bf16.msra.mxu0 %v7199_v48  ;;  %1378 = vmatprep.mubr.f32.mxu0 %v8588_v52  ;;  %v6172_v51 = vunpack.i.h.bf16 %v7669_v23  ;;  %v6171_v24 = vunpack.i.l.bf16 %v7669_v23 }
 0x109   :  { %5467 = vmatprep.subr.bf16.mxu0 %v7246_v4  ;;  %5219 = vmatmul.mubr.msk.f32.gmra.mrb[6].mxu1 %vm210_vm2, %v7622_v31 }
 0x10a   :  { %5461 = vmatpush1.bf16.msra.mxu1 %v7660_v58  ;;  %2654 = vmatprep.mubr.f32.mxu1 %v8588_v52 }
 0x10b   :  { %5197 = vmatmul.mubr.msk.f32.gmra.mrb[10].mxu0 %vm210_vm2, %v7585_v62  ;;  %5559 = vmatprep.subr.bf16.mxu1 %v7519_v53  ;;  %v7681_v59 = vpop.permute.xlu1 %6184  ;;  %v7683_v18 = vpop.permute.xlu0 %6179 }
 0x10c   :  { %5469 = vmatpush1.bf16.msra.mxu0 %v7305_v43  ;;  %2825 = vmatprep.mubr.f32.mxu0 %v8588_v52  ;;  %v6187_v1 = vunpack.i.h.bf16 %v7681_v59  ;;  %v6186_v5 = vunpack.i.l.bf16 %v7681_v59 }
 0x10d   :  { %5471 = vmatprep.subr.bf16.mxu0 %v7326_v22  ;;  %5220 = vmatmul.mubr.msk.f32.vlgmr.msra.gmra.mrb[8].mxu1 %vm210_vm2, %v7597_v16  ;;  %v17_v16 = vld [vmem:[%s8544_s2] sm:$0xff] }
 0x10e   :  { %5561 = vmatpush1.bf16.msra.mxu1 %v7538_v61  ;;  %2660 = vmatprep.mubr.f32.mxu1 %v8588_v52 }
 0x10f   :  { %5222 = vmatmul.mubr.msk.f32.vlgmr.msra.gmra.mrb[12].mxu0 %vm210_vm2, %v2753_v34  ;;  %5563 = vmatprep.subr.bf16.mxu1 %v7549_v44  ;;  %v7696_v53 = vpop.permute.xlu1 %6194  ;;  %v7698_v62 = vpop.permute.xlu0 %6189 }
 0x110   :  { %5473 = vmatpush1.bf16.msra.mxu0 %v7348_v46  ;;  %2831 = vmatprep.mubr.f32.mxu0 %v8588_v52  ;;  %v6197_v17 = vunpack.i.h.bf16 %v7696_v53  ;;  %v6196_v63 = vunpack.i.l.bf16 %v7696_v53 }
 0x111   :  { %5475 = vmatprep.subr.bf16.mxu0 %v7376_v47  ;;  %5221 = vmatmul.mubr.msk.f32.gmra.mrb[10].mxu1 %vm210_vm2, %v7622_v31 }
 0x112   :  { %5565 = vmatpush1.bf16.msra.mxu1 %v7562_v9  ;;  %4087 = vmatprep.mubr.f32.mxu1 %v8588_v52 }
 0x113   :  { %5223 = vmatmul.mubr.msk.f32.gmra.mrb[14].mxu0 %vm210_vm2, %v2754_v56  ;;  %v7712_v61 = vpop.permute.xlu1 %6204  ;;  %v7714_v44 = vpop.permute.xlu0 %6199  ;;  %5567 = vmatprep.subr.bf16.mxu1 %v7589_v49  ;;  %v4016_v49 = vld [vmem:[%s8543_s1 + $0xd8] sm:$0xff] }
 0x114   :  { %5477 = vmatpush1.bf16.msra.mxu0 %v7401_v10  ;;  %2902 = vmatprep.mubr.f32.mxu0 %v8588_v52 }
 0x115   :  { %5479 = vmatprep.subr.bf16.mxu0 %v7429_v19  ;;  %1399 = vperm.xlu0 %6368, %v17_v16  }
 0x116   :  { %5246 = vmatmul.mubr.msk.f32.vlgmr.msra.gmra.mrb[12].mxu1 %vm210_vm2, %v4015_v54 }
 0x117   :  { %5224 = vmatmul.mubr.msk.f32.vlgmr.msra.gmra.mrb[16].mxu0 %vm210_vm2, %v2753_v34  ;;  %v7729_v9 = vpop.permute.xlu1 %6214  ;;  %v7731_v26 = vpop.permute.xlu0 %6209  ;;  %5569 = vmatpush1.bf16.msra.mxu1 %v7591_v36 }
 0x118   :  { %5481 = vmatpush1.bf16.msra.mxu0 %v7465_v25  ;;  %5571 = vmatprep.subr.bf16.mxu1 %v7608_v30 }
 0x119   :  { %5483 = vmatprep.subr.bf16.mxu0 %v7489_v7  ;;  %2908 = vmatprep.mubr.f32.mxu0 %v8588_v52 }
 0x11a   :  { %4093 = vmatprep.mubr.f32.mxu1 %v8588_v52 }
 0x11b   :  { %5225 = vmatmul.mubr.msk.f32.gmra.mrb[18].mxu0 %vm210_vm2, %v2754_v56  ;;  %5247 = vmatmul.mubr.msk.f32.gmra.mrb[14].mxu1 %vm210_vm2, %v4016_v49  ;;  %v7744_v31 = vpop.permute.xlu1 %6224  ;;  %v7746_v14 = vpop.permute.xlu0 %6219 }
 0x11c   :  { %5485 = vmatpush1.bf16.msra.mxu0 %v7499_v50  ;;  %5573 = vmatpush1.bf16.msra.mxu1 %v7615_v20 }
 0x11d   :  { %5487 = vmatprep.subr.bf16.mxu0 %v7153_v6  ;;  %5575 = vmatprep.subr.bf16.mxu1 %v7636_v15  ;;  %v8576_v15 = vunpack.i.h.bf16 %v7698_v62 }
 0x11e   :  { %2979 = vmatprep.mubr.f32.mxu0 %v8588_v52  ;;  %4164 = vmatprep.mubr.f32.mxu1 %v8588_v52 }
 0x11f   :  { %5226 = vmatmul.mubr.msk.f32.vlgmr.msra.gmra.mrb[20].mxu0 %vm210_vm2, %v2753_v34  ;;  %5248 = vmatmul.mubr.msk.f32.vlgmr.msra.gmra.mrb[16].mxu1 %vm210_vm2, %v4015_v54  ;;  %v7756_v36 = vpop.permute.xlu1 %6234  ;;  %v7758_v30 = vpop.permute.xlu0 %6229  ;;  %v7861_v34 = vld [vmem:[%s8543_s1 + $0xc8] sm:$0xff] }
 0x120   :  { %5489 = vmatpush1.bf16.msra.mxu0 %v7205_v38  ;;  %5577 = vmatpush1.bf16.msra.mxu1 %v7638_v42  ;;  %v7777_v38 = vld [vmem:[%s8543_s1 + $0x80] sm:$0xff]  ;;  %v6191_v42 = vunpack.i.l.bf16 %v7698_v62 }
 0x121   :  { %5491 = vmatprep.subr.bf16.mxu0 %v7212_v28  ;;  %5579 = vmatprep.subr.bf16.mxu1 %v7658_v39 }
 0x122   :  { %2985 = vmatprep.mubr.f32.mxu0 %v8588_v52  ;;  %4170 = vmatprep.mubr.f32.mxu1 %v8588_v52  ;;  %v3301_v16 = vsel %vm3287_vm7, %v6191_v42, %v8576_v15  ;;  %v6222_v15 = vunpack.i.h.bf16 %v7746_v14 }
 0x123   :  { %5227 = vmatmul.mubr.msk.f32.gmra.mrb[22].mxu0 %vm210_vm2, %v2754_v56  ;;  %5249 = vmatmul.mubr.msk.f32.gmra.mrb[18].mxu1 %vm210_vm2, %v4016_v49  ;;  %v7768_v6 = vpop.permute.xlu1 %6244  ;;  %v7770_v20 = vpop.permute.xlu0 %6239 }
 0x124   :  { %5493 = vmatpush1.bf16.msra.mxu0 %v7255_v37  ;;  %5581 = vmatpush1.bf16.msra.mxu1 %v7660_v58 }
 0x125   :  { %5495 = vmatprep.subr.bf16.mxu0 %v7273_v29  ;;  %5583 = vmatprep.subr.bf16.mxu1 %v7197_v21  ;;  %v7795_v21 = vld [vmem:[%s8543_s1 + $0x88] sm:$0xff]  ;;  %v6167_v29 = vunpack.i.h.bf16 %v7648_v33  ;;  %v6242_v33 = vunpack.i.h.bf16 %v7770_v20 }
 0x126   :  { %3062 = vmatprep.mubr.f32.mxu0 %v8588_v52  ;;  %4241 = vmatprep.mubr.f32.mxu1 %v8588_v52 }
 0x127   :  { %5228 = vmatmul.mubr.msk.f32.vlgmr.msra.gmra.mrb[12].mxu0 %vm210_vm2, %v7777_v38  ;;  %5250 = vmatmul.mubr.msk.f32.vlgmr.msra.gmra.mrb[20].mxu1 %vm210_vm2, %v4015_v54  ;;  %v7786_v28 = vpop.permute.xlu1 %6254  ;;  %v7788_v37 = vpop.permute.xlu0 %6249  ;;  %v3307_v54 = vsel %vm3287_vm7, %v6196_v63, %v6197_v17 }
 0x128   :  { %5497 = vmatpush1.bf16.msra.mxu0 %v7307_v55  ;;  %5585 = vmatpush1.bf16.msra.mxu1 %v7199_v48  ;;  %v6177_v55 = vunpack.i.h.bf16 %v7667_v2  ;;  %v6176_v48 = vunpack.i.l.bf16 %v7667_v2 }
 0x129   :  { %5499 = vmatprep.subr.bf16.mxu0 %v7332_v40  ;;  %5587 = vmatprep.subr.bf16.mxu1 %v7246_v4  ;;  %v6182_v40 = vunpack.i.h.bf16 %v7683_v18  ;;  %v6181_v4 = vunpack.i.l.bf16 %v7683_v18  ;;  %v6207_v18 = vunpack.i.h.bf16 %v7712_v61 }
 0x12a   :  { %3068 = vmatprep.mubr.f32.mxu0 %v8588_v52  ;;  %4247 = vmatprep.mubr.f32.mxu1 %v8588_v52  ;;  %v3650_v39 = vsel %vm3643_vm6, %v6187_v1, %v6176_v48 }
 0x12b   :  { %5229 = vmatmul.mubr.msk.f32.gmra.mrb[14].mxu0 %vm210_vm2, %v7795_v21  ;;  %5251 = vmatmul.mubr.msk.f32.gmra.mrb[22].mxu1 %vm210_vm2, %v4016_v49  ;;  %v7827_v41 = vpop.permute.xlu1 %6264  ;;  %v3294_v58 = vsel %vm3287_vm7, %v6182_v40, %v6166_v35  ;;  %v3288_v59 = vsel %vm3287_vm7, %v6181_v4, %v6161_v27  ;;  %v6206_v49 = vunpack.i.l.bf16 %v7712_v61  ;;  %v6217_v4 = vunpack.i.h.bf16 %v7729_v9 }
 0x12c   :  { %5501 = vmatpush1.bf16.msra.mxu0 %v7328_v45  ;;  %5589 = vmatpush1.bf16.msra.mxu1 %v7305_v43  ;;  %v7829_v60 = vpop.permute.xlu0 %6259  ;;  %v3295_v43 = vsel %vm3287_vm7, %v6166_v35, %v6167_v29  ;;  %v3645_v45 = vsel %vm3643_vm6, %v6171_v24, %v6172_v51  ;;  %v6216_v35 = vunpack.i.l.bf16 %v7729_v9  ;;  %v5514_v9 = vpack.c.bf16 %v3307_v54, %v3301_v16 }
 0x12d   :  { %5503 = vmatprep.subr.bf16.mxu0 %v7389_v57  ;;  %5591 = vmatprep.subr.bf16.mxu1 %v7326_v22  ;;  %v3651_v22 = vsel %vm3643_vm6, %v6176_v48, %v6177_v55  ;;  %v3644_v57 = vsel %vm3643_vm6, %v6186_v5, %v6171_v24  ;;  %v6212_v48 = vunpack.i.h.bf16 %v7731_v26  ;;  %v6211_v24 = vunpack.i.l.bf16 %v7731_v26 }
 0x12e   :  { %3139 = vmatprep.mubr.f32.mxu0 %v8588_v52  ;;  %4324 = vmatprep.mubr.f32.mxu1 %v8588_v52  ;;  %v5510_v1 = vpack.c.bf16 %v3295_v43, %v3289_v0  ;;  %v7883_v5 = vpack.c.bf16 %v3651_v22, %v3645_v45  ;;  %v7885_v40 = vpack.c.bf16 %v3650_v39, %v3644_v57  ;;  %v6221_v0 = vunpack.i.l.bf16 %v7746_v14 }
 0x12f   :  { %5230 = vmatmul.mubr.msk.f32.vlgmr.msra.gmra.mrb[16].mxu0 %vm210_vm2, %v7777_v38  ;;  %5252 = vmatmul.mubr.msk.f32.vlgmr.msra.gmra.mrb[12].mxu1 %vm210_vm2, %v7825_v3  ;;  %v7863_v56 = vpop.permute.xlu1 %6274  ;;  %v5512_v26 = vpack.c.bf16 %v3294_v58, %v3288_v59  ;;  %v3663_v57 = vsel %vm3643_vm6, %v6206_v49, %v6207_v18  ;;  %v6236_v39 = vunpack.i.l.bf16 %v7756_v36  ;;  %v6231_v58 = vunpack.i.l.bf16 %v7758_v30 }
 0x130   :  { %5505 = vmatpush1.bf16.msra.mxu0 %v7411_v13  ;;  %5593 = vmatpush1.bf16.msra.mxu1 %v7348_v46  ;;  %v6202_v13 = vunpack.i.h.bf16 %v7714_v44  ;;  %v6201_v46 = vunpack.i.l.bf16 %v7714_v44  ;;  %v7877_v27 = vpop.permute.xlu0 %6269  ;;  %v3662_v59 = vsel %vm3643_vm6, %v6217_v4, %v6206_v49  ;;  %v6247_v54 = vunpack.i.h.bf16 %v7768_v6  ;;  %v7967_v4 = vld [vmem:[%s8543_s1 + $0xa0] sm:$0xff] }
 0x131   :  { %5507 = vmatprep.subr.bf16.mxu0 %v7471_v32  ;;  %5595 = vmatprep.subr.bf16.mxu1 %v7376_v47  ;;  %v6227_v32 = vunpack.i.h.bf16 %v7744_v31  ;;  %v6226_v47 = vunpack.i.l.bf16 %v7744_v31  ;;  %v6237_v49 = vunpack.i.h.bf16 %v7756_v36 }
 0x132   :  { %3145 = vmatprep.mubr.f32.mxu0 %v8588_v52  ;;  %4330 = vmatprep.mubr.f32.mxu1 %v8588_v52  ;;  %v3656_v43 = vsel %vm3643_vm6, %v6216_v35, %v6201_v46  ;;  %v3657_v22 = vsel %vm3643_vm6, %v6201_v46, %v6202_v13  ;;  %v6232_v46 = vunpack.i.h.bf16 %v7758_v30  ;;  %v6246_v35 = vunpack.i.l.bf16 %v7768_v6  ;;  %v19_v30 = vld [vmem:[%s8545_s3] sm:$0xff] }
 0x133   :  { %5231 = vmatmul.mubr.msk.f32.gmra.mrb[18].mxu0 %vm210_vm2, %v7795_v21  ;;  %5253 = vmatmul.mubr.msk.f32.gmra.mrb[14].mxu1 %vm210_vm2, %v7861_v34  ;;  %v3296_v16 = vsel %vm3287_vm7, %v6167_v29, %v6226_v47  ;;  %v7939_v11 = vpack.c.bf16 %v3663_v57, %v3657_v22  ;;  %v6266_v57 = vunpack.i.l.bf16 %v7827_v41 }
 0x134   :  { %5509 = vmatpush1.bf16.msra.mxu0 %v7487_v12  ;;  %5597 = vmatpush1.bf16.msra.mxu1 %v7401_v10  ;;  %v7900_v45 = vpop.permute.xlu1 %6284  ;;  %v3306_v12 = vsel %vm3287_vm7, %v6212_v48, %v6196_v63  ;;  %v3300_v10 = vsel %vm3287_vm7, %v6211_v24, %v6191_v42  ;;  %v3297_v63 = vsel %vm3287_vm7, %v6226_v47, %v6227_v32  ;;  %v6241_v48 = vunpack.i.l.bf16 %v7770_v20 }
 0x135   :  { %5511 = vmatprep.subr.bf16.mxu0 %v5510_v1  ;;  %5599 = vmatprep.subr.bf16.mxu1 %v7429_v19  ;;  %v7914_v19 = vpop.permute.xlu0 %6279  ;;  %v3290_v42 = vsel %vm3287_vm7, %v6162_v8, %v6221_v0  ;;  %v5516_v29 = vpack.c.bf16 %v3306_v12, %v3300_v10  ;;  %v3652_v8 = vsel %vm3643_vm6, %v6177_v55, %v6236_v39  ;;  %v6267_v55 = vunpack.i.h.bf16 %v7827_v41 }
 0x136   :  { %3216 = vmatprep.mubr.f32.mxu0 %v8588_v52  ;;  %4401 = vmatprep.mubr.f32.mxu1 %v8588_v52  ;;  %v5520_v1 = vpack.c.bf16 %v3296_v16, %v3290_v42  ;;  %v3309_v47 = vsel %vm3287_vm7, %v6246_v35, %v6247_v54  ;;  %v6261_v12 = vunpack.i.l.bf16 %v7829_v60  ;;  %v6257_v10 = vunpack.i.h.bf16 %v7786_v28 }
 0x137   :  { %5232 = vmatmul.mubr.msk.f32.vlgmr.msra.gmra.mrb[20].mxu0 %vm210_vm2, %v7777_v38  ;;  %5254 = vmatmul.mubr.msk.f32.vlgmr.msra.gmra.mrb[16].mxu1 %vm210_vm2, %v7825_v3  ;;  %v3291_v38 = vsel %vm3287_vm7, %v6221_v0, %v6222_v15  ;;  %v3653_v0 = vsel %vm3643_vm6, %v6236_v39, %v6237_v49  ;;  %v6287_v39 = vunpack.i.h.bf16 %v7900_v45  ;;  %v6282_v53 = vunpack.i.h.bf16 %v7914_v19 }
 0x138   :  { %5513 = vmatpush1.bf16.msra.mxu0 %v5512_v26  ;;  %5601 = vmatpush1.bf16.msra.mxu1 %v7465_v25  ;;  %v3646_v25 = vsel %vm3643_vm6, %v6172_v51, %v6231_v58  ;;  %v5518_v23 = vpack.c.bf16 %v3297_v63, %v3291_v38  ;;  %v6262_v51 = vunpack.i.h.bf16 %v7829_v60  ;;  %v6252_v41 = vunpack.i.h.bf16 %v7788_v37 }
 0x139   :  { %5515 = vmatprep.subr.bf16.mxu0 %v5514_v9  ;;  %5603 = vmatprep.subr.bf16.mxu1 %v7489_v7  ;;  %v7951_v24 = vpop.permute.xlu1 %6294  ;;  %v7953_v7 = vpack.c.bf16 %v3662_v59, %v3656_v43  ;;  %v7975_v26 = vpack.c.bf16 %v3652_v8, %v3646_v25  ;;  %v3308_v9 = vsel %vm3287_vm7, %v6197_v17, %v6246_v35  ;;  %v8612_v43 = vunpack.i.h.bf16 %v7698_v62  ;;  %v8011_v59 = vld [vmem:[%s8543_s1 + $0xa8] sm:$0xff] }
 0x13a   :  { %3222 = vmatprep.mubr.f32.mxu0 %v8588_v52  ;;  %4407 = vmatprep.mubr.f32.mxu1 %v8588_v52  ;;  %v7959_v2 = vpop.permute.xlu0 %6289  ;;  %v6256_v17 = vunpack.i.l.bf16 %v7786_v28  ;;  %v3293_v16 = vsel %vm3287_vm7, %v6261_v12, %v6262_v51  ;;  %v6251_v63 = vunpack.i.l.bf16 %v7788_v37  ;;  %v6286_v42 = vunpack.i.l.bf16 %v7900_v45 }
 0x13b   :  { %5233 = vmatmul.mubr.msk.f32.gmra.mrb[22].mxu0 %vm210_vm2, %v7795_v21  ;;  %5255 = vmatmul.mubr.msk.f32.gmra.mrb[18].mxu1 %vm210_vm2, %v7861_v34  ;;  %v3303_v21 = vsel %vm3287_vm7, %v6241_v48, %v6242_v33  ;;  %v3302_v22 = vsel %vm3287_vm7, %v8612_v43, %v6241_v48  ;;  %v6281_v38 = vunpack.i.l.bf16 %v7914_v19  ;;  %v3298_v25 = vsel %vm3287_vm7, %v6227_v32, %v6266_v57  ;;  %v8043_v32 = vld [vmem:[%s8543_s1 + $0xe0] sm:$0xff] }
 0x13c   :  { %5517 = vmatpush1.bf16.msra.mxu0 %v5516_v29  ;;  %5605 = vmatpush1.bf16.msra.mxu1 %v7499_v50  ;;  %v3647_v50 = vsel %vm3643_vm6, %v6231_v58, %v6232_v46  ;;  %v5522_v62 = vpack.c.bf16 %v3309_v47, %v3303_v21  ;;  %v5524_v8 = vpack.c.bf16 %v3308_v9, %v3302_v22  ;;  %v6277_v48 = vunpack.i.h.bf16 %v7863_v56 }
 0x13d   :  { %5519 = vmatprep.subr.bf16.mxu0 %v5518_v23  ;;  %5607 = vmatprep.subr.bf16.mxu1 %v7883_v5  ;;  %v8019_v29 = vpack.c.bf16 %v3653_v0, %v3647_v50  ;;  %v3292_v35 = vsel %vm3287_vm7, %v6222_v15, %v6261_v12  ;;  %v3305_v19 = vsel %vm3287_vm7, %v6281_v38, %v6282_v53  ;;  %v6276_v15 = vunpack.i.l.bf16 %v7863_v56 }
 0x13e   :  { %3406 = vmatprep.mubr.f32.mxu0 %v8588_v52  ;;  %4478 = vmatprep.mubr.f32.mxu1 %v8588_v52  ;;  %v3311_v31 = vsel %vm3287_vm7, %v6286_v42, %v6287_v39  ;;  %v3664_v14 = vsel %vm3643_vm6, %v6207_v18, %v6256_v17  ;;  %v3665_v61 = vsel %vm3643_vm6, %v6256_v17, %v6257_v10  ;;  %v6271_v23 = vunpack.i.l.bf16 %v7877_v27 }
 0x13f   :  { %5234 = vmatmul.mubr.msk.f32.vlgmr.msra.gmra.mrb[12].mxu0 %vm210_vm2, %v7967_v4  ;;  %5256 = vmatmul.mubr.msk.f32.vlgmr.msra.gmra.mrb[20].mxu1 %vm210_vm2, %v7825_v3  ;;  %v8004_v60 = vpop.permute.xlu1 %6304  ;;  %v3299_v3 = vsel %vm3287_vm7, %v6266_v57, %v6267_v55  ;;  %v3658_v18 = vsel %vm3643_vm6, %v6202_v13, %v6251_v63  ;;  %v5528_v21 = vpack.c.bf16 %v3298_v25, %v3292_v35  ;;  %v6297_v47 = vunpack.i.h.bf16 %v7951_v24 }
 0x140   :  { %5521 = vmatpush1.bf16.msra.mxu0 %v5520_v1  ;;  %5609 = vmatpush1.bf16.msra.mxu1 %v7885_v40  ;;  %v8006_v58 = vpop.permute.xlu0 %6299  ;;  %v5526_v45 = vpack.c.bf16 %v3299_v3, %v3293_v16  ;;  %v6272_v1 = vunpack.i.h.bf16 %v7877_v27  ;;  %v6292_v44 = vunpack.i.h.bf16 %v7959_v2  ;;  %v5530_v56 = vpack.c.bf16 %v3311_v31, %v3305_v19 }
 0x141   :  { %5523 = vmatprep.subr.bf16.mxu0 %v5522_v62  ;;  %5611 = vmatprep.subr.bf16.mxu1 %v7939_v11  ;;  %v3310_v13 = vsel %vm3287_vm7, %v6247_v54, %v6286_v42  ;;  %v3304_v27 = vsel %vm3287_vm7, %v6242_v33, %v6281_v38  ;;  %v8078_v0 = vpack.c.bf16 %v3664_v14, %v3658_v18  ;;  %v6296_v54 = vunpack.i.l.bf16 %v7951_v24  ;;  %v8089_v33 = vld [vmem:[%s8543_s1 + $0xe8] sm:$0xff] }
 0x142   :  { %3412 = vmatprep.mubr.f32.mxu0 %v8588_v52  ;;  %4484 = vmatprep.mubr.f32.mxu1 %v8588_v52  ;;  %v3654_v6 = vsel %vm3643_vm6, %v6237_v49, %v6276_v15  ;;  %v6291_v20 = vunpack.i.l.bf16 %v7959_v2  ;;  %v3648_v9 = vsel %vm3643_vm6, %v6232_v46, %v6271_v23  ;;  %v3649_v36 = vsel %vm3643_vm6, %v6271_v23, %v6272_v1  ;;  %v20_v42 = vld [vmem:[%s8545_s3 + $0x8] sm:$0xff]  ;;  %v8189_v23 = vld [vmem:[%s8543_s1 + $0xb0] sm:$0xff] }
 0x143   :  { %5235 = vmatmul.mubr.msk.f32.gmra.mrb[14].mxu0 %vm210_vm2, %v8011_v59  ;;  %5257 = vmatmul.mubr.msk.f32.gmra.mrb[22].mxu1 %vm210_vm2, %v7861_v34  ;;  %v3659_v34 = vsel %vm3643_vm6, %v6251_v63, %v6252_v41  ;;  %v3655_v49 = vsel %vm3643_vm6, %v6276_v15, %v6277_v48  ;;  %v5532_v24 = vpack.c.bf16 %v3310_v13, %v3304_v27  ;;  %v6307_v57 = vunpack.i.h.bf16 %v8004_v60 }
 0x144   :  { %5525 = vmatpush1.bf16.msra.mxu0 %v5524_v8  ;;  %5613 = vmatpush1.bf16.msra.mxu1 %v7953_v7  ;;  %v8057_v55 = vpop.permute.xlu1 %6314  ;;  %v8076_v50 = vpack.c.bf16 %v3665_v61, %v3659_v34  ;;  %v3661_v46 = vsel %vm3643_vm6, %v6291_v20, %v6292_v44  ;;  %v3667_v22 = vsel %vm3643_vm6, %v6296_v54, %v6297_v47  ;;  %v6306_v12 = vunpack.i.l.bf16 %v8004_v60 }
 0x145   :  { %v8059_v51 = vpop.permute.xlu0 %6309  ;;  %5527 = vmatprep.subr.bf16.mxu0 %v5526_v45  ;;  %5615 = vmatprep.subr.bf16.mxu1 %v8019_v29  ;;  %v6302_v39 = vunpack.i.h.bf16 %v8006_v58  ;;  %v6301_v53 = vunpack.i.l.bf16 %v8006_v58  ;;  %v8117_v62 = vpack.c.bf16 %v3655_v49, %v3649_v36  ;;  %v8119_v17 = vpack.c.bf16 %v3654_v6, %v3648_v9 }
 0x146   :  { %3483 = vmatprep.mubr.f32.mxu0 %v8588_v52  ;;  %4563 = vmatprep.mubr.f32.mxu1 %v8588_v52  ;;  %v3666_v16 = vsel %vm3643_vm6, %v6257_v10, %v6296_v54  ;;  %v3660_v3 = vsel %vm3643_vm6, %v6252_v41, %v6291_v20  ;;  %v8135_v38 = vpack.c.bf16 %v3667_v22, %v3661_v46  ;;  %v6312_v28 = vunpack.i.h.bf16 %v8059_v51  ;;  %v8214_v20 = vld [vmem:[%s8543_s1 + $0xb8] sm:$0xff] }
 0x147   :  { %5236 = vmatmul.mubr.msk.f32.vlgmr.msra.gmra.mrb[16].mxu0 %vm210_vm2, %v7967_v4  ;;  %5258 = vmatmul.mubr.msk.f32.vlgmr.msra.gmra.mrb[12].mxu1 %vm210_vm2, %v8043_v32  ;;  %v4802_v37 = vsel %vm4800_vm8, %v6301_v53, %v6302_v39  ;;  %v4808_v41 = vsel %vm4800_vm8, %v6306_v12, %v6307_v57  ;;  %v6317_v8 = vunpack.i.h.bf16 %v8057_v55  ;;  %v6316_v25 = vunpack.i.l.bf16 %v8057_v55  ;;  %v4743_v55 = vld [vmem:[%s8543_s1 + $0xf8] sm:$0xff] }
 0x148   :  { %5529 = vmatpush1.bf16.msra.mxu0 %v5528_v21  ;;  %5617 = vmatpush1.bf16.msra.mxu1 %v7975_v26  ;;  %v5630_v19 = vpack.c.bf16 %v4808_v41, %v4802_v37  ;;  %v4807_v31 = vsel %vm4800_vm8, %v6312_v28, %v6306_v12 }
 0x149   :  { %5619 = vmatprep.subr.bf16.mxu1 %v8076_v50  ;;  %3489 = vmatprep.mubr.f32.mxu0 %v8588_v52  ;;  %v8098_v2 = vpop.permute.xlu1 %6324  ;;  %v4814_v48 = vsel %vm4800_vm8, %v6316_v25, %v6317_v8 }
 0x14a   :  { %v8100_v43 = vpop.permute.xlu0 %6319  ;;  %4569 = vmatprep.mubr.f32.mxu1 %v8588_v52  ;;  %5531 = vmatprep.subr.bf16.mxu0 %v5530_v56  ;;  %v6327_v15 = vunpack.i.h.bf16 %v8098_v2  ;;  %v6326_v34 = vunpack.i.l.bf16 %v8098_v2 }
 0x14b   :  { %5237 = vmatmul.mubr.msk.f32.gmra.mrb[18].mxu0 %vm210_vm2, %v8011_v59  ;;  %5259 = vmatmul.mubr.msk.f32.gmra.mrb[14].mxu1 %vm210_vm2, %v8089_v33  ;;  %v6322_v35 = vunpack.i.h.bf16 %v8100_v43  ;;  %v6321_v45 = vunpack.i.l.bf16 %v8100_v43 }
 0x14c   :  { %5533 = vmatpush1.bf16.msra.mxu0 %v5532_v24  ;;  %5621 = vmatpush1.bf16.msra.mxu1 %v8078_v0  ;;  %v4813_v47 = vsel %vm4800_vm8, %v6326_v34, %v6316_v25 }
 0x14d   :  { %1421 = vperm.xlu1 %6369, %v19_v30   ;;  %5535 = vmatprep.subr.bf16.mxu0 %v7883_v5  ;;  %v8128_v63 = vpop.permute.xlu1 %6334  ;;  %v6311_v5 = vunpack.i.l.bf16 %v8059_v51  ;;  %v4820_v1 = vsel %vm4800_vm8, %v6321_v45, %v6322_v35  ;;  %v4819_v44 = vsel %vm4800_vm8, %v6327_v15, %v6321_v45 }
 0x14e   :  { %5623 = vmatprep.subr.bf16.mxu1 %v8117_v62  ;;  %3560 = vmatprep.mubr.f32.mxu0 %v8588_v52  ;;  %v8139_v10 = vpop.permute.xlu0 %6329  ;;  %v6336_v51 = vunpack.i.l.bf16 %v8128_v63  ;;  %v5636_v9 = vpack.c.bf16 %v4819_v44, %v4813_v47 }
 0x14f   :  { %4640 = vmatprep.mubr.f32.mxu1 %v8588_v52  ;;  %5238 = vmatmul.mubr.msk.f32.vlgmr.msra.gmra.mrb[20].mxu0 %vm210_vm2, %v7967_v4  ;;  %v8158_v4 = vpack.c.bf16 %v3666_v16, %v3660_v3  ;;  %v4801_v14 = vsel %vm4800_vm8, %v6311_v5, %v6301_v53  ;;  %v6332_v61 = vunpack.i.h.bf16 %v8139_v10  ;;  %v6331_v21 = vunpack.i.l.bf16 %v8139_v10 }
 0x150   :  { %5260 = vmatmul.mubr.msk.f32.vlgmr.msra.gmra.mrb[16].mxu1 %vm210_vm2, %v8043_v32  ;;  %5537 = vmatpush1.bf16.msra.mxu0 %v7885_v40  ;;  %v6337_v40 = vunpack.i.h.bf16 %v8128_v63  ;;  %v4809_v49 = vsel %vm4800_vm8, %v6307_v57, %v6336_v51 }
 0x151   :  { %5625 = vmatpush1.bf16.msra.mxu1 %v8119_v17  ;;  %1426 = vperm.xlu0 %6368, %v20_v42   ;;  %v4804_v6 = vsel %vm4800_vm8, %v6331_v21, %v6332_v61 }
 0x152   :  { %5539 = vmatprep.subr.bf16.mxu0 %v7939_v11  ;;  %5627 = vmatprep.subr.bf16.mxu1 %v8135_v38  ;;  %v8170_v11 = vpop.permute.xlu1 %6344  ;;  %v8172_v18 = vpop.permute.xlu0 %6339  ;;  %v4810_v54 = vsel %vm4800_vm8, %v6336_v51, %v6337_v40 }
 0x153   :  { %3566 = vmatprep.mubr.f32.mxu0 %v8588_v52  ;;  %4646 = vmatprep.mubr.f32.mxu1 %v8588_v52  ;;  %v6347_v56 = vunpack.i.h.bf16 %v8170_v11  ;;  %v6342_v13 = vunpack.i.h.bf16 %v8172_v18  ;;  %v6341_v36 = vunpack.i.l.bf16 %v8172_v18  ;;  %v5638_v24 = vpack.c.bf16 %v4810_v54, %v4804_v6 }
 0x154   :  { %5239 = vmatmul.mubr.msk.f32.gmra.mrb[22].mxu0 %vm210_vm2, %v8011_v59  ;;  %5261 = vmatmul.mubr.msk.f32.gmra.mrb[18].mxu1 %vm210_vm2, %v8089_v33  ;;  %v5632_v59 = vpack.c.bf16 %v4807_v31, %v4801_v14 }
 0x155   :  { %5541 = vmatpush1.bf16.msra.mxu0 %v7953_v7  ;;  %5629 = vmatpush1.bf16.msra.mxu1 %v8158_v4  ;;  %v5634_v7 = vpack.c.bf16 %v4820_v1, %v4814_v48  ;;  %v4816_v60 = vsel %vm4800_vm8, %v6341_v36, %v6342_v13 }
 0x156   :  { %5543 = vmatprep.subr.bf16.mxu0 %v8019_v29  ;;  %5631 = vmatprep.subr.bf16.mxu1 %v5630_v19  ;;  %v6355_v29 = vpop.permute.xlu1 %6354  ;;  %v6350_v27 = vpop.permute.xlu0 %6349 }
 0x157   :  { %3762 = vmatprep.mubr.f32.mxu0 %v8588_v52  ;;  %4717 = vmatprep.mubr.f32.mxu1 %v8588_v52  ;;  %v6357_v2 = vunpack.i.h.bf16 %v6355_v29  ;;  %v6352_v30 = vunpack.i.h.bf16 %v6350_v27  ;;  %v6356_v22 = vunpack.i.l.bf16 %v6355_v29  ;;  %v6351_v57 = vunpack.i.l.bf16 %v6350_v27 }
 0x158   :  { %5240 = vmatmul.mubr.msk.f32.vlgmr.msra.gmra.mrb[12].mxu0 %vm210_vm2, %v8189_v23  ;;  %5262 = vmatmul.mubr.msk.f32.vlgmr.msra.gmra.mrb[20].mxu1 %vm210_vm2, %v8043_v32  ;;  %v6346_v32 = vunpack.i.l.bf16 %v8170_v11 }
 0x159   :  { %5545 = vmatpush1.bf16.msra.mxu0 %v7975_v26  ;;  %5633 = vmatpush1.bf16.msra.mxu1 %v5632_v59  ;;  %v4803_v26 = vsel %vm4800_vm8, %v6302_v39, %v6331_v21  ;;  %v4806_v3 = vsel %vm4800_vm8, %v6351_v57, %v6352_v30  ;;  %v4805_v25 = vsel %vm4800_vm8, %v6332_v61, %v6351_v57 }
 0x15a   :  { %5547 = vmatprep.subr.bf16.mxu0 %v8076_v50  ;;  %5635 = vmatprep.subr.bf16.mxu1 %v5634_v7  ;;  %v4822_v58 = vsel %vm4800_vm8, %v6346_v32, %v6347_v56  ;;  %v4742_v50 = vld [vmem:[%s8543_s1 + $0xf0] sm:$0xff]  ;;  %v5640_v46 = vpack.c.bf16 %v4809_v49, %v4803_v26  ;;  %v6365_v12 = vpop.permute.xlu1 %6364  ;;  %v6360_v39 = vpop.permute.xlu0 %6359 }
 0x15b   :  { %3768 = vmatprep.mubr.f32.mxu0 %v8588_v52  ;;  %4723 = vmatprep.mubr.f32.mxu1 %v8588_v52  ;;  %v6367_v53 = vunpack.i.h.bf16 %v6365_v12  ;;  %v6362_v16 = vunpack.i.h.bf16 %v6360_v39  ;;  %v5642_v43 = vpack.c.bf16 %v4822_v58, %v4816_v60  ;;  %v6366_v42 = vunpack.i.l.bf16 %v6365_v12 }
 0x15c   :  { %5241 = vmatmul.mubr.msk.f32.gmra.mrb[14].mxu0 %vm210_vm2, %v8214_v20  ;;  %5263 = vmatmul.mubr.msk.f32.gmra.mrb[22].mxu1 %vm210_vm2, %v8089_v33  ;;  %v4821_v33 = vsel %vm4800_vm8, %v6322_v35, %v6346_v32  ;;  %v6361_v28 = vunpack.i.l.bf16 %v6360_v39 }
 0x15d   :  { %5549 = vmatpush1.bf16.msra.mxu0 %v8078_v0  ;;  %5637 = vmatpush1.bf16.msra.mxu1 %v5636_v9  ;;  %v4815_v0 = vsel %vm4800_vm8, %v6317_v8, %v6341_v36  ;;  %v4824_v8 = vsel %vm4800_vm8, %v6366_v42, %v6367_v53  ;;  %v4823_v10 = vsel %vm4800_vm8, %v6347_v56, %v6366_v42 }
 0x15e   :  { %5551 = vmatprep.subr.bf16.mxu0 %v8117_v62  ;;  %3839 = vmatprep.mubr.f32.mxu0 %v8588_v52  ;;  %v4812_v62 = vsel %vm4800_vm8, %v6356_v22, %v6357_v2  ;;  %v5644_v5 = vpack.c.bf16 %v4821_v33, %v4815_v0  ;;  %v4818_v41 = vsel %vm4800_vm8, %v6361_v28, %v6362_v16 }
 0x15f   :  { %4919 = vmatprep.mubr.f32.mxu1 %v8588_v52  ;;  %5639 = vmatprep.subr.bf16.mxu1 %v5638_v24  ;;  %v5646_v37 = vpack.c.bf16 %v4812_v62, %v4806_v3  ;;  %v4817_v35 = vsel %vm4800_vm8, %v6342_v13, %v6361_v28 }
 0x160   :  { %5242 = vmatmul.mubr.msk.f32.vlgmr.msra.gmra.mrb[16].mxu0 %vm210_vm2, %v8189_v23  ;;  %5264 = vmatmul.mubr.msk.f32.vlgmr.msra.gmra.mrb[12].mxu1 %vm210_vm2, %v4742_v50  ;;  %v5652_v45 = vpack.c.bf16 %v4823_v10, %v4817_v35 }
 0x161   :  { %5553 = vmatpush1.bf16.msra.mxu0 %v8119_v17  ;;  %5641 = vmatpush1.bf16.msra.mxu1 %v5640_v46  ;;  %v4811_v17 = vsel %vm4800_vm8, %v6337_v40, %v6356_v22 }
 0x162   :  { %5555 = vmatprep.subr.bf16.mxu0 %v8135_v38  ;;  %3845 = vmatprep.mubr.f32.mxu0 %v8588_v52  ;;  %v5650_v38 = vpack.c.bf16 %v4824_v8, %v4818_v41  ;;  %v5648_v63 = vpack.c.bf16 %v4811_v17, %v4805_v25 }
 0x163   :  { %4925 = vmatprep.mubr.f32.mxu1 %v8588_v52  ;;  %5643 = vmatprep.subr.bf16.mxu1 %v5642_v43 }
 0x164   :  { %5243 = vmatmul.mubr.msk.f32.gmra.mrb[18].mxu0 %vm210_vm2, %v8214_v20  ;;  %5265 = vmatmul.mubr.msk.f32.gmra.mrb[14].mxu1 %vm210_vm2, %v4743_v55 }
 0x165   :  { %5557 = vmatpush1.bf16.msra.mxu0 %v8158_v4  ;;  %5645 = vmatpush1.bf16.msra.mxu1 %v5644_v5 }
 0x166   :  { %3916 = vmatprep.mubr.f32.mxu0 %v8588_v52  ;;  %4996 = vmatprep.mubr.f32.mxu1 %v8588_v52 }
 0x167   :  { %5647 = vmatprep.subr.bf16.mxu1 %v5646_v37 }
 0x168   :  { %5244 = vmatmul.mubr.msk.f32.vlgmr.msra.gmra.mrb[20].mxu0 %vm210_vm2, %v8189_v23  ;;  %5266 = vmatmul.mubr.msk.f32.vlgmr.msra.gmra.mrb[16].mxu1 %vm210_vm2, %v4742_v50 }
 0x169   :  { %5649 = vmatpush1.bf16.msra.mxu1 %v5648_v63  ;;  %3922 = vmatprep.mubr.f32.mxu0 %v8588_v52 }
 0x16a   :  { %5002 = vmatprep.mubr.f32.mxu1 %v8588_v52  ;;  %5651 = vmatprep.subr.bf16.mxu1 %v5650_v38 }
 0x16c   :  { %5245 = vmatmul.mubr.msk.f32.gmra.mrb[22].mxu0 %vm210_vm2, %v8214_v20  ;;  %5267 = vmatmul.mubr.msk.f32.gmra.mrb[18].mxu1 %vm210_vm2, %v4743_v55 }
 0x16d   :  { %5653 = vmatpush1.bf16.msra.mxu1 %v5652_v45  ;;  %5073 = vmatprep.mubr.f32.mxu1 %v8588_v52 }
 0x170   :  { %5268 = vmatmul.mubr.msk.f32.vlgmr.msra.gmra.mrb[20].mxu1 %vm210_vm2, %v4742_v50 }
 0x171   :  { %5079 = vmatprep.mubr.f32.mxu1 %v8588_v52  ;;  %v8294_v4 = vpop.permute.xlu1 %1404 }
 0x174   :  { %5269 = vmatmul.mubr.msk.f32.gmra.mrb[22].mxu1 %vm210_vm2, %v4743_v55 }
 0x194   :  { %v8296_v19 = vpop.permute.xlu0 %1399 }
 0x1c9   :  { %v1220_v31 = vpop.f32.mrb[0].mxu0 }
 0x1ca   :  { %v1407_v14 = vmul.f32 %v8296_v19, %v1220_v31  ;;  %v1222_v15 = vpop.f32.mrb[1].mxu0 }
 0x1cb   :  { %v1408_v34 = vmul.f32 %v8296_v19, %v1222_v15 }
 0x1cc   :  { %v8300_v40 = vpop.permute.xlu1 %1421 }
 0x1cd   :  { %v1429_v61 = vadd.f32 %v8300_v40, %v1407_v14  ;;  %v1430_v11 = vadd.f32 %v8300_v40, %v1408_v34  ;;  %v1226_v18 = vpop.f32.mrb[2].mxu0 }
 0x1ce   :  { %v1413_v48 = vmul.f32 %v8294_v4, %v1226_v18  ;;  %v1228_v1 = vpop.f32.mrb[3].mxu0 }
 0x1cf   :  { %vm1441_vm9 = vcmp.gt.f32.partialorder %v1429_v61, 0.0  ;;  %v1453_v52 = vmul.f32 0.1, %v1429_v61  ;;  %vm1442_vm10 = vcmp.gt.f32.partialorder %v1430_v11, 0.0  ;;  %v1454_v23 = vmul.f32 0.1, %v1430_v11 }
 0x1d0   :  { %v1414_v59 = vmul.f32 %v8294_v4, %v1228_v1  ;;  %v8306_v51 = vpop.permute.xlu0 %1426  ;;  %v2502_v21 = vpop.f32.mrb[0].mxu1 }
 0x1d1   :  { %v1465_v47 = vsel %vm1441_vm9, %v1429_v61, %v1453_v52  ;;  %v1435_v44 = vadd.f32 %v8306_v51, %v1413_v48  ;;  %v2679_v7 = vmul.f32 %v2502_v21, %v8296_v19  ;;  %v2504_v56 = vpop.f32.mrb[1].mxu1  ;;  %v1466_v13 = vsel %vm1442_vm10, %v1430_v11, %v1454_v23 }
 0x1d2   :  { %1477 = vst [vmem:[%s8546_s4] sm:$0xff] %v1465_v47  ;;  %v1436_v29 = vadd.f32 %v8306_v51, %v1414_v59  ;;  %v1297_v27 = vpop.f32.mrb[4].mxu0  ;;  %v2680_v6 = vmul.f32 %v2504_v56, %v8296_v19  ;;  %1478 = vst [vmem:[%s8546_s4 + $0x8] sm:$0xff] %v1466_v13 }
 0x1d3   :  { %vm1447_vm11 = vcmp.gt.f32.partialorder %v1435_v44, 0.0  ;;  %v1459_v54 = vmul.f32 0.1, %v1435_v44  ;;  %v1409_v20 = vmul.f32 %v8296_v19, %v1297_v27  ;;  %v2691_v9 = vadd.f32 %v2679_v7, %v8300_v40  ;;  %v1299_v32 = vpop.f32.mrb[5].mxu0 }
 0x1d4   :  { %vm1448_vm12 = vcmp.gt.f32.partialorder %v1436_v29, 0.0  ;;  %v1460_v36 = vmul.f32 0.1, %v1436_v29  ;;  %v1410_v49 = vmul.f32 %v8296_v19, %v1299_v32  ;;  %v2692_v26 = vadd.f32 %v2680_v6, %v8300_v40  ;;  %v2508_v24 = vpop.f32.mrb[2].mxu1 }
 0x1d5   :  { %v1471_v2 = vsel %vm1447_vm11, %v1435_v44, %v1459_v54  ;;  %v1431_v30 = vadd.f32 %v8300_v40, %v1409_v20  ;;  %vm2703_vm13 = vcmp.gt.f32.partialorder %v2691_v9, 0.0  ;;  %v2715_v60 = vmul.f32 0.1, %v2691_v9  ;;  %v2510_v58 = vpop.f32.mrb[3].mxu1 }
 0x1d6   :  { %v1472_v50 = vsel %vm1448_vm12, %v1436_v29, %v1460_v36  ;;  %1483 = vst [vmem:[%s8546_s4 + $0x30] sm:$0xff] %v1471_v2  ;;  %v1432_v46 = vadd.f32 %v8300_v40, %v1410_v49  ;;  %vm2704_vm14 = vcmp.gt.f32.partialorder %v2692_v26, 0.0  ;;  %v2716_v33 = vmul.f32 0.1, %v2692_v26  ;;  %v1303_v22 = vpop.f32.mrb[6].mxu0 }
 0x1d7   :  { %1484 = vst [vmem:[%s8546_s4 + $0x38] sm:$0xff] %v1472_v50  ;;  %vm1443_vm15 = vcmp.gt.f32.partialorder %v1431_v30, 0.0  ;;  %v1455_v57 = vmul.f32 0.1, %v1431_v30  ;;  %v2727_v12 = vsel %vm2703_vm13, %v2691_v9, %v2715_v60  ;;  %v1415_v39 = vmul.f32 %v8294_v4, %v1303_v22  ;;  %v1305_v0 = vpop.f32.mrb[7].mxu0 }
 0x1d8   :  { %2739 = vst [vmem:[%s8546_s4 + $0x60] sm:$0xff] %v2727_v12  ;;  %vm1444_vm0 = vcmp.gt.f32.partialorder %v1432_v46, 0.0  ;;  %v1456_v53 = vmul.f32 0.1, %v1432_v46  ;;  %v2728_v16 = vsel %vm2704_vm14, %v2692_v26, %v2716_v33  ;;  %v2685_v43 = vmul.f32 %v2508_v24, %v8294_v4  ;;  %v2579_v3 = vpop.f32.mrb[4].mxu1 }
 0x1d9   :  { %v1467_v62 = vsel %vm1443_vm15, %v1431_v30, %v1455_v57  ;;  %2740 = vst [vmem:[%s8546_s4 + $0x68] sm:$0xff] %v2728_v16  ;;  %v1437_v42 = vadd.f32 %v8306_v51, %v1415_v39  ;;  %v1416_v28 = vmul.f32 %v8294_v4, %v1305_v0  ;;  %v2686_v55 = vmul.f32 %v2510_v58, %v8294_v4  ;;  %v2581_v5 = vpop.f32.mrb[5].mxu1 }
 0x1da   :  { %1479 = vst [vmem:[%s8546_s4 + $0x10] sm:$0xff] %v1467_v62  ;;  %v1468_v37 = vsel %vm1444_vm0, %v1432_v46, %v1456_v53  ;;  %v2697_v41 = vadd.f32 %v2685_v43, %v8306_v51  ;;  %v1374_v8 = vpop.f32.mrb[8].mxu0  ;;  %v2681_v17 = vmul.f32 %v2579_v3, %v8296_v19  ;;  %v2682_v25 = vmul.f32 %v2581_v5, %v8296_v19 }
 0x1db   :  { %1480 = vst [vmem:[%s8546_s4 + $0x18] sm:$0xff] %v1468_v37  ;;  %vm1449_vm1 = vcmp.gt.f32.partialorder %v1437_v42, 0.0  ;;  %v1461_v38 = vmul.f32 0.1, %v1437_v42  ;;  %v1438_v63 = vadd.f32 %v8306_v51, %v1416_v28  ;;  %v2698_v10 = vadd.f32 %v2686_v55, %v8306_v51  ;;  %v1376_v35 = vpop.f32.mrb[9].mxu0 }
 0x1dc   :  { %vm2709_vm2 = vcmp.gt.f32.partialorder %v2697_v41, 0.0  ;;  %v2721_v45 = vmul.f32 0.1, %v2697_v41  ;;  %v1411_v31 = vmul.f32 %v8296_v19, %v1374_v8  ;;  %v2693_v14 = vadd.f32 %v2681_v17, %v8300_v40  ;;  %v2585_v15 = vpop.f32.mrb[6].mxu1 }
 0x1dd   :  { %v1473_v34 = vsel %vm1449_vm1, %v1437_v42, %v1461_v38  ;;  %vm1450_vm3 = vcmp.gt.f32.partialorder %v1438_v63, 0.0  ;;  %v1462_v61 = vmul.f32 0.1, %v1438_v63  ;;  %vm2710_vm4 = vcmp.gt.f32.partialorder %v2698_v10, 0.0  ;;  %v2587_v11 = vpop.f32.mrb[7].mxu1 }
 0x1de   :  { %1485 = vst [vmem:[%s8546_s4 + $0x40] sm:$0xff] %v1473_v34  ;;  %v2733_v18 = vsel %vm2709_vm2, %v2697_v41, %v2721_v45  ;;  %v2722_v52 = vmul.f32 0.1, %v2698_v10  ;;  %v1433_v48 = vadd.f32 %v8300_v40, %v1411_v31  ;;  %vm2705_vm5 = vcmp.gt.f32.partialorder %v2693_v14, 0.0  ;;  %v1380_v1 = vpop.f32.mrb[10].mxu0 }
 0x1df   :  { %2745 = vst [vmem:[%s8546_s4 + $0x90] sm:$0xff] %v2733_v18  ;;  %v1474_v23 = vsel %vm1450_vm3, %v1438_v63, %v1462_v61  ;;  %v2717_v59 = vmul.f32 0.1, %v2693_v14  ;;  %v1412_v21 = vmul.f32 %v8296_v19, %v1376_v35  ;;  %v2694_v47 = vadd.f32 %v2682_v25, %v8300_v40  ;;  %v1382_v44 = vpop.f32.mrb[11].mxu0 }
 0x1e0   :  { %1486 = vst [vmem:[%s8546_s4 + $0x48] sm:$0xff] %v1474_v23  ;;  %v2734_v7 = vsel %vm2710_vm4, %v2698_v10, %v2722_v52  ;;  %vm1445_vm6 = vcmp.gt.f32.partialorder %v1433_v48, 0.0  ;;  %v1457_v56 = vmul.f32 0.1, %v1433_v48  ;;  %v1417_v13 = vmul.f32 %v8294_v4, %v1380_v1  ;;  %v2656_v29 = vpop.f32.mrb[8].mxu1 }
 0x1e1   :  { %2746 = vst [vmem:[%s8546_s4 + $0x98] sm:$0xff] %v2734_v7  ;;  %v2729_v27 = vsel %vm2705_vm5, %v2693_v14, %v2717_v59  ;;  %v1434_v6 = vadd.f32 %v8300_v40, %v1412_v21  ;;  %vm2706_vm7 = vcmp.gt.f32.partialorder %v2694_v47, 0.0  ;;  %v2718_v54 = vmul.f32 0.1, %v2694_v47  ;;  %v2658_v20 = vpop.f32.mrb[9].mxu1 }
 0x1e2   :  { %v1469_v9 = vsel %vm1445_vm6, %v1433_v48, %v1457_v56  ;;  %2741 = vst [vmem:[%s8546_s4 + $0x70] sm:$0xff] %v2729_v27  ;;  %v1439_v32 = vadd.f32 %v8306_v51, %v1417_v13  ;;  %v2687_v36 = vmul.f32 %v2585_v15, %v8294_v4  ;;  %v1418_v49 = vmul.f32 %v8294_v4, %v1382_v44 }
 0x1e3   :  { %1481 = vst [vmem:[%s8546_s4 + $0x20] sm:$0xff] %v1469_v9  ;;  %vm1446_vm8 = vcmp.gt.f32.partialorder %v1434_v6, 0.0  ;;  %v1458_v26 = vmul.f32 0.1, %v1434_v6  ;;  %v2730_v24 = vsel %vm2706_vm7, %v2694_v47, %v2718_v54  ;;  %v2688_v2 = vmul.f32 %v2587_v11, %v8294_v4 }
 0x1e4   :  { %2742 = vst [vmem:[%s8546_s4 + $0x78] sm:$0xff] %v2730_v24  ;;  %vm1451_vm9 = vcmp.gt.f32.partialorder %v1439_v32, 0.0  ;;  %v1463_v30 = vmul.f32 0.1, %v1439_v32  ;;  %v2699_v60 = vadd.f32 %v2687_v36, %v8306_v51  ;;  %v1440_v58 = vadd.f32 %v8306_v51, %v1418_v49  ;;  %v2662_v57 = vpop.f32.mrb[10].mxu1 }
 0x1e5   :  { %v1470_v50 = vsel %vm1446_vm8, %v1434_v6, %v1458_v26  ;;  %v2700_v46 = vadd.f32 %v2688_v2, %v8306_v51  ;;  %v2683_v33 = vmul.f32 %v2656_v29, %v8296_v19  ;;  %v2684_v22 = vmul.f32 %v2658_v20, %v8296_v19  ;;  %v2664_v0 = vpop.f32.mrb[11].mxu1 }
 0x1e6   :  { %1482 = vst [vmem:[%s8546_s4 + $0x28] sm:$0xff] %v1470_v50  ;;  %v1475_v12 = vsel %vm1451_vm9, %v1439_v32, %v1463_v30  ;;  %vm2711_vm10 = vcmp.gt.f32.partialorder %v2699_v60, 0.0  ;;  %v2723_v39 = vmul.f32 0.1, %v2699_v60  ;;  %vm1452_vm11 = vcmp.gt.f32.partialorder %v1440_v58, 0.0 }
 0x1e7   :  { %1487 = vst [vmem:[%s8546_s4 + $0x50] sm:$0xff] %v1475_v12  ;;  %v1464_v53 = vmul.f32 0.1, %v1440_v58  ;;  %vm2712_vm12 = vcmp.gt.f32.partialorder %v2700_v46, 0.0  ;;  %v2724_v16 = vmul.f32 0.1, %v2700_v46  ;;  %v2695_v43 = vadd.f32 %v2683_v33, %v8300_v40 }
 0x1e8   :  { %v2735_v3 = vsel %vm2711_vm10, %v2699_v60, %v2723_v39  ;;  %v2696_v62 = vadd.f32 %v2684_v22, %v8300_v40  ;;  %v2689_v42 = vmul.f32 %v2662_v57, %v8294_v4  ;;  %v2690_v28 = vmul.f32 %v2664_v0, %v8294_v4 }
 0x1e9   :  { %2747 = vst [vmem:[%s8546_s4 + $0xa0] sm:$0xff] %v2735_v3  ;;  %v1476_v55 = vsel %vm1452_vm11, %v1440_v58, %v1464_v53  ;;  %v2736_v5 = vsel %vm2712_vm12, %v2700_v46, %v2724_v16  ;;  %vm2707_vm13 = vcmp.gt.f32.partialorder %v2695_v43, 0.0  ;;  %v2719_v37 = vmul.f32 0.1, %v2695_v43 }
 0x1ea   :  { %1488 = vst [vmem:[%s8546_s4 + $0x58] sm:$0xff] %v1476_v55  ;;  %2748 = vst [vmem:[%s8546_s4 + $0xa8] sm:$0xff] %v2736_v5  ;;  %vm2708_vm14 = vcmp.gt.f32.partialorder %v2696_v62, 0.0  ;;  %v2720_v41 = vmul.f32 0.1, %v2696_v62  ;;  %v2701_v8 = vadd.f32 %v2689_v42, %v8306_v51  ;;  %v2702_v17 = vadd.f32 %v2690_v28, %v8306_v51 }
 0x1eb   :  { %v2731_v25 = vsel %vm2707_vm13, %v2695_v43, %v2719_v37 }
 0x1ec   :  { %2743 = vst [vmem:[%s8546_s4 + $0x80] sm:$0xff] %v2731_v25  ;;  %v2732_v38 = vsel %vm2708_vm14, %v2696_v62, %v2720_v41  ;;  %vm2713_vm15 = vcmp.gt.f32.partialorder %v2701_v8, 0.0  ;;  %v2725_v63 = vmul.f32 0.1, %v2701_v8  ;;  %vm2714_vm0 = vcmp.gt.f32.partialorder %v2702_v17, 0.0 }
 0x1ed   :  { %2744 = vst [vmem:[%s8546_s4 + $0x88] sm:$0xff] %v2732_v38  ;;  %v2726_v10 = vmul.f32 0.1, %v2702_v17 }
 0x1ee   :  { %v2737_v35 = vsel %vm2713_vm15, %v2701_v8, %v2725_v63 }
 0x1ef   :  { %2749 = vst [vmem:[%s8546_s4 + $0xb0] sm:$0xff] %v2737_v35  ;;  %v2738_v45 = vsel %vm2714_vm0, %v2702_v17, %v2726_v10 }
 0x1f0   :  { %2750 = vst [vmem:[%s8546_s4 + $0xb8] sm:$0xff] %v2738_v45 }
 0x22b   :  { %v3764_v31 = vpop.f32.mrb[12].mxu0 }
 0x22c   :  { %v3941_v14 = vmul.f32 %v3764_v31, %v8296_v19  ;;  %v3766_v15 = vpop.f32.mrb[13].mxu0 }
 0x22d   :  { %v3942_v34 = vmul.f32 %v3766_v15, %v8296_v19 }
 0x22e   :  { %v3953_v61 = vadd.f32 %v3941_v14, %v8300_v40 }
 0x22f   :  { %v3954_v11 = vadd.f32 %v3942_v34, %v8300_v40  ;;  %v3770_v18 = vpop.f32.mrb[14].mxu0 }
 0x230   :  { %vm3965_vm1 = vcmp.gt.f32.partialorder %v3953_v61, 0.0  ;;  %v3977_v52 = vmul.f32 0.1, %v3953_v61  ;;  %v3947_v48 = vmul.f32 %v3770_v18, %v8294_v4  ;;  %v3772_v1 = vpop.f32.mrb[15].mxu0 }
 0x231   :  { %vm3966_vm2 = vcmp.gt.f32.partialorder %v3954_v11, 0.0  ;;  %v3978_v23 = vmul.f32 0.1, %v3954_v11  ;;  %v3948_v59 = vmul.f32 %v3772_v1, %v8294_v4 }
 0x232   :  { %v3989_v21 = vsel %vm3965_vm1, %v3953_v61, %v3977_v52  ;;  %v3959_v47 = vadd.f32 %v3947_v48, %v8306_v51 }
 0x233   :  { %4001 = vst [vmem:[%s8546_s4 + $0xc0] sm:$0xff] %v3989_v21  ;;  %v3990_v44 = vsel %vm3966_vm2, %v3954_v11, %v3978_v23  ;;  %v3960_v7 = vadd.f32 %v3948_v59, %v8306_v51  ;;  %v3841_v56 = vpop.f32.mrb[16].mxu0  ;;  %v4921_v13 = vpop.f32.mrb[12].mxu1 }
 0x234   :  { %4002 = vst [vmem:[%s8546_s4 + $0xc8] sm:$0xff] %v3990_v44  ;;  %vm3971_vm3 = vcmp.gt.f32.partialorder %v3959_v47, 0.0  ;;  %v3983_v29 = vmul.f32 0.1, %v3959_v47  ;;  %v3943_v27 = vmul.f32 %v3841_v56, %v8296_v19  ;;  %v5098_v6 = vmul.f32 %v4921_v13, %v8296_v19  ;;  %v3843_v54 = vpop.f32.mrb[17].mxu0  ;;  %v4923_v20 = vpop.f32.mrb[13].mxu1 }
 0x235   :  { %vm3972_vm4 = vcmp.gt.f32.partialorder %v3960_v7, 0.0  ;;  %v3984_v9 = vmul.f32 0.1, %v3960_v7  ;;  %v3944_v32 = vmul.f32 %v3843_v54, %v8296_v19  ;;  %v5099_v36 = vmul.f32 %v4923_v20, %v8296_v19 }
 0x236   :  { %v3995_v49 = vsel %vm3971_vm3, %v3959_v47, %v3983_v29  ;;  %v3955_v26 = vadd.f32 %v3943_v27, %v8300_v40  ;;  %v5110_v24 = vadd.f32 %v5098_v6, %v8300_v40 }
 0x237   :  { %4007 = vst [vmem:[%s8546_s4 + $0xf0] sm:$0xff] %v3995_v49  ;;  %v3996_v2 = vsel %vm3972_vm4, %v3960_v7, %v3984_v9  ;;  %v3956_v30 = vadd.f32 %v3944_v32, %v8300_v40  ;;  %v5111_v60 = vadd.f32 %v5099_v36, %v8300_v40  ;;  %v3847_v58 = vpop.f32.mrb[18].mxu0  ;;  %v4927_v50 = vpop.f32.mrb[14].mxu1 }
 0x238   :  { %4008 = vst [vmem:[%s8546_s4 + $0xf8] sm:$0xff] %v3996_v2  ;;  %vm3967_vm5 = vcmp.gt.f32.partialorder %v3955_v26, 0.0  ;;  %v3979_v46 = vmul.f32 0.1, %v3955_v26  ;;  %vm5122_vm6 = vcmp.gt.f32.partialorder %v5110_v24, 0.0  ;;  %v3949_v0 = vmul.f32 %v3847_v58, %v8294_v4  ;;  %v3849_v16 = vpop.f32.mrb[19].mxu0 }
 0x239   :  { %v5134_v33 = vmul.f32 0.1, %v5110_v24  ;;  %vm3968_vm7 = vcmp.gt.f32.partialorder %v3956_v30, 0.0  ;;  %v3980_v22 = vmul.f32 0.1, %v3956_v30  ;;  %vm5123_vm8 = vcmp.gt.f32.partialorder %v5111_v60, 0.0 }
 0x23a   :  { %v5135_v57 = vmul.f32 0.1, %v5111_v60  ;;  %v3991_v12 = vsel %vm3967_vm5, %v3955_v26, %v3979_v46  ;;  %v5104_v53 = vmul.f32 %v4927_v50, %v8294_v4  ;;  %v4929_v43 = vpop.f32.mrb[15].mxu1  ;;  %v3950_v42 = vmul.f32 %v3849_v16, %v8294_v4 }
 0x23b   :  { %v5146_v39 = vsel %vm5122_vm6, %v5110_v24, %v5134_v33  ;;  %4003 = vst [vmem:[%s8546_s4 + $0xd0] sm:$0xff] %v3991_v12  ;;  %v3992_v3 = vsel %vm3968_vm7, %v3956_v30, %v3980_v22  ;;  %v5105_v28 = vmul.f32 %v4929_v43, %v8294_v4  ;;  %v3918_v55 = vpop.f32.mrb[20].mxu0  ;;  %v4998_v5 = vpop.f32.mrb[16].mxu1  ;;  %v3961_v37 = vadd.f32 %v3949_v0, %v8306_v51 }
 0x23c   :  { %5158 = vst [vmem:[%s8546_s4 + $0x120] sm:$0xff] %v5146_v39  ;;  %v5147_v62 = vsel %vm5123_vm8, %v5111_v60, %v5135_v57  ;;  %4004 = vst [vmem:[%s8546_s4 + $0xd8] sm:$0xff] %v3992_v3  ;;  %v5116_v41 = vadd.f32 %v5104_v53, %v8306_v51  ;;  %v3945_v8 = vmul.f32 %v3918_v55, %v8296_v19  ;;  %v3920_v25 = vpop.f32.mrb[21].mxu0  ;;  %v5000_v38 = vpop.f32.mrb[17].mxu1 }
 0x23d   :  { %5159 = vst [vmem:[%s8546_s4 + $0x128] sm:$0xff] %v5147_v62  ;;  %v5100_v17 = vmul.f32 %v4998_v5, %v8296_v19  ;;  %v3962_v63 = vadd.f32 %v3950_v42, %v8306_v51  ;;  %v5117_v10 = vadd.f32 %v5105_v28, %v8306_v51  ;;  %v3946_v35 = vmul.f32 %v3920_v25, %v8296_v19 }
 0x23e   :  { %v5101_v45 = vmul.f32 %v5000_v38, %v8296_v19  ;;  %vm3973_vm9 = vcmp.gt.f32.partialorder %v3961_v37, 0.0  ;;  %v3985_v31 = vmul.f32 0.1, %v3961_v37  ;;  %vm5128_vm10 = vcmp.gt.f32.partialorder %v5116_v41, 0.0 }
 0x23f   :  { %v5140_v14 = vmul.f32 0.1, %v5116_v41  ;;  %vm3974_vm11 = vcmp.gt.f32.partialorder %v3962_v63, 0.0  ;;  %v3986_v15 = vmul.f32 0.1, %v3962_v63  ;;  %vm5129_vm12 = vcmp.gt.f32.partialorder %v5117_v10, 0.0 }
 0x240   :  { %v5141_v34 = vmul.f32 0.1, %v5117_v10  ;;  %v3997_v61 = vsel %vm3973_vm9, %v3961_v37, %v3985_v31  ;;  %v3957_v18 = vadd.f32 %v3945_v8, %v8300_v40  ;;  %v5112_v52 = vadd.f32 %v5100_v17, %v8300_v40  ;;  %v3924_v48 = vpop.f32.mrb[22].mxu0  ;;  %v5004_v1 = vpop.f32.mrb[18].mxu1 }
 0x241   :  { %v5152_v11 = vsel %vm5128_vm10, %v5116_v41, %v5140_v14  ;;  %4009 = vst [vmem:[%s8546_s4 + $0x100] sm:$0xff] %v3997_v61  ;;  %v3998_v23 = vsel %vm3974_vm11, %v3962_v63, %v3986_v15  ;;  %v3958_v21 = vadd.f32 %v3946_v35, %v8300_v40  ;;  %v5113_v47 = vadd.f32 %v5101_v45, %v8300_v40  ;;  %v3926_v44 = vpop.f32.mrb[23].mxu0  ;;  %v5006_v7 = vpop.f32.mrb[19].mxu1 }
 0x242   :  { %5164 = vst [vmem:[%s8546_s4 + $0x150] sm:$0xff] %v5152_v11  ;;  %v5153_v59 = vsel %vm5129_vm12, %v5117_v10, %v5141_v34  ;;  %4010 = vst [vmem:[%s8546_s4 + $0x108] sm:$0xff] %v3998_v23  ;;  %vm3969_vm13 = vcmp.gt.f32.partialorder %v3957_v18, 0.0  ;;  %v3981_v56 = vmul.f32 0.1, %v3957_v18  ;;  %vm5124_vm14 = vcmp.gt.f32.partialorder %v5112_v52, 0.0 }
 0x243   :  { %5165 = vst [vmem:[%s8546_s4 + $0x158] sm:$0xff] %v5153_v59  ;;  %v5136_v13 = vmul.f32 0.1, %v5112_v52  ;;  %vm3970_vm15 = vcmp.gt.f32.partialorder %v3958_v21, 0.0  ;;  %v3982_v29 = vmul.f32 0.1, %v3958_v21  ;;  %v3951_v20 = vmul.f32 %v3924_v48, %v8294_v4 }
 0x244   :  { %vm5125_vm0 = vcmp.gt.f32.partialorder %v5113_v47, 0.0  ;;  %v5137_v27 = vmul.f32 0.1, %v5113_v47  ;;  %v3993_v6 = vsel %vm3969_vm13, %v3957_v18, %v3981_v56  ;;  %v5106_v9 = vmul.f32 %v5004_v1, %v8294_v4  ;;  %v5075_v32 = vpop.f32.mrb[20].mxu1 }
 0x245   :  { %v5148_v54 = vsel %vm5124_vm14, %v5112_v52, %v5136_v13  ;;  %4005 = vst [vmem:[%s8546_s4 + $0xe0] sm:$0xff] %v3993_v6  ;;  %v3994_v36 = vsel %vm3970_vm15, %v3958_v21, %v3982_v29  ;;  %v3952_v26 = vmul.f32 %v3926_v44, %v8294_v4  ;;  %v5107_v24 = vmul.f32 %v5006_v7, %v8294_v4  ;;  %v5077_v2 = vpop.f32.mrb[21].mxu1 }
 0x246   :  { %5160 = vst [vmem:[%s8546_s4 + $0x130] sm:$0xff] %v5148_v54  ;;  %v5149_v49 = vsel %vm5125_vm0, %v5113_v47, %v5137_v27  ;;  %4006 = vst [vmem:[%s8546_s4 + $0xe8] sm:$0xff] %v3994_v36  ;;  %v3963_v30 = vadd.f32 %v3951_v20, %v8306_v51  ;;  %v5118_v60 = vadd.f32 %v5106_v9, %v8306_v51 }
 0x247   :  { %5161 = vst [vmem:[%s8546_s4 + $0x138] sm:$0xff] %v5149_v49  ;;  %v5102_v58 = vmul.f32 %v5075_v32, %v8296_v19  ;;  %v5103_v50 = vmul.f32 %v5077_v2, %v8296_v19  ;;  %v3964_v46 = vadd.f32 %v3952_v26, %v8306_v51  ;;  %v5119_v33 = vadd.f32 %v5107_v24, %v8306_v51  ;;  %v5081_v22 = vpop.f32.mrb[22].mxu1 }
 0x248   :  { %vm3975_vm1 = vcmp.gt.f32.partialorder %v3963_v30, 0.0  ;;  %v3987_v57 = vmul.f32 0.1, %v3963_v30  ;;  %vm5130_vm2 = vcmp.gt.f32.partialorder %v5118_v60, 0.0  ;;  %v5142_v12 = vmul.f32 0.1, %v5118_v60 }
 0x249   :  { %vm3976_vm3 = vcmp.gt.f32.partialorder %v3964_v46, 0.0  ;;  %v3988_v39 = vmul.f32 0.1, %v3964_v46  ;;  %vm5131_vm4 = vcmp.gt.f32.partialorder %v5119_v33, 0.0  ;;  %v5143_v0 = vmul.f32 0.1, %v5119_v33 }
 0x24a   :  { %v3999_v53 = vsel %vm3975_vm1, %v3963_v30, %v3987_v57  ;;  %v5154_v16 = vsel %vm5130_vm2, %v5118_v60, %v5142_v12  ;;  %v5114_v43 = vadd.f32 %v5102_v58, %v8300_v40  ;;  %v5115_v3 = vadd.f32 %v5103_v50, %v8300_v40  ;;  %v5083_v19 = vpop.f32.mrb[23].mxu1 }
 0x24b   :  { %4011 = vst [vmem:[%s8546_s4 + $0x110] sm:$0xff] %v3999_v53  ;;  %5166 = vst [vmem:[%s8546_s4 + $0x160] sm:$0xff] %v5154_v16  ;;  %v4000_v62 = vsel %vm3976_vm3, %v3964_v46, %v3988_v39  ;;  %v5155_v42 = vsel %vm5131_vm4, %v5119_v33, %v5143_v0  ;;  %v5108_v28 = vmul.f32 %v5081_v22, %v8294_v4 }
 0x24c   :  { %v5109_v55 = vmul.f32 %v5083_v19, %v8294_v4  ;;  %4012 = vst [vmem:[%s8546_s4 + $0x118] sm:$0xff] %v4000_v62  ;;  %5167 = vst [vmem:[%s8546_s4 + $0x168] sm:$0xff] %v5155_v42  ;;  %vm5126_vm5 = vcmp.gt.f32.partialorder %v5114_v43, 0.0  ;;  %v5138_v40 = vmul.f32 0.1, %v5114_v43  ;;  %vm5127_vm6 = vcmp.gt.f32.partialorder %v5115_v3, 0.0 }
 0x24d   :  { %v5139_v5 = vmul.f32 0.1, %v5115_v3  ;;  %v5120_v37 = vadd.f32 %v5108_v28, %v8306_v51 }
 0x24e   :  { %v5121_v41 = vadd.f32 %v5109_v55, %v8306_v51  ;;  %v5150_v8 = vsel %vm5126_vm5, %v5114_v43, %v5138_v40 }
 0x24f   :  { %v5151_v17 = vsel %vm5127_vm6, %v5115_v3, %v5139_v5  ;;  %5162 = vst [vmem:[%s8546_s4 + $0x140] sm:$0xff] %v5150_v8  ;;  %vm5132_vm7 = vcmp.gt.f32.partialorder %v5120_v37, 0.0  ;;  %v5144_v4 = vmul.f32 0.1, %v5120_v37 }
 0x250   :  { %5163 = vst [vmem:[%s8546_s4 + $0x148] sm:$0xff] %v5151_v17  ;;  %vm5133_vm8 = vcmp.gt.f32.partialorder %v5121_v41, 0.0  ;;  %v5145_v25 = vmul.f32 0.1, %v5121_v41 }
 0x251   :  { %v5156_v38 = vsel %vm5132_vm7, %v5120_v37, %v5144_v4 }
 0x252   :  { %v5157_v63 = vsel %vm5133_vm8, %v5121_v41, %v5145_v25  ;;  %5168 = vst [vmem:[%s8546_s4 + $0x170] sm:$0xff] %v5156_v38 }
 0x253   :  { %5169 = vst [vmem:[%s8546_s4 + $0x178] sm:$0xff] %v5157_v63 }

// kernel: generator_forward.9
= control target key start
LH: loop header
LB: loop body
LE: loop exit
PB: predicated region body
PF: predicated region fallthrough
CT: control target
= control target key end

     0   :  { %s9558_s25 = smov 127   ;;  %v11352_v38 = vmov 0.0   ;;  %s9560_s8 = smov 126   ;;  %vm211_vm0 = vcmask 1039360   ;;  %vm288_vm1 = vcmask 130048   ;;  %vm9565_vm2 = vmmov 0   ;;  %s11349_s0 = inlined_call_operand.vmem [shape: f32[16,2560], index: 0, kind: input, shape index: {}]   ;;  %s11350_s1 = inlined_call_operand.vmem [shape: f32[72,16], index: 1, kind: input, shape index: {}]   ;;  %s11351_s2 = inlined_call_operand.vmem [shape: f32[8,2432], index: 2, kind: output, shape index: {}]  }
   0x1   :  { %v9587_v0 = vld [vmem:[%s11349_s0 + $0x20] sm:$0xff]  ;;  %v9592_v1 = vld [vmem:[%s11349_s0 + $0x28] sm:$0xff]  ;;  %v9611_v5 = vld [vmem:[%s11349_s0 + $0x30] sm:$0xff]  ;;  %356 = vmatprep.mubr.f32.mxu0 %v11352_v38  ;;  %427 = vmatprep.mubr.f32.mxu1 %v11352_v38  ;;  %s9562_s9 = smov 93   ;;  %s9563_s12 = smov 92   ;;  %vm1794_vm3 = vcmask 1031168  }
   0x2   :  { %v9597_v2 = vld [vmem:[%s11349_s0] sm:$0xff]  ;;  %v9601_v3 = vpack.i.bf16 %v9592_v1, %v9587_v0  ;;  %v9606_v4 = vld [vmem:[%s11349_s0 + $0x8] sm:$0xff]  ;;  %v9616_v6 = vld [vmem:[%s11349_s0 + $0x38] sm:$0xff]  ;;  %s9566_s19 = smov 60   ;;  %vm2683_vm4 = vcmask 769024   ;;  %vm3572_vm5 = vcmask 760832  }
   0x3   :  { %v9620_v7 = vpack.i.bf16 %v9606_v4, %v9597_v2  ;;  %v9625_v8 = vld [vmem:[%s11349_s0 + $0x10] sm:$0xff]  ;;  %v9630_v9 = vld [vmem:[%s11349_s0 + $0x18] sm:$0xff]  ;;  %v9636_v10 = vpack.i.bf16 %v9616_v6, %v9611_v5  ;;  %v9657_v14 = vld [vmem:[%s11349_s0 + $0x40] sm:$0xff]  ;;  %s9567_s5 = smov 59   ;;  %vm4461_vm6 = vcmask 752640   ;;  %vm5350_vm7 = vcmask 490496  }
   0x4   :  { %8691 = vrot.lane.b32.xlu1 %v9601_v3, %s9558_s25  ;;  %v9642_v11 = vpack.i.bf16 %v9630_v9, %v9625_v8  ;;  %v9647_v12 = vld [vmem:[%s11349_s0 + $0x50] sm:$0xff]  ;;  %v9652_v13 = vld [vmem:[%s11349_s0 + $0x58] sm:$0xff]  ;;  %11384 = vst [vmem:[#allocation4_spill] sm:$0xff] %v9657_v14  ;;  %v9662_v15 = vld [vmem:[%s11349_s0 + $0x48] sm:$0xff]  ;;  %vm6239_vm8 = vcmask 482304   ;;  %vm7128_vm9 = vcmask 474112  }
   0x5   :  { %8681 = vrot.lane.b32.xlu0 %v9620_v7, %s9558_s25  ;;  %11382 = vst [vmem:[#allocation2_spill] sm:$0xff] %v9647_v12  ;;  %11383 = vst [vmem:[#allocation3_spill] sm:$0xff] %v9652_v13  ;;  %v9668_v16 = vpack.i.bf16 %v9652_v13, %v9647_v12  ;;  %v9674_v17 = vpack.i.bf16 %v9662_v15, %v9657_v14  ;;  %v9679_v18 = vld [vmem:[%s11349_s0 + $0x70] sm:$0xff]  ;;  %v9684_v19 = vld [vmem:[%s11349_s0 + $0x78] sm:$0xff] }
   0x6   :  { %11385 = vst [vmem:[#allocation5_spill] sm:$0xff] %v9679_v18  ;;  %11386 = vst [vmem:[#allocation6_spill] sm:$0xff] %v9684_v19  ;;  %v9689_v20 = vld [vmem:[%s11349_s0 + $0x60] sm:$0xff]  ;;  %v9694_v21 = vld [vmem:[%s11349_s0 + $0x68] sm:$0xff]  ;;  %v9700_v22 = vpack.i.bf16 %v9684_v19, %v9679_v18 }
   0x7   :  { %11387 = vst [vmem:[#allocation7_spill] sm:$0xff] %v9689_v20  ;;  %11388 = vst [vmem:[#allocation8_spill] sm:$0xff] %v9694_v21  ;;  %v9706_v23 = vpack.i.bf16 %v9694_v21, %v9689_v20  ;;  %v9711_v24 = vld [vmem:[%s11349_s0 + $0x90] sm:$0xff]  ;;  %v9716_v25 = vld [vmem:[%s11349_s0 + $0x98] sm:$0xff] }
   0x8   :  { %8696 = vrot.lane.b32.xlu1 %v9636_v10, %s9558_s25  ;;  %v9721_v26 = vld [vmem:[%s11349_s0 + $0x80] sm:$0xff]  ;;  %v9726_v27 = vld [vmem:[%s11349_s0 + $0x88] sm:$0xff]  ;;  %v9732_v28 = vpack.i.bf16 %v9716_v25, %v9711_v24  ;;  %v9743_v30 = vld [vmem:[%s11349_s0 + $0xb0] sm:$0xff] }
   0x9   :  { %8686 = vrot.lane.b32.xlu0 %v9642_v11, %s9558_s25  ;;  %11389 = vst [vmem:[#allocation9_spill] sm:$0xff] %v9721_v26  ;;  %11390 = vst [vmem:[#allocation10_spill] sm:$0xff] %v9726_v27  ;;  %v9738_v29 = vpack.i.bf16 %v9726_v27, %v9721_v26  ;;  %v9748_v31 = vld [vmem:[%s11349_s0 + $0xb8] sm:$0xff]  ;;  %v9753_v32 = vld [vmem:[%s11349_s0 + $0xa0] sm:$0xff] }
   0xa   :  { %v9758_v33 = vld [vmem:[%s11349_s0 + $0xa8] sm:$0xff]  ;;  %v9764_v34 = vpack.i.bf16 %v9748_v31, %v9743_v30  ;;  %v9775_v36 = vld [vmem:[%s11349_s0 + $0xd0] sm:$0xff]  ;;  %v9780_v37 = vld [vmem:[%s11349_s0 + $0xd8] sm:$0xff] }
   0xb   :  { %v9770_v35 = vpack.i.bf16 %v9758_v33, %v9753_v32  ;;  %v9786_v39 = vld [vmem:[%s11349_s0 + $0xc0] sm:$0xff]  ;;  %v9791_v40 = vld [vmem:[%s11349_s0 + $0xc8] sm:$0xff]  ;;  %v8745_v41 = vpack.i.bf16 %v9780_v37, %v9775_v36  ;;  %v9807_v43 = vld [vmem:[%s11349_s0 + $0xf0] sm:$0xff] }
   0xc   :  { %8706 = vrot.lane.b32.xlu1 %v9668_v16, %s9558_s25  ;;  %v9802_v42 = vpack.i.bf16 %v9791_v40, %v9786_v39  ;;  %11391 = vst [vmem:[#allocation11_spill] sm:$0xff] %v9807_v43  ;;  %v9812_v44 = vld [vmem:[%s11349_s0 + $0xf8] sm:$0xff]  ;;  %v9817_v45 = vld [vmem:[%s11349_s0 + $0xe0] sm:$0xff]  ;;  %v9822_v46 = vld [vmem:[%s11349_s0 + $0xe8] sm:$0xff] }
   0xd   :  { %8701 = vrot.lane.b32.xlu0 %v9674_v17, %s9558_s25  ;;  %11392 = vst [vmem:[#allocation12_spill] sm:$0xff] %v9812_v44  ;;  %11393 = vst [vmem:[#allocation13_spill] sm:$0xff] %v9817_v45  ;;  %v8755_v47 = vpack.i.bf16 %v9812_v44, %v9807_v43  ;;  %v8750_v48 = vpack.i.bf16 %v9822_v46, %v9817_v45  ;;  %v9834_v49 = vld [vmem:[%s11349_s0 + $0x110] sm:$0xff]  ;;  %v9839_v50 = vld [vmem:[%s11349_s0 + $0x118] sm:$0xff] }
   0xe   :  { %11394 = vst [vmem:[#allocation14_spill] sm:$0xff] %v9834_v49  ;;  %11395 = vst [vmem:[#allocation15_spill] sm:$0xff] %v9839_v50  ;;  %v9844_v51 = vld [vmem:[%s11349_s0 + $0x100] sm:$0xff]  ;;  %v9849_v52 = vld [vmem:[%s11349_s0 + $0x108] sm:$0xff]  ;;  %v8765_v53 = vpack.i.bf16 %v9839_v50, %v9834_v49 }
   0xf   :  { %11396 = vst [vmem:[#allocation16_spill] sm:$0xff] %v9844_v51  ;;  %11397 = vst [vmem:[#allocation17_spill] sm:$0xff] %v9849_v52  ;;  %v8760_v54 = vpack.i.bf16 %v9849_v52, %v9844_v51  ;;  %v9860_v55 = vld [vmem:[%s11349_s0 + $0x130] sm:$0xff]  ;;  %v9865_v56 = vld [vmem:[%s11349_s0 + $0x138] sm:$0xff] }
  0x10   :  { %8716 = vrot.lane.b32.xlu1 %v9700_v22, %s9558_s25  ;;  %11398 = vst [vmem:[#allocation18_spill] sm:$0xff] %v9860_v55  ;;  %v9870_v57 = vld [vmem:[%s11349_s0 + $0x120] sm:$0xff]  ;;  %v9875_v58 = vld [vmem:[%s11349_s0 + $0x128] sm:$0xff]  ;;  %v8775_v59 = vpack.i.bf16 %v9865_v56, %v9860_v55 }
  0x11   :  { %8711 = vrot.lane.b32.xlu0 %v9706_v23, %s9558_s25  ;;  %11399 = vst [vmem:[#allocation19_spill] sm:$0xff] %v9870_v57  ;;  %11400 = vst [vmem:[#allocation20_spill] sm:$0xff] %v9875_v58  ;;  %v8770_v60 = vpack.i.bf16 %v9875_v58, %v9870_v57 }
  0x14   :  { %8726 = vrot.lane.b32.xlu1 %v9732_v28, %s9558_s25 }
  0x15   :  { %8721 = vrot.lane.b32.xlu0 %v9738_v29, %s9558_s25 }
  0x18   :  { %8736 = vrot.lane.b32.xlu1 %v9764_v34, %s9558_s25 }
  0x19   :  { %8731 = vrot.lane.b32.xlu0 %v9770_v35, %s9558_s25 }
  0x1c   :  { %8746 = vrot.lane.b32.xlu1 %v8745_v41, %s9558_s25 }
  0x1d   :  { %8741 = vrot.lane.b32.xlu0 %v9802_v42, %s9558_s25 }
  0x20   :  { %8756 = vrot.lane.b32.xlu1 %v8755_v47, %s9558_s25 }
  0x21   :  { %8751 = vrot.lane.b32.xlu0 %v8750_v48, %s9558_s25 }
  0x24   :  { %8766 = vrot.lane.b32.xlu1 %v8765_v53, %s9558_s25 }
  0x25   :  { %8761 = vrot.lane.b32.xlu0 %v8760_v54, %s9558_s25 }
  0x28   :  { %8776 = vrot.lane.b32.xlu1 %v8775_v59, %s9558_s25 }
  0x29   :  { %8771 = vrot.lane.b32.xlu0 %v8770_v60, %s9558_s25  ;;  %s9561_s25 = smov 94  }
  0x2c   :  { %8786 = vrot.lane.b32.xlu1 %v9642_v11, %s9560_s8 }
  0x2d   :  { %8781 = vrot.lane.b32.xlu0 %v9620_v7, %s9560_s8 }
  0x30   :  { %8796 = vrot.lane.b32.xlu1 %v9636_v10, %s9560_s8 }
  0x31   :  { %8791 = vrot.lane.b32.xlu0 %v9601_v3, %s9560_s8 }
  0x34   :  { %8806 = vrot.lane.b32.xlu1 %v9668_v16, %s9560_s8 }
  0x35   :  { %8801 = vrot.lane.b32.xlu0 %v9674_v17, %s9560_s8 }
  0x38   :  { %8816 = vrot.lane.b32.xlu1 %v9700_v22, %s9560_s8 }
  0x39   :  { %8811 = vrot.lane.b32.xlu0 %v9706_v23, %s9560_s8 }
  0x3c   :  { %8826 = vrot.lane.b32.xlu1 %v9732_v28, %s9560_s8 }
  0x3d   :  { %8821 = vrot.lane.b32.xlu0 %v9738_v29, %s9560_s8 }
  0x40   :  { %8836 = vrot.lane.b32.xlu1 %v9764_v34, %s9560_s8 }
  0x41   :  { %8831 = vrot.lane.b32.xlu0 %v9770_v35, %s9560_s8 }
  0x44   :  { %8846 = vrot.lane.b32.xlu1 %v8745_v41, %s9560_s8 }
  0x45   :  { %8841 = vrot.lane.b32.xlu0 %v9802_v42, %s9560_s8 }
  0x48   :  { %8856 = vrot.lane.b32.xlu1 %v8755_v47, %s9560_s8 }
  0x49   :  { %8851 = vrot.lane.b32.xlu0 %v8750_v48, %s9560_s8 }
  0x4c   :  { %8866 = vrot.lane.b32.xlu1 %v8765_v53, %s9560_s8 }
  0x4d   :  { %8861 = vrot.lane.b32.xlu0 %v8760_v54, %s9560_s8 }
  0x50   :  { %8876 = vrot.lane.b32.xlu1 %v8775_v59, %s9560_s8 }
  0x51   :  { %8871 = vrot.lane.b32.xlu0 %v8770_v60, %s9560_s8 }
  0x54   :  { %8886 = vrot.lane.b32.xlu1 %v9642_v11, %s9561_s25 }
  0x55   :  { %8881 = vrot.lane.b32.xlu0 %v9620_v7, %s9561_s25 }
  0x58   :  { %8896 = vrot.lane.b32.xlu1 %v9636_v10, %s9561_s25 }
  0x59   :  { %8891 = vrot.lane.b32.xlu0 %v9601_v3, %s9561_s25 }
  0x5c   :  { %8906 = vrot.lane.b32.xlu1 %v9668_v16, %s9561_s25 }
  0x5d   :  { %8901 = vrot.lane.b32.xlu0 %v9674_v17, %s9561_s25 }
  0x60   :  { %8916 = vrot.lane.b32.xlu1 %v9700_v22, %s9561_s25 }
  0x61   :  { %8911 = vrot.lane.b32.xlu0 %v9706_v23, %s9561_s25  ;;  %v9005_v23 = vpack.i.bf16 %v9748_v31, %v9753_v32 }
  0x64   :  { %8926 = vrot.lane.b32.xlu1 %v9732_v28, %s9561_s25  ;;  %v9933_v28 = vpack.i.bf16 %v9743_v30, %v9758_v33 }
  0x65   :  { %8921 = vrot.lane.b32.xlu0 %v9738_v29, %s9561_s25  ;;  %v9015_v29 = vpack.i.bf16 %v9657_v14, %v9775_v36 }
  0x68   :  { %8936 = vrot.lane.b32.xlu1 %v9764_v34, %s9561_s25 }
  0x69   :  { %8931 = vrot.lane.b32.xlu0 %v9770_v35, %s9561_s25 }
  0x6c   :  { %8946 = vrot.lane.b32.xlu1 %v8745_v41, %s9561_s25 }
  0x6d   :  { %8941 = vrot.lane.b32.xlu0 %v9802_v42, %s9561_s25 }
  0x70   :  { %8956 = vrot.lane.b32.xlu1 %v8755_v47, %s9561_s25  ;;  %v9956_v47 = vpack.i.bf16 %v9817_v45, %v9780_v37 }
  0x71   :  { %8951 = vrot.lane.b32.xlu0 %v8750_v48, %s9561_s25  ;;  %v9960_v48 = vpack.i.bf16 %v9689_v20, %v9652_v13 }
  0x74   :  { %8966 = vrot.lane.b32.xlu1 %v8765_v53, %s9561_s25 }
  0x75   :  { %8961 = vrot.lane.b32.xlu0 %v8760_v54, %s9561_s25 }
  0x76   :  { %v9911_v61 = vpop.permute.xlu1 %8691 }
  0x77   :  { %v8682_v62 = vpop.permute.xlu0 %8681  ;;  %v8694_v34 = vunpack.i.h.bf16 %v9911_v61  ;;  %v8693_v35 = vunpack.i.l.bf16 %v9911_v61 }
  0x78   :  { %8976 = vrot.lane.b32.xlu1 %v8775_v59, %s9561_s25  ;;  %v8684_v53 = vunpack.i.h.bf16 %v8682_v62  ;;  %v8683_v54 = vunpack.i.l.bf16 %v8682_v62  ;;  %v9965_v59 = vpack.i.bf16 %v9807_v43, %v9822_v46  ;;  %v9977_v62 = vpack.i.bf16 %v9844_v51, %v9812_v44 }
  0x79   :  { %8971 = vrot.lane.b32.xlu0 %v8770_v60, %s9561_s25  ;;  %v9969_v60 = vpack.i.bf16 %v9679_v18, %v9694_v21  ;;  %v9986_v18 = vpack.i.bf16 %v9834_v49, %v9849_v52  ;;  %v9997_v51 = vsel %vm211_vm0, %v8693_v35, %v8694_v34  ;;  %v10001_v43 = vpack.i.bf16 %v9865_v56, %v9716_v25 }
  0x7a   :  { %v9913_v63 = vpop.permute.xlu1 %8696  ;;  %v10005_v49 = vpack.i.bf16 %v9860_v55, %v9875_v58 }
  0x7b   :  { %v9915_v16 = vpop.permute.xlu0 %8686  ;;  %v8699_v61 = vunpack.i.h.bf16 %v9913_v63 }
  0x7c   :  { %8986 = vrot.lane.b32.xlu1 %v9642_v11, %s9562_s9  ;;  %v8688_v38 = vunpack.i.l.bf16 %v9915_v16 }
  0x7d   :  { %8981 = vrot.lane.b32.xlu0 %v9620_v7, %s9562_s9 }
  0x7e   :  { %v9921_v17 = vpop.permute.xlu1 %8706 }
  0x7f   :  { %v9923_v22 = vpop.permute.xlu0 %8701  ;;  %v11376_v58 = vunpack.i.l.bf16 %v9921_v17 }
  0x80   :  { %8996 = vrot.lane.b32.xlu1 %v9636_v10, %s9562_s9  ;;  %v8704_v52 = vunpack.i.h.bf16 %v9923_v22  ;;  %v8703_v25 = vunpack.i.l.bf16 %v9923_v22 }
  0x81   :  { %8991 = vrot.lane.b32.xlu0 %v9601_v3, %s9562_s9  ;;  %v9948_v3 = vpack.i.bf16 %v9647_v12, %v9662_v15 }
  0x82   :  { %v9935_v11 = vpop.permute.xlu1 %8716 }
  0x83   :  { %v9937_v7 = vpop.permute.xlu0 %8711  ;;  %11401 = vst [vmem:[#allocation21_spill] sm:$0xff] %v9948_v3 }
  0x84   :  { %9006 = vrot.lane.b32.xlu1 %v9005_v23, %s9562_s9  ;;  %v8698_v23 = vunpack.i.l.bf16 %v9913_v63  ;;  %v9990_v63 = vpack.i.bf16 %v9711_v24, %v9726_v27  ;;  %v8689_v24 = vunpack.i.h.bf16 %v9915_v16 }
  0x85   :  { %9001 = vrot.lane.b32.xlu0 %v9933_v28, %s9562_s9 }
  0x86   :  { %v9944_v10 = vpop.permute.xlu1 %8726  ;;  %v217_v56 = vsel %vm211_vm0, %v8694_v34, %v8698_v23  ;;  %v214_v34 = vsel %vm211_vm0, %v8688_v38, %v8689_v24 }
  0x87   :  { %v9952_v41 = vpop.permute.xlu0 %8721 }
  0x88   :  { %9016 = vrot.lane.b32.xlu1 %v9015_v29, %s9562_s9  ;;  %v9981_v29 = vpack.i.bf16 %v9721_v26, %v9684_v19 }
  0x89   :  { %9011 = vrot.lane.b32.xlu0 %v9802_v42, %s9562_s9  ;;  %v9994_v42 = vpack.i.bf16 %v9870_v57, %v9839_v50  ;;  %v212_v57 = vsel %vm211_vm0, %v8683_v54, %v8684_v53  ;;  %v10012_v50 = vsel %vm211_vm0, %v8698_v23, %v8699_v61  ;;  %v10029_v23 = vsel %vm211_vm0, %v8703_v25, %v8704_v52 }
  0x8a   :  { %v8737_v20 = vpop.permute.xlu1 %8736 }
  0x8b   :  { %v8738_v26 = vunpack.i.l.bf16 %v8737_v20  ;;  %v8732_v19 = vpop.permute.xlu0 %8731  ;;  %v8739_v16 = vunpack.i.h.bf16 %v8737_v20  ;;  %v215_v20 = vsel %vm211_vm0, %v8689_v24, %v8693_v35 }
  0x8c   :  { %v8734_v27 = vunpack.i.h.bf16 %v8732_v19  ;;  %v8733_v12 = vunpack.i.l.bf16 %v8732_v19  ;;  %9026 = vrot.lane.b32.xlu1 %v9948_v3, %s9562_s9  ;;  %v213_v19 = vsel %vm211_vm0, %v8684_v53, %v8688_v38  ;;  %v8709_v53 = vunpack.i.h.bf16 %v9921_v17 }
  0x8d   :  { %9021 = vrot.lane.b32.xlu0 %v9956_v47, %s9562_s9  ;;  %v233_v35 = vsel %vm211_vm0, %v8738_v26, %v8739_v16 }
  0x8e   :  { %v8747_v55 = vpop.permute.xlu1 %8746  ;;  %v232_v3 = vsel %vm211_vm0, %v8734_v27, %v8738_v26  ;;  %v231_v54 = vsel %vm211_vm0, %v8733_v12, %v8734_v27  ;;  %v219_v27 = vsel %vm211_vm0, %v8699_v61, %v8703_v25  ;;  %v8713_v61 = vunpack.i.l.bf16 %v9937_v7 }
  0x8f   :  { %v8748_v21 = vunpack.i.l.bf16 %v8747_v55  ;;  %v8742_v44 = vpop.permute.xlu0 %8741  ;;  %v8158_v13 = vpack.c.bf16 %v232_v3, %v213_v19  ;;  %v8160_v45 = vpack.c.bf16 %v231_v54, %v212_v57  ;;  %v8749_v12 = vunpack.i.h.bf16 %v8747_v55 }
  0x90   :  { %v8744_v22 = vunpack.i.h.bf16 %v8742_v44  ;;  %v8743_v14 = vunpack.i.l.bf16 %v8742_v44  ;;  %9036 = vrot.lane.b32.xlu1 %v9960_v48, %s9562_s9 }
  0x91   :  { %9031 = vrot.lane.b32.xlu0 %v9965_v59, %s9562_s9  ;;  %8159 = vmatprep.subr.bf16.mxu0 %v8158_v13  ;;  %v10041_v13 = vld [vmem:[%s11350_s1 + $0x8] sm:$0xff] }
  0x92   :  { %v235_v44 = vsel %vm211_vm0, %v8743_v14, %v8744_v22  ;;  %8161 = vmatpush1.bf16.msra.mxu0 %v8160_v45  ;;  %v8757_v57 = vpop.permute.xlu1 %8756  ;;  %v234_v3 = vsel %vm211_vm0, %v8739_v16, %v8743_v14  ;;  %v236_v38 = vsel %vm211_vm0, %v8744_v22, %v8748_v21  ;;  %v221_v45 = vsel %vm211_vm0, %v8704_v52, %v11376_v58 }
  0x93   :  { %v8758_v24 = vunpack.i.l.bf16 %v8757_v57  ;;  %v8752_v19 = vpop.permute.xlu0 %8751  ;;  %v8162_v54 = vpack.c.bf16 %v234_v3, %v215_v20  ;;  %v8166_v55 = vpack.c.bf16 %v236_v38, %v217_v56  ;;  %v8168_v26 = vpack.c.bf16 %v235_v44, %v9997_v51 }
  0x94   :  { %v8754_v14 = vunpack.i.h.bf16 %v8752_v19  ;;  %v8753_v25 = vunpack.i.l.bf16 %v8752_v19  ;;  %9046 = vrot.lane.b32.xlu1 %v9969_v60, %s9562_s9  ;;  %v11377_v56 = vunpack.i.l.bf16 %v9935_v11  ;;  %v8714_v16 = vunpack.i.h.bf16 %v9937_v7 }
  0x95   :  { %v237_v22 = vsel %vm211_vm0, %v8748_v21, %v8749_v12  ;;  %9041 = vrot.lane.b32.xlu0 %v9977_v62, %s9562_s9  ;;  %8163 = vmatprep.subr.bf16.mxu1 %v8162_v54  ;;  %v8164_v52 = vpack.c.bf16 %v233_v35, %v214_v34  ;;  %v8759_v38 = vunpack.i.h.bf16 %v8757_v57  ;;  %v8728_v57 = vunpack.i.l.bf16 %v9944_v10 }
  0x96   :  { %v239_v3 = vsel %vm211_vm0, %v8753_v25, %v8754_v14  ;;  %8167 = vmatprep.subr.bf16.mxu0 %v8166_v55  ;;  %7978 = vmatmul.mubr.msk.f32.vlgmr.msra.gmra.mrb[0].mxu0 %vm288_vm1, %v10041_v13  ;;  %v8767_v51 = vpop.permute.xlu1 %8766  ;;  %v238_v44 = vsel %vm211_vm0, %v8749_v12, %v8753_v25  ;;  %v240_v7 = vsel %vm211_vm0, %v8754_v14, %v8758_v24  ;;  %v11402_v55 = vmov 0.0  }
  0x97   :  { %8165 = vmatpush1.bf16.msra.mxu1 %v8164_v52  ;;  %8169 = vmatpush1.bf16.msra.mxu0 %v8168_v26  ;;  %v8768_v21 = vunpack.i.l.bf16 %v8767_v51  ;;  %v8762_v19 = vpop.permute.xlu0 %8761  ;;  %v8170_v54 = vpack.c.bf16 %v238_v44, %v219_v27  ;;  %v8174_v34 = vpack.c.bf16 %v240_v7, %v221_v45  ;;  %v8176_v58 = vpack.c.bf16 %v239_v3, %v10029_v23 }
  0x98   :  { %v8764_v35 = vunpack.i.h.bf16 %v8762_v19  ;;  %v8763_v20 = vunpack.i.l.bf16 %v8762_v19  ;;  %9056 = vrot.lane.b32.xlu1 %v9981_v29, %s9562_s9  ;;  %498 = vmatprep.mubr.f32.mxu0 %v11402_v55  ;;  %v223_v12 = vsel %vm211_vm0, %v8709_v53, %v8713_v61  ;;  %v8723_v14 = vunpack.i.l.bf16 %v9952_v41 }
  0x99   :  { %9051 = vrot.lane.b32.xlu0 %v9986_v18, %s9562_s9  ;;  %8171 = vmatprep.subr.bf16.mxu1 %v8170_v54  ;;  %v8172_v27 = vpack.c.bf16 %v237_v22, %v10012_v50  ;;  %v225_v45 = vsel %vm211_vm0, %v8714_v16, %v11377_v56  ;;  %v8724_v23 = vunpack.i.h.bf16 %v9952_v41  ;;  %v241_v44 = vsel %vm211_vm0, %v8758_v24, %v8759_v38 }
  0x9a   :  { %v243_v25 = vsel %vm211_vm0, %v8763_v20, %v8764_v35  ;;  %8175 = vmatprep.subr.bf16.mxu0 %v8174_v34  ;;  %7979 = vmatmul.mubr.msk.f32.vlgmr.msra.gmra.mrb[0].mxu1 %vm288_vm1, %v10041_v13  ;;  %v8777_v26 = vpop.permute.xlu1 %8776  ;;  %v242_v52 = vsel %vm211_vm0, %v8759_v38, %v8763_v20  ;;  %v244_v3 = vsel %vm211_vm0, %v8764_v35, %v8768_v21  ;;  %v8769_v54 = vunpack.i.h.bf16 %v8767_v51 }
  0x9b   :  { %7980 = vmatmul.mubr.msk.f32.vlgmr.msra.gmra.mrb[2].mxu0 %vm288_vm1, %v10041_v13  ;;  %8173 = vmatpush1.bf16.msra.mxu1 %v8172_v27  ;;  %v8778_v50 = vunpack.i.l.bf16 %v8777_v26  ;;  %v8772_v22 = vpop.permute.xlu0 %8771  ;;  %v8178_v41 = vpack.c.bf16 %v242_v52, %v223_v12  ;;  %v8182_v7 = vpack.c.bf16 %v244_v3, %v225_v45  ;;  %v224_v19 = vsel %vm211_vm0, %v8713_v61, %v8714_v16 }
  0x9c   :  { %8177 = vmatpush1.bf16.msra.mxu0 %v8176_v58  ;;  %v8774_v34 = vunpack.i.h.bf16 %v8772_v22  ;;  %v8773_v56 = vunpack.i.l.bf16 %v8772_v22  ;;  %9066 = vrot.lane.b32.xlu1 %v9990_v63, %s9562_s9  ;;  %v11403_v24 = vunpack.i.l.bf16 %v9921_v17  ;;  %v8184_v38 = vpack.c.bf16 %v243_v25, %v224_v19 }
  0x9d   :  { %9061 = vrot.lane.b32.xlu0 %v9994_v42, %s9562_s9  ;;  %569 = vmatprep.mubr.f32.mxu1 %v11402_v55  ;;  %v11404_v61 = vunpack.i.h.bf16 %v9935_v11  ;;  %v229_v45 = vsel %vm211_vm0, %v8724_v23, %v8728_v57  ;;  %v245_v25 = vsel %vm211_vm0, %v8768_v21, %v8769_v54  ;;  %v8779_v3 = vunpack.i.h.bf16 %v8777_v26 }
  0x9e   :  { %v222_v20 = vsel %vm211_vm0, %v11403_v24, %v8709_v53  ;;  %640 = vmatprep.mubr.f32.mxu0 %v11402_v55  ;;  %8179 = vmatprep.subr.bf16.mxu1 %v8178_v41  ;;  %v10100_v51 = vpop.permute.xlu1 %8786  ;;  %v246_v17 = vsel %vm211_vm0, %v8769_v54, %v8773_v56  ;;  %v248_v53 = vsel %vm211_vm0, %v8774_v34, %v8778_v50  ;;  %v11406_v22 = vunpack.i.l.bf16 %v9935_v11 }
  0x9f   :  { %v227_v58 = vsel %vm211_vm0, %v11404_v61, %v8723_v14  ;;  %v8180_v16 = vpack.c.bf16 %v241_v44, %v222_v20  ;;  %v247_v35 = vsel %vm211_vm0, %v8773_v56, %v8774_v34  ;;  %8183 = vmatprep.subr.bf16.mxu0 %v8182_v7  ;;  %7981 = vmatmul.mubr.msk.f32.vlgmr.msra.gmra.mrb[2].mxu1 %vm288_vm1, %v10041_v13  ;;  %v10107_v12 = vpop.permute.xlu0 %8781  ;;  %v11378_v20 = vmov 0.0|0.0  }
  0xa0   :  { %v8186_v27 = vpack.c.bf16 %v246_v17, %v227_v58  ;;  %7982 = vmatmul.mubr.msk.f32.vlgmr.msra.gmra.mrb[4].mxu0 %vm288_vm1, %v10041_v13  ;;  %v8190_v52 = vpack.c.bf16 %v248_v53, %v229_v45  ;;  %v228_v56 = vsel %vm211_vm0, %v8723_v14, %v8724_v23  ;;  %9076 = vrot.lane.b32.xlu1 %v10001_v43, %s9562_s9  ;;  %v8729_v14 = vunpack.i.h.bf16 %v9944_v10 }
  0xa1   :  { %8181 = vmatpush1.bf16.msra.mxu1 %v8180_v16  ;;  %8185 = vmatpush1.bf16.msra.mxu0 %v8184_v38  ;;  %v11405_v44 = vmov %v11404_v61  ;;  %v8192_v21 = vpack.c.bf16 %v247_v35, %v228_v56  ;;  %v10134_v11 = vpack.i.bf16 %v9625_v8, %v9606_v4  ;;  %v249_v19 = vsel %vm211_vm0, %v8778_v50, %v8779_v3  ;;  %v11409_v35 = vld [vmem:[#allocation3_spill] sm:$0xff] }
  0xa2   :  { %v226_v41 = vsel %vm211_vm0, %v11406_v22, %v11405_v44  ;;  %9071 = vrot.lane.b32.xlu0 %v10005_v49, %s9562_s9  ;;  %711 = vmatprep.mubr.f32.mxu1 %v11402_v55  ;;  %v10126_v7 = vpop.permute.xlu1 %8796  ;;  %v8197_v54 = vpack.c.bf16 %v9758_v33, %v9606_v4  ;;  %v230_v24 = vsel %vm211_vm0, %v8728_v57, %v8729_v14  ;;  %v11415_v44 = vld [vmem:[#allocation7_spill] sm:$0xff]  ;;  %v11416_v22 = vld [vmem:[#allocation16_spill] sm:$0xff] }
  0xa3   :  { %782 = vmatprep.mubr.f32.mxu0 %v11402_v55  ;;  %8187 = vmatprep.subr.bf16.mxu1 %v8186_v27  ;;  %v8188_v23 = vpack.c.bf16 %v245_v25, %v226_v41  ;;  %v10130_v26 = vpop.permute.xlu0 %8791  ;;  %v8199_v50 = vpack.c.bf16 %v9753_v32, %v9597_v2  ;;  %v10159_v33 = vpack.i.bf16 %v9753_v32, %v9587_v0  ;;  %v11410_v27 = vld [vmem:[#allocation12_spill] sm:$0xff] }
  0xa4   :  { %8191 = vmatprep.subr.bf16.mxu0 %v8190_v52  ;;  %7983 = vmatmul.mubr.msk.f32.vlgmr.msra.gmra.mrb[4].mxu1 %vm288_vm1, %v10041_v13  ;;  %v8195_v10 = vpack.c.bf16 %v249_v19, %v230_v24  ;;  %v10165_v57 = vpack.i.bf16 %v9630_v9, %v9597_v2  ;;  %v8201_v38 = vpack.c.bf16 %v9748_v31, %v9630_v9  ;;  %v10190_v9 = vld [vmem:[%s11350_s1] sm:$0xff]  ;;  %v11412_v52 = vld [vmem:[#allocation17_spill] sm:$0xff]  ;;  %v11418_v24 = vld [vmem:[#allocation15_spill] sm:$0xff] }
  0xa5   :  { %7984 = vmatmul.mubr.msk.f32.vlgmr.msra.gmra.mrb[6].mxu0 %vm288_vm1, %v10041_v13  ;;  %8189 = vmatpush1.bf16.msra.mxu1 %v8188_v23  ;;  %v8205_v32 = vpack.c.bf16 %v9791_v40, %v9592_v1  ;;  %v8203_v2 = vpack.c.bf16 %v9743_v30, %v9625_v8  ;;  %v8207_v16 = vpack.c.bf16 %v9786_v39, %v9587_v0 }
  0xa6   :  { %8193 = vmatpush1.bf16.msra.mxu0 %v8192_v21  ;;  %9086 = vrot.lane.b32.xlu1 %v9933_v28, %s9563_s12  ;;  %v10145_v34 = vpop.permute.xlu1 %8806  ;;  %v10196_v8 = vpack.i.bf16 %v9611_v5, %v9592_v1  ;;  %v10201_v30 = vpack.i.bf16 %v9786_v39, %v9748_v31  ;;  %v8209_v17 = vpack.c.bf16 %v9780_v37, %v9616_v6  ;;  %v11407_v37 = vld [vmem:[#allocation4_spill] sm:$0xff]  ;;  %v11408_v39 = vld [vmem:[#allocation13_spill] sm:$0xff] }
  0xa7   :  { %9081 = vrot.lane.b32.xlu0 %v10134_v11, %s9563_s12  ;;  %853 = vmatprep.mubr.f32.mxu1 %v11402_v55  ;;  %v10155_v4 = vpop.permute.xlu0 %8801  ;;  %v8213_v0 = vpack.c.bf16 %v9822_v46, %v9662_v15  ;;  %v8211_v31 = vpack.c.bf16 %v9775_v36, %v9611_v5  ;;  %v10226_v15 = vpack.i.bf16 %v11407_v37, %v9616_v6  ;;  %v11411_v6 = vld [vmem:[#allocation8_spill] sm:$0xff] }
  0xa8   :  { %924 = vmatprep.mubr.f32.mxu0 %v11402_v55  ;;  %8194 = vmatprep.subr.bf16.mxu1 %v11378_v20  ;;  %v10231_v46 = vpack.i.bf16 %v9775_v36, %v9791_v40  ;;  %v8217_v45 = vpack.c.bf16 %v11410_v27, %v11409_v35  ;;  %v8221_v56 = vpack.c.bf16 %v11412_v52, %v11411_v6  ;;  %v11413_v36 = vld [vmem:[#allocation2_spill] sm:$0xff]  ;;  %v11414_v40 = vld [vmem:[#allocation11_spill] sm:$0xff] }
  0xa9   :  { %8198 = vmatprep.subr.bf16.mxu0 %v8197_v54  ;;  %7985 = vmatmul.mubr.msk.f32.vlgmr.msra.gmra.mrb[6].mxu1 %vm288_vm1, %v10041_v13  ;;  %v8219_v3 = vpack.c.bf16 %v11414_v40, %v11413_v36  ;;  %v8223_v41 = vpack.c.bf16 %v11416_v22, %v11415_v44  ;;  %v11417_v54 = vld [vmem:[#allocation6_spill] sm:$0xff]  ;;  %v11425_v6 = vld [vmem:[#allocation19_spill] sm:$0xff]  ;;  %v8793_v22 = vunpack.i.l.bf16 %v10130_v26 }
  0xaa   :  { %7986 = vmatmul.mubr.msk.f32.vlgmr.msra.gmra.mrb[8].mxu0 %vm288_vm1, %v10041_v13  ;;  %8196 = vmatpush3.bf16.msra.mxu1 %v8195_v10  ;;  %v10175_v61 = vpop.permute.xlu1 %8816  ;;  %v8788_v10 = vunpack.i.l.bf16 %v10100_v51 }
  0xab   :  { %8200 = vmatpush1.bf16.msra.mxu0 %v8199_v50  ;;  %9096 = vrot.lane.b32.xlu1 %v10159_v33, %s9563_s12  ;;  %v10181_v58 = vpop.permute.xlu0 %8811  ;;  %v8225_v50 = vpack.c.bf16 %v11418_v24, %v11417_v54 }
  0xac   :  { %9091 = vrot.lane.b32.xlu0 %v10165_v57, %s9563_s12  ;;  %8099 = vmatprep.mubr.msk.f32.mxu1 %vm9565_vm2, %v11402_v55 }
  0xad   :  { %1068 = vmatprep.mubr.f32.mxu0 %v11402_v55  ;;  %8202 = vmatprep.subr.bf16.mxu1 %v8201_v38  ;;  %v8784_v38 = vunpack.i.h.bf16 %v10107_v12 }
  0xae   :  { %8206 = vmatprep.subr.bf16.mxu0 %v8205_v32  ;;  %8100 = vmatmul.mubr.msk.f32.vlgmr.msra.gmra.mrb[8].mxu1 %vm288_vm1, %v10041_v13  ;;  %v10207_v53 = vpop.permute.xlu1 %8826  ;;  %v8215_v13 = vpack.c.bf16 %v11408_v39, %v11407_v37  ;;  %v11421_v37 = vld [vmem:[#allocation21_spill] sm:$0xff] }
  0xaf   :  { %7988 = vmatmul.mubr.msk.f32.vlgmr.msra.gmra.mrb[0].mxu0 %vm288_vm1, %v10190_v9  ;;  %8204 = vmatpush1.bf16.msra.mxu1 %v8203_v2  ;;  %v10213_v1 = vpop.permute.xlu0 %8821  ;;  %v11419_v2 = vld [vmem:[#allocation10_spill] sm:$0xff]  ;;  %v11422_v39 = vld [vmem:[#allocation5_spill] sm:$0xff]  ;;  %v1796_v24 = vsel %vm1794_vm3, %v8784_v38, %v8788_v10 }
  0xb0   :  { %8208 = vmatpush1.bf16.msra.mxu0 %v8207_v16  ;;  %9106 = vrot.lane.b32.xlu1 %v10196_v8, %s9563_s12  ;;  %v11420_v16 = vld [vmem:[#allocation20_spill] sm:$0xff] }
  0xb1   :  { %9101 = vrot.lane.b32.xlu0 %v10201_v30, %s9563_s12  ;;  %1139 = vmatprep.mubr.f32.mxu1 %v11402_v55 }
  0xb2   :  { %1210 = vmatprep.mubr.f32.mxu0 %v11402_v55  ;;  %8210 = vmatprep.subr.bf16.mxu1 %v8209_v17  ;;  %v10233_v5 = vpop.permute.xlu1 %8836  ;;  %v8229_v17 = vpack.c.bf16 %v11420_v16, %v11419_v2  ;;  %v8798_v2 = vunpack.i.l.bf16 %v10126_v7 }
  0xb3   :  { %8214 = vmatprep.subr.bf16.mxu0 %v8213_v0  ;;  %7989 = vmatmul.mubr.msk.f32.vlgmr.msra.gmra.mrb[0].mxu1 %vm288_vm1, %v10190_v9  ;;  %v8832_v25 = vpop.permute.xlu0 %8831  ;;  %v8838_v14 = vunpack.i.l.bf16 %v10233_v5  ;;  %v30_v0 = vld [vmem:[%s11349_s0 + $0x90] sm:$0xff] }
  0xb4   :  { %7990 = vmatmul.mubr.msk.f32.vlgmr.msra.gmra.mrb[2].mxu0 %vm288_vm1, %v10190_v9  ;;  %8212 = vmatpush1.bf16.msra.mxu1 %v8211_v31  ;;  %v8834_v23 = vunpack.i.h.bf16 %v8832_v25  ;;  %v8833_v32 = vunpack.i.l.bf16 %v8832_v25  ;;  %v8789_v31 = vunpack.i.h.bf16 %v10100_v51  ;;  %v11424_v25 = vld [vmem:[#allocation9_spill] sm:$0xff] }
  0xb5   :  { %8216 = vmatpush1.bf16.msra.mxu0 %v8215_v13  ;;  %9116 = vrot.lane.b32.xlu1 %v10226_v15, %s9563_s12  ;;  %v11423_v13 = vld [vmem:[#allocation14_spill] sm:$0xff]  ;;  %v8231_v52 = vpack.c.bf16 %v11425_v6, %v11424_v25 }
  0xb6   :  { %9111 = vrot.lane.b32.xlu0 %v10231_v46, %s9563_s12  ;;  %1281 = vmatprep.mubr.f32.mxu1 %v11402_v55  ;;  %v10252_v21 = vpop.permute.xlu1 %8846  ;;  %v8227_v35 = vpack.c.bf16 %v11423_v13, %v11422_v39  ;;  %v1814_v54 = vsel %vm1794_vm3, %v8833_v32, %v8834_v23  ;;  %v11380_v32 = vunpack.i.l.bf16 %v10145_v34  ;;  %v8803_v39 = vunpack.i.l.bf16 %v10155_v4 }
  0xb7   :  { %1352 = vmatprep.mubr.f32.mxu0 %v11402_v55  ;;  %8218 = vmatprep.subr.bf16.mxu1 %v8217_v45  ;;  %v10256_v19 = vpop.permute.xlu0 %8841  ;;  %v8783_v45 = vunpack.i.l.bf16 %v10107_v12  ;;  %v8848_v12 = vunpack.i.l.bf16 %v10252_v21 }
  0xb8   :  { %8222 = vmatprep.subr.bf16.mxu0 %v8221_v56  ;;  %7991 = vmatmul.mubr.msk.f32.vlgmr.msra.gmra.mrb[2].mxu1 %vm288_vm1, %v10190_v9  ;;  %v8843_v51 = vunpack.i.l.bf16 %v10256_v19  ;;  %v1815_v56 = vsel %vm1794_vm3, %v8834_v23, %v8838_v14  ;;  %v8844_v40 = vunpack.i.h.bf16 %v10256_v19  ;;  %v8794_v19 = vunpack.i.h.bf16 %v10130_v26 }
  0xb9   :  { %7992 = vmatmul.mubr.msk.f32.vlgmr.msra.gmra.mrb[4].mxu0 %vm288_vm1, %v10190_v9  ;;  %8220 = vmatpush1.bf16.msra.mxu1 %v8219_v3  ;;  %v11426_v3 = vld [vmem:[#allocation18_spill] sm:$0xff]  ;;  %v8236_v16 = vpack.c.bf16 %v1815_v56, %v1796_v24  ;;  %v1795_v23 = vsel %vm1794_vm3, %v8783_v45, %v8784_v38  ;;  %v8799_v45 = vunpack.i.h.bf16 %v10126_v7  ;;  %v8849_v56 = vunpack.i.h.bf16 %v10252_v21 }
  0xba   :  { %8224 = vmatpush1.bf16.msra.mxu0 %v8223_v41  ;;  %9126 = vrot.lane.b32.xlu1 %v11421_v37, %s9563_s12  ;;  %v10276_v27 = vpop.permute.xlu1 %8856  ;;  %v8234_v44 = vpack.c.bf16 %v11426_v3, %v30_v0  ;;  %v8839_v41 = vunpack.i.h.bf16 %v10233_v5  ;;  %v8238_v38 = vpack.c.bf16 %v1814_v54, %v1795_v23  ;;  %v1818_v3 = vsel %vm1794_vm3, %v8843_v51, %v8844_v40 }
  0xbb   :  { %9121 = vrot.lane.b32.xlu0 %v9956_v47, %s9563_s12  ;;  %1423 = vmatprep.mubr.f32.mxu1 %v11402_v55  ;;  %v10288_v36 = vpop.permute.xlu0 %8851  ;;  %v11381_v25 = vunpack.i.l.bf16 %v10276_v27  ;;  %v1800_v24 = vsel %vm1794_vm3, %v8794_v19, %v8798_v2 }
  0xbc   :  { %1494 = vmatprep.mubr.f32.mxu0 %v11402_v55  ;;  %8226 = vmatprep.subr.bf16.mxu1 %v8225_v50  ;;  %v10301_v50 = vsel %vm1794_vm3, %v8788_v10, %v8789_v31  ;;  %v1817_v10 = vsel %vm1794_vm3, %v8839_v41, %v8843_v51  ;;  %v8853_v13 = vunpack.i.l.bf16 %v10288_v36  ;;  %v8854_v6 = vunpack.i.h.bf16 %v10288_v36 }
  0xbd   :  { %8230 = vmatprep.subr.bf16.mxu0 %v8229_v17  ;;  %7993 = vmatmul.mubr.msk.f32.vlgmr.msra.gmra.mrb[4].mxu1 %vm288_vm1, %v10190_v9  ;;  %v8804_v17 = vunpack.i.h.bf16 %v10155_v4 }
  0xbe   :  { %7994 = vmatmul.mubr.msk.f32.vlgmr.msra.gmra.mrb[6].mxu0 %vm288_vm1, %v10190_v9  ;;  %8228 = vmatpush1.bf16.msra.mxu1 %v8227_v35  ;;  %v10307_v0 = vpop.permute.xlu1 %8866  ;;  %v1819_v35 = vsel %vm1794_vm3, %v8844_v40, %v8848_v12  ;;  %v1802_v40 = vsel %vm1794_vm3, %v8799_v45, %v8803_v39 }
  0xbf   :  { %8232 = vmatpush1.bf16.msra.mxu0 %v8231_v52  ;;  %9136 = vrot.lane.b32.xlu1 %v9960_v48, %s9563_s12  ;;  %v10315_v26 = vpop.permute.xlu0 %8861  ;;  %v1798_v52 = vsel %vm1794_vm3, %v8789_v31, %v8793_v22  ;;  %v1816_v31 = vsel %vm1794_vm3, %v8838_v14, %v8839_v41  ;;  %v8244_v51 = vpack.c.bf16 %v1819_v35, %v1800_v24  ;;  %v8818_v14 = vunpack.i.l.bf16 %v10175_v61 }
  0xc0   :  { %9131 = vrot.lane.b32.xlu0 %v9965_v59, %s9563_s12  ;;  %1565 = vmatprep.mubr.f32.mxu1 %v11402_v55  ;;  %v8240_v54 = vpack.c.bf16 %v1817_v10, %v1798_v52  ;;  %v1804_v5 = vsel %vm1794_vm3, %v8804_v17, %v11380_v32  ;;  %v8863_v41 = vunpack.i.l.bf16 %v10315_v26  ;;  %v8813_v10 = vunpack.i.l.bf16 %v10181_v58 }
  0xc1   :  { %1636 = vmatprep.mubr.f32.mxu0 %v11402_v55  ;;  %8233 = vmatprep.subr.bf16.mxu1 %v11378_v20  ;;  %v1799_v20 = vsel %vm1794_vm3, %v8793_v22, %v8794_v19  ;;  %v1823_v19 = vsel %vm1794_vm3, %v8854_v6, %v11381_v25  ;;  %v8868_v35 = vunpack.i.l.bf16 %v10307_v0  ;;  %v8864_v52 = vunpack.i.h.bf16 %v10315_v26 }
  0xc2   :  { %8237 = vmatprep.subr.bf16.mxu0 %v8236_v16  ;;  %7995 = vmatmul.mubr.msk.f32.vlgmr.msra.gmra.mrb[6].mxu1 %vm288_vm1, %v10190_v9  ;;  %v10338_v23 = vpop.permute.xlu1 %8876  ;;  %v1821_v16 = vsel %vm1794_vm3, %v8849_v56, %v8853_v13  ;;  %v8246_v22 = vpack.c.bf16 %v1818_v3, %v1799_v20  ;;  %v8814_v20 = vunpack.i.h.bf16 %v10181_v58  ;;  %v8859_v3 = vunpack.i.h.bf16 %v10276_v27 }
  0xc3   :  { %7996 = vmatmul.mubr.msk.f32.vlgmr.msra.gmra.mrb[8].mxu0 %vm288_vm1, %v10190_v9  ;;  %8235 = vmatpush3.bf16.msra.mxu1 %v8234_v44  ;;  %v10346_v36 = vpop.permute.xlu0 %8871  ;;  %v10365_v44 = vld [vmem:[%s11350_s1 + $0x10] sm:$0xff]  ;;  %v1822_v32 = vsel %vm1794_vm3, %v8853_v13, %v8854_v6  ;;  %v8248_v25 = vpack.c.bf16 %v1821_v16, %v1802_v40  ;;  %v1820_v26 = vsel %vm1794_vm3, %v8848_v12, %v8849_v56  ;;  %v8828_v16 = vunpack.i.l.bf16 %v10207_v53 }
  0xc4   :  { %8239 = vmatpush1.bf16.msra.mxu0 %v8238_v38  ;;  %9146 = vrot.lane.b32.xlu1 %v9969_v60, %s9563_s12  ;;  %v8242_v38 = vpack.c.bf16 %v1816_v31, %v10301_v50  ;;  %v8809_v50 = vunpack.i.h.bf16 %v10145_v34  ;;  %v8252_v58 = vpack.c.bf16 %v1823_v19, %v1804_v5  ;;  %v1801_v13 = vsel %vm1794_vm3, %v8798_v2, %v8799_v45 }
  0xc5   :  { %9141 = vrot.lane.b32.xlu0 %v9977_v62, %s9563_s12  ;;  %8106 = vmatprep.mubr.msk.f32.mxu1 %vm9565_vm2, %v11402_v55  ;;  %v1825_v21 = vsel %vm1794_vm3, %v8859_v3, %v8863_v41  ;;  %v8873_v7 = vunpack.i.l.bf16 %v10346_v36  ;;  %v1827_v4 = vsel %vm1794_vm3, %v8864_v52, %v8868_v35  ;;  %v8878_v45 = vunpack.i.l.bf16 %v10338_v23 }
  0xc6   :  { %1938 = vmatprep.mubr.f32.mxu0 %v11402_v55  ;;  %8241 = vmatprep.subr.bf16.mxu1 %v8240_v54  ;;  %v10376_v24 = vpop.permute.xlu1 %8886  ;;  %v1806_v2 = vsel %vm1794_vm3, %v8809_v50, %v8813_v10  ;;  %v8874_v6 = vunpack.i.h.bf16 %v10346_v36  ;;  %v8823_v31 = vunpack.i.l.bf16 %v10213_v1  ;;  %v1826_v40 = vsel %vm1794_vm3, %v8863_v41, %v8864_v52 }
  0xc7   :  { %8245 = vmatprep.subr.bf16.mxu0 %v8244_v51  ;;  %8107 = vmatmul.mubr.msk.f32.vlgmr.msra.gmra.mrb[8].mxu1 %vm288_vm1, %v10190_v9  ;;  %v10383_v54 = vpop.permute.xlu0 %8881  ;;  %v1803_v9 = vsel %vm1794_vm3, %v8803_v39, %v8804_v17  ;;  %v8250_v39 = vpack.c.bf16 %v1820_v26, %v1801_v13  ;;  %v8869_v51 = vunpack.i.h.bf16 %v10307_v0  ;;  %v8824_v36 = vunpack.i.h.bf16 %v10213_v1 }
  0xc8   :  { %7998 = vmatmul.mubr.msk.f32.vlgmr.msra.gmra.mrb[0].mxu0 %vm288_vm1, %v10365_v44  ;;  %8243 = vmatpush1.bf16.msra.mxu1 %v8242_v38  ;;  %v8254_v12 = vpack.c.bf16 %v1822_v32, %v1803_v9  ;;  %v1808_v32 = vsel %vm1794_vm3, %v8814_v20, %v8818_v14  ;;  %v11427_v5 = vunpack.i.l.bf16 %v10276_v27  ;;  %v8819_v41 = vunpack.i.h.bf16 %v10175_v61 }
  0xc9   :  { %8247 = vmatpush1.bf16.msra.mxu0 %v8246_v22  ;;  %9156 = vrot.lane.b32.xlu1 %v9981_v29, %s9563_s12  ;;  %v8260_v19 = vpack.c.bf16 %v1827_v4, %v1808_v32  ;;  %v1807_v38 = vsel %vm1794_vm3, %v8813_v10, %v8814_v20  ;;  %v1829_v52 = vsel %vm1794_vm3, %v8869_v51, %v8873_v7  ;;  %v11428_v27 = vunpack.i.l.bf16 %v10145_v34 }
  0xca   :  { %9151 = vrot.lane.b32.xlu0 %v9986_v18, %s9563_s12  ;;  %2009 = vmatprep.mubr.f32.mxu1 %v11402_v55  ;;  %v10408_v17 = vpop.permute.xlu1 %8896  ;;  %v1824_v22 = vsel %vm1794_vm3, %v11427_v5, %v8859_v3  ;;  %v8262_v26 = vpack.c.bf16 %v1826_v40, %v1807_v38  ;;  %v1831_v10 = vsel %vm1794_vm3, %v8874_v6, %v8878_v45 }
  0xcb   :  { %2080 = vmatprep.mubr.f32.mxu0 %v11402_v55  ;;  %8249 = vmatprep.subr.bf16.mxu1 %v8248_v25  ;;  %v10416_v56 = vpop.permute.xlu0 %8891  ;;  %v8256_v25 = vpack.c.bf16 %v1825_v21, %v1806_v2  ;;  %v1805_v3 = vsel %vm1794_vm3, %v11428_v27, %v8809_v50  ;;  %v1810_v13 = vsel %vm1794_vm3, %v8819_v41, %v8823_v31 }
  0xcc   :  { %8253 = vmatprep.subr.bf16.mxu0 %v8252_v58  ;;  %7999 = vmatmul.mubr.msk.f32.vlgmr.msra.gmra.mrb[0].mxu1 %vm288_vm1, %v10365_v44  ;;  %v8258_v58 = vpack.c.bf16 %v1824_v22, %v1805_v3  ;;  %v1830_v34 = vsel %vm1794_vm3, %v8873_v7, %v8874_v6  ;;  %v8264_v50 = vpack.c.bf16 %v1829_v52, %v1810_v13  ;;  %v8894_v22 = vunpack.i.h.bf16 %v10416_v56 }
  0xcd   :  { %8000 = vmatmul.mubr.msk.f32.vlgmr.msra.gmra.mrb[2].mxu0 %vm288_vm1, %v10365_v44  ;;  %8251 = vmatpush1.bf16.msra.mxu1 %v8250_v39  ;;  %v1812_v9 = vsel %vm1794_vm3, %v8824_v36, %v8828_v16  ;;  %v1828_v21 = vsel %vm1794_vm3, %v8868_v35, %v8869_v51  ;;  %v1811_v7 = vsel %vm1794_vm3, %v8823_v31, %v8824_v36  ;;  %v8884_v31 = vunpack.i.h.bf16 %v10383_v54 }
  0xce   :  { %8255 = vmatpush1.bf16.msra.mxu0 %v8254_v12  ;;  %9166 = vrot.lane.b32.xlu1 %v9990_v63, %s9563_s12  ;;  %v10435_v1 = vpop.permute.xlu1 %8906  ;;  %v8879_v12 = vunpack.i.h.bf16 %v10338_v23  ;;  %v8268_v2 = vpack.c.bf16 %v1831_v10, %v1812_v9  ;;  %v1809_v0 = vsel %vm1794_vm3, %v8818_v14, %v8819_v41  ;;  %v8829_v23 = vunpack.i.h.bf16 %v10207_v53 }
  0xcf   :  { %9161 = vrot.lane.b32.xlu0 %v9994_v42, %s9563_s12  ;;  %2151 = vmatprep.mubr.f32.mxu1 %v11402_v55  ;;  %v10444_v20 = vpop.permute.xlu0 %8901  ;;  %v8270_v35 = vpack.c.bf16 %v1830_v34, %v1811_v7  ;;  %v8266_v6 = vpack.c.bf16 %v1828_v21, %v1809_v0  ;;  %v8889_v53 = vunpack.i.h.bf16 %v10376_v24  ;;  %v8883_v51 = vunpack.i.l.bf16 %v10383_v54 }
  0xd0   :  { %2222 = vmatprep.mubr.f32.mxu0 %v11402_v55  ;;  %8257 = vmatprep.subr.bf16.mxu1 %v8256_v25  ;;  %v1813_v32 = vsel %vm1794_vm3, %v8828_v16, %v8829_v23  ;;  %v8899_v25 = vunpack.i.h.bf16 %v10408_v17  ;;  %v11429_v16 = vmov 0.0|0.0   ;;  %v8898_v54 = vunpack.i.l.bf16 %v10408_v17 }
  0xd1   :  { %8261 = vmatprep.subr.bf16.mxu0 %v8260_v19  ;;  %8001 = vmatmul.mubr.msk.f32.vlgmr.msra.gmra.mrb[2].mxu1 %vm288_vm1, %v10365_v44  ;;  %v8893_v19 = vunpack.i.l.bf16 %v10416_v56  ;;  %v2684_v52 = vsel %vm2683_vm4, %v8883_v51, %v8884_v31  ;;  %v8904_v17 = vunpack.i.h.bf16 %v10444_v20  ;;  %v8903_v27 = vunpack.i.l.bf16 %v10444_v20 }
  0xd2   :  { %8002 = vmatmul.mubr.msk.f32.vlgmr.msra.gmra.mrb[4].mxu0 %vm288_vm1, %v10365_v44  ;;  %8259 = vmatpush1.bf16.msra.mxu1 %v8258_v58  ;;  %v10458_v4 = vpop.permute.xlu1 %8916  ;;  %v10516_v56 = vsel %vm2683_vm4, %v8898_v54, %v8899_v25  ;;  %v8908_v20 = vunpack.i.l.bf16 %v10435_v1 }
  0xd3   :  { %8263 = vmatpush1.bf16.msra.mxu0 %v8262_v26  ;;  %9176 = vrot.lane.b32.xlu1 %v10001_v43, %s9563_s12  ;;  %v10463_v39 = vpop.permute.xlu0 %8911  ;;  %v1832_v43 = vsel %vm1794_vm3, %v8878_v45, %v8879_v12  ;;  %v8888_v45 = vunpack.i.l.bf16 %v10376_v24  ;;  %v2688_v12 = vsel %vm2683_vm4, %v8893_v19, %v8894_v22  ;;  %v2687_v0 = vsel %vm2683_vm4, %v8889_v53, %v8893_v19 }
  0xd4   :  { %9171 = vrot.lane.b32.xlu0 %v10005_v49, %s9563_s12  ;;  %2293 = vmatprep.mubr.f32.mxu1 %v11402_v55  ;;  %v8273_v40 = vpack.c.bf16 %v1832_v43, %v1813_v32  ;;  %v10530_v23 = vsel %vm2683_vm4, %v8903_v27, %v8904_v17 }
  0xd5   :  { %2364 = vmatprep.mubr.f32.mxu0 %v11402_v55  ;;  %8265 = vmatprep.subr.bf16.mxu1 %v8264_v50  ;;  %v10497_v24 = vsel %vm2683_vm4, %v8888_v45, %v8889_v53  ;;  %v2685_v3 = vsel %vm2683_vm4, %v8884_v31, %v8888_v45 }
  0xd6   :  { %8269 = vmatprep.subr.bf16.mxu0 %v8268_v2  ;;  %8003 = vmatmul.mubr.msk.f32.vlgmr.msra.gmra.mrb[4].mxu1 %vm288_vm1, %v10365_v44  ;;  %v10476_v61 = vpop.permute.xlu1 %8926 }
  0xd7   :  { %8004 = vmatmul.mubr.msk.f32.vlgmr.msra.gmra.mrb[6].mxu0 %vm288_vm1, %v10365_v44  ;;  %8267 = vmatpush1.bf16.msra.mxu1 %v8266_v6  ;;  %v10481_v14 = vpop.permute.xlu0 %8921  ;;  %v2691_v6 = vsel %vm2683_vm4, %v8899_v25, %v8903_v27  ;;  %v10546_v25 = vld [vmem:[%s11350_s1 + $0x18] sm:$0xff] }
  0xd8   :  { %8271 = vmatpush1.bf16.msra.mxu0 %v8270_v35  ;;  %9186 = vrot.lane.b32.xlu1 %v9933_v28, %s9566_s19  ;;  %v2689_v35 = vsel %vm2683_vm4, %v8894_v22, %v8898_v54  ;;  %v2693_v54 = vsel %vm2683_vm4, %v8904_v17, %v8908_v20 }
  0xd9   :  { %9181 = vrot.lane.b32.xlu0 %v10134_v11, %s9566_s19  ;;  %2435 = vmatprep.mubr.f32.mxu1 %v11402_v55 }
  0xda   :  { %8272 = vmatprep.subr.bf16.mxu1 %v11429_v16  ;;  %8005 = vmatmul.mubr.msk.f32.vlgmr.msra.gmra.mrb[6].mxu1 %vm288_vm1, %v10365_v44  ;;  %v8937_v28 = vpop.permute.xlu1 %8936 }
  0xdb   :  { %8274 = vmatpush3.bf16.msra.mxu1 %v8273_v40  ;;  %v8938_v36 = vunpack.i.l.bf16 %v8937_v28  ;;  %v8932_v5 = vpop.permute.xlu0 %8931  ;;  %2506 = vmatprep.mubr.f32.mxu0 %v11402_v55  ;;  %v8939_v26 = vunpack.i.h.bf16 %v8937_v28 }
  0xdc   :  { %9196 = vrot.lane.b32.xlu1 %v10159_v33, %s9566_s19  ;;  %v8934_v41 = vunpack.i.h.bf16 %v8932_v5  ;;  %v8933_v38 = vunpack.i.l.bf16 %v8932_v5  ;;  %8006 = vmatmul.mubr.msk.f32.vlgmr.msra.gmra.mrb[8].mxu0 %vm288_vm1, %v10365_v44 }
  0xdd   :  { %9191 = vrot.lane.b32.xlu0 %v10165_v57, %s9566_s19  ;;  %8113 = vmatprep.mubr.msk.f32.mxu1 %vm9565_vm2, %v11402_v55  ;;  %v2705_v43 = vsel %vm2683_vm4, %v8938_v36, %v8939_v26 }
  0xde   :  { %v2703_v10 = vsel %vm2683_vm4, %v8933_v38, %v8934_v41  ;;  %v8947_v58 = vpop.permute.xlu1 %8946  ;;  %v2704_v13 = vsel %vm2683_vm4, %v8934_v41, %v8938_v36  ;;  %2827 = vmatprep.mubr.f32.mxu0 %v11402_v55  ;;  %8114 = vmatmul.mubr.msk.f32.vlgmr.msra.gmra.mrb[8].mxu1 %vm288_vm1, %v10365_v44  ;;  %v8918_v36 = vunpack.i.l.bf16 %v10458_v4  ;;  %v8914_v38 = vunpack.i.h.bf16 %v10463_v39 }
  0xdf   :  { %v8948_v34 = vunpack.i.l.bf16 %v8947_v58  ;;  %v8942_v50 = vpop.permute.xlu0 %8941  ;;  %v8275_v9 = vpack.c.bf16 %v2704_v13, %v2685_v3  ;;  %v8277_v21 = vpack.c.bf16 %v2703_v10, %v2684_v52  ;;  %2898 = vmatprep.mubr.f32.mxu1 %v11402_v55  ;;  %v8949_v44 = vunpack.i.h.bf16 %v8947_v58 }
  0xe0   :  { %9206 = vrot.lane.b32.xlu1 %v10196_v8, %s9566_s19  ;;  %v8944_v2 = vunpack.i.h.bf16 %v8942_v50  ;;  %v8943_v7 = vunpack.i.l.bf16 %v8942_v50  ;;  %v8913_v52 = vunpack.i.l.bf16 %v10463_v39  ;;  %v8281_v17 = vpack.c.bf16 %v2705_v43, %v10497_v24 }
  0xe1   :  { %9201 = vrot.lane.b32.xlu0 %v10201_v30, %s9566_s19  ;;  %8276 = vmatprep.subr.bf16.mxu0 %v8275_v9  ;;  %v2709_v27 = vsel %vm2683_vm4, %v8948_v34, %v8949_v44  ;;  %v8909_v3 = vunpack.i.h.bf16 %v10435_v1  ;;  %v8919_v13 = vunpack.i.h.bf16 %v10458_v4  ;;  %v8924_v43 = vunpack.i.h.bf16 %v10481_v14 }
  0xe2   :  { %v2707_v32 = vsel %vm2683_vm4, %v8943_v7, %v8944_v2  ;;  %8278 = vmatpush1.bf16.msra.mxu0 %v8277_v21  ;;  %v10538_v45 = vpop.permute.xlu1 %8956  ;;  %v2706_v53 = vsel %vm2683_vm4, %v8939_v26, %v8943_v7  ;;  %v2708_v31 = vsel %vm2683_vm4, %v8944_v2, %v8948_v34 }
  0xe3   :  { %v8958_v51 = vunpack.i.l.bf16 %v10538_v45  ;;  %v8952_v40 = vpop.permute.xlu0 %8951  ;;  %v8279_v28 = vpack.c.bf16 %v2706_v53, %v2687_v0  ;;  %v8283_v5 = vpack.c.bf16 %v2708_v31, %v2689_v35  ;;  %v8285_v41 = vpack.c.bf16 %v2707_v32, %v2688_v12 }
  0xe4   :  { %9216 = vrot.lane.b32.xlu1 %v10226_v15, %s9566_s19  ;;  %v8954_v22 = vunpack.i.h.bf16 %v8952_v40  ;;  %v8953_v19 = vunpack.i.l.bf16 %v8952_v40  ;;  %v8959_v21 = vunpack.i.h.bf16 %v10538_v45  ;;  %v8923_v0 = vunpack.i.l.bf16 %v10481_v14 }
  0xe5   :  { %9211 = vrot.lane.b32.xlu0 %v10231_v46, %s9566_s19  ;;  %8280 = vmatprep.subr.bf16.mxu1 %v8279_v28  ;;  %v2695_v35 = vsel %vm2683_vm4, %v8909_v3, %v8913_v52 }
  0xe6   :  { %v2711_v26 = vsel %vm2683_vm4, %v8953_v19, %v8954_v22  ;;  %8284 = vmatprep.subr.bf16.mxu0 %v8283_v5  ;;  %8008 = vmatmul.mubr.msk.f32.vlgmr.msra.gmra.mrb[0].mxu0 %vm288_vm1, %v10546_v25  ;;  %v10564_v10 = vpop.permute.xlu1 %8966  ;;  %v2710_v39 = vsel %vm2683_vm4, %v8949_v44, %v8953_v19  ;;  %v2712_v58 = vsel %vm2683_vm4, %v8954_v22, %v8958_v51 }
  0xe7   :  { %8282 = vmatpush1.bf16.msra.mxu1 %v8281_v17  ;;  %8286 = vmatpush1.bf16.msra.mxu0 %v8285_v41  ;;  %v8968_v24 = vunpack.i.l.bf16 %v10564_v10  ;;  %v8962_v34 = vpop.permute.xlu0 %8961  ;;  %v8287_v50 = vpack.c.bf16 %v2710_v39, %v2691_v6  ;;  %v8291_v9 = vpack.c.bf16 %v2712_v58, %v2693_v54  ;;  %v8293_v7 = vpack.c.bf16 %v2711_v26, %v10530_v23 }
  0xe8   :  { %9226 = vrot.lane.b32.xlu1 %v11421_v37, %s9566_s19  ;;  %v8964_v12 = vunpack.i.h.bf16 %v8962_v34  ;;  %v8963_v2 = vunpack.i.l.bf16 %v8962_v34  ;;  %2969 = vmatprep.mubr.f32.mxu0 %v11402_v55  ;;  %v8289_v44 = vpack.c.bf16 %v2709_v27, %v10516_v56  ;;  %v2697_v37 = vsel %vm2683_vm4, %v8914_v38, %v8918_v36 }
  0xe9   :  { %9221 = vrot.lane.b32.xlu0 %v9956_v47, %s9566_s19  ;;  %8288 = vmatprep.subr.bf16.mxu1 %v8287_v50  ;;  %v8928_v6 = vunpack.i.l.bf16 %v10476_v61  ;;  %v2713_v14 = vsel %vm2683_vm4, %v8958_v51, %v8959_v21  ;;  %v8969_v28 = vunpack.i.h.bf16 %v10564_v10  ;;  %v2694_v22 = vsel %vm2683_vm4, %v8908_v20, %v8909_v3 }
  0xea   :  { %8292 = vmatprep.subr.bf16.mxu0 %v8291_v9  ;;  %8009 = vmatmul.mubr.msk.f32.vlgmr.msra.gmra.mrb[0].mxu1 %vm288_vm1, %v10546_v25  ;;  %v8977_v23 = vpop.permute.xlu1 %8976  ;;  %v2714_v47 = vsel %vm2683_vm4, %v8959_v21, %v8963_v2  ;;  %v2716_v32 = vsel %vm2683_vm4, %v8964_v12, %v8968_v24  ;;  %v2715_v56 = vsel %vm2683_vm4, %v8963_v2, %v8964_v12  ;;  %v8929_v34 = vunpack.i.h.bf16 %v10476_v61  ;;  %v9518_v2 = vld [vmem:[%s11349_s0 + $0x98] sm:$0xff] }
  0xeb   :  { %8010 = vmatmul.mubr.msk.f32.vlgmr.msra.gmra.mrb[2].mxu0 %vm288_vm1, %v10546_v25  ;;  %8290 = vmatpush1.bf16.msra.mxu1 %v8289_v44  ;;  %v8978_v45 = vunpack.i.l.bf16 %v8977_v23  ;;  %v8972_v53 = vpop.permute.xlu0 %8971  ;;  %v8295_v31 = vpack.c.bf16 %v2714_v47, %v2695_v35  ;;  %v8299_v40 = vpack.c.bf16 %v2716_v32, %v2697_v37  ;;  %v2696_v19 = vsel %vm2683_vm4, %v8913_v52, %v8914_v38  ;;  %v9519_v61 = vld [vmem:[%s11349_s0 + $0x138] sm:$0xff] }
  0xec   :  { %9236 = vrot.lane.b32.xlu1 %v9960_v48, %s9566_s19  ;;  %8294 = vmatpush1.bf16.msra.mxu0 %v8293_v7  ;;  %v8974_v5 = vunpack.i.h.bf16 %v8972_v53  ;;  %v8973_v54 = vunpack.i.l.bf16 %v8972_v53  ;;  %v2699_v48 = vsel %vm2683_vm4, %v8919_v13, %v8923_v0  ;;  %v8301_v51 = vpack.c.bf16 %v2715_v56, %v2696_v19 }
  0xed   :  { %9231 = vrot.lane.b32.xlu0 %v9965_v59, %s9566_s19  ;;  %3040 = vmatprep.mubr.f32.mxu1 %v11402_v55  ;;  %v8297_v59 = vpack.c.bf16 %v2713_v14, %v2694_v22  ;;  %v2701_v27 = vsel %vm2683_vm4, %v8924_v43, %v8928_v6  ;;  %v2717_v26 = vsel %vm2683_vm4, %v8968_v24, %v8969_v28  ;;  %v8979_v10 = vunpack.i.h.bf16 %v8977_v23  ;;  %v9520_v14 = vld [vmem:[%s11349_s0 + $0xb0] sm:$0xff] }
  0xee   :  { %3111 = vmatprep.mubr.f32.mxu0 %v11402_v55  ;;  %8296 = vmatprep.subr.bf16.mxu1 %v8295_v31  ;;  %v10607_v41 = vpop.permute.xlu1 %8986  ;;  %v2718_v1 = vsel %vm2683_vm4, %v8969_v28, %v8973_v54  ;;  %v2720_v20 = vsel %vm2683_vm4, %v8974_v5, %v8978_v45  ;;  %v2719_v17 = vsel %vm2683_vm4, %v8973_v54, %v8974_v5  ;;  %v9521_v28 = vld [vmem:[%s11349_s0 + $0xa8] sm:$0xff] }
  0xef   :  { %8300 = vmatprep.subr.bf16.mxu0 %v8299_v40  ;;  %8011 = vmatmul.mubr.msk.f32.vlgmr.msra.gmra.mrb[2].mxu1 %vm288_vm1, %v10546_v25  ;;  %v10613_v38 = vpop.permute.xlu0 %8981  ;;  %v8303_v52 = vpack.c.bf16 %v2718_v1, %v2699_v48  ;;  %v8307_v3 = vpack.c.bf16 %v2720_v20, %v2701_v27  ;;  %v2700_v39 = vsel %vm2683_vm4, %v8923_v0, %v8924_v43  ;;  %v8989_v43 = vunpack.i.h.bf16 %v10607_v41 }
  0xf0   :  { %9246 = vrot.lane.b32.xlu1 %v9969_v60, %s9566_s19  ;;  %8012 = vmatmul.mubr.msk.f32.vlgmr.msra.gmra.mrb[4].mxu0 %vm288_vm1, %v10546_v25  ;;  %v2698_v60 = vsel %vm2683_vm4, %v8918_v36, %v8919_v13  ;;  %v2721_v4 = vsel %vm2683_vm4, %v8978_v45, %v8979_v10  ;;  %v8984_v36 = vunpack.i.h.bf16 %v10613_v38  ;;  %v8983_v13 = vunpack.i.l.bf16 %v10613_v38 }
  0xf1   :  { %9241 = vrot.lane.b32.xlu0 %v9977_v62, %s9566_s19  ;;  %8298 = vmatpush1.bf16.msra.mxu1 %v8297_v59  ;;  %v8309_v62 = vpack.c.bf16 %v2719_v17, %v2700_v39  ;;  %v8305_v50 = vpack.c.bf16 %v2717_v26, %v2698_v60  ;;  %v10663_v7 = vpack.i.bf16 %v9519_v61, %v9518_v2 }
  0xf2   :  { %8302 = vmatpush1.bf16.msra.mxu0 %v8301_v51  ;;  %3182 = vmatprep.mubr.f32.mxu1 %v11402_v55  ;;  %v10628_v58 = vpop.permute.xlu1 %8996  ;;  %v3573_v23 = vsel %vm3572_vm5, %v8983_v13, %v8984_v36  ;;  %v10694_v5 = vpack.i.bf16 %v9520_v14, %v9521_v28  ;;  %v9522_v14 = vld [vmem:[%s11349_s0 + $0x50] sm:$0xff]  ;;  %v9523_v28 = vld [vmem:[%s11349_s0 + $0x48] sm:$0xff] }
  0xf3   :  { %3253 = vmatprep.mubr.f32.mxu0 %v11402_v55  ;;  %8304 = vmatprep.subr.bf16.mxu1 %v8303_v52  ;;  %v10637_v24 = vpop.permute.xlu0 %8991  ;;  %v8998_v56 = vunpack.i.l.bf16 %v10628_v58  ;;  %v8999_v48 = vunpack.i.h.bf16 %v10628_v58 }
  0xf4   :  { %9256 = vrot.lane.b32.xlu1 %v9981_v29, %s9566_s19  ;;  %8308 = vmatprep.subr.bf16.mxu0 %v8307_v3  ;;  %v2702_v29 = vsel %vm2683_vm4, %v8928_v6, %v8929_v34  ;;  %v8993_v37 = vunpack.i.l.bf16 %v10637_v24 }
  0xf5   :  { %9251 = vrot.lane.b32.xlu0 %v9986_v18, %s9566_s19  ;;  %8013 = vmatmul.mubr.msk.f32.vlgmr.msra.gmra.mrb[4].mxu1 %vm288_vm1, %v10546_v25  ;;  %v8988_v18 = vunpack.i.l.bf16 %v10607_v41  ;;  %v8312_v0 = vpack.c.bf16 %v2721_v4, %v2702_v29  ;;  %v3579_v34 = vsel %vm3572_vm5, %v8998_v56, %v8999_v48 }
  0xf6   :  { %8014 = vmatmul.mubr.msk.f32.vlgmr.msra.gmra.mrb[6].mxu0 %vm288_vm1, %v10546_v25  ;;  %8306 = vmatpush1.bf16.msra.mxu1 %v8305_v50  ;;  %v9007_v9 = vpop.permute.xlu1 %9006  ;;  %v3576_v1 = vsel %vm3572_vm5, %v8989_v43, %v8993_v37 }
  0xf7   :  { %8310 = vmatpush1.bf16.msra.mxu0 %v8309_v62  ;;  %3324 = vmatprep.mubr.f32.mxu1 %v11402_v55  ;;  %v9008_v21 = vunpack.i.l.bf16 %v9007_v9  ;;  %v9002_v12 = vpop.permute.xlu0 %9001  ;;  %v9009_v6 = vunpack.i.h.bf16 %v9007_v9  ;;  %v3574_v40 = vsel %vm3572_vm5, %v8984_v36, %v8988_v18  ;;  %v3575_v10 = vsel %vm3572_vm5, %v8988_v18, %v8989_v43 }
  0xf8   :  { %9266 = vrot.lane.b32.xlu1 %v9990_v63, %s9566_s19  ;;  %8311 = vmatprep.subr.bf16.mxu1 %v11429_v16  ;;  %v9004_v44 = vunpack.i.h.bf16 %v9002_v12  ;;  %v9003_v35 = vunpack.i.l.bf16 %v9002_v12  ;;  %v8994_v63 = vunpack.i.h.bf16 %v10637_v24 }
  0xf9   :  { %9261 = vrot.lane.b32.xlu0 %v9994_v42, %s9566_s19  ;;  %8015 = vmatmul.mubr.msk.f32.vlgmr.msra.gmra.mrb[6].mxu1 %vm288_vm1, %v10546_v25 }
  0xfa   :  { %8313 = vmatpush3.bf16.msra.mxu1 %v8312_v0  ;;  %v3592_v47 = vsel %vm3572_vm5, %v9008_v21, %v9003_v35  ;;  %v10675_v32 = vpop.permute.xlu1 %9016  ;;  %3395 = vmatprep.mubr.f32.mxu0 %v11402_v55  ;;  %v3593_v42 = vsel %vm3572_vm5, %v9003_v35, %v9004_v44  ;;  %v3577_v51 = vsel %vm3572_vm5, %v8993_v37, %v8994_v63 }
  0xfb   :  { %v8316_v45 = vpack.c.bf16 %v3592_v47, %v3573_v23  ;;  %v9018_v53 = vunpack.i.l.bf16 %v10675_v32  ;;  %v9012_v31 = vpop.permute.xlu0 %9011  ;;  %8016 = vmatmul.mubr.msk.f32.vlgmr.msra.gmra.mrb[8].mxu0 %vm288_vm1, %v10546_v25  ;;  %8120 = vmatprep.mubr.msk.f32.mxu1 %vm9565_vm2, %v11402_v55  ;;  %v8314_v19 = vpack.c.bf16 %v3593_v42, %v3574_v40  ;;  %v3594_v41 = vsel %vm3572_vm5, %v9004_v44, %v9009_v6 }
  0xfc   :  { %9276 = vrot.lane.b32.xlu1 %v10663_v7, %s9566_s19  ;;  %v9014_v54 = vunpack.i.h.bf16 %v9012_v31  ;;  %v9013_v22 = vunpack.i.l.bf16 %v9012_v31  ;;  %3716 = vmatprep.mubr.f32.mxu0 %v11402_v55  ;;  %v9019_v20 = vunpack.i.h.bf16 %v10675_v32  ;;  %v3578_v26 = vsel %vm3572_vm5, %v8994_v63, %v8998_v56 }
  0xfd   :  { %9271 = vrot.lane.b32.xlu0 %v10005_v49, %s9566_s19  ;;  %8121 = vmatmul.mubr.msk.f32.vlgmr.msra.gmra.mrb[8].mxu1 %vm288_vm1, %v10546_v25  ;;  %v10714_v25 = vld [vmem:[%s11350_s1 + $0x20] sm:$0xff]  ;;  %v8320_v62 = vpack.c.bf16 %v3594_v41, %v3575_v10 }
  0xfe   :  { %v3596_v59 = vsel %vm3572_vm5, %v9013_v22, %v9014_v54  ;;  %8315 = vmatprep.subr.bf16.mxu0 %v8314_v19  ;;  %v9027_v38 = vpop.permute.xlu1 %9026  ;;  %v3595_v52 = vsel %vm3572_vm5, %v9009_v6, %v9013_v22  ;;  %v3597_v49 = vsel %vm3572_vm5, %v9014_v54, %v9018_v53  ;;  %3787 = vmatprep.mubr.f32.mxu1 %v11402_v55 }
  0xff   :  { %v8324_v27 = vpack.c.bf16 %v3596_v59, %v3577_v51  ;;  %8317 = vmatpush1.bf16.msra.mxu0 %v8316_v45  ;;  %v9022_v17 = vpop.permute.xlu0 %9021  ;;  %v8318_v3 = vpack.c.bf16 %v3595_v52, %v3576_v1  ;;  %v8322_v60 = vpack.c.bf16 %v3597_v49, %v3578_v26  ;;  %v9028_v24 = vunpack.i.l.bf16 %v9027_v38  ;;  %v9527_v26 = vld [vmem:[%s11349_s0 + $0x60] sm:$0xff] }
 0x100   :  { %9286 = vrot.lane.b32.xlu1 %v10694_v5, %s9567_s5  ;;  %v9024_v39 = vunpack.i.h.bf16 %v9022_v17  ;;  %v9023_v58 = vunpack.i.l.bf16 %v9022_v17  ;;  %v9029_v50 = vunpack.i.h.bf16 %v9027_v38  ;;  %v3580_v13 = vsel %vm3572_vm5, %v8999_v48, %v9019_v20  ;;  %v9524_v48 = vld [vmem:[%s11349_s0 + $0xd8] sm:$0xff] }
 0x101   :  { %9281 = vrot.lane.b32.xlu0 %v10134_v11, %s9567_s5  ;;  %8319 = vmatprep.subr.bf16.mxu1 %v8318_v3  ;;  %v3581_v2 = vsel %vm3572_vm5, %v9019_v20, %v9028_v24  ;;  %v10767_v54 = vpack.i.bf16 %v9522_v14, %v9523_v28  ;;  %v9526_v3 = vld [vmem:[%s11349_s0 + $0x58] sm:$0xff]  ;;  %v9536_v14 = vld [vmem:[%s11349_s0 + $0x110] sm:$0xff]  ;;  %v9537_v28 = vld [vmem:[%s11349_s0 + $0x108] sm:$0xff] }
 0x102   :  { %v3598_v4 = vsel %vm3572_vm5, %v9018_v53, %v9023_v58  ;;  %8323 = vmatprep.subr.bf16.mxu0 %v8322_v60  ;;  %8018 = vmatmul.mubr.msk.f32.vlgmr.msra.gmra.mrb[0].mxu0 %vm288_vm1, %v10714_v25  ;;  %v9037_v36 = vpop.permute.xlu1 %9036  ;;  %v3599_v9 = vsel %vm3572_vm5, %v9023_v58, %v9024_v39  ;;  %v10796_v10 = vpack.i.bf16 %v9527_v26, %v9526_v3  ;;  %v9528_v60 = vld [vmem:[%s11349_s0 + $0xf0] sm:$0xff] }
 0x103   :  { %v8328_v29 = vpack.c.bf16 %v3598_v4, %v3579_v34  ;;  %8321 = vmatpush1.bf16.msra.mxu1 %v8320_v62  ;;  %8325 = vmatpush1.bf16.msra.mxu0 %v8324_v27  ;;  %v9032_v18 = vpop.permute.xlu0 %9031  ;;  %v8326_v11 = vpack.c.bf16 %v3599_v9, %v3580_v13  ;;  %v9038_v61 = vunpack.i.l.bf16 %v9037_v36  ;;  %v9039_v0 = vunpack.i.h.bf16 %v9037_v36  ;;  %v9529_v34 = vld [vmem:[%s11349_s0 + $0xe8] sm:$0xff] }
 0x104   :  { %9296 = vrot.lane.b32.xlu1 %v10159_v33, %s9567_s5  ;;  %v9034_v21 = vunpack.i.h.bf16 %v9032_v18  ;;  %v9033_v12 = vunpack.i.l.bf16 %v9032_v18  ;;  %3858 = vmatprep.mubr.f32.mxu0 %v11402_v55  ;;  %v3582_v33 = vsel %vm3572_vm5, %v9028_v24, %v9029_v50  ;;  %v10806_v62 = vpack.i.bf16 %v9528_v60, %v9529_v34 }
 0x105   :  { %9291 = vrot.lane.b32.xlu0 %v10165_v57, %s9567_s5  ;;  %8327 = vmatprep.subr.bf16.mxu1 %v8326_v11  ;;  %v3583_v47 = vsel %vm3572_vm5, %v9029_v50, %v9038_v61 }
 0x106   :  { %v3600_v44 = vsel %vm3572_vm5, %v9024_v39, %v9033_v12  ;;  %8019 = vmatmul.mubr.msk.f32.vlgmr.msra.gmra.mrb[0].mxu1 %vm288_vm1, %v10714_v25  ;;  %v10736_v35 = vpop.permute.xlu1 %9046  ;;  %v3601_v63 = vsel %vm3572_vm5, %v9033_v12, %v9034_v21  ;;  %8020 = vmatmul.mubr.msk.f32.vlgmr.msra.gmra.mrb[2].mxu0 %vm288_vm1, %v10714_v25  ;;  %v9531_v12 = vld [vmem:[%s11349_s0 + $0x68] sm:$0xff] }
 0x107   :  { %v8332_v57 = vpack.c.bf16 %v3600_v44, %v3581_v2  ;;  %8329 = vmatpush1.bf16.msra.mxu1 %v8328_v29  ;;  %v9042_v37 = vpop.permute.xlu0 %9041  ;;  %v8330_v6 = vpack.c.bf16 %v3601_v63, %v3582_v33  ;;  %3929 = vmatprep.mubr.f32.mxu1 %v11402_v55  ;;  %v9048_v32 = vunpack.i.l.bf16 %v10736_v35  ;;  %v9049_v42 = vunpack.i.h.bf16 %v10736_v35  ;;  %v9532_v35 = vld [vmem:[%s11349_s0 + $0xf8] sm:$0xff]  ;;  %v9533_v33 = vld [vmem:[%s11349_s0 + $0x100] sm:$0xff] }
 0x108   :  { %9306 = vrot.lane.b32.xlu1 %v10196_v8, %s9567_s5  ;;  %v9044_v43 = vunpack.i.h.bf16 %v9042_v37  ;;  %v9043_v23 = vunpack.i.l.bf16 %v9042_v37  ;;  %4000 = vmatprep.mubr.f32.mxu0 %v11402_v55  ;;  %v3584_v8 = vsel %vm3572_vm5, %v9038_v61, %v9039_v0  ;;  %v10833_v63 = vpack.i.bf16 %v9533_v33, %v9532_v35  ;;  %v9535_v37 = vld [vmem:[%s11349_s0 + $0x80] sm:$0xff] }
 0x109   :  { %9301 = vrot.lane.b32.xlu0 %v10201_v30, %s9567_s5  ;;  %8331 = vmatprep.subr.bf16.mxu0 %v8330_v6  ;;  %v3585_v41 = vsel %vm3572_vm5, %v9039_v0, %v9048_v32  ;;  %v3586_v38 = vsel %vm3572_vm5, %v9048_v32, %v9049_v42 }
 0x10a   :  { %v3602_v56 = vsel %vm3572_vm5, %v9034_v21, %v9043_v23  ;;  %8333 = vmatpush1.bf16.msra.mxu0 %v8332_v57  ;;  %v10752_v45 = vpop.permute.xlu1 %9056  ;;  %v3603_v53 = vsel %vm3572_vm5, %v9043_v23, %v9044_v43  ;;  %8021 = vmatmul.mubr.msk.f32.vlgmr.msra.gmra.mrb[2].mxu1 %vm288_vm1, %v10714_v25  ;;  %v9530_v21 = vld [vmem:[%s11349_s0 + $0x70] sm:$0xff]  ;;  %v9534_v57 = vld [vmem:[%s11349_s0 + $0x78] sm:$0xff] }
 0x10b   :  { %v8336_v30 = vpack.c.bf16 %v3602_v56, %v3583_v47  ;;  %v9052_v31 = vpop.permute.xlu0 %9051  ;;  %v8334_v40 = vpack.c.bf16 %v3603_v53, %v3584_v8  ;;  %4071 = vmatprep.mubr.f32.mxu1 %v11402_v55  ;;  %v9059_v1 = vunpack.i.h.bf16 %v10752_v45  ;;  %v9058_v20 = vunpack.i.l.bf16 %v10752_v45 }
 0x10c   :  { %9316 = vrot.lane.b32.xlu1 %v10226_v15, %s9567_s5  ;;  %v9054_v22 = vunpack.i.h.bf16 %v9052_v31  ;;  %v9053_v19 = vunpack.i.l.bf16 %v9052_v31  ;;  %v9525_v15 = vld [vmem:[%s11349_s0 + $0xe0] sm:$0xff]  ;;  %v10823_v2 = vpack.i.bf16 %v9530_v21, %v9531_v12  ;;  %v10841_v6 = vpack.i.bf16 %v9535_v37, %v9534_v57  ;;  %v10920_v12 = vld [vmem:[%s11350_s1 + $0x28] sm:$0xff] }
 0x10d   :  { %9311 = vrot.lane.b32.xlu0 %v10231_v46, %s9567_s5  ;;  %v10777_v51 = vpack.i.bf16 %v9525_v15, %v9524_v48  ;;  %8335 = vmatprep.subr.bf16.mxu1 %v8334_v40  ;;  %v3587_v24 = vsel %vm3572_vm5, %v9049_v42, %v9058_v20  ;;  %v3588_v50 = vsel %vm3572_vm5, %v9058_v20, %v9059_v1 }
 0x10e   :  { %v3604_v59 = vsel %vm3572_vm5, %v9044_v43, %v9053_v19  ;;  %8337 = vmatpush1.bf16.msra.mxu1 %v8336_v30  ;;  %v9067_v46 = vpop.permute.xlu1 %9066  ;;  %v3605_v52 = vsel %vm3572_vm5, %v9053_v19, %v9054_v22  ;;  %8022 = vmatmul.mubr.msk.f32.vlgmr.msra.gmra.mrb[4].mxu0 %vm288_vm1, %v10714_v25 }
 0x10f   :  { %v8340_v49 = vpack.c.bf16 %v3604_v59, %v3585_v41  ;;  %v9062_v27 = vpop.permute.xlu0 %9061  ;;  %v8338_v17 = vpack.c.bf16 %v3605_v52, %v3586_v38  ;;  %4142 = vmatprep.mubr.f32.mxu0 %v11402_v55  ;;  %v9069_v4 = vunpack.i.h.bf16 %v9067_v46  ;;  %v9068_v36 = vunpack.i.l.bf16 %v9067_v46  ;;  %v9538_v59 = vld [vmem:[%s11349_s0 + $0x90] sm:$0xff]  ;;  %v9539_v46 = vld [vmem:[%s11349_s0 + $0x88] sm:$0xff] }
 0x110   :  { %9326 = vrot.lane.b32.xlu1 %v10767_v54, %s9567_s5  ;;  %v9064_v39 = vunpack.i.h.bf16 %v9062_v27  ;;  %v9063_v58 = vunpack.i.l.bf16 %v9062_v27  ;;  %v10882_v38 = vpack.i.bf16 %v9538_v59, %v9539_v46  ;;  %v9541_v27 = vld [vmem:[%s11349_s0 + $0x120] sm:$0xff]  ;;  %v9550_v59 = vld [vmem:[%s11349_s0 + $0x28] sm:$0xff]  ;;  %v9551_v46 = vld [vmem:[%s11349_s0 + $0x30] sm:$0xff] }
 0x111   :  { %9321 = vrot.lane.b32.xlu0 %v10777_v51, %s9567_s5  ;;  %8339 = vmatprep.subr.bf16.mxu0 %v8338_v17  ;;  %v3589_v47 = vsel %vm3572_vm5, %v9059_v1, %v9068_v36  ;;  %v3590_v42 = vsel %vm3572_vm5, %v9068_v36, %v9069_v4 }
 0x112   :  { %v3606_v13 = vsel %vm3572_vm5, %v9054_v22, %v9063_v58  ;;  %8341 = vmatpush1.bf16.msra.mxu0 %v8340_v49  ;;  %v3607_v9 = vsel %vm3572_vm5, %v9063_v58, %v9064_v39  ;;  %8023 = vmatmul.mubr.msk.f32.vlgmr.msra.gmra.mrb[4].mxu1 %vm288_vm1, %v10714_v25  ;;  %v9077_v18 = vpop.permute.xlu1 %9076  ;;  %v10865_v22 = vpack.i.bf16 %v9536_v14, %v9537_v28  ;;  %v9540_v49 = vld [vmem:[%s11349_s0 + $0x118] sm:$0xff] }
 0x113   :  { %v8344_v29 = vpack.c.bf16 %v3606_v13, %v3587_v24  ;;  %v8342_v11 = vpack.c.bf16 %v3607_v9, %v3588_v50  ;;  %4213 = vmatprep.mubr.f32.mxu1 %v11402_v55  ;;  %v9079_v61 = vunpack.i.h.bf16 %v9077_v18  ;;  %v9078_v0 = vunpack.i.l.bf16 %v9077_v18  ;;  %v9542_v24 = vld [vmem:[%s11349_s0 + $0x130] sm:$0xff] }
 0x114   :  { %9336 = vrot.lane.b32.xlu1 %v10796_v10, %s9567_s5  ;;  %v9072_v44 = vpop.permute.xlu0 %9071  ;;  %v10893_v17 = vpack.i.bf16 %v9541_v27, %v9540_v49 }
 0x115   :  { %9331 = vrot.lane.b32.xlu0 %v10806_v62, %s9567_s5  ;;  %v9074_v43 = vunpack.i.h.bf16 %v9072_v44  ;;  %v9073_v23 = vunpack.i.l.bf16 %v9072_v44  ;;  %8343 = vmatprep.subr.bf16.mxu1 %v8342_v11  ;;  %v3591_v32 = vsel %vm3572_vm5, %v9069_v4, %v9078_v0  ;;  %v9544_v0 = vld [vmem:[%s11349_s0 + $0x8] sm:$0xff]  ;;  %v9545_v44 = vld [vmem:[%s11349_s0 + $0x10] sm:$0xff] }
 0x116   :  { %8345 = vmatpush1.bf16.msra.mxu1 %v8344_v29  ;;  %8024 = vmatmul.mubr.msk.f32.vlgmr.msra.gmra.mrb[6].mxu0 %vm288_vm1, %v10714_v25  ;;  %v9380_v35 = vpack.i.bf16 %v9545_v44, %v9544_v0  ;;  %v9557_v0 = vld [vmem:[%s11349_s0 + $0xc8] sm:$0xff] }
 0x117   :  { %v3610_v56 = vsel %vm3572_vm5, %v9074_v43, %v9079_v61  ;;  %v3608_v45 = vsel %vm3572_vm5, %v9064_v39, %v9073_v23  ;;  %v3609_v8 = vsel %vm3572_vm5, %v9073_v23, %v9074_v43  ;;  %8350 = vmatprep.subr.bf16.mxu1 %v11429_v16  ;;  %4284 = vmatprep.mubr.f32.mxu0 %v11402_v55 }
 0x118   :  { %9346 = vrot.lane.b32.xlu1 %v10823_v2, %s9567_s5  ;;  %v8351_v53 = vpack.c.bf16 %v3610_v56, %v3591_v32  ;;  %v8348_v30 = vpack.c.bf16 %v3608_v45, %v3589_v47  ;;  %v10855_v31 = vpop.permute.xlu1 %9086  ;;  %v8346_v40 = vpack.c.bf16 %v3609_v8, %v3590_v42  ;;  %v9546_v56 = vld [vmem:[%s11349_s0 + $0x20] sm:$0xff] }
 0x119   :  { %9341 = vrot.lane.b32.xlu0 %v10833_v63, %s9567_s5  ;;  %v9089_v19 = vunpack.i.h.bf16 %v10855_v31  ;;  %v9088_v48 = vunpack.i.l.bf16 %v10855_v31  ;;  %v9082_v15 = vpop.permute.xlu0 %9081  ;;  %8025 = vmatmul.mubr.msk.f32.vlgmr.msra.gmra.mrb[6].mxu1 %vm288_vm1, %v10714_v25  ;;  %v9547_v45 = vld [vmem:[%s11349_s0 + $0xa0] sm:$0xff] }
 0x11a   :  { %v9084_v41 = vunpack.i.h.bf16 %v9082_v15  ;;  %v9083_v1 = vunpack.i.l.bf16 %v9082_v15  ;;  %8347 = vmatprep.subr.bf16.mxu0 %v8346_v40  ;;  %8352 = vmatpush3.bf16.msra.mxu1 %v8351_v53  ;;  %v9395_v8 = vpack.i.bf16 %v9547_v45, %v9546_v56 }
 0x11b   :  { %8349 = vmatpush1.bf16.msra.mxu0 %v8348_v30  ;;  %v4482_v20 = vsel %vm4461_vm6, %v9088_v48, %v9089_v19  ;;  %8127 = vmatprep.mubr.msk.f32.mxu1 %vm9565_vm2, %v11402_v55  ;;  %v9548_v30 = vld [vmem:[%s11349_s0] sm:$0xff] }
 0x11c   :  { %9356 = vrot.lane.b32.xlu1 %v10841_v6, %s9567_s5  ;;  %v4463_v52 = vsel %vm4461_vm6, %v9083_v1, %v9084_v41 }
 0x11d   :  { %9351 = vrot.lane.b32.xlu0 %v10865_v22, %s9567_s5  ;;  %v9097_v3 = vpop.permute.xlu1 %9096  ;;  %v8353_v26 = vpack.c.bf16 %v4482_v20, %v4463_v52  ;;  %8128 = vmatmul.mubr.msk.f32.vlgmr.msra.gmra.mrb[8].mxu1 %vm288_vm1, %v10714_v25  ;;  %v9405_v52 = vpack.i.bf16 %v9551_v46, %v9550_v59 }
 0x11e   :  { %v9099_v39 = vunpack.i.h.bf16 %v9097_v3  ;;  %v9092_v58 = vpop.permute.xlu0 %9091  ;;  %8026 = vmatmul.mubr.msk.f32.vlgmr.msra.gmra.mrb[8].mxu0 %vm288_vm1, %v10714_v25  ;;  %4676 = vmatprep.mubr.f32.mxu1 %v11402_v55  ;;  %v9543_v25 = vld [vmem:[%s11349_s0 + $0x128] sm:$0xff]  ;;  %v9098_v4 = vunpack.i.l.bf16 %v9097_v3  ;;  %v9552_v3 = vld [vmem:[%s11349_s0 + $0xb8] sm:$0xff] }
 0x11f   :  { %v9093_v60 = vunpack.i.l.bf16 %v9092_v58  ;;  %8354 = vmatprep.subr.bf16.mxu0 %v8353_v26  ;;  %4605 = vmatprep.mubr.f32.mxu0 %v11402_v55  ;;  %v10912_v50 = vpack.i.bf16 %v9542_v24, %v9543_v25  ;;  %v9094_v36 = vunpack.i.h.bf16 %v9092_v58  ;;  %v9553_v26 = vld [vmem:[%s11349_s0 + $0xc0] sm:$0xff]  ;;  %v9554_v25 = vld [vmem:[%s11349_s0 + $0x38] sm:$0xff] }
 0x120   :  { %9366 = vrot.lane.b32.xlu1 %v10882_v38, %s9567_s5  ;;  %v4481_v34 = vsel %vm4461_vm6, %v9099_v39, %v9088_v48  ;;  %v9400_v39 = vpack.i.bf16 %v9553_v26, %v9552_v3 }
 0x121   :  { %9361 = vrot.lane.b32.xlu0 %v10893_v17, %s9567_s5  ;;  %v4462_v13 = vsel %vm4461_vm6, %v9093_v60, %v9083_v1  ;;  %v4464_v61 = vsel %vm4461_vm6, %v9084_v41, %v9094_v36  ;;  %v4465_v33 = vsel %vm4461_vm6, %v9094_v36, %v9098_v4 }
 0x122   :  { %v8355_v9 = vpack.c.bf16 %v4481_v34, %v4462_v13  ;;  %v9107_v29 = vpop.permute.xlu1 %9106 }
 0x123   :  { %v9102_v18 = vpop.permute.xlu0 %9101  ;;  %v9109_v57 = vunpack.i.h.bf16 %v9107_v29  ;;  %v9108_v37 = vunpack.i.l.bf16 %v9107_v29 }
 0x124   :  { %9376 = vrot.lane.b32.xlu1 %v10663_v7, %s9567_s5  ;;  %v9104_v11 = vunpack.i.h.bf16 %v9102_v18  ;;  %v9103_v21 = vunpack.i.l.bf16 %v9102_v18  ;;  %8356 = vmatpush1.bf16.msra.mxu0 %v8355_v9 }
 0x125   :  { %9371 = vrot.lane.b32.xlu0 %v10912_v50, %s9567_s5  ;;  %s9568_s5 = smov 58   ;;  %v4466_v28 = vsel %vm4461_vm6, %v9098_v4, %v9108_v37  ;;  %v9555_v4 = vld [vmem:[%s11349_s0 + $0x40] sm:$0xff] }
 0x126   :  { %v4483_v43 = vsel %vm4461_vm6, %v9089_v19, %v9103_v21  ;;  %v4484_v23 = vsel %vm4461_vm6, %v9103_v21, %v9104_v11  ;;  %v4467_v19 = vsel %vm4461_vm6, %v9108_v37, %v9109_v57  ;;  %v9415_v36 = vpack.i.bf16 %v9555_v4, %v9554_v25 }
 0x127   :  { %v8359_v47 = vpack.c.bf16 %v4483_v43, %v4464_v61  ;;  %v10934_v32 = vpop.permute.xlu1 %9116  ;;  %v8357_v42 = vpack.c.bf16 %v4484_v23, %v4465_v33  ;;  %8028 = vmatmul.mubr.msk.f32.vlgmr.msra.gmra.mrb[0].mxu0 %vm288_vm1, %v10920_v12  ;;  %v9556_v61 = vld [vmem:[%s11349_s0 + $0xd0] sm:$0xff] }
 0x128   :  { %9386 = vrot.lane.b32.xlu1 %v10694_v5, %s9568_s5  ;;  %v9112_v53 = vpop.permute.xlu0 %9111  ;;  %4747 = vmatprep.mubr.f32.mxu0 %v11402_v55  ;;  %v9549_v5 = vld [vmem:[%s11349_s0 + $0x18] sm:$0xff]  ;;  %v9119_v48 = vunpack.i.h.bf16 %v10934_v32  ;;  %v9118_v15 = vunpack.i.l.bf16 %v10934_v32  ;;  %v9410_v44 = vpack.i.bf16 %v9556_v61, %v9557_v0 }
 0x129   :  { %9381 = vrot.lane.b32.xlu0 %v9380_v35, %s9568_s5  ;;  %v9390_v31 = vpack.i.bf16 %v9549_v5, %v9548_v30  ;;  %v9114_v40 = vunpack.i.h.bf16 %v9112_v53  ;;  %v9113_v14 = vunpack.i.l.bf16 %v9112_v53  ;;  %8358 = vmatprep.subr.bf16.mxu1 %v8357_v42 }
 0x12a   :  { %8360 = vmatpush1.bf16.msra.mxu1 %v8359_v47  ;;  %v4468_v24 = vsel %vm4461_vm6, %v9109_v57, %v9118_v15  ;;  %v4469_v13 = vsel %vm4461_vm6, %v9118_v15, %v9119_v48 }
 0x12b   :  { %v4485_v41 = vsel %vm4461_vm6, %v9104_v11, %v9113_v14  ;;  %v4486_v1 = vsel %vm4461_vm6, %v9113_v14, %v9114_v40 }
 0x12c   :  { %9396 = vrot.lane.b32.xlu1 %v9395_v8, %s9568_s5  ;;  %v8363_v20 = vpack.c.bf16 %v4485_v41, %v4466_v28  ;;  %v9127_v49 = vpop.permute.xlu1 %9126  ;;  %v8361_v27 = vpack.c.bf16 %v4486_v1, %v4467_v19 }
 0x12d   :  { %9391 = vrot.lane.b32.xlu0 %v9390_v31, %s9568_s5  ;;  %v9122_v58 = vpop.permute.xlu0 %9121  ;;  %8029 = vmatmul.mubr.msk.f32.vlgmr.msra.gmra.mrb[0].mxu1 %vm288_vm1, %v10920_v12  ;;  %v9129_v9 = vunpack.i.h.bf16 %v9127_v49  ;;  %v9128_v29 = vunpack.i.l.bf16 %v9127_v49 }
 0x12e   :  { %v9124_v60 = vunpack.i.h.bf16 %v9122_v58  ;;  %v9123_v34 = vunpack.i.l.bf16 %v9122_v58  ;;  %8362 = vmatprep.subr.bf16.mxu0 %v8361_v27  ;;  %4818 = vmatprep.mubr.f32.mxu1 %v11402_v55 }
 0x12f   :  { %8364 = vmatpush1.bf16.msra.mxu0 %v8363_v20  ;;  %v4470_v23 = vsel %vm4461_vm6, %v9119_v48, %v9128_v29  ;;  %v4471_v47 = vsel %vm4461_vm6, %v9128_v29, %v9129_v9 }
 0x130   :  { %9406 = vrot.lane.b32.xlu1 %v9405_v52, %s9568_s5  ;;  %v4487_v18 = vsel %vm4461_vm6, %v9114_v40, %v9123_v34  ;;  %v4488_v11 = vsel %vm4461_vm6, %v9123_v34, %v9124_v60 }
 0x131   :  { %9401 = vrot.lane.b32.xlu0 %v9400_v39, %s9568_s5  ;;  %v8367_v21 = vpack.c.bf16 %v4487_v18, %v4468_v24  ;;  %v9137_v35 = vpop.permute.xlu1 %9136  ;;  %v8365_v33 = vpack.c.bf16 %v4488_v11, %v4469_v13 }
 0x132   :  { %v9132_v57 = vpop.permute.xlu0 %9131  ;;  %8030 = vmatmul.mubr.msk.f32.vlgmr.msra.gmra.mrb[2].mxu0 %vm288_vm1, %v10920_v12  ;;  %v9139_v32 = vunpack.i.h.bf16 %v9137_v35  ;;  %v9138_v42 = vunpack.i.l.bf16 %v9137_v35 }
 0x133   :  { %v9134_v37 = vunpack.i.h.bf16 %v9132_v57  ;;  %v9133_v43 = vunpack.i.l.bf16 %v9132_v57  ;;  %8366 = vmatprep.subr.bf16.mxu1 %v8365_v33  ;;  %4889 = vmatprep.mubr.f32.mxu0 %v11402_v55 }
 0x134   :  { %9416 = vrot.lane.b32.xlu1 %v9415_v36, %s9568_s5  ;;  %8368 = vmatpush1.bf16.msra.mxu1 %v8367_v21  ;;  %v4472_v14 = vsel %vm4461_vm6, %v9129_v9, %v9138_v42  ;;  %v4473_v28 = vsel %vm4461_vm6, %v9138_v42, %v9139_v32 }
 0x135   :  { %9411 = vrot.lane.b32.xlu0 %v9410_v44, %s9568_s5  ;;  %v4489_v56 = vsel %vm4461_vm6, %v9124_v60, %v9133_v43  ;;  %v4490_v45 = vsel %vm4461_vm6, %v9133_v43, %v9134_v37 }
 0x136   :  { %v8371_v8 = vpack.c.bf16 %v4489_v56, %v4470_v23  ;;  %v9147_v53 = vpop.permute.xlu1 %9146  ;;  %v8369_v30 = vpack.c.bf16 %v4490_v45, %v4471_v47 }
 0x137   :  { %v9142_v5 = vpop.permute.xlu0 %9141  ;;  %8031 = vmatmul.mubr.msk.f32.vlgmr.msra.gmra.mrb[2].mxu1 %vm288_vm1, %v10920_v12  ;;  %v9149_v19 = vunpack.i.h.bf16 %v9147_v53  ;;  %v9148_v48 = vunpack.i.l.bf16 %v9147_v53 }
 0x138   :  { %9426 = vrot.lane.b32.xlu1 %v10767_v54, %s9568_s5  ;;  %v9144_v31 = vunpack.i.h.bf16 %v9142_v5  ;;  %v9143_v40 = vunpack.i.l.bf16 %v9142_v5  ;;  %8370 = vmatprep.subr.bf16.mxu0 %v8369_v30 }
 0x139   :  { %9421 = vrot.lane.b32.xlu0 %v10777_v51, %s9568_s5  ;;  %8372 = vmatpush1.bf16.msra.mxu0 %v8371_v8  ;;  %v4474_v52 = vsel %vm4461_vm6, %v9139_v32, %v9148_v48  ;;  %v4475_v49 = vsel %vm4461_vm6, %v9148_v48, %v9149_v19 }
 0x13a   :  { %v4491_v15 = vsel %vm4461_vm6, %v9134_v37, %v9143_v40  ;;  %v4492_v41 = vsel %vm4461_vm6, %v9143_v40, %v9144_v31  ;;  %4960 = vmatprep.mubr.f32.mxu1 %v11402_v55 }
 0x13b   :  { %v8375_v54 = vpack.c.bf16 %v4491_v15, %v4472_v14  ;;  %v9157_v1 = vpop.permute.xlu1 %9156  ;;  %v8373_v20 = vpack.c.bf16 %v4492_v41, %v4473_v28 }
 0x13c   :  { %9436 = vrot.lane.b32.xlu1 %v10796_v10, %s9568_s5  ;;  %v9152_v59 = vpop.permute.xlu0 %9151  ;;  %8032 = vmatmul.mubr.msk.f32.vlgmr.msra.gmra.mrb[4].mxu0 %vm288_vm1, %v10920_v12  ;;  %v9159_v27 = vunpack.i.h.bf16 %v9157_v1  ;;  %v9158_v3 = vunpack.i.l.bf16 %v9157_v1 }
 0x13d   :  { %9431 = vrot.lane.b32.xlu0 %v10806_v62, %s9568_s5  ;;  %v9154_v51 = vunpack.i.h.bf16 %v9152_v59  ;;  %v9153_v46 = vunpack.i.l.bf16 %v9152_v59  ;;  %8374 = vmatprep.subr.bf16.mxu1 %v8373_v20 }
 0x13e   :  { %8376 = vmatpush1.bf16.msra.mxu1 %v8375_v54  ;;  %5031 = vmatprep.mubr.f32.mxu0 %v11402_v55  ;;  %v4476_v25 = vsel %vm4461_vm6, %v9149_v19, %v9158_v3  ;;  %v4477_v4 = vsel %vm4461_vm6, %v9158_v3, %v9159_v27 }
 0x13f   :  { %v4493_v10 = vsel %vm4461_vm6, %v9144_v31, %v9153_v46  ;;  %v4494_v26 = vsel %vm4461_vm6, %v9153_v46, %v9154_v51 }
 0x140   :  { %v8379_v39 = vpack.c.bf16 %v4493_v10, %v4474_v52  ;;  %9446 = vrot.lane.b32.xlu1 %v10823_v2, %s9568_s5  ;;  %v9167_v62 = vpop.permute.xlu1 %9166  ;;  %v8377_v58 = vpack.c.bf16 %v4494_v26, %v4475_v49 }
 0x141   :  { %9441 = vrot.lane.b32.xlu0 %v10833_v63, %s9568_s5  ;;  %v9162_v60 = vpop.permute.xlu0 %9161  ;;  %8033 = vmatmul.mubr.msk.f32.vlgmr.msra.gmra.mrb[4].mxu1 %vm288_vm1, %v10920_v12  ;;  %v9169_v2 = vunpack.i.h.bf16 %v9167_v62  ;;  %v9168_v36 = vunpack.i.l.bf16 %v9167_v62 }
 0x142   :  { %v9164_v34 = vunpack.i.h.bf16 %v9162_v60  ;;  %v9163_v24 = vunpack.i.l.bf16 %v9162_v60  ;;  %8378 = vmatprep.subr.bf16.mxu0 %v8377_v58  ;;  %5102 = vmatprep.mubr.f32.mxu1 %v11402_v55 }
 0x143   :  { %8380 = vmatpush1.bf16.msra.mxu0 %v8379_v39 }
 0x144   :  { %v4495_v13 = vsel %vm4461_vm6, %v9154_v51, %v9163_v24  ;;  %9456 = vrot.lane.b32.xlu1 %v10841_v6, %s9568_s5  ;;  %v4496_v63 = vsel %vm4461_vm6, %v9163_v24, %v9164_v34  ;;  %v4478_v6 = vsel %vm4461_vm6, %v9159_v27, %v9168_v36 }
 0x145   :  { %v8383_v9 = vpack.c.bf16 %v4495_v13, %v4476_v25  ;;  %9451 = vrot.lane.b32.xlu0 %v10865_v22, %s9568_s5  ;;  %v9177_v29 = vpop.permute.xlu1 %9176  ;;  %v8381_v18 = vpack.c.bf16 %v4496_v63, %v4477_v4  ;;  %v4479_v22 = vsel %vm4461_vm6, %v9168_v36, %v9169_v2 }
 0x146   :  { %v9179_v11 = vunpack.i.h.bf16 %v9177_v29  ;;  %v9178_v21 = vunpack.i.l.bf16 %v9177_v29  ;;  %v9172_v61 = vpop.permute.xlu0 %9171  ;;  %8034 = vmatmul.mubr.msk.f32.vlgmr.msra.gmra.mrb[6].mxu0 %vm288_vm1, %v10920_v12 }
 0x147   :  { %v9174_v0 = vunpack.i.h.bf16 %v9172_v61  ;;  %v9173_v44 = vunpack.i.l.bf16 %v9172_v61  ;;  %8382 = vmatprep.subr.bf16.mxu1 %v8381_v18  ;;  %5173 = vmatprep.mubr.f32.mxu0 %v11402_v55 }
 0x148   :  { %v4480_v35 = vsel %vm4461_vm6, %v9169_v2, %v9178_v21  ;;  %9466 = vrot.lane.b32.xlu1 %v10882_v38, %s9568_s5  ;;  %8384 = vmatpush1.bf16.msra.mxu1 %v8383_v9 }
 0x149   :  { %v4499_v33 = vsel %vm4461_vm6, %v9174_v0, %v9179_v11  ;;  %v4497_v57 = vsel %vm4461_vm6, %v9164_v34, %v9173_v44  ;;  %9461 = vrot.lane.b32.xlu0 %v10893_v17, %s9568_s5  ;;  %v4498_v37 = vsel %vm4461_vm6, %v9173_v44, %v9174_v0  ;;  %8389 = vmatprep.subr.bf16.mxu1 %v11429_v16 }
 0x14a   :  { %v8390_v43 = vpack.c.bf16 %v4499_v33, %v4480_v35  ;;  %v8387_v23 = vpack.c.bf16 %v4497_v57, %v4478_v6  ;;  %v9187_v47 = vpop.permute.xlu1 %9186  ;;  %v8385_v32 = vpack.c.bf16 %v4498_v37, %v4479_v22 }
 0x14b   :  { %v9189_v38 = vunpack.i.h.bf16 %v9187_v47  ;;  %v9188_v42 = vunpack.i.l.bf16 %v9187_v47  ;;  %v9182_v56 = vpop.permute.xlu0 %9181  ;;  %8035 = vmatmul.mubr.msk.f32.vlgmr.msra.gmra.mrb[6].mxu1 %vm288_vm1, %v10920_v12 }
 0x14c   :  { %v9184_v45 = vunpack.i.h.bf16 %v9182_v56  ;;  %v9183_v8 = vunpack.i.l.bf16 %v9182_v56  ;;  %9476 = vrot.lane.b32.xlu1 %v10663_v7, %s9568_s5  ;;  %8386 = vmatprep.subr.bf16.mxu0 %v8385_v32 }
 0x14d   :  { %9471 = vrot.lane.b32.xlu0 %v10912_v50, %s9568_s5  ;;  %8388 = vmatpush1.bf16.msra.mxu0 %v8387_v23  ;;  %v5371_v17 = vsel %vm5350_vm7, %v9188_v42, %v9189_v38 }
 0x14e   :  { %8391 = vmatpush3.bf16.msra.mxu1 %v8390_v43  ;;  %v9197_v53 = vpop.permute.xlu1 %9196  ;;  %v5352_v30 = vsel %vm5350_vm7, %v9183_v8, %v9184_v45  ;;  %8134 = vmatprep.mubr.msk.f32.mxu1 %vm9565_vm2, %v11402_v55 }
 0x14f   :  { %v9199_v5 = vunpack.i.h.bf16 %v9197_v53  ;;  %v9192_v31 = vpop.permute.xlu0 %9191  ;;  %v8392_v40 = vpack.c.bf16 %v5371_v17, %v5352_v30  ;;  %v9198_v28 = vunpack.i.l.bf16 %v9197_v53 }
 0x150   :  { %v9193_v14 = vunpack.i.l.bf16 %v9192_v31  ;;  %8036 = vmatmul.mubr.msk.f32.vlgmr.msra.gmra.mrb[8].mxu0 %vm288_vm1, %v10920_v12  ;;  %v9194_v50 = vunpack.i.h.bf16 %v9192_v31 }
 0x151   :  { %v5370_v7 = vsel %vm5350_vm7, %v9199_v5, %v9188_v42  ;;  %8393 = vmatprep.subr.bf16.mxu0 %v8392_v40  ;;  %8135 = vmatmul.mubr.msk.f32.vlgmr.msra.gmra.mrb[8].mxu1 %vm288_vm1, %v10920_v12  ;;  %v11077_v12 = vld [vmem:[%s11350_s1 + $0x30] sm:$0xff] }
 0x152   :  { %v5351_v19 = vsel %vm5350_vm7, %v9193_v14, %v9183_v8  ;;  %v9207_v48 = vpop.permute.xlu1 %9206  ;;  %5494 = vmatprep.mubr.f32.mxu0 %v11402_v55  ;;  %5565 = vmatprep.mubr.f32.mxu1 %v11402_v55  ;;  %v5353_v20 = vsel %vm5350_vm7, %v9184_v45, %v9194_v50  ;;  %v5354_v49 = vsel %vm5350_vm7, %v9194_v50, %v9198_v28 }
 0x153   :  { %v8394_v15 = vpack.c.bf16 %v5370_v7, %v5351_v19  ;;  %v9202_v41 = vpop.permute.xlu0 %9201  ;;  %v9208_v59 = vunpack.i.l.bf16 %v9207_v48  ;;  %v9209_v51 = vunpack.i.h.bf16 %v9207_v48 }
 0x154   :  { %v9204_v54 = vunpack.i.h.bf16 %v9202_v41  ;;  %v9203_v1 = vunpack.i.l.bf16 %v9202_v41 }
 0x155   :  { %8395 = vmatpush1.bf16.msra.mxu0 %v8394_v15  ;;  %v5355_v58 = vsel %vm5350_vm7, %v9198_v28, %v9208_v59  ;;  %v5356_v4 = vsel %vm5350_vm7, %v9208_v59, %v9209_v51 }
 0x156   :  { %v5372_v46 = vsel %vm5350_vm7, %v9189_v38, %v9203_v1  ;;  %v9217_v52 = vpop.permute.xlu1 %9216  ;;  %v5373_v27 = vsel %vm5350_vm7, %v9203_v1, %v9204_v54 }
 0x157   :  { %v8398_v3 = vpack.c.bf16 %v5372_v46, %v5353_v20  ;;  %v9212_v10 = vpop.permute.xlu0 %9211  ;;  %v8396_v26 = vpack.c.bf16 %v5373_v27, %v5354_v49  ;;  %v9218_v60 = vunpack.i.l.bf16 %v9217_v52  ;;  %v9219_v34 = vunpack.i.h.bf16 %v9217_v52 }
 0x158   :  { %v9214_v39 = vunpack.i.h.bf16 %v9212_v10  ;;  %v9213_v62 = vunpack.i.l.bf16 %v9212_v10  ;;  %8038 = vmatmul.mubr.msk.f32.vlgmr.msra.gmra.mrb[0].mxu0 %vm288_vm1, %v11077_v12 }
 0x159   :  { %8397 = vmatprep.subr.bf16.mxu1 %v8396_v26  ;;  %5636 = vmatprep.mubr.f32.mxu0 %v11402_v55  ;;  %v5357_v18 = vsel %vm5350_vm7, %v9209_v51, %v9218_v60  ;;  %v5358_v44 = vsel %vm5350_vm7, %v9218_v60, %v9219_v34 }
 0x15a   :  { %v5374_v24 = vsel %vm5350_vm7, %v9204_v54, %v9213_v62  ;;  %8399 = vmatpush1.bf16.msra.mxu1 %v8398_v3  ;;  %v9227_v25 = vpop.permute.xlu1 %9226  ;;  %v5375_v2 = vsel %vm5350_vm7, %v9213_v62, %v9214_v39 }
 0x15b   :  { %v8402_v36 = vpack.c.bf16 %v5374_v24, %v5355_v58  ;;  %v9222_v13 = vpop.permute.xlu0 %9221  ;;  %v8400_v63 = vpack.c.bf16 %v5375_v2, %v5356_v4  ;;  %v9228_v11 = vunpack.i.l.bf16 %v9227_v25  ;;  %v9229_v21 = vunpack.i.h.bf16 %v9227_v25 }
 0x15c   :  { %v9224_v9 = vunpack.i.h.bf16 %v9222_v13  ;;  %v9223_v29 = vunpack.i.l.bf16 %v9222_v13 }
 0x15d   :  { %8401 = vmatprep.subr.bf16.mxu0 %v8400_v63  ;;  %8039 = vmatmul.mubr.msk.f32.vlgmr.msra.gmra.mrb[0].mxu1 %vm288_vm1, %v11077_v12  ;;  %v5359_v43 = vsel %vm5350_vm7, %v9219_v34, %v9228_v11  ;;  %v5360_v42 = vsel %vm5350_vm7, %v9228_v11, %v9229_v21 }
 0x15e   :  { %v5376_v61 = vsel %vm5350_vm7, %v9214_v39, %v9223_v29  ;;  %8403 = vmatpush1.bf16.msra.mxu0 %v8402_v36  ;;  %v9237_v0 = vpop.permute.xlu1 %9236  ;;  %v5377_v6 = vsel %vm5350_vm7, %v9223_v29, %v9224_v9  ;;  %5707 = vmatprep.mubr.f32.mxu1 %v11402_v55 }
 0x15f   :  { %v8406_v35 = vpack.c.bf16 %v5376_v61, %v5357_v18  ;;  %v9232_v22 = vpop.permute.xlu0 %9231  ;;  %v8404_v33 = vpack.c.bf16 %v5377_v6, %v5358_v44  ;;  %v9238_v23 = vunpack.i.l.bf16 %v9237_v0  ;;  %v9239_v47 = vunpack.i.h.bf16 %v9237_v0 }
 0x160   :  { %v9234_v57 = vunpack.i.h.bf16 %v9232_v22  ;;  %v9233_v37 = vunpack.i.l.bf16 %v9232_v22 }
 0x161   :  { %8405 = vmatprep.subr.bf16.mxu1 %v8404_v33  ;;  %8040 = vmatmul.mubr.msk.f32.vlgmr.msra.gmra.mrb[2].mxu0 %vm288_vm1, %v11077_v12  ;;  %v5361_v5 = vsel %vm5350_vm7, %v9229_v21, %v9238_v23  ;;  %v5362_v50 = vsel %vm5350_vm7, %v9238_v23, %v9239_v47 }
 0x162   :  { %v5378_v32 = vsel %vm5350_vm7, %v9224_v9, %v9233_v37  ;;  %8407 = vmatpush1.bf16.msra.mxu1 %v8406_v35  ;;  %v9247_v38 = vpop.permute.xlu1 %9246  ;;  %v5379_v56 = vsel %vm5350_vm7, %v9233_v37, %v9234_v57  ;;  %5778 = vmatprep.mubr.f32.mxu0 %v11402_v55 }
 0x163   :  { %v8410_v45 = vpack.c.bf16 %v5378_v32, %v5359_v43  ;;  %v9242_v8 = vpop.permute.xlu0 %9241  ;;  %v8408_v17 = vpack.c.bf16 %v5379_v56, %v5360_v42  ;;  %v9248_v31 = vunpack.i.l.bf16 %v9247_v38  ;;  %v9249_v40 = vunpack.i.h.bf16 %v9247_v38 }
 0x164   :  { %v9244_v53 = vunpack.i.h.bf16 %v9242_v8  ;;  %v9243_v30 = vunpack.i.l.bf16 %v9242_v8 }
 0x165   :  { %8409 = vmatprep.subr.bf16.mxu0 %v8408_v17  ;;  %8041 = vmatmul.mubr.msk.f32.vlgmr.msra.gmra.mrb[2].mxu1 %vm288_vm1, %v11077_v12  ;;  %v5363_v1 = vsel %vm5350_vm7, %v9239_v47, %v9248_v31  ;;  %v5364_v52 = vsel %vm5350_vm7, %v9248_v31, %v9249_v40 }
 0x166   :  { %v5380_v14 = vsel %vm5350_vm7, %v9234_v57, %v9243_v30  ;;  %8411 = vmatpush1.bf16.msra.mxu0 %v8410_v45  ;;  %v9257_v7 = vpop.permute.xlu1 %9256  ;;  %v5381_v28 = vsel %vm5350_vm7, %v9243_v30, %v9244_v53  ;;  %5849 = vmatprep.mubr.f32.mxu1 %v11402_v55 }
 0x167   :  { %v8414_v19 = vpack.c.bf16 %v5380_v14, %v5361_v5  ;;  %v9252_v48 = vpop.permute.xlu0 %9251  ;;  %v8412_v15 = vpack.c.bf16 %v5381_v28, %v5362_v50  ;;  %v9258_v20 = vunpack.i.l.bf16 %v9257_v7  ;;  %v9259_v59 = vunpack.i.h.bf16 %v9257_v7 }
 0x168   :  { %v9254_v41 = vunpack.i.h.bf16 %v9252_v48  ;;  %v9253_v54 = vunpack.i.l.bf16 %v9252_v48 }
 0x169   :  { %8413 = vmatprep.subr.bf16.mxu1 %v8412_v15  ;;  %8042 = vmatmul.mubr.msk.f32.vlgmr.msra.gmra.mrb[4].mxu0 %vm288_vm1, %v11077_v12  ;;  %v5365_v62 = vsel %vm5350_vm7, %v9249_v40, %v9258_v20  ;;  %v5366_v25 = vsel %vm5350_vm7, %v9258_v20, %v9259_v59 }
 0x16a   :  { %v5382_v51 = vsel %vm5350_vm7, %v9244_v53, %v9253_v54  ;;  %8415 = vmatpush1.bf16.msra.mxu1 %v8414_v19  ;;  %v9267_v46 = vpop.permute.xlu1 %9266  ;;  %v5383_v49 = vsel %vm5350_vm7, %v9253_v54, %v9254_v41  ;;  %5920 = vmatprep.mubr.f32.mxu0 %v11402_v55 }
 0x16b   :  { %v8418_v27 = vpack.c.bf16 %v5382_v51, %v5363_v1  ;;  %v9262_v3 = vpop.permute.xlu0 %9261  ;;  %v8416_v10 = vpack.c.bf16 %v5383_v49, %v5364_v52  ;;  %v9269_v58 = vunpack.i.h.bf16 %v9267_v46  ;;  %v9268_v60 = vunpack.i.l.bf16 %v9267_v46 }
 0x16c   :  { %v9264_v26 = vunpack.i.h.bf16 %v9262_v3  ;;  %v9263_v39 = vunpack.i.l.bf16 %v9262_v3 }
 0x16d   :  { %8417 = vmatprep.subr.bf16.mxu0 %v8416_v10  ;;  %8043 = vmatmul.mubr.msk.f32.vlgmr.msra.gmra.mrb[4].mxu1 %vm288_vm1, %v11077_v12  ;;  %v5367_v11 = vsel %vm5350_vm7, %v9259_v59, %v9268_v60  ;;  %v5368_v61 = vsel %vm5350_vm7, %v9268_v60, %v9269_v58 }
 0x16e   :  { %v5384_v34 = vsel %vm5350_vm7, %v9254_v41, %v9263_v39  ;;  %8419 = vmatpush1.bf16.msra.mxu0 %v8418_v27  ;;  %v9277_v24 = vpop.permute.xlu1 %9276  ;;  %v5385_v4 = vsel %vm5350_vm7, %v9263_v39, %v9264_v26  ;;  %5991 = vmatprep.mubr.f32.mxu1 %v11402_v55  ;;  %v11152_v41 = vld [vmem:[%s11350_s1 + $0x38] sm:$0xff] }
 0x16f   :  { %v8422_v2 = vpack.c.bf16 %v5384_v34, %v5365_v62  ;;  %v9279_v36 = vunpack.i.h.bf16 %v9277_v24  ;;  %v9278_v13 = vunpack.i.l.bf16 %v9277_v24  ;;  %v9272_v63 = vpop.permute.xlu0 %9271  ;;  %v8420_v9 = vpack.c.bf16 %v5385_v4, %v5366_v25 }
 0x170   :  { %v9274_v29 = vunpack.i.h.bf16 %v9272_v63  ;;  %v9273_v18 = vunpack.i.l.bf16 %v9272_v63 }
 0x171   :  { %v5369_v21 = vsel %vm5350_vm7, %v9269_v58, %v9278_v13  ;;  %8421 = vmatprep.subr.bf16.mxu1 %v8420_v9  ;;  %8044 = vmatmul.mubr.msk.f32.vlgmr.msra.gmra.mrb[6].mxu0 %vm288_vm1, %v11077_v12 }
 0x172   :  { %v5388_v0 = vsel %vm5350_vm7, %v9274_v29, %v9279_v36  ;;  %v5386_v44 = vsel %vm5350_vm7, %v9264_v26, %v9273_v18  ;;  %8423 = vmatpush1.bf16.msra.mxu1 %v8422_v2  ;;  %v9287_v6 = vpop.permute.xlu1 %9286  ;;  %v5387_v35 = vsel %vm5350_vm7, %v9273_v18, %v9274_v29  ;;  %6062 = vmatprep.mubr.f32.mxu0 %v11402_v55 }
 0x173   :  { %v8429_v22 = vpack.c.bf16 %v5388_v0, %v5369_v21  ;;  %v8426_v33 = vpack.c.bf16 %v5386_v44, %v5367_v11  ;;  %v9289_v57 = vunpack.i.h.bf16 %v9287_v6  ;;  %v9288_v37 = vunpack.i.l.bf16 %v9287_v6  ;;  %v9282_v43 = vpop.permute.xlu0 %9281  ;;  %8428 = vmatprep.subr.bf16.mxu1 %v11429_v16 }
 0x174   :  { %v9284_v23 = vunpack.i.h.bf16 %v9282_v43  ;;  %v9283_v47 = vunpack.i.l.bf16 %v9282_v43  ;;  %v8424_v32 = vpack.c.bf16 %v5387_v35, %v5368_v61 }
 0x175   :  { %8045 = vmatmul.mubr.msk.f32.vlgmr.msra.gmra.mrb[6].mxu1 %vm288_vm1, %v11077_v12  ;;  %v6260_v38 = vsel %vm6239_vm8, %v9288_v37, %v9289_v57 }
 0x176   :  { %8425 = vmatprep.subr.bf16.mxu0 %v8424_v32  ;;  %8430 = vmatpush3.bf16.msra.mxu1 %v8429_v22  ;;  %v9297_v42 = vpop.permute.xlu1 %9296  ;;  %v6241_v56 = vsel %vm6239_vm8, %v9283_v47, %v9284_v23 }
 0x177   :  { %8427 = vmatpush1.bf16.msra.mxu0 %v8426_v33  ;;  %v9299_v45 = vunpack.i.h.bf16 %v9297_v42  ;;  %v9292_v8 = vpop.permute.xlu0 %9291  ;;  %v8431_v17 = vpack.c.bf16 %v6260_v38, %v6241_v56  ;;  %8141 = vmatprep.mubr.msk.f32.mxu1 %vm9565_vm2, %v11402_v55  ;;  %v9298_v31 = vunpack.i.l.bf16 %v9297_v42 }
 0x178   :  { %v9293_v53 = vunpack.i.l.bf16 %v9292_v8  ;;  %v9294_v5 = vunpack.i.h.bf16 %v9292_v8 }
 0x179   :  { %v6259_v30 = vsel %vm6239_vm8, %v9299_v45, %v9288_v37  ;;  %8432 = vmatprep.subr.bf16.mxu0 %v8431_v17  ;;  %8142 = vmatmul.mubr.msk.f32.vlgmr.msra.gmra.mrb[8].mxu1 %vm288_vm1, %v11077_v12 }
 0x17a   :  { %v6240_v40 = vsel %vm6239_vm8, %v9293_v53, %v9283_v47  ;;  %v9307_v14 = vpop.permute.xlu1 %9306  ;;  %8046 = vmatmul.mubr.msk.f32.vlgmr.msra.gmra.mrb[8].mxu0 %vm288_vm1, %v11077_v12  ;;  %6454 = vmatprep.mubr.f32.mxu1 %v11402_v55  ;;  %v6242_v48 = vsel %vm6239_vm8, %v9284_v23, %v9294_v5  ;;  %v6243_v20 = vsel %vm6239_vm8, %v9294_v5, %v9298_v31 }
 0x17b   :  { %v8433_v7 = vpack.c.bf16 %v6259_v30, %v6240_v40  ;;  %v9302_v50 = vpop.permute.xlu0 %9301  ;;  %6383 = vmatprep.mubr.f32.mxu0 %v11402_v55  ;;  %v9308_v15 = vunpack.i.l.bf16 %v9307_v14  ;;  %v9309_v54 = vunpack.i.h.bf16 %v9307_v14 }
 0x17c   :  { %v9304_v28 = vunpack.i.h.bf16 %v9302_v50  ;;  %v9303_v19 = vunpack.i.l.bf16 %v9302_v50 }
 0x17d   :  { %8434 = vmatpush1.bf16.msra.mxu0 %v8433_v7  ;;  %v6244_v3 = vsel %vm6239_vm8, %v9298_v31, %v9308_v15  ;;  %v6245_v58 = vsel %vm6239_vm8, %v9308_v15, %v9309_v54 }
 0x17e   :  { %v6261_v12 = vsel %vm6239_vm8, %v9289_v57, %v9303_v19  ;;  %v9317_v1 = vpop.permute.xlu1 %9316  ;;  %v6262_v59 = vsel %vm6239_vm8, %v9303_v19, %v9304_v28 }
 0x17f   :  { %v8437_v51 = vpack.c.bf16 %v6261_v12, %v6242_v48  ;;  %v9312_v46 = vpop.permute.xlu0 %9311  ;;  %v8435_v52 = vpack.c.bf16 %v6262_v59, %v6243_v20  ;;  %v9318_v10 = vunpack.i.l.bf16 %v9317_v1  ;;  %v9319_v26 = vunpack.i.h.bf16 %v9317_v1 }
 0x180   :  { %v9314_v49 = vunpack.i.h.bf16 %v9312_v46  ;;  %v9313_v27 = vunpack.i.l.bf16 %v9312_v46  ;;  %8048 = vmatmul.mubr.msk.f32.vlgmr.msra.gmra.mrb[0].mxu0 %vm288_vm1, %v11152_v41 }
 0x181   :  { %8436 = vmatprep.subr.bf16.mxu1 %v8435_v52  ;;  %6525 = vmatprep.mubr.f32.mxu0 %v11402_v55  ;;  %v6246_v36 = vsel %vm6239_vm8, %v9309_v54, %v9318_v10  ;;  %v6247_v18 = vsel %vm6239_vm8, %v9318_v10, %v9319_v26 }
 0x182   :  { %v6263_v39 = vsel %vm6239_vm8, %v9304_v28, %v9313_v27  ;;  %8438 = vmatpush1.bf16.msra.mxu1 %v8437_v51  ;;  %v9327_v62 = vpop.permute.xlu1 %9326  ;;  %v6264_v60 = vsel %vm6239_vm8, %v9313_v27, %v9314_v49 }
 0x183   :  { %v8441_v34 = vpack.c.bf16 %v6263_v39, %v6244_v3  ;;  %v9322_v24 = vpop.permute.xlu0 %9321  ;;  %v8439_v25 = vpack.c.bf16 %v6264_v60, %v6245_v58  ;;  %v9328_v13 = vunpack.i.l.bf16 %v9327_v62  ;;  %v9329_v63 = vunpack.i.h.bf16 %v9327_v62 }
 0x184   :  { %v9324_v4 = vunpack.i.h.bf16 %v9322_v24  ;;  %v9323_v2 = vunpack.i.l.bf16 %v9322_v24 }
 0x185   :  { %8440 = vmatprep.subr.bf16.mxu0 %v8439_v25  ;;  %8049 = vmatmul.mubr.msk.f32.vlgmr.msra.gmra.mrb[0].mxu1 %vm288_vm1, %v11152_v41  ;;  %v6248_v35 = vsel %vm6239_vm8, %v9319_v26, %v9328_v13  ;;  %v6249_v43 = vsel %vm6239_vm8, %v9328_v13, %v9329_v63 }
 0x186   :  { %v6265_v9 = vsel %vm6239_vm8, %v9314_v49, %v9323_v2  ;;  %8442 = vmatpush1.bf16.msra.mxu0 %v8441_v34  ;;  %v9337_v29 = vpop.permute.xlu1 %9336  ;;  %v6266_v11 = vsel %vm6239_vm8, %v9323_v2, %v9324_v4  ;;  %6596 = vmatprep.mubr.f32.mxu1 %v11402_v55 }
 0x187   :  { %v8445_v21 = vpack.c.bf16 %v6265_v9, %v6246_v36  ;;  %v9332_v61 = vpop.permute.xlu0 %9331  ;;  %v8443_v0 = vpack.c.bf16 %v6266_v11, %v6247_v18  ;;  %v9338_v22 = vunpack.i.l.bf16 %v9337_v29  ;;  %v9339_v33 = vunpack.i.h.bf16 %v9337_v29 }
 0x188   :  { %v9334_v44 = vunpack.i.h.bf16 %v9332_v61  ;;  %v9333_v6 = vunpack.i.l.bf16 %v9332_v61 }
 0x189   :  { %8444 = vmatprep.subr.bf16.mxu1 %v8443_v0  ;;  %8050 = vmatmul.mubr.msk.f32.vlgmr.msra.gmra.mrb[2].mxu0 %vm288_vm1, %v11152_v41  ;;  %v6250_v45 = vsel %vm6239_vm8, %v9329_v63, %v9338_v22  ;;  %v6251_v5 = vsel %vm6239_vm8, %v9338_v22, %v9339_v33 }
 0x18a   :  { %v6267_v57 = vsel %vm6239_vm8, %v9324_v4, %v9333_v6  ;;  %8446 = vmatpush1.bf16.msra.mxu1 %v8445_v21  ;;  %v9347_v37 = vpop.permute.xlu1 %9346  ;;  %v6268_v23 = vsel %vm6239_vm8, %v9333_v6, %v9334_v44  ;;  %6667 = vmatprep.mubr.f32.mxu0 %v11402_v55 }
 0x18b   :  { %v8449_v47 = vpack.c.bf16 %v6267_v57, %v6248_v35  ;;  %v9342_v32 = vpop.permute.xlu0 %9341  ;;  %v8447_v38 = vpack.c.bf16 %v6268_v23, %v6249_v43  ;;  %v9348_v8 = vunpack.i.l.bf16 %v9347_v37  ;;  %v9349_v17 = vunpack.i.h.bf16 %v9347_v37 }
 0x18c   :  { %v9344_v42 = vunpack.i.h.bf16 %v9342_v32  ;;  %v9343_v56 = vunpack.i.l.bf16 %v9342_v32 }
 0x18d   :  { %8448 = vmatprep.subr.bf16.mxu0 %v8447_v38  ;;  %8051 = vmatmul.mubr.msk.f32.vlgmr.msra.gmra.mrb[2].mxu1 %vm288_vm1, %v11152_v41  ;;  %v6252_v19 = vsel %vm6239_vm8, %v9339_v33, %v9348_v8  ;;  %v6253_v1 = vsel %vm6239_vm8, %v9348_v8, %v9349_v17 }
 0x18e   :  { %v6269_v53 = vsel %vm6239_vm8, %v9334_v44, %v9343_v56  ;;  %8450 = vmatpush1.bf16.msra.mxu0 %v8449_v47  ;;  %v9357_v30 = vpop.permute.xlu1 %9356  ;;  %v6270_v31 = vsel %vm6239_vm8, %v9343_v56, %v9344_v42  ;;  %6738 = vmatprep.mubr.f32.mxu1 %v11402_v55 }
 0x18f   :  { %v8453_v40 = vpack.c.bf16 %v6269_v53, %v6250_v45  ;;  %v9352_v14 = vpop.permute.xlu0 %9351  ;;  %v8451_v7 = vpack.c.bf16 %v6270_v31, %v6251_v5  ;;  %v9358_v48 = vunpack.i.l.bf16 %v9357_v30  ;;  %v9359_v15 = vunpack.i.h.bf16 %v9357_v30 }
 0x190   :  { %v9354_v50 = vunpack.i.h.bf16 %v9352_v14  ;;  %v9353_v28 = vunpack.i.l.bf16 %v9352_v14 }
 0x191   :  { %8452 = vmatprep.subr.bf16.mxu1 %v8451_v7  ;;  %8052 = vmatmul.mubr.msk.f32.vlgmr.msra.gmra.mrb[4].mxu0 %vm288_vm1, %v11152_v41  ;;  %v6254_v27 = vsel %vm6239_vm8, %v9349_v17, %v9358_v48  ;;  %v6255_v62 = vsel %vm6239_vm8, %v9358_v48, %v9359_v15 }
 0x192   :  { %v6271_v54 = vsel %vm6239_vm8, %v9344_v42, %v9353_v28  ;;  %8454 = vmatpush1.bf16.msra.mxu1 %v8453_v40  ;;  %v9367_v12 = vpop.permute.xlu1 %9366  ;;  %v6272_v20 = vsel %vm6239_vm8, %v9353_v28, %v9354_v50  ;;  %6809 = vmatprep.mubr.f32.mxu0 %v11402_v55 }
 0x193   :  { %v8457_v59 = vpack.c.bf16 %v6271_v54, %v6252_v19  ;;  %v9362_v51 = vpop.permute.xlu0 %9361  ;;  %v8455_v46 = vpack.c.bf16 %v6272_v20, %v6253_v1  ;;  %v9369_v3 = vunpack.i.h.bf16 %v9367_v12  ;;  %v9368_v10 = vunpack.i.l.bf16 %v9367_v12 }
 0x194   :  { %v9364_v52 = vunpack.i.h.bf16 %v9362_v51  ;;  %v9363_v49 = vunpack.i.l.bf16 %v9362_v51 }
 0x195   :  { %8456 = vmatprep.subr.bf16.mxu0 %v8455_v46  ;;  %8053 = vmatmul.mubr.msk.f32.vlgmr.msra.gmra.mrb[4].mxu1 %vm288_vm1, %v11152_v41  ;;  %v6256_v13 = vsel %vm6239_vm8, %v9359_v15, %v9368_v10  ;;  %v6257_v9 = vsel %vm6239_vm8, %v9368_v10, %v9369_v3 }
 0x196   :  { %v6273_v26 = vsel %vm6239_vm8, %v9354_v50, %v9363_v49  ;;  %8458 = vmatpush1.bf16.msra.mxu0 %v8457_v59  ;;  %v9377_v39 = vpop.permute.xlu1 %9376  ;;  %v6274_v58 = vsel %vm6239_vm8, %v9363_v49, %v9364_v52  ;;  %6880 = vmatprep.mubr.f32.mxu1 %v11402_v55  ;;  %v11227_v50 = vld [vmem:[%s11350_s1 + $0x40] sm:$0xff] }
 0x197   :  { %v8461_v60 = vpack.c.bf16 %v6273_v26, %v6254_v27  ;;  %v9379_v34 = vunpack.i.h.bf16 %v9377_v39  ;;  %v9378_v24 = vunpack.i.l.bf16 %v9377_v39  ;;  %v9372_v25 = vpop.permute.xlu0 %9371  ;;  %v8459_v4 = vpack.c.bf16 %v6274_v58, %v6255_v62 }
 0x198   :  { %v9374_v2 = vunpack.i.h.bf16 %v9372_v25  ;;  %v9373_v36 = vunpack.i.l.bf16 %v9372_v25 }
 0x199   :  { %v6258_v63 = vsel %vm6239_vm8, %v9369_v3, %v9378_v24  ;;  %8460 = vmatprep.subr.bf16.mxu1 %v8459_v4  ;;  %8054 = vmatmul.mubr.msk.f32.vlgmr.msra.gmra.mrb[6].mxu0 %vm288_vm1, %v11152_v41 }
 0x19a   :  { %v6277_v29 = vsel %vm6239_vm8, %v9374_v2, %v9379_v34  ;;  %v6275_v18 = vsel %vm6239_vm8, %v9364_v52, %v9373_v36  ;;  %8462 = vmatpush1.bf16.msra.mxu1 %v8461_v60  ;;  %v9387_v11 = vpop.permute.xlu1 %9386  ;;  %v6276_v21 = vsel %vm6239_vm8, %v9373_v36, %v9374_v2  ;;  %6951 = vmatprep.mubr.f32.mxu0 %v11402_v55 }
 0x19b   :  { %v8468_v61 = vpack.c.bf16 %v6277_v29, %v6258_v63  ;;  %v8465_v0 = vpack.c.bf16 %v6275_v18, %v6256_v13  ;;  %v9389_v44 = vunpack.i.h.bf16 %v9387_v11  ;;  %v9388_v6 = vunpack.i.l.bf16 %v9387_v11  ;;  %v9382_v35 = vpop.permute.xlu0 %9381  ;;  %8467 = vmatprep.subr.bf16.mxu1 %v11429_v16 }
 0x19c   :  { %v9384_v22 = vunpack.i.h.bf16 %v9382_v35  ;;  %v9383_v33 = vunpack.i.l.bf16 %v9382_v35  ;;  %v8463_v57 = vpack.c.bf16 %v6276_v21, %v6257_v9 }
 0x19d   :  { %8055 = vmatmul.mubr.msk.f32.vlgmr.msra.gmra.mrb[6].mxu1 %vm288_vm1, %v11152_v41  ;;  %v7149_v37 = vsel %vm7128_vm9, %v9388_v6, %v9389_v44 }
 0x19e   :  { %8464 = vmatprep.subr.bf16.mxu0 %v8463_v57  ;;  %8469 = vmatpush3.bf16.msra.mxu1 %v8468_v61  ;;  %v9397_v43 = vpop.permute.xlu1 %9396  ;;  %v7130_v23 = vsel %vm7128_vm9, %v9383_v33, %v9384_v22 }
 0x19f   :  { %8466 = vmatpush1.bf16.msra.mxu0 %v8465_v0  ;;  %v9399_v47 = vunpack.i.h.bf16 %v9397_v43  ;;  %v9392_v32 = vpop.permute.xlu0 %9391  ;;  %v8470_v38 = vpack.c.bf16 %v7149_v37, %v7130_v23  ;;  %8148 = vmatprep.mubr.msk.f32.mxu1 %vm9565_vm2, %v11402_v55  ;;  %v9398_v8 = vunpack.i.l.bf16 %v9397_v43 }
 0x1a0   :  { %v9393_v42 = vunpack.i.l.bf16 %v9392_v32  ;;  %v9394_v45 = vunpack.i.h.bf16 %v9392_v32 }
 0x1a1   :  { %v7148_v56 = vsel %vm7128_vm9, %v9399_v47, %v9388_v6  ;;  %8471 = vmatprep.subr.bf16.mxu0 %v8470_v38  ;;  %8149 = vmatmul.mubr.msk.f32.vlgmr.msra.gmra.mrb[8].mxu1 %vm288_vm1, %v11152_v41 }
 0x1a2   :  { %v7129_v17 = vsel %vm7128_vm9, %v9393_v42, %v9383_v33  ;;  %v9407_v53 = vpop.permute.xlu1 %9406  ;;  %8056 = vmatmul.mubr.msk.f32.vlgmr.msra.gmra.mrb[8].mxu0 %vm288_vm1, %v11152_v41  ;;  %7343 = vmatprep.mubr.f32.mxu1 %v11402_v55  ;;  %v7131_v14 = vsel %vm7128_vm9, %v9384_v22, %v9394_v45  ;;  %v7132_v48 = vsel %vm7128_vm9, %v9394_v45, %v9398_v8 }
 0x1a3   :  { %v8472_v30 = vpack.c.bf16 %v7148_v56, %v7129_v17  ;;  %v9402_v5 = vpop.permute.xlu0 %9401  ;;  %7272 = vmatprep.mubr.f32.mxu0 %v11402_v55  ;;  %v9408_v7 = vunpack.i.l.bf16 %v9407_v53  ;;  %v9409_v28 = vunpack.i.h.bf16 %v9407_v53 }
 0x1a4   :  { %v9404_v31 = vunpack.i.h.bf16 %v9402_v5  ;;  %v9403_v40 = vunpack.i.l.bf16 %v9402_v5 }
 0x1a5   :  { %8473 = vmatpush1.bf16.msra.mxu0 %v8472_v30  ;;  %v7133_v51 = vsel %vm7128_vm9, %v9398_v8, %v9408_v7  ;;  %v7134_v3 = vsel %vm7128_vm9, %v9408_v7, %v9409_v28 }
 0x1a6   :  { %v7150_v41 = vsel %vm7128_vm9, %v9389_v44, %v9403_v40  ;;  %v9417_v19 = vpop.permute.xlu1 %9416  ;;  %v7151_v15 = vsel %vm7128_vm9, %v9403_v40, %v9404_v31 }
 0x1a7   :  { %v8476_v54 = vpack.c.bf16 %v7150_v41, %v7131_v14  ;;  %v9412_v12 = vpop.permute.xlu0 %9411  ;;  %v8474_v1 = vpack.c.bf16 %v7151_v15, %v7132_v48  ;;  %v9418_v46 = vunpack.i.l.bf16 %v9417_v19  ;;  %v9419_v52 = vunpack.i.h.bf16 %v9417_v19 }
 0x1a8   :  { %v9414_v20 = vunpack.i.h.bf16 %v9412_v12  ;;  %v9413_v59 = vunpack.i.l.bf16 %v9412_v12  ;;  %8058 = vmatmul.mubr.msk.f32.vlgmr.msra.gmra.mrb[0].mxu0 %vm288_vm1, %v11227_v50 }
 0x1a9   :  { %8475 = vmatprep.subr.bf16.mxu1 %v8474_v1  ;;  %7414 = vmatprep.mubr.f32.mxu0 %v11402_v55  ;;  %v7135_v34 = vsel %vm7128_vm9, %v9409_v28, %v9418_v46  ;;  %v7136_v36 = vsel %vm7128_vm9, %v9418_v46, %v9419_v52 }
 0x1aa   :  { %v7152_v49 = vsel %vm7128_vm9, %v9404_v31, %v9413_v59  ;;  %8477 = vmatpush1.bf16.msra.mxu1 %v8476_v54  ;;  %v9427_v27 = vpop.permute.xlu1 %9426  ;;  %v7153_v10 = vsel %vm7128_vm9, %v9413_v59, %v9414_v20 }
 0x1ab   :  { %v8480_v26 = vpack.c.bf16 %v7152_v49, %v7133_v51  ;;  %v9422_v39 = vpop.permute.xlu0 %9421  ;;  %v8478_v62 = vpack.c.bf16 %v7153_v10, %v7134_v3  ;;  %v9428_v24 = vunpack.i.l.bf16 %v9427_v27  ;;  %v9429_v25 = vunpack.i.h.bf16 %v9427_v27 }
 0x1ac   :  { %v9424_v58 = vunpack.i.h.bf16 %v9422_v39  ;;  %v9423_v60 = vunpack.i.l.bf16 %v9422_v39 }
 0x1ad   :  { %8059 = vmatmul.mubr.msk.f32.vlgmr.msra.gmra.mrb[0].mxu1 %vm288_vm1, %v11227_v50  ;;  %8479 = vmatprep.subr.bf16.mxu0 %v8478_v62  ;;  %v7137_v21 = vsel %vm7128_vm9, %v9419_v52, %v9428_v24  ;;  %v7138_v35 = vsel %vm7128_vm9, %v9428_v24, %v9429_v25 }
 0x1ae   :  { %v7154_v4 = vsel %vm7128_vm9, %v9414_v20, %v9423_v60  ;;  %8481 = vmatpush1.bf16.msra.mxu0 %v8480_v26  ;;  %v9437_v2 = vpop.permute.xlu1 %9436  ;;  %v7155_v13 = vsel %vm7128_vm9, %v9423_v60, %v9424_v58  ;;  %7485 = vmatprep.mubr.f32.mxu1 %v11402_v55 }
 0x1af   :  { %v8484_v63 = vpack.c.bf16 %v7154_v4, %v7135_v34  ;;  %v9432_v9 = vpop.permute.xlu0 %9431  ;;  %v8482_v29 = vpack.c.bf16 %v7155_v13, %v7136_v36  ;;  %v9438_v61 = vunpack.i.l.bf16 %v9437_v2  ;;  %v9439_v0 = vunpack.i.h.bf16 %v9437_v2 }
 0x1b0   :  { %v9434_v18 = vunpack.i.h.bf16 %v9432_v9  ;;  %v9433_v11 = vunpack.i.l.bf16 %v9432_v9 }
 0x1b1   :  { %8060 = vmatmul.mubr.msk.f32.vlgmr.msra.gmra.mrb[2].mxu0 %vm288_vm1, %v11227_v50  ;;  %8483 = vmatprep.subr.bf16.mxu1 %v8482_v29  ;;  %v7139_v47 = vsel %vm7128_vm9, %v9429_v25, %v9438_v61  ;;  %v7140_v45 = vsel %vm7128_vm9, %v9438_v61, %v9439_v0 }
 0x1b2   :  { %v7156_v44 = vsel %vm7128_vm9, %v9424_v58, %v9433_v11  ;;  %8485 = vmatpush1.bf16.msra.mxu1 %v8484_v63  ;;  %v9447_v6 = vpop.permute.xlu1 %9446  ;;  %v7157_v22 = vsel %vm7128_vm9, %v9433_v11, %v9434_v18  ;;  %7556 = vmatprep.mubr.f32.mxu0 %v11402_v55 }
 0x1b3   :  { %v8488_v33 = vpack.c.bf16 %v7156_v44, %v7137_v21  ;;  %v9442_v57 = vpop.permute.xlu0 %9441  ;;  %v8486_v37 = vpack.c.bf16 %v7157_v22, %v7138_v35  ;;  %v9448_v32 = vunpack.i.l.bf16 %v9447_v6  ;;  %v9449_v38 = vunpack.i.h.bf16 %v9447_v6 }
 0x1b4   :  { %v9444_v43 = vunpack.i.h.bf16 %v9442_v57  ;;  %v9443_v23 = vunpack.i.l.bf16 %v9442_v57 }
 0x1b5   :  { %8061 = vmatmul.mubr.msk.f32.vlgmr.msra.gmra.mrb[2].mxu1 %vm288_vm1, %v11227_v50  ;;  %8487 = vmatprep.subr.bf16.mxu0 %v8486_v37  ;;  %v7141_v40 = vsel %vm7128_vm9, %v9439_v0, %v9448_v32  ;;  %v7142_v19 = vsel %vm7128_vm9, %v9448_v32, %v9449_v38 }
 0x1b6   :  { %v7158_v42 = vsel %vm7128_vm9, %v9434_v18, %v9443_v23  ;;  %8489 = vmatpush1.bf16.msra.mxu0 %v8488_v33  ;;  %v9457_v56 = vpop.permute.xlu1 %9456  ;;  %v7159_v8 = vsel %vm7128_vm9, %v9443_v23, %v9444_v43  ;;  %7627 = vmatprep.mubr.f32.mxu1 %v11402_v55 }
 0x1b7   :  { %v8492_v17 = vpack.c.bf16 %v7158_v42, %v7139_v47  ;;  %v9452_v53 = vpop.permute.xlu0 %9451  ;;  %v8490_v30 = vpack.c.bf16 %v7159_v8, %v7140_v45  ;;  %v9458_v14 = vunpack.i.l.bf16 %v9457_v56  ;;  %v9459_v7 = vunpack.i.h.bf16 %v9457_v56 }
 0x1b8   :  { %v9454_v5 = vunpack.i.h.bf16 %v9452_v53  ;;  %v9453_v31 = vunpack.i.l.bf16 %v9452_v53 }
 0x1b9   :  { %8062 = vmatmul.mubr.msk.f32.vlgmr.msra.gmra.mrb[4].mxu0 %vm288_vm1, %v11227_v50  ;;  %8491 = vmatprep.subr.bf16.mxu1 %v8490_v30  ;;  %v7143_v59 = vsel %vm7128_vm9, %v9449_v38, %v9458_v14  ;;  %v7144_v27 = vsel %vm7128_vm9, %v9458_v14, %v9459_v7 }
 0x1ba   :  { %v7160_v28 = vsel %vm7128_vm9, %v9444_v43, %v9453_v31  ;;  %8493 = vmatpush1.bf16.msra.mxu1 %v8492_v17  ;;  %v9467_v41 = vpop.permute.xlu1 %9466  ;;  %v7161_v48 = vsel %vm7128_vm9, %v9453_v31, %v9454_v5  ;;  %7698 = vmatprep.mubr.f32.mxu0 %v11402_v55 }
 0x1bb   :  { %v8496_v15 = vpack.c.bf16 %v7160_v28, %v7141_v40  ;;  %v9462_v54 = vpop.permute.xlu0 %9461  ;;  %v8494_v12 = vpack.c.bf16 %v7161_v48, %v7142_v19  ;;  %v9469_v51 = vunpack.i.h.bf16 %v9467_v41  ;;  %v9468_v46 = vunpack.i.l.bf16 %v9467_v41 }
 0x1bc   :  { %v9464_v1 = vunpack.i.h.bf16 %v9462_v54  ;;  %v9463_v20 = vunpack.i.l.bf16 %v9462_v54 }
 0x1bd   :  { %8063 = vmatmul.mubr.msk.f32.vlgmr.msra.gmra.mrb[4].mxu1 %vm288_vm1, %v11227_v50  ;;  %8495 = vmatprep.subr.bf16.mxu0 %v8494_v12  ;;  %v7145_v24 = vsel %vm7128_vm9, %v9459_v7, %v9468_v46  ;;  %v7146_v4 = vsel %vm7128_vm9, %v9468_v46, %v9469_v51 }
 0x1be   :  { %v7162_v52 = vsel %vm7128_vm9, %v9454_v5, %v9463_v20  ;;  %8497 = vmatpush1.bf16.msra.mxu0 %v8496_v15  ;;  %v9477_v49 = vpop.permute.xlu1 %9476  ;;  %v7163_v3 = vsel %vm7128_vm9, %v9463_v20, %v9464_v1  ;;  %7769 = vmatprep.mubr.f32.mxu1 %v11402_v55 }
 0x1bf   :  { %v8500_v10 = vpack.c.bf16 %v7162_v52, %v7143_v59  ;;  %v9479_v26 = vunpack.i.h.bf16 %v9477_v49  ;;  %v9478_v39 = vunpack.i.l.bf16 %v9477_v49  ;;  %v9472_v62 = vpop.permute.xlu0 %9471  ;;  %v8498_v58 = vpack.c.bf16 %v7163_v3, %v7144_v27 }
 0x1c0   :  { %v9474_v60 = vunpack.i.h.bf16 %v9472_v62  ;;  %v9473_v34 = vunpack.i.l.bf16 %v9472_v62 }
 0x1c1   :  { %v7147_v25 = vsel %vm7128_vm9, %v9469_v51, %v9478_v39  ;;  %8064 = vmatmul.mubr.msk.f32.vlgmr.msra.gmra.mrb[6].mxu0 %vm288_vm1, %v11227_v50  ;;  %8499 = vmatprep.subr.bf16.mxu1 %v8498_v58 }
 0x1c2   :  { %v7166_v2 = vsel %vm7128_vm9, %v9474_v60, %v9479_v26  ;;  %v7164_v36 = vsel %vm7128_vm9, %v9464_v1, %v9473_v34  ;;  %8501 = vmatpush1.bf16.msra.mxu1 %v8500_v10  ;;  %v7165_v13 = vsel %vm7128_vm9, %v9473_v34, %v9474_v60  ;;  %7840 = vmatprep.mubr.f32.mxu0 %v11402_v55 }
 0x1c3   :  { %v8507_v63 = vpack.c.bf16 %v7166_v2, %v7147_v25  ;;  %v8504_v9 = vpack.c.bf16 %v7164_v36, %v7145_v24  ;;  %v8502_v29 = vpack.c.bf16 %v7165_v13, %v7146_v4  ;;  %8506 = vmatprep.subr.bf16.mxu1 %v11429_v16 }
 0x1c5   :  { %8065 = vmatmul.mubr.msk.f32.vlgmr.msra.gmra.mrb[6].mxu1 %vm288_vm1, %v11227_v50  ;;  %8503 = vmatprep.subr.bf16.mxu0 %v8502_v29 }
 0x1c6   :  { %8505 = vmatpush1.bf16.msra.mxu0 %v8504_v9  ;;  %8508 = vmatpush3.bf16.msra.mxu1 %v8507_v63 }
 0x1c7   :  { %8155 = vmatprep.mubr.msk.f32.mxu1 %vm9565_vm2, %v11402_v55 }
 0x1c9   :  { %8066 = vmatmul.mubr.msk.f32.vlgmr.msra.gmra.mrb[8].mxu0 %vm288_vm1, %v11227_v50  ;;  %8156 = vmatmul.mubr.msk.f32.vlgmr.msra.gmra.mrb[8].mxu1 %vm288_vm1, %v11227_v50 }
 0x27b   :  { %v7274_v18 = vpop.f32.mrb[0].mxu0 }
 0x27c   :  { %9480 = vtanh.f32 %v7274_v18  ;;  %v7276_v11 = vpop.f32.mrb[1].mxu0 }
 0x27d   :  { %9482 = vtanh.f32 %v7276_v11 }
 0x280   :  { %v7345_v16 = vpop.f32.mrb[0].mxu1 }
 0x281   :  { %9484 = vtanh.f32 %v7345_v16  ;;  %v7347_v21 = vpop.f32.mrb[1].mxu1 }
 0x282   :  { %9486 = vtanh.f32 %v7347_v21 }
 0x284   :  { %v7416_v61 = vpop.f32.mrb[2].mxu0 }
 0x285   :  { %9488 = vtanh.f32 %v7416_v61  ;;  %v7418_v0 = vpop.f32.mrb[3].mxu0 }
 0x286   :  { %v9481_v44 = vpop.eup %9480  ;;  %9490 = vtanh.f32 %v7418_v0 }
 0x287   :  { %v9483_v55 = vpop.eup %9482  ;;  %7955 = vst [vmem:[%s11351_s2] sm:$0xff] %v9481_v44 }
 0x288   :  { %7956 = vst [vmem:[%s11351_s2 + $0x8] sm:$0xff] %v9483_v55  ;;  %v7487_v50 = vpop.f32.mrb[2].mxu1 }
 0x289   :  { %9492 = vtanh.f32 %v7487_v50  ;;  %v7489_v6 = vpop.f32.mrb[3].mxu1 }
 0x28a   :  { %9494 = vtanh.f32 %v7489_v6 }
 0x28b   :  { %v9485_v35 = vpop.eup %9484 }
 0x28c   :  { %v9487_v22 = vpop.eup %9486  ;;  %7957 = vst [vmem:[%s11351_s2 + $0x10] sm:$0xff] %v9485_v35  ;;  %v7558_v33 = vpop.f32.mrb[4].mxu0 }
 0x28d   :  { %7958 = vst [vmem:[%s11351_s2 + $0x18] sm:$0xff] %v9487_v22  ;;  %9496 = vtanh.f32 %v7558_v33  ;;  %v7560_v57 = vpop.f32.mrb[5].mxu0 }
 0x28e   :  { %9498 = vtanh.f32 %v7560_v57 }
 0x28f   :  { %v9489_v37 = vpop.eup %9488 }
 0x290   :  { %v9491_v43 = vpop.eup %9490  ;;  %7959 = vst [vmem:[%s11351_s2 + $0x20] sm:$0xff] %v9489_v37  ;;  %v7629_v23 = vpop.f32.mrb[4].mxu1 }
 0x291   :  { %7960 = vst [vmem:[%s11351_s2 + $0x28] sm:$0xff] %v9491_v43  ;;  %9500 = vtanh.f32 %v7629_v23  ;;  %v7631_v47 = vpop.f32.mrb[5].mxu1 }
 0x292   :  { %9502 = vtanh.f32 %v7631_v47 }
 0x293   :  { %v9493_v32 = vpop.eup %9492 }
 0x294   :  { %v9495_v38 = vpop.eup %9494  ;;  %7961 = vst [vmem:[%s11351_s2 + $0x30] sm:$0xff] %v9493_v32  ;;  %v7700_v42 = vpop.f32.mrb[6].mxu0 }
 0x295   :  { %7962 = vst [vmem:[%s11351_s2 + $0x38] sm:$0xff] %v9495_v38  ;;  %9504 = vtanh.f32 %v7700_v42  ;;  %v7702_v56 = vpop.f32.mrb[7].mxu0 }
 0x296   :  { %9506 = vtanh.f32 %v7702_v56 }
 0x297   :  { %v9497_v45 = vpop.eup %9496 }
 0x298   :  { %v9499_v8 = vpop.eup %9498  ;;  %7963 = vst [vmem:[%s11351_s2 + $0x40] sm:$0xff] %v9497_v45  ;;  %v7771_v17 = vpop.f32.mrb[6].mxu1 }
 0x299   :  { %7964 = vst [vmem:[%s11351_s2 + $0x48] sm:$0xff] %v9499_v8  ;;  %9508 = vtanh.f32 %v7771_v17  ;;  %v7773_v53 = vpop.f32.mrb[7].mxu1 }
 0x29a   :  { %9510 = vtanh.f32 %v7773_v53 }
 0x29b   :  { %v9501_v30 = vpop.eup %9500 }
 0x29c   :  { %v9503_v5 = vpop.eup %9502  ;;  %7965 = vst [vmem:[%s11351_s2 + $0x50] sm:$0xff] %v9501_v30  ;;  %v7842_v31 = vpop.f32.mrb[8].mxu0 }
 0x29d   :  { %v7913_v40 = vpop.f32.mrb[8].mxu1  ;;  %7966 = vst [vmem:[%s11351_s2 + $0x58] sm:$0xff] %v9503_v5  ;;  %9512 = vtanh.f32 %v7842_v31  ;;  %v7844_v14 = vpop.f32.mrb[9].mxu0 }
 0x29e   :  { %v8157_v7 = vpop.f32.mrb[9].mxu1  ;;  %9514 = vtanh.f32 %v7913_v40 }
 0x29f   :  { %v9505_v28 = vpop.eup %9504  ;;  %9516 = vtanh.f32 %v7844_v14 }
 0x2a0   :  { %v9507_v41 = vpop.eup %9506  ;;  %7967 = vst [vmem:[%s11351_s2 + $0x60] sm:$0xff] %v9505_v28 }
 0x2a1   :  { %7968 = vst [vmem:[%s11351_s2 + $0x68] sm:$0xff] %v9507_v41 }
 0x2a3   :  { %v9509_v19 = vpop.eup %9508 }
 0x2a4   :  { %v9511_v48 = vpop.eup %9510  ;;  %7969 = vst [vmem:[%s11351_s2 + $0x70] sm:$0xff] %v9509_v19 }
 0x2a5   :  { %7970 = vst [vmem:[%s11351_s2 + $0x78] sm:$0xff] %v9511_v48 }
 0x2a7   :  { %v9513_v15 = vpop.eup %9512 }
 0x2a8   :  { %v9515_v54 = vpop.eup %9514  ;;  %7971 = vst [vmem:[%s11351_s2 + $0x80] sm:$0xff] %v9513_v15 }
 0x2a9   :  { %v9517_v12 = vpop.eup %9516  ;;  %7973 = vst [vmem:[%s11351_s2 + $0x90] sm:$0xff] %v9515_v54 }
 0x2aa   :  { %7972 = vst [vmem:[%s11351_s2 + $0x88] sm:$0xff] %v9517_v12 }

</bundles_post_ra>
